<compile_context>
chip_gen: v7x
topology: tpu7x:2x2x1
jax: 0.10.0
libtpu: 0.0.40
codegen_flags: <defaults>
</compile_context>

<pallas_src>
import jax
import jax.numpy as jnp
from jax.experimental import pallas as pl
from jax.experimental.pallas import tpu as pltpu

PATCH = 4
P_PAD = 128          # im2col patch dim zero-padded to a full 128-lane tile
PARAM_NAMES = ("w_emb", "b_emb", "ln1_g", "ln1_b", "w_qkv", "b_qkv",
               "wo", "bo", "ln2_g", "ln2_b", "w1", "b1", "w2", "b2",
               "lnf_g", "lnf_b", "wh", "bh")


# ----------------------------- kernel -----------------------------------------


def _layernorm(x, g, b, eps=1e-5):
    mu = jnp.mean(x, axis=-1, keepdims=True)
    var = jnp.mean((x - mu) ** 2, axis=-1, keepdims=True)
    return (x - mu) * jax.lax.rsqrt(var + eps) * g + b


def fused_image_kernel(patches_ref,
                       w_emb_ref, b_emb_ref, ln1_g_ref, ln1_b_ref,
                       w_qkv_ref, b_qkv_ref,
                       wo_ref, bo_ref, ln2_g_ref, ln2_b_ref,
                       w1_ref, b1_ref, w2_ref, b2_ref,
                       lnf_g_ref, lnf_b_ref, wh_ref, bh_ref,
                       out_ref):
    """One grid step = one batch element: patch embed -> LN1 -> fused QKV ->
    full softmax attention -> out-proj + residual -> LN2 -> GELU MLP + residual
    -> LNf -> lane-dense 1-channel seg head row."""
    D = w_emb_ref.shape[-1]

    # Patch embedding (K = 128 lanes thanks to zero padding) + LN1.
    x = jnp.dot(patches_ref[...], w_emb_ref[...],
                preferred_element_type=jnp.float32) + b_emb_ref[...]      # (N, D) f32
    h = _layernorm(x, ln1_g_ref[...], ln1_b_ref[...])

    # Fused QKV projection (384 output lanes).
    qkv = jnp.dot(h.astype(jnp.bfloat16), w_qkv_ref[...],
                  preferred_element_type=jnp.float32) + b_qkv_ref[...]    # (N, 3D)
    q = qkv[:, :D].astype(jnp.bfloat16)
    k = qkv[:, D:2 * D].astype(jnp.bfloat16)
    v = qkv[:, 2 * D:].astype(jnp.bfloat16)

    # Full softmax attention -- whole per-batch K|V stays in VMEM, no kv tiling,
    # no online-softmax rescale path.
    s = jax.lax.dot_general(q, k, (((1,), (1,)), ((), ())),
                            preferred_element_type=jnp.float32)           # (N, N)
    s = s * (1.0 / float(D) ** 0.5)
    m = jnp.max(s, axis=-1, keepdims=True)
    p = jnp.exp(s - m)
    denom = jnp.sum(p, axis=-1, keepdims=True)
    attn = jnp.dot(p.astype(jnp.bfloat16), v,
                   preferred_element_type=jnp.float32)                    # (N, D)
    attn = attn * pl.reciprocal(denom, approx=True)

    # Attention out-proj + residual.
    x = x + jnp.dot(attn.astype(jnp.bfloat16), wo_ref[...],
                    preferred_element_type=jnp.float32) + bo_ref[...]

    # MLP block.
    h = _layernorm(x, ln2_g_ref[...], ln2_b_ref[...])
    h = jnp.dot(h.astype(jnp.bfloat16), w1_ref[...],
                preferred_element_type=jnp.float32) + b1_ref[...]
    # TODO(synk): PyTorch nn.GELU defaults to exact erf; tanh approximation used.
    h = jax.nn.gelu(h, approximate=True)
    x = x + jnp.dot(h.astype(jnp.bfloat16), w2_ref[...],
                    preferred_element_type=jnp.float32) + b2_ref[...]

    # Final LN + 1-channel seg head emitted as a lane-dense (1, N) row.
    x = _layernorm(x, lnf_g_ref[...], lnf_b_ref[...])
    seg = jax.lax.dot_general(wh_ref[...], x.astype(jnp.bfloat16),
                              (((1,), (1,)), ((), ())),
                              preferred_element_type=jnp.float32) + bh_ref[...]
    out_ref[...] = seg.astype(out_ref.dtype)


# ----------------------------- wrapper -----------------------------------------


def _full_spec(arr):
    nd = arr.ndim
    return pl.BlockSpec(arr.shape, lambda b, _nd=nd: (0,) * _nd)


def init_params(key, in_chans=3, embed_dim=128, mlp_ratio=4):
    P = in_chans * PATCH * PATCH
    assert P <= P_PAD
    D = embed_dim
    Dm = D * mlp_ratio
    ks = jax.random.split(key, 6)

    def nrm(k, shape, scale=0.02):
        return (scale * jax.random.normal(k, shape, dtype=jnp.float32)).astype(
            jnp.bfloat16)

    zeros = lambda s: jnp.zeros(s, jnp.float32)
    ones = lambda s: jnp.ones(s, jnp.float32)

    # Zero-pad the patch-embed rows so the im2col K dim is a full 128-lane tile.
    w_emb = jnp.zeros((P_PAD, D), jnp.bfloat16).at[:P, :].set(nrm(ks[0], (P, D)))

    return {
        "w_emb": w_emb, "b_emb": zeros((1, D)),
        "ln1_g": ones((1, D)), "ln1_b": zeros((1, D)),
        "w_qkv": nrm(ks[1], (D, 3 * D)), "b_qkv": zeros((1, 3 * D)),
        "wo": nrm(ks[2], (D, D)), "bo": zeros((1, D)),
        "ln2_g": ones((1, D)), "ln2_b": zeros((1, D)),
        "w1": nrm(ks[3], (D, Dm)), "b1": zeros((1, Dm)),
        "w2": nrm(ks[4], (Dm, D)), "b2": zeros((1, D)),
        "lnf_g": ones((1, D)), "lnf_b": zeros((1, D)),
        "wh": nrm(ks[5], (1, D)), "bh": zeros((1, 1)),
    }


@jax.jit
def image_model_forward(frame, params):
    """frame: NCHW (B, C, H, W) float32 -> seg logits NCHW (B, 1, H, W)."""
    B, C, H, W = frame.shape
    Hp, Wp = H // PATCH, W // PATCH
    N = Hp * Wp
    P = C * PATCH * PATCH
    D = params["w_emb"].shape[1]
    Dm = params["w1"].shape[1]

    assert N % 128 == 0, "token count must fill the 128-lane output row"
    # TODO(synk): for very large images (N >> 2048) reintroduce q/kv tiling; the
    # fully fused per-batch kernel assumes the whole sequence fits in VMEM.
    assert N <= 2048

    # im2col for the stride-4 patch embedding, padded to a 128-lane K dim (glue;
    # all matmuls live in the kernel).
    # TODO(synk): feed NHWC row strips straight into the kernel BlockSpec to drop
    # this extra HBM pass over the frame.
    x = frame.reshape(B, C, Hp, PATCH, Wp, PATCH)
    x = x.transpose(0, 2, 4, 1, 3, 5)                  # (B, Hp, Wp, C, ph, pw)
    patches = x.reshape(B, N, P).astype(jnp.bfloat16)
    patches = jnp.pad(patches, ((0, 0), (0, 0), (0, P_PAD - P)))

    plist = [params[n] for n in PARAM_NAMES]

    flops = int(B * 2 * N * (P_PAD * D + 3 * D * D + 2 * N * D + D * D
                             + 2 * D * Dm + D))
    transcendentals = int(B * (N * N + N * Dm))
    bytes_accessed = int(B * (N * P_PAD * 2 + N * 4)
                         + sum(a.size * a.dtype.itemsize for a in plist))
    cost = pl.CostEstimate(flops=flops, transcendentals=transcendentals,
                           bytes_accessed=bytes_accessed)

    out = pl.pallas_call(
        fused_image_kernel,
        out_shape=jax.ShapeDtypeStruct((B, 1, N), jnp.float32),
        grid_spec=pltpu.PrefetchScalarGridSpec(
            num_scalar_prefetch=0,
            grid=(B,),
            in_specs=[pl.BlockSpec((None, N, P_PAD), lambda b: (b, 0, 0))]
                     + [_full_spec(a) for a in plist],
            out_specs=pl.BlockSpec((None, 1, N), lambda b: (b, 0, 0)),
        ),
        compiler_params=pltpu.CompilerParams(
            dimension_semantics=("parallel",),     # v7x: one batch per TensorCore
            vmem_limit_bytes=16 * 1024 * 1024,     # working set ~1.5 MiB; safe on v7x
        ),
        cost_estimate=cost,
    )(patches, *plist)

    seg = out.reshape(B, 1, Hp, Wp)
    # Final upsample to input resolution (F.interpolate(..., mode='bilinear') glue).
    seg = jax.image.resize(seg, (B, 1, H, W), method="bilinear")
    return seg


# ----------------------------- main --------------------------------------------

if __name__ == "__main__":
    key = jax.random.PRNGKey(0)
    k_frame, k_params = jax.random.split(key)

    B, C, H, W = 2, 3, 64, 64            # small "trainsize" = 64 -> N = 256 tokens
    frame = jax.random.normal(k_frame, (B, C, H, W), dtype=jnp.float32)

    params = init_params(k_params, in_chans=C, embed_dim=128, mlp_ratio=4)

    seg = image_model_forward(frame, params)
    seg = jax.block_until_ready(seg)

    assert seg.shape == (B, 1, H, W), seg.shape
    assert bool(jnp.all(jnp.isfinite(seg)))
    print("KERNEL_OK")
</pallas_src>

<mosaic_0001>
module attributes {stable_mosaic.version = 11 : i64} {
  func.func @fused_image_kernel(%arg0: i32, %arg1: memref<1x256x128xbf16, #tpu.memory_space<vmem>>, %arg2: memref<128x128xbf16, #tpu.memory_space<vmem>>, %arg3: memref<1x128xf32, #tpu.memory_space<vmem>>, %arg4: memref<1x128xf32, #tpu.memory_space<vmem>>, %arg5: memref<1x128xf32, #tpu.memory_space<vmem>>, %arg6: memref<128x384xbf16, #tpu.memory_space<vmem>>, %arg7: memref<1x384xf32, #tpu.memory_space<vmem>>, %arg8: memref<128x128xbf16, #tpu.memory_space<vmem>>, %arg9: memref<1x128xf32, #tpu.memory_space<vmem>>, %arg10: memref<1x128xf32, #tpu.memory_space<vmem>>, %arg11: memref<1x128xf32, #tpu.memory_space<vmem>>, %arg12: memref<128x512xbf16, #tpu.memory_space<vmem>>, %arg13: memref<1x512xf32, #tpu.memory_space<vmem>>, %arg14: memref<512x128xbf16, #tpu.memory_space<vmem>>, %arg15: memref<1x128xf32, #tpu.memory_space<vmem>>, %arg16: memref<1x128xf32, #tpu.memory_space<vmem>>, %arg17: memref<1x128xf32, #tpu.memory_space<vmem>>, %arg18: memref<1x128xbf16, #tpu.memory_space<vmem>>, %arg19: memref<1x1xf32, #tpu.memory_space<vmem>>, %arg20: memref<1x1x256xf32, #tpu.memory_space<vmem>>) attributes {dimension_semantics = [#tpu.dimension_semantics<parallel>], iteration_bounds = array<i64: 2>, scalar_prefetch = 0 : i64, scratch_operands = 0 : i64, tpu.core_type = #tpu.core_type<tc>, window_params = [{transform_indices = @transform_0, window_bounds = array<i64: 1, 256, 128>}, {pipeline_mode = #tpu.pipeline_mode<synchronous>, transform_indices = @transform_1, window_bounds = array<i64: 128, 128>}, {pipeline_mode = #tpu.pipeline_mode<synchronous>, transform_indices = @transform_2, window_bounds = array<i64: 1, 128>}, {pipeline_mode = #tpu.pipeline_mode<synchronous>, transform_indices = @transform_3, window_bounds = array<i64: 1, 128>}, {pipeline_mode = #tpu.pipeline_mode<synchronous>, transform_indices = @transform_4, window_bounds = array<i64: 1, 128>}, {pipeline_mode = #tpu.pipeline_mode<synchronous>, transform_indices = @transform_5, window_bounds = array<i64: 128, 384>}, {pipeline_mode = #tpu.pipeline_mode<synchronous>, transform_indices = @transform_6, window_bounds = array<i64: 1, 384>}, {pipeline_mode = #tpu.pipeline_mode<synchronous>, transform_indices = @transform_7, window_bounds = array<i64: 128, 128>}, {pipeline_mode = #tpu.pipeline_mode<synchronous>, transform_indices = @transform_8, window_bounds = array<i64: 1, 128>}, {pipeline_mode = #tpu.pipeline_mode<synchronous>, transform_indices = @transform_9, window_bounds = array<i64: 1, 128>}, {pipeline_mode = #tpu.pipeline_mode<synchronous>, transform_indices = @transform_10, window_bounds = array<i64: 1, 128>}, {pipeline_mode = #tpu.pipeline_mode<synchronous>, transform_indices = @transform_11, window_bounds = array<i64: 128, 512>}, {pipeline_mode = #tpu.pipeline_mode<synchronous>, transform_indices = @transform_12, window_bounds = array<i64: 1, 512>}, {pipeline_mode = #tpu.pipeline_mode<synchronous>, transform_indices = @transform_13, window_bounds = array<i64: 512, 128>}, {pipeline_mode = #tpu.pipeline_mode<synchronous>, transform_indices = @transform_14, window_bounds = array<i64: 1, 128>}, {pipeline_mode = #tpu.pipeline_mode<synchronous>, transform_indices = @transform_15, window_bounds = array<i64: 1, 128>}, {pipeline_mode = #tpu.pipeline_mode<synchronous>, transform_indices = @transform_16, window_bounds = array<i64: 1, 128>}, {pipeline_mode = #tpu.pipeline_mode<synchronous>, transform_indices = @transform_17, window_bounds = array<i64: 1, 128>}, {pipeline_mode = #tpu.pipeline_mode<synchronous>, transform_indices = @transform_18, window_bounds = array<i64: 1, 1>}, {transform_indices = @transform_19, window_bounds = array<i64: 1, 1, 256>}]} {
    %c0 = arith.constant 0 : index
    %c0_0 = arith.constant 0 : index
    %c0_1 = arith.constant 0 : index
    %0 = vector.load %arg1[%c0, %c0_0, %c0_1] : memref<1x256x128xbf16, #tpu.memory_space<vmem>>, vector<1x256x128xbf16>
    %1 = vector.shape_cast %0 : vector<1x256x128xbf16> to vector<256x128xbf16>
    %c0_2 = arith.constant 0 : index
    %c0_3 = arith.constant 0 : index
    %2 = vector.load %arg2[%c0_2, %c0_3] : memref<128x128xbf16, #tpu.memory_space<vmem>>, vector<128x128xbf16>
    %cst = arith.constant dense<0.000000e+00> : vector<256x128xf32>
    %3 = tpu.matmul %1, %2, %cst {dimension_numbers = #tpu.dot_dimension_numbers<[1], [0], [0], [1], [0, 0, 1, 1], [], []>} : vector<256x128xbf16>, vector<128x128xbf16>, vector<256x128xf32> -> vector<256x128xf32>
    %c0_4 = arith.constant 0 : index
    %c0_5 = arith.constant 0 : index
    %4 = vector.load %arg3[%c0_4, %c0_5] : memref<1x128xf32, #tpu.memory_space<vmem>>, vector<1x128xf32>
    %5 = vector.broadcast %4 : vector<1x128xf32> to vector<256x128xf32>
    %6 = arith.addf %3, %5 : vector<256x128xf32>
    %c0_6 = arith.constant 0 : index
    %c0_7 = arith.constant 0 : index
    %7 = vector.load %arg4[%c0_6, %c0_7] : memref<1x128xf32, #tpu.memory_space<vmem>>, vector<1x128xf32>
    %c0_8 = arith.constant 0 : index
    %c0_9 = arith.constant 0 : index
    %8 = vector.load %arg5[%c0_8, %c0_9] : memref<1x128xf32, #tpu.memory_space<vmem>>, vector<1x128xf32>
    %cst_10 = arith.constant dense<0.000000e+00> : vector<256xf32>
    %9 = vector.multi_reduction <add>, %6, %cst_10 [1] : vector<256x128xf32> to vector<256xf32>
    %10 = vector.shape_cast %9 : vector<256xf32> to vector<256x1xf32>
    %cst_11 = arith.constant 1.280000e+02 : f32
    %11 = vector.broadcast %cst_11 : f32 to vector<256x1xf32>
    %12 = arith.divf %10, %11 : vector<256x1xf32>
    %13 = vector.broadcast %12 : vector<256x1xf32> to vector<256x128xf32>
    %14 = arith.subf %6, %13 : vector<256x128xf32>
    %15 = arith.mulf %14, %14 : vector<256x128xf32>
    %cst_12 = arith.constant dense<0.000000e+00> : vector<256xf32>
    %16 = vector.multi_reduction <add>, %15, %cst_12 [1] : vector<256x128xf32> to vector<256xf32>
    %17 = vector.shape_cast %16 : vector<256xf32> to vector<256x1xf32>
    %cst_13 = arith.constant 1.280000e+02 : f32
    %18 = vector.broadcast %cst_13 : f32 to vector<256x1xf32>
    %19 = arith.divf %17, %18 : vector<256x1xf32>
    %20 = vector.broadcast %12 : vector<256x1xf32> to vector<256x128xf32>
    %21 = arith.subf %6, %20 : vector<256x128xf32>
    %cst_14 = arith.constant 9.99999974E-6 : f32
    %22 = vector.broadcast %cst_14 : f32 to vector<256x1xf32>
    %23 = arith.addf %19, %22 : vector<256x1xf32>
    %24 = math.rsqrt %23 : vector<256x1xf32>
    %25 = vector.broadcast %24 : vector<256x1xf32> to vector<256x128xf32>
    %26 = arith.mulf %21, %25 : vector<256x128xf32>
    %27 = vector.broadcast %7 : vector<1x128xf32> to vector<256x128xf32>
    %28 = arith.mulf %26, %27 : vector<256x128xf32>
    %29 = vector.broadcast %8 : vector<1x128xf32> to vector<256x128xf32>
    %30 = arith.addf %28, %29 : vector<256x128xf32>
    %31 = arith.truncf %30 : vector<256x128xf32> to vector<256x128xbf16>
    %c0_15 = arith.constant 0 : index
    %c0_16 = arith.constant 0 : index
    %32 = vector.load %arg6[%c0_15, %c0_16] : memref<128x384xbf16, #tpu.memory_space<vmem>>, vector<128x384xbf16>
    %cst_17 = arith.constant dense<0.000000e+00> : vector<256x384xf32>
    %33 = tpu.matmul %31, %32, %cst_17 {dimension_numbers = #tpu.dot_dimension_numbers<[1], [0], [0], [1], [0, 0, 1, 1], [], []>} : vector<256x128xbf16>, vector<128x384xbf16>, vector<256x384xf32> -> vector<256x384xf32>
    %c0_18 = arith.constant 0 : index
    %c0_19 = arith.constant 0 : index
    %34 = vector.load %arg7[%c0_18, %c0_19] : memref<1x384xf32, #tpu.memory_space<vmem>>, vector<1x384xf32>
    %35 = vector.broadcast %34 : vector<1x384xf32> to vector<256x384xf32>
    %36 = arith.addf %33, %35 : vector<256x384xf32>
    %37 = vector.extract_strided_slice %36 {offsets = [0, 0], sizes = [256, 128], strides = [1, 1]} : vector<256x384xf32> to vector<256x128xf32>
    %38 = arith.truncf %37 : vector<256x128xf32> to vector<256x128xbf16>
    %39 = vector.extract_strided_slice %36 {offsets = [0, 128], sizes = [256, 128], strides = [1, 1]} : vector<256x384xf32> to vector<256x128xf32>
    %40 = arith.truncf %39 : vector<256x128xf32> to vector<256x128xbf16>
    %41 = vector.extract_strided_slice %36 {offsets = [0, 256], sizes = [256, 128], strides = [1, 1]} : vector<256x384xf32> to vector<256x128xf32>
    %42 = arith.truncf %41 : vector<256x128xf32> to vector<256x128xbf16>
    %cst_20 = arith.constant dense<0.000000e+00> : vector<256x256xf32>
    %43 = tpu.matmul %38, %40, %cst_20 {dimension_numbers = #tpu.dot_dimension_numbers<[1], [1], [0], [0], [0, 0, 1, 0], [], []>} : vector<256x128xbf16>, vector<256x128xbf16>, vector<256x256xf32> -> vector<256x256xf32>
    %cst_21 = arith.constant 0.0883883461 : f32
    %44 = vector.broadcast %cst_21 : f32 to vector<256x256xf32>
    %45 = arith.mulf %43, %44 : vector<256x256xf32>
    %cst_22 = arith.constant dense<0xFF800000> : vector<256xf32>
    %46 = vector.multi_reduction <maximumf>, %45, %cst_22 [1] : vector<256x256xf32> to vector<256xf32>
    %47 = vector.shape_cast %46 : vector<256xf32> to vector<256x1xf32>
    %48 = vector.broadcast %47 : vector<256x1xf32> to vector<256x256xf32>
    %49 = arith.subf %45, %48 : vector<256x256xf32>
    %50 = math.exp %49 : vector<256x256xf32>
    %cst_23 = arith.constant dense<0.000000e+00> : vector<256xf32>
    %51 = vector.multi_reduction <add>, %50, %cst_23 [1] : vector<256x256xf32> to vector<256xf32>
    %52 = vector.shape_cast %51 : vector<256xf32> to vector<256x1xf32>
    %53 = arith.truncf %50 : vector<256x256xf32> to vector<256x256xbf16>
    %cst_24 = arith.constant dense<0.000000e+00> : vector<256x128xf32>
    %54 = tpu.matmul %53, %42, %cst_24 {dimension_numbers = #tpu.dot_dimension_numbers<[1], [0], [0], [1], [0, 0, 1, 1], [], []>} : vector<256x256xbf16>, vector<256x128xbf16>, vector<256x128xf32> -> vector<256x128xf32>
    %55 = tpu.reciprocal %52 {approx = true} : vector<256x1xf32> -> vector<256x1xf32>
    %56 = vector.broadcast %55 : vector<256x1xf32> to vector<256x128xf32>
    %57 = arith.mulf %54, %56 : vector<256x128xf32>
    %58 = arith.truncf %57 : vector<256x128xf32> to vector<256x128xbf16>
    %c0_25 = arith.constant 0 : index
    %c0_26 = arith.constant 0 : index
    %59 = vector.load %arg8[%c0_25, %c0_26] : memref<128x128xbf16, #tpu.memory_space<vmem>>, vector<128x128xbf16>
    %cst_27 = arith.constant dense<0.000000e+00> : vector<256x128xf32>
    %60 = tpu.matmul %58, %59, %cst_27 {dimension_numbers = #tpu.dot_dimension_numbers<[1], [0], [0], [1], [0, 0, 1, 1], [], []>} : vector<256x128xbf16>, vector<128x128xbf16>, vector<256x128xf32> -> vector<256x128xf32>
    %61 = arith.addf %6, %60 : vector<256x128xf32>
    %c0_28 = arith.constant 0 : index
    %c0_29 = arith.constant 0 : index
    %62 = vector.load %arg9[%c0_28, %c0_29] : memref<1x128xf32, #tpu.memory_space<vmem>>, vector<1x128xf32>
    %63 = vector.broadcast %62 : vector<1x128xf32> to vector<256x128xf32>
    %64 = arith.addf %61, %63 : vector<256x128xf32>
    %c0_30 = arith.constant 0 : index
    %c0_31 = arith.constant 0 : index
    %65 = vector.load %arg10[%c0_30, %c0_31] : memref<1x128xf32, #tpu.memory_space<vmem>>, vector<1x128xf32>
    %c0_32 = arith.constant 0 : index
    %c0_33 = arith.constant 0 : index
    %66 = vector.load %arg11[%c0_32, %c0_33] : memref<1x128xf32, #tpu.memory_space<vmem>>, vector<1x128xf32>
    %cst_34 = arith.constant dense<0.000000e+00> : vector<256xf32>
    %67 = vector.multi_reduction <add>, %64, %cst_34 [1] : vector<256x128xf32> to vector<256xf32>
    %68 = vector.shape_cast %67 : vector<256xf32> to vector<256x1xf32>
    %cst_35 = arith.constant 1.280000e+02 : f32
    %69 = vector.broadcast %cst_35 : f32 to vector<256x1xf32>
    %70 = arith.divf %68, %69 : vector<256x1xf32>
    %71 = vector.broadcast %70 : vector<256x1xf32> to vector<256x128xf32>
    %72 = arith.subf %64, %71 : vector<256x128xf32>
    %73 = arith.mulf %72, %72 : vector<256x128xf32>
    %cst_36 = arith.constant dense<0.000000e+00> : vector<256xf32>
    %74 = vector.multi_reduction <add>, %73, %cst_36 [1] : vector<256x128xf32> to vector<256xf32>
    %75 = vector.shape_cast %74 : vector<256xf32> to vector<256x1xf32>
    %cst_37 = arith.constant 1.280000e+02 : f32
    %76 = vector.broadcast %cst_37 : f32 to vector<256x1xf32>
    %77 = arith.divf %75, %76 : vector<256x1xf32>
    %78 = vector.broadcast %70 : vector<256x1xf32> to vector<256x128xf32>
    %79 = arith.subf %64, %78 : vector<256x128xf32>
    %cst_38 = arith.constant 9.99999974E-6 : f32
    %80 = vector.broadcast %cst_38 : f32 to vector<256x1xf32>
    %81 = arith.addf %77, %80 : vector<256x1xf32>
    %82 = math.rsqrt %81 : vector<256x1xf32>
    %83 = vector.broadcast %82 : vector<256x1xf32> to vector<256x128xf32>
    %84 = arith.mulf %79, %83 : vector<256x128xf32>
    %85 = vector.broadcast %65 : vector<1x128xf32> to vector<256x128xf32>
    %86 = arith.mulf %84, %85 : vector<256x128xf32>
    %87 = vector.broadcast %66 : vector<1x128xf32> to vector<256x128xf32>
    %88 = arith.addf %86, %87 : vector<256x128xf32>
    %89 = arith.truncf %88 : vector<256x128xf32> to vector<256x128xbf16>
    %c0_39 = arith.constant 0 : index
    %c0_40 = arith.constant 0 : index
    %90 = vector.load %arg12[%c0_39, %c0_40] : memref<128x512xbf16, #tpu.memory_space<vmem>>, vector<128x512xbf16>
    %cst_41 = arith.constant dense<0.000000e+00> : vector<256x512xf32>
    %91 = tpu.matmul %89, %90, %cst_41 {dimension_numbers = #tpu.dot_dimension_numbers<[1], [0], [0], [1], [0, 0, 1, 1], [], []>} : vector<256x128xbf16>, vector<128x512xbf16>, vector<256x512xf32> -> vector<256x512xf32>
    %c0_42 = arith.constant 0 : index
    %c0_43 = arith.constant 0 : index
    %92 = vector.load %arg13[%c0_42, %c0_43] : memref<1x512xf32, #tpu.memory_space<vmem>>, vector<1x512xf32>
    %93 = vector.broadcast %92 : vector<1x512xf32> to vector<256x512xf32>
    %94 = arith.addf %91, %93 : vector<256x512xf32>
    %95 = arith.mulf %94, %94 : vector<256x512xf32>
    %96 = arith.mulf %94, %95 : vector<256x512xf32>
    %cst_44 = arith.constant 4.471500e-02 : f32
    %97 = vector.broadcast %cst_44 : f32 to vector<256x512xf32>
    %98 = arith.mulf %97, %96 : vector<256x512xf32>
    %99 = arith.addf %94, %98 : vector<256x512xf32>
    %cst_45 = arith.constant 0.797884583 : f32
    %100 = vector.broadcast %cst_45 : f32 to vector<256x512xf32>
    %101 = arith.mulf %100, %99 : vector<256x512xf32>
    %102 = math.tanh %101 : vector<256x512xf32>
    %cst_46 = arith.constant 1.000000e+00 : f32
    %103 = vector.broadcast %cst_46 : f32 to vector<256x512xf32>
    %104 = arith.addf %103, %102 : vector<256x512xf32>
    %cst_47 = arith.constant 5.000000e-01 : f32
    %105 = vector.broadcast %cst_47 : f32 to vector<256x512xf32>
    %106 = arith.mulf %105, %104 : vector<256x512xf32>
    %107 = arith.mulf %94, %106 : vector<256x512xf32>
    %108 = arith.truncf %107 : vector<256x512xf32> to vector<256x512xbf16>
    %c0_48 = arith.constant 0 : index
    %c0_49 = arith.constant 0 : index
    %109 = vector.load %arg14[%c0_48, %c0_49] : memref<512x128xbf16, #tpu.memory_space<vmem>>, vector<512x128xbf16>
    %cst_50 = arith.constant dense<0.000000e+00> : vector<256x128xf32>
    %110 = tpu.matmul %108, %109, %cst_50 {dimension_numbers = #tpu.dot_dimension_numbers<[1], [0], [0], [1], [0, 0, 1, 1], [], []>} : vector<256x512xbf16>, vector<512x128xbf16>, vector<256x128xf32> -> vector<256x128xf32>
    %111 = arith.addf %64, %110 : vector<256x128xf32>
    %c0_51 = arith.constant 0 : index
    %c0_52 = arith.constant 0 : index
    %112 = vector.load %arg15[%c0_51, %c0_52] : memref<1x128xf32, #tpu.memory_space<vmem>>, vector<1x128xf32>
    %113 = vector.broadcast %112 : vector<1x128xf32> to vector<256x128xf32>
    %114 = arith.addf %111, %113 : vector<256x128xf32>
    %c0_53 = arith.constant 0 : index
    %c0_54 = arith.constant 0 : index
    %115 = vector.load %arg16[%c0_53, %c0_54] : memref<1x128xf32, #tpu.memory_space<vmem>>, vector<1x128xf32>
    %c0_55 = arith.constant 0 : index
    %c0_56 = arith.constant 0 : index
    %116 = vector.load %arg17[%c0_55, %c0_56] : memref<1x128xf32, #tpu.memory_space<vmem>>, vector<1x128xf32>
    %cst_57 = arith.constant dense<0.000000e+00> : vector<256xf32>
    %117 = vector.multi_reduction <add>, %114, %cst_57 [1] : vector<256x128xf32> to vector<256xf32>
    %118 = vector.shape_cast %117 : vector<256xf32> to vector<256x1xf32>
    %cst_58 = arith.constant 1.280000e+02 : f32
    %119 = vector.broadcast %cst_58 : f32 to vector<256x1xf32>
    %120 = arith.divf %118, %119 : vector<256x1xf32>
    %121 = vector.broadcast %120 : vector<256x1xf32> to vector<256x128xf32>
    %122 = arith.subf %114, %121 : vector<256x128xf32>
    %123 = arith.mulf %122, %122 : vector<256x128xf32>
    %cst_59 = arith.constant dense<0.000000e+00> : vector<256xf32>
    %124 = vector.multi_reduction <add>, %123, %cst_59 [1] : vector<256x128xf32> to vector<256xf32>
    %125 = vector.shape_cast %124 : vector<256xf32> to vector<256x1xf32>
    %cst_60 = arith.constant 1.280000e+02 : f32
    %126 = vector.broadcast %cst_60 : f32 to vector<256x1xf32>
    %127 = arith.divf %125, %126 : vector<256x1xf32>
    %128 = vector.broadcast %120 : vector<256x1xf32> to vector<256x128xf32>
    %129 = arith.subf %114, %128 : vector<256x128xf32>
    %cst_61 = arith.constant 9.99999974E-6 : f32
    %130 = vector.broadcast %cst_61 : f32 to vector<256x1xf32>
    %131 = arith.addf %127, %130 : vector<256x1xf32>
    %132 = math.rsqrt %131 : vector<256x1xf32>
    %133 = vector.broadcast %132 : vector<256x1xf32> to vector<256x128xf32>
    %134 = arith.mulf %129, %133 : vector<256x128xf32>
    %135 = vector.broadcast %115 : vector<1x128xf32> to vector<256x128xf32>
    %136 = arith.mulf %134, %135 : vector<256x128xf32>
    %137 = vector.broadcast %116 : vector<1x128xf32> to vector<256x128xf32>
    %138 = arith.addf %136, %137 : vector<256x128xf32>
    %c0_62 = arith.constant 0 : index
    %c0_63 = arith.constant 0 : index
    %139 = vector.load %arg18[%c0_62, %c0_63] : memref<1x128xbf16, #tpu.memory_space<vmem>>, vector<1x128xbf16>
    %140 = arith.truncf %138 : vector<256x128xf32> to vector<256x128xbf16>
    %cst_64 = arith.constant dense<0.000000e+00> : vector<1x256xf32>
    %141 = tpu.matmul %139, %140, %cst_64 {dimension_numbers = #tpu.dot_dimension_numbers<[1], [1], [0], [0], [0, 0, 1, 0], [], []>} : vector<1x128xbf16>, vector<256x128xbf16>, vector<1x256xf32> -> vector<1x256xf32>
    %c0_65 = arith.constant 0 : index
    %c0_66 = arith.constant 0 : index
    %142 = vector.load %arg19[%c0_65, %c0_66] : memref<1x1xf32, #tpu.memory_space<vmem>>, vector<1x1xf32>
    %143 = vector.broadcast %142 : vector<1x1xf32> to vector<1x256xf32>
    %144 = arith.addf %141, %143 : vector<1x256xf32>
    %c0_67 = arith.constant 0 : index
    %c0_68 = arith.constant 0 : index
    %c0_69 = arith.constant 0 : index
    %145 = vector.load %arg20[%c0_67, %c0_68, %c0_69] : memref<1x1x256xf32, #tpu.memory_space<vmem>>, vector<1x1x256xf32>
    %146 = vector.shape_cast %145 : vector<1x1x256xf32> to vector<1x256xf32>
    %147 = vector.shape_cast %144 : vector<1x256xf32> to vector<1x1x256xf32>
    tpu.vector_store %arg20[%c0_67, %c0_68, %c0_69], %147 {strides = array<i32>} : memref<1x1x256xf32, #tpu.memory_space<vmem>>, vector<1x1x256xf32>,
    return
  }
  func.func @transform_0(%arg0: i32) -> (i32, i32, i32) {
    %c0_i32 = arith.constant 0 : i32
    %c0_i32_0 = arith.constant 0 : i32
    %c0_i32_1 = arith.constant 0 : i32
    return %arg0, %c0_i32, %c0_i32_0 : i32, i32, i32
  }
  func.func @transform_1(%arg0: i32) -> (i32, i32) {
    %c0_i32 = arith.constant 0 : i32
    %c0_i32_0 = arith.constant 0 : i32
    %c0_i32_1 = arith.constant 0 : i32
    return %c0_i32, %c0_i32_0 : i32, i32
  }
  func.func @transform_2(%arg0: i32) -> (i32, i32) {
    %c0_i32 = arith.constant 0 : i32
    %c0_i32_0 = arith.constant 0 : i32
    %c0_i32_1 = arith.constant 0 : i32
    return %c0_i32, %c0_i32_0 : i32, i32
  }
  func.func @transform_3(%arg0: i32) -> (i32, i32) {
    %c0_i32 = arith.constant 0 : i32
    %c0_i32_0 = arith.constant 0 : i32
    %c0_i32_1 = arith.constant 0 : i32
    return %c0_i32, %c0_i32_0 : i32, i32
  }
  func.func @transform_4(%arg0: i32) -> (i32, i32) {
    %c0_i32 = arith.constant 0 : i32
    %c0_i32_0 = arith.constant 0 : i32
    %c0_i32_1 = arith.constant 0 : i32
    return %c0_i32, %c0_i32_0 : i32, i32
  }
  func.func @transform_5(%arg0: i32) -> (i32, i32) {
    %c0_i32 = arith.constant 0 : i32
    %c0_i32_0 = arith.constant 0 : i32
    %c0_i32_1 = arith.constant 0 : i32
    return %c0_i32, %c0_i32_0 : i32, i32
  }
  func.func @transform_6(%arg0: i32) -> (i32, i32) {
    %c0_i32 = arith.constant 0 : i32
    %c0_i32_0 = arith.constant 0 : i32
    %c0_i32_1 = arith.constant 0 : i32
    return %c0_i32, %c0_i32_0 : i32, i32
  }
  func.func @transform_7(%arg0: i32) -> (i32, i32) {
    %c0_i32 = arith.constant 0 : i32
    %c0_i32_0 = arith.constant 0 : i32
    %c0_i32_1 = arith.constant 0 : i32
    return %c0_i32, %c0_i32_0 : i32, i32
  }
  func.func @transform_8(%arg0: i32) -> (i32, i32) {
    %c0_i32 = arith.constant 0 : i32
    %c0_i32_0 = arith.constant 0 : i32
    %c0_i32_1 = arith.constant 0 : i32
    return %c0_i32, %c0_i32_0 : i32, i32
  }
  func.func @transform_9(%arg0: i32) -> (i32, i32) {
    %c0_i32 = arith.constant 0 : i32
    %c0_i32_0 = arith.constant 0 : i32
    %c0_i32_1 = arith.constant 0 : i32
    return %c0_i32, %c0_i32_0 : i32, i32
  }
  func.func @transform_10(%arg0: i32) -> (i32, i32) {
    %c0_i32 = arith.constant 0 : i32
    %c0_i32_0 = arith.constant 0 : i32
    %c0_i32_1 = arith.constant 0 : i32
    return %c0_i32, %c0_i32_0 : i32, i32
  }
  func.func @transform_11(%arg0: i32) -> (i32, i32) {
    %c0_i32 = arith.constant 0 : i32
    %c0_i32_0 = arith.constant 0 : i32
    %c0_i32_1 = arith.constant 0 : i32
    return %c0_i32, %c0_i32_0 : i32, i32
  }
  func.func @transform_12(%arg0: i32) -> (i32, i32) {
    %c0_i32 = arith.constant 0 : i32
    %c0_i32_0 = arith.constant 0 : i32
    %c0_i32_1 = arith.constant 0 : i32
    return %c0_i32, %c0_i32_0 : i32, i32
  }
  func.func @transform_13(%arg0: i32) -> (i32, i32) {
    %c0_i32 = arith.constant 0 : i32
    %c0_i32_0 = arith.constant 0 : i32
    %c0_i32_1 = arith.constant 0 : i32
    return %c0_i32, %c0_i32_0 : i32, i32
  }
  func.func @transform_14(%arg0: i32) -> (i32, i32) {
    %c0_i32 = arith.constant 0 : i32
    %c0_i32_0 = arith.constant 0 : i32
    %c0_i32_1 = arith.constant 0 : i32
    return %c0_i32, %c0_i32_0 : i32, i32
  }
  func.func @transform_15(%arg0: i32) -> (i32, i32) {
    %c0_i32 = arith.constant 0 : i32
    %c0_i32_0 = arith.constant 0 : i32
    %c0_i32_1 = arith.constant 0 : i32
    return %c0_i32, %c0_i32_0 : i32, i32
  }
  func.func @transform_16(%arg0: i32) -> (i32, i32) {
    %c0_i32 = arith.constant 0 : i32
    %c0_i32_0 = arith.constant 0 : i32
    %c0_i32_1 = arith.constant 0 : i32
    return %c0_i32, %c0_i32_0 : i32, i32
  }
  func.func @transform_17(%arg0: i32) -> (i32, i32) {
    %c0_i32 = arith.constant 0 : i32
    %c0_i32_0 = arith.constant 0 : i32
    %c0_i32_1 = arith.constant 0 : i32
    return %c0_i32, %c0_i32_0 : i32, i32
  }
  func.func @transform_18(%arg0: i32) -> (i32, i32) {
    %c0_i32 = arith.constant 0 : i32
    %c0_i32_0 = arith.constant 0 : i32
    %c0_i32_1 = arith.constant 0 : i32
    return %c0_i32, %c0_i32_0 : i32, i32
  }
  func.func @transform_19(%arg0: i32) -> (i32, i32, i32) {
    %c0_i32 = arith.constant 0 : i32
    %c0_i32_0 = arith.constant 0 : i32
    %c0_i32_1 = arith.constant 0 : i32
    return %arg0, %c0_i32, %c0_i32_0 : i32, i32, i32
  }
}

</mosaic_0001>

<bundles_post_ra>
// kernel: image_model_forward.1
= control target key start
LH: loop header
LB: loop body
LE: loop exit
PB: predicated region body
PF: predicated region fallthrough
CT: control target
= control target key end

     0   :  { %s8367_s20 = smov 0   ;;  %s12508_s0 = inlined_call_operand.vmem [shape: bf16[2,256,128], index: 0, kind: input, shape index: {}]   ;;  %s12509_s1 = inlined_call_operand.vmem [shape: bf16[128,128], index: 1, kind: input, shape index: {}]   ;;  %s12510_s2 = inlined_call_operand.vmem [shape: f32[1,128], index: 2, kind: input, shape index: {}]   ;;  %s12511_s3 = inlined_call_operand.vmem [shape: f32[1,128], index: 3, kind: input, shape index: {}]   ;;  %s12512_s4 = inlined_call_operand.vmem [shape: f32[1,128], index: 4, kind: input, shape index: {}]   ;;  %s12513_s5 = inlined_call_operand.vmem [shape: bf16[128,384], index: 5, kind: input, shape index: {}]   ;;  %s12514_s6 = inlined_call_operand.vmem [shape: f32[1,384], index: 6, kind: input, shape index: {}]   ;;  %s12515_s7 = inlined_call_operand.vmem [shape: bf16[128,128], index: 7, kind: input, shape index: {}]   ;;  %s12516_s8 = inlined_call_operand.vmem [shape: f32[1,128], index: 8, kind: input, shape index: {}]   ;;  %s12517_s9 = inlined_call_operand.vmem [shape: f32[1,128], index: 9, kind: input, shape index: {}]   ;;  %s12518_s10 = inlined_call_operand.vmem [shape: f32[1,128], index: 10, kind: input, shape index: {}]   ;;  %s12519_s11 = inlined_call_operand.vmem [shape: bf16[128,512], index: 11, kind: input, shape index: {}]   ;;  %s12520_s12 = inlined_call_operand.vmem [shape: f32[1,512], index: 12, kind: input, shape index: {}]   ;;  %s12521_s13 = inlined_call_operand.vmem [shape: bf16[512,128], index: 13, kind: input, shape index: {}]   ;;  %s12522_s14 = inlined_call_operand.vmem [shape: f32[1,128], index: 14, kind: input, shape index: {}]   ;;  %s12523_s15 = inlined_call_operand.vmem [shape: f32[1,128], index: 15, kind: input, shape index: {}]   ;;  %s12524_s16 = inlined_call_operand.vmem [shape: f32[1,128], index: 16, kind: input, shape index: {}]   ;;  %s12525_s17 = inlined_call_operand.vmem [shape: bf16[1,128], index: 17, kind: input, shape index: {}]   ;;  %s12526_s18 = inlined_call_operand.<no memory space> [shape: f32[1,1], index: 18, kind: input, shape index: {}]   ;;  %s12527_s19 = inlined_call_operand.vmem [shape: f32[2,1,256], index: 19, kind: output, shape index: {}]  }
   0x1   :  { %12701 = sst [smem:[#allocation104_spill]] %s12508_s0  ;;  %v24_v0 = vstv %s12526_s18 }
   0x2   :  { %12702 = sst [smem:[#allocation105_spill]] %s12509_s1  ;;  %25 = vst [vmem:[#allocation2] sm:$0x1] %v24_v0 }
   0x3   :  { %12703 = sst [smem:[#allocation106_spill]] %s12510_s2 }
   0x4   :  { %12704 = sst [smem:[#allocation107_spill]] %s12511_s3 }
   0x5 LB: > { %s6685_s21 = sadd.s32 4294967295, %s8260_s20   ;;  %p6689_p0 = scmp.ge.s32.totalorder %s8260_s20, 1  ;;  %s8260_s20 = sphi %s8367_s20, %s31_s20  }
   0x6   : > { %p539_p1 = scmp.lt.s32.totalorder %s8260_s20, 3 }
   0x8   : > { %p540_p2 = pnand %p6689_p0, %p539_p1 }
   0xa   : > { %543 = sbr.rel (%p540_p2) target bundleno = 3492 (0xda4), region = 96 }
  0x11   : > { %s12705_s2 = sld [smem:[#allocation105_spill]]  ;;  %p594_p3 = scmp.lt.s32.totalorder %s6685_s21, 1 }
  0x12   : > { %s12706_s28 = sld [smem:[#allocation104_spill]]  ;;  %s12707_s0 = sld [smem:[#allocation106_spill]] }
  0x13   : > { %s13231_s21 = smov (!%p594_p3, %s6685_s21), 1 }
  0x14   : > { %s6824_s3 = sshll.u32 %s13231_s21, 7  ;;  %s6692_s25 = sshll.u32 %s13231_s21, 1 }
  0x15   : > { %s602_s27 = scalar_lea.vmem %s12527_s19, %s6692_s25 }
  0x17   : > { %v7470_v1 = vld [vmem:[%s12705_s2] sm:$0xff]   ;;  %v7471_v2 = vld [vmem:[%s12705_s2 + $0x8] sm:$0xff]   ;;  %v7472_v3 = vld [vmem:[%s12705_s2 + $0x10] sm:$0xff]  }
  0x18   : > { %7299 = vmatprep.subr.bf16.mxu0 %v7470_v1  ;;  %7443 = vmatprep.subr.bf16.mxu1 %v7470_v1  ;;  %s8390_s29 = scalar_lea.vmem %s12706_s28, %s6824_s3  ;;  %v7473_v4 = vld [vmem:[%s12705_s2 + $0x18] sm:$0xff]   ;;  %v7474_v6 = vld [vmem:[%s12705_s2 + $0x20] sm:$0xff]   ;;  %v7475_v7 = vld [vmem:[%s12705_s2 + $0x28] sm:$0xff]   ;;  %s12740_s28 = sld [smem:[#allocation107_spill]] }
  0x19   : > { %7300 = vmatpush3.bf16.msra.mxu0 %v7470_v1  ;;  %7451 = vmatpush3.bf16.msra.mxu1 %v7470_v1  ;;  %v7478_v5 = vld [vmem:[%s8390_s29] sm:$0xff]   ;;  %v7476_v9 = vld [vmem:[%s12705_s2 + $0x30] sm:$0xff]   ;;  %v7477_v10 = vld [vmem:[%s12705_s2 + $0x38] sm:$0xff]  }
  0x1a   : > { %7301 = vmatprep.subr.bf16.mxu0 %v7471_v2  ;;  %7444 = vmatprep.subr.bf16.mxu1 %v7471_v2  ;;  %v7486_v8 = vld [vmem:[%s8390_s29 + $0x40] sm:$0xff]   ;;  %v7479_v11 = vld [vmem:[%s8390_s29 + $0x8] sm:$0xff]   ;;  %v7480_v13 = vld [vmem:[%s8390_s29 + $0x10] sm:$0xff]  }
  0x1b   : > { %7315 = vmatprep.mubr.bf16.mxu0 %v7478_v5  ;;  %7331 = vmatprep.mubr.bf16.mxu1 %v7486_v8  ;;  %v7487_v12 = vld [vmem:[%s8390_s29 + $0x48] sm:$0xff]   ;;  %v7488_v14 = vld [vmem:[%s8390_s29 + $0x50] sm:$0xff]   ;;  %v7481_v15 = vld [vmem:[%s8390_s29 + $0x18] sm:$0xff]  }
  0x1c   : > { %v7489_v16 = vld [vmem:[%s8390_s29 + $0x58] sm:$0xff]   ;;  %v7482_v17 = vld [vmem:[%s8390_s29 + $0x20] sm:$0xff]   ;;  %v7483_v19 = vld [vmem:[%s8390_s29 + $0x28] sm:$0xff]  }
  0x1d   : > { %7302 = vmatpush3.bf16.msra.mxu0 %v7471_v2  ;;  %7452 = vmatpush3.bf16.msra.mxu1 %v7471_v2  ;;  %v7490_v18 = vld [vmem:[%s8390_s29 + $0x60] sm:$0xff]   ;;  %v7491_v20 = vld [vmem:[%s8390_s29 + $0x68] sm:$0xff]   ;;  %v7484_v21 = vld [vmem:[%s8390_s29 + $0x30] sm:$0xff]  }
  0x1e   : > { %7303 = vmatprep.subr.bf16.mxu0 %v7472_v3  ;;  %7445 = vmatprep.subr.bf16.mxu1 %v7472_v3  ;;  %v7492_v22 = vld [vmem:[%s8390_s29 + $0x70] sm:$0xff]   ;;  %v7485_v23 = vld [vmem:[%s8390_s29 + $0x38] sm:$0xff]   ;;  %v8426_v25 = vld [vmem:[%s12707_s0] ss:$0 sm:$0xff] }
  0x1f   : > { %v7493_v24 = vld [vmem:[%s8390_s29 + $0x78] sm:$0xff]  }
  0x21   : > { %7304 = vmatpush3.bf16.msra.mxu0 %v7472_v3  ;;  %7453 = vmatpush3.bf16.msra.mxu1 %v7472_v3 }
  0x22   : > { %7305 = vmatprep.subr.bf16.mxu0 %v7473_v4  ;;  %7446 = vmatprep.subr.bf16.mxu1 %v7473_v4 }
  0x25   : > { %7306 = vmatpush3.bf16.msra.mxu0 %v7473_v4  ;;  %7454 = vmatpush3.bf16.msra.mxu1 %v7473_v4 }
  0x26   : > { %7307 = vmatprep.subr.bf16.mxu0 %v7474_v6  ;;  %7447 = vmatprep.subr.bf16.mxu1 %v7474_v6 }
  0x29   : > { %7308 = vmatpush3.bf16.msra.mxu0 %v7474_v6  ;;  %7455 = vmatpush3.bf16.msra.mxu1 %v7474_v6 }
  0x2a   : > { %7309 = vmatprep.subr.bf16.mxu0 %v7475_v7  ;;  %7448 = vmatprep.subr.bf16.mxu1 %v7475_v7 }
  0x2d   : > { %7310 = vmatpush3.bf16.msra.mxu0 %v7475_v7  ;;  %7456 = vmatpush3.bf16.msra.mxu1 %v7475_v7 }
  0x2e   : > { %7311 = vmatprep.subr.bf16.mxu0 %v7476_v9  ;;  %7449 = vmatprep.subr.bf16.mxu1 %v7476_v9 }
  0x31   : > { %7312 = vmatpush3.bf16.msra.mxu0 %v7476_v9  ;;  %7457 = vmatpush3.bf16.msra.mxu1 %v7476_v9 }
  0x32   : > { %7313 = vmatprep.subr.bf16.mxu0 %v7477_v10  ;;  %7450 = vmatprep.subr.bf16.mxu1 %v7477_v10 }
  0x35   : > { %7314 = vmatpush3.bf16.msra.mxu0 %v7477_v10  ;;  %7458 = vmatpush3.bf16.msra.mxu1 %v7477_v10 }
  0x38   : > { %7316 = vmatmul.mubr.bf16.vlgmr.msra.gmra.mrb[0].mxu0 %v7479_v11  ;;  %7332 = vmatmul.mubr.bf16.vlgmr.msra.gmra.mrb[0].mxu1 %v7487_v12 }
  0x39   : > { %7319 = vmatprep.mubr.bf16.mxu0 %v7480_v13  ;;  %7335 = vmatprep.mubr.bf16.mxu1 %v7488_v14 }
  0x40   : > { %7320 = vmatmul.mubr.bf16.gmra.mrb[4].mxu0 %v7481_v15  ;;  %7336 = vmatmul.mubr.bf16.gmra.mrb[4].mxu1 %v7489_v16 }
  0x41   : > { %7323 = vmatprep.mubr.bf16.mxu0 %v7482_v17  ;;  %7339 = vmatprep.mubr.bf16.mxu1 %v7490_v18 }
  0x48   : > { %7324 = vmatmul.mubr.bf16.gmra.mrb[8].mxu0 %v7483_v19  ;;  %7340 = vmatmul.mubr.bf16.gmra.mrb[8].mxu1 %v7491_v20 }
  0x49   : > { %7327 = vmatprep.mubr.bf16.mxu0 %v7484_v21  ;;  %7343 = vmatprep.mubr.bf16.mxu1 %v7492_v22 }
  0x50   : > { %7328 = vmatmul.mubr.bf16.gmra.mrb[12].mxu0 %v7485_v23  ;;  %7344 = vmatmul.mubr.bf16.gmra.mrb[12].mxu1 %v7493_v24 }
 0x10b   : > { %v7317_v26 = vpop.f32.mrb[0].mxu0  ;;  %v7333_v27 = vpop.f32.mrb[0].mxu1 }
 0x10c   : > { %v8429_v28 = vadd.f32 %v7317_v26, %v8426_v25  ;;  %v837_v29 = vpop.f32.mrb[1].mxu0  ;;  %v901_v30 = vpop.f32.mrb[1].mxu1  ;;  %v8511_v8 = vadd.f32 %v7333_v27, %v8426_v25  ;;  %v7494_v27 = vld [vmem:[%s12513_s5] ss:$12 sps:$4 sm:$0xff]  }
 0x10d   : > { %v8432_v31 = vadd.f32 %v8426_v25, %v837_v29  ;;  %v7318_v32 = vpop.f32.mrb[2].mxu0  ;;  %v7334_v33 = vpop.f32.mrb[2].mxu1  ;;  %v8504_v6 = vadd.f32 %v8426_v25, %v901_v30  ;;  %v7496_v29 = vld [vmem:[%s12513_s5 + $0x4] ss:$12 sps:$4 sm:$0xff]   ;;  %v7499_v30 = vld [vmem:[%s12513_s5 + $0x1c] ss:$12 sps:$4 sm:$0xff]  }
 0x10e   : > { %12708 = vst [vmem:[#allocation3_spill] sm:$0xff] %v8429_v28  ;;  %970 = vadd.xlane.f32.xlu1 %v8429_v28  ;;  %v840_v34 = vpop.f32.mrb[3].mxu0  ;;  %v904_v35 = vpop.f32.mrb[3].mxu1  ;;  %v8437_v36 = vadd.f32 %v7318_v32, %v8426_v25  ;;  %12730 = vst [vmem:[#allocation25_spill] sm:$0xff] %v8511_v8  ;;  %v8515_v9 = vadd.f32 %v7334_v33, %v8426_v25  ;;  %1588 = vmatprep.subr.bf16.mxu1 %v7496_v29  ;;  %v7497_v32 = vld [vmem:[%s12513_s5 + $0x18] ss:$12 sps:$4 sm:$0xff]  }
 0x10f   : > { %12709 = vst [vmem:[#allocation4_spill] sm:$0xff] %v8432_v31  ;;  %966 = vadd.xlane.f32.xlu0 %v8432_v31  ;;  %v8440_v37 = vadd.f32 %v8426_v25, %v840_v34  ;;  %12728 = vst [vmem:[#allocation23_spill] sm:$0xff] %v8504_v6  ;;  %v8508_v7 = vadd.f32 %v8426_v25, %v904_v35  ;;  %1589 = vmatpush1.bf16.msra.mxu1 %v7494_v27  ;;  %v7500_v27 = vld [vmem:[%s12513_s5 + $0x30] ss:$12 sps:$4 sm:$0xff]  }
 0x110   : > { %12710 = vst [vmem:[#allocation5_spill] sm:$0xff] %v8437_v36  ;;  %12731 = vst [vmem:[#allocation26_spill] sm:$0xff] %v8515_v9  ;;  %1590 = vmatprep.subr.bf16.mxu1 %v7499_v30 }
 0x111   : > { %12711 = vst [vmem:[#allocation6_spill] sm:$0xff] %v8440_v37  ;;  %12729 = vst [vmem:[#allocation24_spill] sm:$0xff] %v8508_v7 }
 0x112   : > { %972 = vadd.xlane.f32.xlu1 %v8437_v36 }
 0x113   : > { %v7321_v38 = vpop.f32.mrb[4].mxu0  ;;  %968 = vadd.xlane.f32.xlu0 %v8440_v37  ;;  %v7337_v54 = vpop.f32.mrb[4].mxu1  ;;  %1591 = vmatpush1.bf16.msra.mxu1 %v7497_v32 }
 0x114   : > { %v853_v39 = vpop.f32.mrb[5].mxu0  ;;  %v8448_v43 = vadd.f32 %v7321_v38, %v8426_v25  ;;  %v8475_v55 = vadd.f32 %v7337_v54, %v8426_v25  ;;  %v917_v56 = vpop.f32.mrb[5].mxu1 }
 0x115   : > { %v8445_v40 = vadd.f32 %v8426_v25, %v853_v39  ;;  %v7322_v41 = vpop.f32.mrb[6].mxu0  ;;  %v8479_v58 = vadd.f32 %v8426_v25, %v917_v56  ;;  %v7338_v59 = vpop.f32.mrb[6].mxu1 }
 0x116   : > { %v856_v42 = vpop.f32.mrb[7].mxu0  ;;  %12713 = vst [vmem:[#allocation8_spill] sm:$0xff] %v8448_v43  ;;  %v8455_v45 = vadd.f32 %v7322_v41, %v8426_v25  ;;  %12720 = vst [vmem:[#allocation15_spill] sm:$0xff] %v8475_v55  ;;  %v8482_v61 = vadd.f32 %v7338_v59, %v8426_v25  ;;  %v920_v0 = vpop.f32.mrb[7].mxu1 }
 0x117   : > { %12712 = vst [vmem:[#allocation7_spill] sm:$0xff] %v8445_v40  ;;  %v8451_v44 = vadd.f32 %v8426_v25, %v856_v42  ;;  %974 = vadd.xlane.f32.xlu0 %v8445_v40  ;;  %12721 = vst [vmem:[#allocation16_spill] sm:$0xff] %v8479_v58  ;;  %v8489_v2 = vadd.f32 %v8426_v25, %v920_v0 }
 0x118   : > { %12715 = vst [vmem:[#allocation10_spill] sm:$0xff] %v8455_v45  ;;  %12722 = vst [vmem:[#allocation17_spill] sm:$0xff] %v8482_v61 }
 0x119   : > { %12714 = vst [vmem:[#allocation9_spill] sm:$0xff] %v8451_v44  ;;  %976 = vadd.xlane.f32.xlu1 %v8451_v44  ;;  %12724 = vst [vmem:[#allocation19_spill] sm:$0xff] %v8489_v2 }
 0x11b   : > { %v7325_v46 = vpop.f32.mrb[8].mxu0  ;;  %978 = vadd.xlane.f32.xlu0 %v8448_v43  ;;  %v7341_v10 = vpop.f32.mrb[8].mxu1 }
 0x11c   : > { %v869_v47 = vpop.f32.mrb[9].mxu0  ;;  %v8464_v51 = vadd.f32 %v7325_v46, %v8426_v25  ;;  %v8519_v11 = vadd.f32 %v7341_v10, %v8426_v25  ;;  %v933_v12 = vpop.f32.mrb[9].mxu1 }
 0x11d   : > { %v8460_v48 = vadd.f32 %v8426_v25, %v869_v47  ;;  %v7326_v49 = vpop.f32.mrb[10].mxu0  ;;  %980 = vadd.xlane.f32.xlu1 %v8455_v45  ;;  %v8523_v13 = vadd.f32 %v8426_v25, %v933_v12  ;;  %v7342_v14 = vpop.f32.mrb[10].mxu1 }
 0x11e   : > { %v872_v50 = vpop.f32.mrb[11].mxu0  ;;  %12717 = vst [vmem:[#allocation12_spill] sm:$0xff] %v8464_v51  ;;  %v8471_v53 = vadd.f32 %v7326_v49, %v8426_v25  ;;  %12732 = vst [vmem:[#allocation27_spill] sm:$0xff] %v8519_v11  ;;  %v8527_v15 = vadd.f32 %v7342_v14, %v8426_v25  ;;  %v936_v16 = vpop.f32.mrb[11].mxu1 }
 0x11f   : > { %12716 = vst [vmem:[#allocation11_spill] sm:$0xff] %v8460_v48  ;;  %v8467_v52 = vadd.f32 %v8426_v25, %v872_v50  ;;  %982 = vadd.xlane.f32.xlu0 %v8460_v48  ;;  %12733 = vst [vmem:[#allocation28_spill] sm:$0xff] %v8523_v13  ;;  %v8530_v17 = vadd.f32 %v8426_v25, %v936_v16 }
 0x120   : > { %12719 = vst [vmem:[#allocation14_spill] sm:$0xff] %v8471_v53  ;;  %12734 = vst [vmem:[#allocation29_spill] sm:$0xff] %v8527_v15 }
 0x121   : > { %12718 = vst [vmem:[#allocation13_spill] sm:$0xff] %v8467_v52  ;;  %984 = vadd.xlane.f32.xlu1 %v8467_v52  ;;  %12735 = vst [vmem:[#allocation30_spill] sm:$0xff] %v8530_v17 }
 0x123   : > { %v7329_v57 = vpop.f32.mrb[12].mxu0  ;;  %986 = vadd.xlane.f32.xlu0 %v8464_v51  ;;  %v7345_v18 = vpop.f32.mrb[12].mxu1 }
 0x124   : > { %v885_v60 = vpop.f32.mrb[13].mxu0  ;;  %v8492_v3 = vadd.f32 %v7329_v57, %v8426_v25  ;;  %v8533_v19 = vadd.f32 %v7345_v18, %v8426_v25  ;;  %v949_v20 = vpop.f32.mrb[13].mxu1 }
 0x125   : > { %v8485_v62 = vadd.f32 %v8426_v25, %v885_v60  ;;  %v7330_v63 = vpop.f32.mrb[14].mxu0  ;;  %988 = vadd.xlane.f32.xlu1 %v8471_v53  ;;  %v8536_v21 = vadd.f32 %v8426_v25, %v949_v20  ;;  %v7346_v22 = vpop.f32.mrb[14].mxu1 }
 0x126   : > { %v888_v1 = vpop.f32.mrb[15].mxu0  ;;  %12725 = vst [vmem:[#allocation20_spill] sm:$0xff] %v8492_v3  ;;  %v8499_v5 = vadd.f32 %v7330_v63, %v8426_v25  ;;  %12736 = vst [vmem:[#allocation31_spill] sm:$0xff] %v8533_v19  ;;  %v8539_v23 = vadd.f32 %v7346_v22, %v8426_v25  ;;  %v952_v24 = vpop.f32.mrb[15].mxu1  ;;  %v7502_v22 = vld [vmem:[%s12513_s5 + $0x34] ss:$12 sps:$4 sm:$0xff]  }
 0x127   : > { %12723 = vst [vmem:[#allocation18_spill] sm:$0xff] %v8485_v62  ;;  %v8495_v4 = vadd.f32 %v8426_v25, %v888_v1  ;;  %990 = vadd.xlane.f32.xlu0 %v8485_v62  ;;  %12737 = vst [vmem:[#allocation32_spill] sm:$0xff] %v8536_v21  ;;  %v8542_v26 = vadd.f32 %v8426_v25, %v952_v24  ;;  %v7503_v24 = vld [vmem:[%s12513_s5 + $0x8] ss:$12 sps:$4 sm:$0xff]   ;;  %1592 = vmatprep.subr.bf16.mxu1 %v7502_v22 }
 0x128   : > { %12727 = vst [vmem:[#allocation22_spill] sm:$0xff] %v8499_v5  ;;  %12738 = vst [vmem:[#allocation33_spill] sm:$0xff] %v8539_v23  ;;  %7347 = vmatprep.subr.bf16.mxu0 %v7503_v24  ;;  %1593 = vmatpush1.bf16.msra.mxu1 %v7500_v27 }
 0x129   : > { %12726 = vst [vmem:[#allocation21_spill] sm:$0xff] %v8495_v4  ;;  %992 = vadd.xlane.f32.xlu1 %v8495_v4  ;;  %12739 = vst [vmem:[#allocation34_spill] sm:$0xff] %v8542_v26  ;;  %7348 = vmatpush3.bf16.msra.mxu0 %v7503_v24 }
 0x12b   : > { %994 = vadd.xlane.f32.xlu0 %v8492_v3 }
 0x12d   : > { %996 = vadd.xlane.f32.xlu1 %v8499_v5 }
 0x12f   : > { %998 = vadd.xlane.f32.xlu0 %v8504_v6 }
 0x131   : > { %1000 = vadd.xlane.f32.xlu1 %v8508_v7 }
 0x133   : > { %1002 = vadd.xlane.f32.xlu0 %v8511_v8 }
 0x135   : > { %1004 = vadd.xlane.f32.xlu1 %v8515_v9 }
 0x19b   : > { %v971_v25 = vpop.xlane.xlu1 %970 }
 0x19c   : > { %v967_v33 = vpop.xlane.xlu0 %966  ;;  %v1033_v39 = vmul.f32 0.0078125, %v971_v25 }
 0x19d   : > { %v1031_v34 = vmul.f32 0.0078125, %v967_v33  ;;  %v7506_v33 = vld [vmem:[%s12513_s5 + $0x4c] ss:$12 sps:$4 sm:$0xff]  }
 0x19e   : > { %v8567_v54 = vsub.f32 %v8429_v28, %v1033_v39  ;;  %1594 = vmatprep.subr.bf16.mxu1 %v7506_v33 }
 0x19f   : > { %v8557_v35 = vsub.f32 %v8432_v31, %v1031_v34  ;;  %v973_v46 = vpop.xlane.xlu1 %972  ;;  %v7507_v34 = vld [vmem:[%s12513_s5 + $0x20] ss:$12 sps:$4 sm:$0xff]  }
 0x1a0   : > { %v969_v38 = vpop.xlane.xlu0 %968  ;;  %v1034_v49 = vmul.f32 0.0078125, %v973_v46  ;;  %v1097_v59 = vmul.f32 %v8567_v54, %v8567_v54  ;;  %7349 = vmatprep.subr.bf16.mxu0 %v7507_v34 }
 0x1a1   : > { %v1032_v41 = vmul.f32 0.0078125, %v969_v38  ;;  %v1095_v42 = vmul.f32 %v8557_v35, %v8557_v35  ;;  %v7504_v38 = vld [vmem:[%s12513_s5 + $0x48] ss:$12 sps:$4 sm:$0xff]   ;;  %7350 = vmatpush3.bf16.msra.mxu0 %v7507_v34 }
 0x1a2   : > { %v8573_v60 = vsub.f32 %v8437_v36, %v1034_v49  ;;  %1595 = vmatpush1.bf16.msra.mxu1 %v7504_v38 }
 0x1a3   : > { %1127 = vadd.xlane.f32.xlu0 %v1095_v42  ;;  %v8562_v47 = vsub.f32 %v8440_v37, %v1032_v41 }
 0x1a4   : > { %v975_v56 = vpop.xlane.xlu0 %974  ;;  %v1098_v1 = vmul.f32 %v8573_v60, %v8573_v60 }
 0x1a5   : > { %v1096_v50 = vmul.f32 %v8562_v47, %v8562_v47  ;;  %v1035_v57 = vmul.f32 0.0078125, %v975_v56  ;;  %v7511_v56 = vld [vmem:[%s12513_s5 + $0x38] ss:$12 sps:$4 sm:$0xff]  }
 0x1a6   : > { %v977_v63 = vpop.xlane.xlu1 %976  ;;  %7351 = vmatprep.subr.bf16.mxu0 %v7511_v56 }
 0x1a7   : > { %1006 = vadd.xlane.f32.xlu0 %v8479_v58  ;;  %1129 = vadd.xlane.f32.xlu1 %v1096_v50  ;;  %v1036_v0 = vmul.f32 0.0078125, %v977_v63  ;;  %v8579_v10 = vsub.f32 %v8445_v40, %v1035_v57  ;;  %v7510_v50 = vld [vmem:[%s12513_s5 + $0x64] ss:$12 sps:$4 sm:$0xff]   ;;  %v7508_v57 = vld [vmem:[%s12513_s5 + $0x60] ss:$12 sps:$4 sm:$0xff]  }
 0x1a8   : > { %v979_v12 = vpop.xlane.xlu0 %978  ;;  %1596 = vmatprep.subr.bf16.mxu1 %v7510_v50  ;;  %7352 = vmatpush3.bf16.msra.mxu0 %v7511_v56  ;;  %v7520_v50 = vld [vmem:[%s12513_s5 + $0xa8] ss:$12 sps:$4 sm:$0xff]  }
 0x1a9   : > { %v1037_v14 = vmul.f32 0.0078125, %v979_v12  ;;  %v1099_v16 = vmul.f32 %v8579_v10, %v8579_v10  ;;  %v8585_v18 = vsub.f32 %v8451_v44, %v1036_v0  ;;  %1597 = vmatpush1.bf16.msra.mxu1 %v7508_v57  ;;  %v7514_v12 = vld [vmem:[%s12513_s5 + $0x7c] ss:$12 sps:$4 sm:$0xff]  }
 0x1aa   : > { %v981_v20 = vpop.xlane.xlu1 %980  ;;  %1598 = vmatprep.subr.bf16.mxu1 %v7514_v12 }
 0x1ab   : > { %1131 = vadd.xlane.f32.xlu0 %v1097_v59  ;;  %1008 = vadd.xlane.f32.xlu1 %v8489_v2  ;;  %v1038_v30 = vmul.f32 0.0078125, %v981_v20  ;;  %v1100_v32 = vmul.f32 %v8585_v18, %v8585_v18  ;;  %v8600_v25 = vsub.f32 %v8448_v43, %v1037_v14  ;;  %v7515_v14 = vld [vmem:[%s12513_s5 + $0x50] ss:$12 sps:$4 sm:$0xff]  }
 0x1ac   : > { %v983_v29 = vpop.xlane.xlu0 %982  ;;  %7353 = vmatprep.subr.bf16.mxu0 %v7515_v14 }
 0x1ad   : > { %v1039_v41 = vmul.f32 0.0078125, %v983_v29  ;;  %v1101_v42 = vmul.f32 %v8600_v25, %v8600_v25  ;;  %v8615_v46 = vsub.f32 %v8455_v45, %v1038_v30  ;;  %7354 = vmatpush3.bf16.msra.mxu0 %v7515_v14  ;;  %v7518_v29 = vld [vmem:[%s12513_s5 + $0x94] ss:$12 sps:$4 sm:$0xff]  }
 0x1ae   : > { %v985_v39 = vpop.xlane.xlu1 %984  ;;  %v7519_v30 = vld [vmem:[%s12513_s5 + $0x68] ss:$12 sps:$4 sm:$0xff]  }
 0x1af   : > { %1010 = vadd.xlane.f32.xlu0 %v8475_v55  ;;  %1133 = vadd.xlane.f32.xlu1 %v1098_v1  ;;  %v1040_v59 = vmul.f32 0.0078125, %v985_v39  ;;  %v1102_v63 = vmul.f32 %v8615_v46, %v8615_v46  ;;  %v8630_v0 = vsub.f32 %v8460_v48, %v1039_v41 }
 0x1b0   : > { %v987_v49 = vpop.xlane.xlu0 %986  ;;  %7355 = vmatprep.subr.bf16.mxu0 %v7519_v30 }
 0x1b1   : > { %v1041_v22 = vmul.f32 0.0078125, %v987_v49  ;;  %v1103_v24 = vmul.f32 %v8630_v0, %v8630_v0  ;;  %v8645_v27 = vsub.f32 %v8467_v52, %v1040_v59  ;;  %7356 = vmatpush3.bf16.msra.mxu0 %v7519_v30  ;;  %v7523_v49 = vld [vmem:[%s12513_s5 + $0x80] ss:$12 sps:$4 sm:$0xff]  }
 0x1b2   : > { %v989_v1 = vpop.xlane.xlu1 %988  ;;  %7357 = vmatprep.subr.bf16.mxu0 %v7523_v49 }
 0x1b3   : > { %1012 = vadd.xlane.f32.xlu1 %v8482_v61  ;;  %1135 = vadd.xlane.f32.xlu0 %v1099_v16  ;;  %v7512_v16 = vld [vmem:[%s12513_s5 + $0x78] ss:$12 sps:$4 sm:$0xff]   ;;  %v1042_v34 = vmul.f32 0.0078125, %v989_v1  ;;  %v1104_v38 = vmul.f32 %v8645_v27, %v8645_v27  ;;  %v8660_v39 = vsub.f32 %v8464_v51, %v1041_v22 }
 0x1b4   : > { %v991_v20 = vpop.xlane.xlu0 %990  ;;  %1599 = vmatpush1.bf16.msra.mxu1 %v7512_v16  ;;  %v7524_v1 = vld [vmem:[%s12513_s5 + $0x98] ss:$12 sps:$4 sm:$0xff]   ;;  %v12529_v16 = vmov 0  }
 0x1b5   : > { %1600 = vmatprep.subr.bf16.mxu1 %v7518_v29  ;;  %v1043_v56 = vmul.f32 0.0078125, %v991_v20  ;;  %v1105_v57 = vmul.f32 %v8660_v39, %v8660_v39  ;;  %v8675_v59 = vsub.f32 %v8471_v53, %v1042_v34  ;;  %7358 = vmatpush3.bf16.msra.mxu0 %v7523_v49  ;;  %v7525_v29 = vld [vmem:[%s12513_s5 + $0xb0] ss:$12 sps:$4 sm:$0xff]  }
 0x1b6   : > { %v993_v33 = vpop.xlane.xlu1 %992  ;;  %1620 = vmatprep.mubr.bf16.mxu1 %v12529_v16  ;;  %7359 = vmatprep.subr.bf16.mxu0 %v7524_v1 }
 0x1b7   : > { %1137 = vadd.xlane.f32.xlu1 %v1100_v32  ;;  %1014 = vadd.xlane.f32.xlu0 %v8523_v13  ;;  %v7516_v32 = vld [vmem:[%s12513_s5 + $0x90] ss:$12 sps:$4 sm:$0xff]   ;;  %v1044_v12 = vmul.f32 0.0078125, %v993_v33  ;;  %v1106_v22 = vmul.f32 %v8675_v59, %v8675_v59 }
 0x1b8   : > { %1601 = vmatpush1.bf16.msra.mxu1 %v7516_v32  ;;  %v995_v41 = vpop.xlane.xlu0 %994  ;;  %7469 = vset.pattern.permute.xlu0 %v12529_v16 }
 0x1b9   : > { %v1045_v20 = vmul.f32 0.0078125, %v995_v41  ;;  %7360 = vmatpush3.bf16.msra.mxu0 %v7524_v1  ;;  %v8693_v33 = vsub.f32 %v8495_v4, %v1044_v12 }
 0x1ba   : > { %7361 = vmatprep.subr.bf16.mxu0 %v7525_v29 }
 0x1bb   : > { %1016 = vadd.xlane.f32.xlu1 %v8530_v17  ;;  %1139 = vadd.xlane.f32.xlu0 %v1101_v42  ;;  %v7522_v42 = vld [vmem:[%s12513_s5 + $0xac] ss:$12 sps:$4 sm:$0xff]   ;;  %v8698_v41 = vsub.f32 %v8492_v3, %v1045_v20  ;;  %v1108_v49 = vmul.f32 %v8693_v33, %v8693_v33 }
 0x1bc   : > { %1602 = vmatprep.subr.bf16.mxu1 %v7522_v42  ;;  %v999_v14 = vpop.xlane.xlu0 %998 }
 0x1bd   : > { %1603 = vmatpush1.bf16.msra.mxu1 %v7520_v50  ;;  %v1047_v34 = vmul.f32 0.0078125, %v999_v14  ;;  %7362 = vmatpush3.bf16.msra.mxu0 %v7525_v29 }
 0x1bf   : > { %1141 = vadd.xlane.f32.xlu1 %v1102_v63  ;;  %1018 = vadd.xlane.f32.xlu0 %v8519_v11  ;;  %v997_v63 = vpop.xlane.xlu1 %996  ;;  %v8709_v1 = vsub.f32 %v8504_v6, %v1047_v34 }
 0x1c0   : > { %v1046_v30 = vmul.f32 0.0078125, %v997_v63  ;;  %v1003_v42 = vpop.xlane.xlu0 %1002  ;;  %v1109_v63 = vmul.f32 %v8698_v41, %v8698_v41 }
 0x1c2   : > { %v8704_v50 = vsub.f32 %v8499_v5, %v1046_v30 }
 0x1c3   : > { %1020 = vadd.xlane.f32.xlu1 %v8527_v15  ;;  %1143 = vadd.xlane.f32.xlu0 %v1103_v24  ;;  %v8685_v24 = vsub.f32 %v8485_v62, %v1043_v56  ;;  %v1001_v32 = vpop.xlane.xlu1 %1000 }
 0x1c4   : > { %v1048_v56 = vmul.f32 0.0078125, %v1001_v32  ;;  %v1110_v14 = vmul.f32 %v8704_v50, %v8704_v50 }
 0x1c6   : > { %v8716_v29 = vsub.f32 %v8508_v7, %v1048_v56 }
 0x1c7   : > { %1145 = vadd.xlane.f32.xlu1 %v1104_v38  ;;  %1022 = vadd.xlane.f32.xlu0 %v8536_v21  ;;  %v1107_v38 = vmul.f32 %v8685_v24, %v8685_v24  ;;  %v1005_v12 = vpop.xlane.xlu1 %1004 }
 0x1c8   : > { %v1050_v20 = vmul.f32 0.0078125, %v1005_v12  ;;  %v1112_v32 = vmul.f32 %v8716_v29, %v8716_v29 }
 0x1cb   : > { %1024 = vadd.xlane.f32.xlu1 %v8542_v26  ;;  %1147 = vadd.xlane.f32.xlu0 %v1105_v57  ;;  %v1049_v57 = vmul.f32 0.0078125, %v1003_v42 }
 0x1cd   : > { %v8719_v30 = vsub.f32 %v8511_v8, %v1049_v57 }
 0x1cf   : > { %1149 = vadd.xlane.f32.xlu1 %v1106_v22  ;;  %1026 = vadd.xlane.f32.xlu0 %v8533_v19  ;;  %v1111_v22 = vmul.f32 %v8709_v1, %v8709_v1  ;;  %v1113_v34 = vmul.f32 %v8719_v30, %v8719_v30 }
 0x1d3   : > { %1028 = vadd.xlane.f32.xlu1 %v8539_v23  ;;  %1151 = vadd.xlane.f32.xlu0 %v1107_v38  ;;  %v8726_v38 = vsub.f32 %v8515_v9, %v1050_v20 }
 0x1d5   : > { %v1114_v42 = vmul.f32 %v8726_v38, %v8726_v38 }
 0x1d7   : > { %1153 = vadd.xlane.f32.xlu1 %v1108_v49  ;;  %1155 = vadd.xlane.f32.xlu0 %v1109_v63 }
 0x1db   : > { %1157 = vadd.xlane.f32.xlu1 %v1110_v14  ;;  %1159 = vadd.xlane.f32.xlu0 %v1111_v22 }
 0x1df   : > { %1161 = vadd.xlane.f32.xlu1 %v1112_v32  ;;  %1163 = vadd.xlane.f32.xlu0 %v1113_v34 }
 0x1e3   : > { %1165 = vadd.xlane.f32.xlu1 %v1114_v42 }
 0x230   : > { %v1128_v49 = vpop.xlane.xlu0 %1127 }
 0x231   : > { %v1191_v56 = vmul.f32 0.0078125, %v1128_v49 }
 0x233   : > { %v1223_v57 = vadd.f32 1e-05, %v1191_v56 }
 0x234   : > { %v1130_v63 = vpop.xlane.xlu1 %1129  ;;  %v1007_v12 = vpop.xlane.xlu0 %1006 }
 0x235   : > { %7614 = vrsqrt.f32 %v1223_v57  ;;  %v1192_v14 = vmul.f32 0.0078125, %v1130_v63  ;;  %v1051_v22 = vmul.f32 0.0078125, %v1007_v12 }
 0x237   : > { %v1224_v16 = vadd.f32 1e-05, %v1192_v14  ;;  %v8731_v7 = vsub.f32 %v8479_v58, %v1051_v22 }
 0x238   : > { %v1009_v20 = vpop.xlane.xlu1 %1008  ;;  %v1132_v9 = vpop.xlane.xlu0 %1131 }
 0x239   : > { %7616 = vrsqrt.f32 %v1224_v16  ;;  %v1052_v32 = vmul.f32 0.0078125, %v1009_v20  ;;  %v1193_v34 = vmul.f32 0.0078125, %v1132_v9  ;;  %v1115_v42 = vmul.f32 %v8731_v7, %v8731_v7 }
 0x23b   : > { %v1225_v8 = vadd.f32 1e-05, %v1193_v34  ;;  %1167 = vadd.xlane.f32.xlu0 %v1115_v42  ;;  %v8736_v49 = vsub.f32 %v8489_v2, %v1052_v32  ;;  %v8747_v32 = vld [vmem:[%s12740_s28] ss:$0 sm:$0xff] }
 0x23c   : > { %v1134_v56 = vpop.xlane.xlu1 %1133  ;;  %v1011_v57 = vpop.xlane.xlu0 %1010 }
 0x23d   : > { %7618 = vrsqrt.f32 %v1225_v8  ;;  %v1194_v63 = vmul.f32 0.0078125, %v1134_v56  ;;  %v1053_v12 = vmul.f32 0.0078125, %v1011_v57  ;;  %v1116_v14 = vmul.f32 %v8736_v49, %v8736_v49 }
 0x23f   : > { %v7615_v22 = vpop.eup %7614  ;;  %v1226_v16 = vadd.f32 1e-05, %v1194_v63  ;;  %1169 = vadd.xlane.f32.xlu1 %v1116_v14  ;;  %v8741_v9 = vsub.f32 %v8475_v55, %v1053_v12 }
 0x240   : > { %v1287_v20 = vmul.f32 %v7615_v22, %v8557_v35  ;;  %v1013_v34 = vpop.xlane.xlu1 %1012  ;;  %v1136_v42 = vpop.xlane.xlu0 %1135 }
 0x241   : > { %7620 = vrsqrt.f32 %v1226_v16  ;;  %v1054_v8 = vmul.f32 0.0078125, %v1013_v34  ;;  %v1195_v56 = vmul.f32 0.0078125, %v1136_v42  ;;  %v1117_v57 = vmul.f32 %v8741_v9, %v8741_v9  ;;  %v8761_v42 = vld [vmem:[%s12512_s4] ss:$0 sm:$0xff] }
 0x242   : > { %v1325_v35 = vmul.f32 %v8747_v32, %v1287_v20 }
 0x243   : > { %v7617_v63 = vpop.eup %7616  ;;  %v1227_v14 = vadd.f32 1e-05, %v1195_v56  ;;  %1171 = vadd.xlane.f32.xlu0 %v1117_v57  ;;  %v8752_v12 = vsub.f32 %v8482_v61, %v1054_v8 }
 0x244   : > { %v1288_v22 = vmul.f32 %v7617_v63, %v8562_v47  ;;  %v1138_v55 = vpop.xlane.xlu1 %1137  ;;  %v1015_v2 = vpop.xlane.xlu0 %1014 }
 0x245   : > { %7622 = vrsqrt.f32 %v1227_v14  ;;  %v1196_v58 = vmul.f32 0.0078125, %v1138_v55  ;;  %v1055_v16 = vmul.f32 0.0078125, %v1015_v2  ;;  %v1118_v34 = vmul.f32 %v8752_v12, %v8752_v12 }
 0x246   : > { %v1326_v8 = vmul.f32 %v8747_v32, %v1288_v22  ;;  %v1363_v55 = vadd.f32 %v8761_v42, %v1325_v35 }
 0x247   : > { %v7619_v56 = vpop.eup %7618  ;;  %v1228_v57 = vadd.f32 1e-05, %v1196_v58  ;;  %1173 = vadd.xlane.f32.xlu1 %v1118_v34  ;;  %v8765_v47 = vsub.f32 %v8523_v13, %v1055_v16 }
 0x248   : > { %v1017_v20 = vpop.xlane.xlu1 %1016  ;;  %v1140_v63 = vpop.xlane.xlu0 %1139  ;;  %v1364_v2 = vadd.f32 %v8761_v42, %v1326_v8  ;;  %v1289_v14 = vmul.f32 %v7619_v56, %v8567_v54 }
 0x249   : > { %7624 = vrsqrt.f32 %v1228_v57  ;;  %v1056_v61 = vmul.f32 0.0078125, %v1017_v20  ;;  %v1197_v6 = vmul.f32 0.0078125, %v1140_v63  ;;  %v1119_v22 = vmul.f32 %v8765_v47, %v8765_v47 }
 0x24a   : > { %v1395_v5 = vpack.c.bf16 %v1364_v2, %v1363_v55  ;;  %v1327_v54 = vmul.f32 %v8747_v32, %v1289_v14  ;;  %v12741_v63 = vmov 0  }
 0x24b   : > { %v7621_v58 = vpop.eup %7620  ;;  %v1229_v34 = vadd.f32 1e-05, %v1197_v6  ;;  %1175 = vadd.xlane.f32.xlu0 %v1119_v22  ;;  %v8773_v16 = vsub.f32 %v8530_v17, %v1056_v61 }
 0x24c   : > { %v1142_v13 = vpop.xlane.xlu1 %1141  ;;  %1621 = vmatmul.mubr.bf16.vlgmr.msra.gmra.mrb[16].mxu1 %v1395_v5  ;;  %7363 = vmatprep.mubr.bf16.mxu0 %v1395_v5  ;;  %v1019_v35 = vpop.xlane.xlu0 %1018  ;;  %v1290_v8 = vmul.f32 %v7621_v58, %v8573_v60  ;;  %v1365_v14 = vadd.f32 %v8761_v42, %v1327_v54 }
 0x24d   : > { %7626 = vrsqrt.f32 %v1229_v34  ;;  %v1198_v56 = vmul.f32 0.0078125, %v1142_v13  ;;  %v1057_v57 = vmul.f32 0.0078125, %v1019_v35  ;;  %v1120_v20 = vmul.f32 %v8773_v16, %v8773_v16  ;;  %1630 = vmatprep.mubr.bf16.mxu1 %v12741_v63 }
 0x24e   : > { %v1328_v6 = vmul.f32 %v8747_v32, %v1290_v8 }
 0x24f   : > { %v7623_v61 = vpop.eup %7622  ;;  %v1230_v55 = vadd.f32 1e-05, %v1198_v56  ;;  %1177 = vadd.xlane.f32.xlu1 %v1120_v20  ;;  %v8782_v5 = vsub.f32 %v8519_v11, %v1057_v57 }
 0x250   : > { %v1021_v2 = vpop.xlane.xlu1 %1020  ;;  %v1144_v60 = vpop.xlane.xlu0 %1143  ;;  %v1366_v13 = vadd.f32 %v8761_v42, %v1328_v6  ;;  %v1291_v22 = vmul.f32 %v7623_v61, %v8579_v10 }
 0x251   : > { %7628 = vrsqrt.f32 %v1230_v55  ;;  %v1058_v58 = vmul.f32 0.0078125, %v1021_v2  ;;  %v1199_v34 = vmul.f32 0.0078125, %v1144_v60  ;;  %v1121_v35 = vmul.f32 %v8782_v5, %v8782_v5 }
 0x252   : > { %v1396_v8 = vpack.c.bf16 %v1366_v13, %v1365_v14  ;;  %v1329_v10 = vmul.f32 %v8747_v32, %v1291_v22 }
 0x253   : > { %v7625_v56 = vpop.eup %7624  ;;  %v1231_v20 = vadd.f32 1e-05, %v1199_v34  ;;  %1179 = vadd.xlane.f32.xlu0 %v1121_v35  ;;  %v8790_v57 = vsub.f32 %v8527_v15, %v1058_v58 }
 0x254   : > { %v1146_v11 = vpop.xlane.xlu1 %1145  ;;  %1631 = vmatmul.mubr.bf16.gmra.mrb[20].mxu1 %v1396_v8  ;;  %7364 = vmatmul.mubr.bf16.vlgmr.msra.gmra.mrb[16].mxu0 %v1396_v8  ;;  %v1023_v54 = vpop.xlane.xlu0 %1022  ;;  %v1292_v6 = vmul.f32 %v7625_v56, %v8585_v18  ;;  %v1367_v22 = vadd.f32 %v8761_v42, %v1329_v10 }
 0x255   : > { %7630 = vrsqrt.f32 %v1231_v20  ;;  %v1200_v61 = vmul.f32 0.0078125, %v1146_v11  ;;  %v1059_v55 = vmul.f32 0.0078125, %v1023_v54  ;;  %v1122_v2 = vmul.f32 %v8790_v57, %v8790_v57  ;;  %1640 = vmatprep.mubr.bf16.mxu1 %v12741_v63 }
 0x256   : > { %v1330_v60 = vmul.f32 %v8747_v32, %v1292_v6 }
 0x257   : > { %v7627_v14 = vpop.eup %7626  ;;  %v1232_v13 = vadd.f32 1e-05, %v1200_v61  ;;  %1181 = vadd.xlane.f32.xlu1 %v1122_v2  ;;  %v8799_v58 = vsub.f32 %v8536_v21, %v1059_v55 }
 0x258   : > { %v1025_v34 = vpop.xlane.xlu1 %1024  ;;  %v1148_v18 = vpop.xlane.xlu0 %1147  ;;  %v1368_v11 = vadd.f32 %v8761_v42, %v1330_v60  ;;  %v1293_v35 = vmul.f32 %v7627_v14, %v8600_v25 }
 0x259   : > { %7632 = vrsqrt.f32 %v1232_v13  ;;  %v1060_v8 = vmul.f32 0.0078125, %v1025_v34  ;;  %v1201_v56 = vmul.f32 0.0078125, %v1148_v18  ;;  %v1123_v20 = vmul.f32 %v8799_v58, %v8799_v58 }
 0x25a   : > { %v1397_v54 = vpack.c.bf16 %v1368_v11, %v1367_v22  ;;  %v1331_v25 = vmul.f32 %v8747_v32, %v1293_v35 }
 0x25b   : > { %v7629_v6 = vpop.eup %7628  ;;  %v1233_v61 = vadd.f32 1e-05, %v1201_v56  ;;  %1183 = vadd.xlane.f32.xlu0 %v1123_v20  ;;  %v8807_v55 = vsub.f32 %v8542_v26, %v1060_v8 }
 0x25c   : > { %v1150_v2 = vpop.xlane.xlu1 %1149  ;;  %1641 = vmatmul.mubr.bf16.gmra.mrb[24].mxu1 %v1397_v54  ;;  %7367 = vmatprep.mubr.bf16.mxu0 %v1397_v54  ;;  %v1027_v10 = vpop.xlane.xlu0 %1026  ;;  %v1294_v60 = vmul.f32 %v7629_v6, %v8615_v46  ;;  %v1369_v35 = vadd.f32 %v8761_v42, %v1331_v25 }
 0x25d   : > { %7634 = vrsqrt.f32 %v1233_v61  ;;  %v1202_v14 = vmul.f32 0.0078125, %v1150_v2  ;;  %v1061_v13 = vmul.f32 0.0078125, %v1027_v10  ;;  %v1124_v34 = vmul.f32 %v8807_v55, %v8807_v55  ;;  %1650 = vmatprep.mubr.bf16.mxu1 %v12741_v63 }
 0x25e   : > { %v1332_v18 = vmul.f32 %v8747_v32, %v1294_v60 }
 0x25f   : > { %v7631_v22 = vpop.eup %7630  ;;  %v1234_v11 = vadd.f32 1e-05, %v1202_v14  ;;  %1185 = vadd.xlane.f32.xlu1 %v1124_v34  ;;  %v8816_v8 = vsub.f32 %v8533_v19, %v1061_v13 }
 0x260   : > { %v1029_v56 = vpop.xlane.xlu1 %1028  ;;  %v1152_v46 = vpop.xlane.xlu0 %1151  ;;  %v1370_v20 = vadd.f32 %v8761_v42, %v1332_v18  ;;  %v1295_v54 = vmul.f32 %v7631_v22, %v8630_v0 }
 0x261   : > { %7636 = vrsqrt.f32 %v1234_v11  ;;  %v1062_v6 = vmul.f32 0.0078125, %v1029_v56  ;;  %v1203_v61 = vmul.f32 0.0078125, %v1152_v46  ;;  %v1125_v2 = vmul.f32 %v8816_v8, %v8816_v8 }
 0x262   : > { %v1398_v10 = vpack.c.bf16 %v1370_v20, %v1369_v35  ;;  %v1333_v0 = vmul.f32 %v8747_v32, %v1295_v54 }
 0x263   : > { %v7633_v60 = vpop.eup %7632  ;;  %v1235_v14 = vadd.f32 1e-05, %v1203_v61  ;;  %1187 = vadd.xlane.f32.xlu0 %v1125_v2  ;;  %v8824_v13 = vsub.f32 %v8539_v23, %v1062_v6 }
 0x264   : > { %v1154_v34 = vpop.xlane.xlu1 %1153  ;;  %1651 = vmatmul.mubr.bf16.gmra.mrb[28].mxu1 %v1398_v10  ;;  %7368 = vmatmul.mubr.bf16.gmra.mrb[20].mxu0 %v1398_v10  ;;  %v1156_v25 = vpop.xlane.xlu0 %1155  ;;  %v1296_v18 = vmul.f32 %v7633_v60, %v8645_v27  ;;  %v1371_v27 = vadd.f32 %v8761_v42, %v1333_v0 }
 0x265   : > { %7638 = vrsqrt.f32 %v1235_v14  ;;  %v1204_v22 = vmul.f32 0.0078125, %v1154_v34  ;;  %v1205_v11 = vmul.f32 0.0078125, %v1156_v25  ;;  %v1126_v56 = vmul.f32 %v8824_v13, %v8824_v13  ;;  %1660 = vmatprep.mubr.bf16.mxu1 %v12741_v63 }
 0x266   : > { %v1334_v46 = vmul.f32 %v8747_v32, %v1296_v18 }
 0x267   : > { %v7635_v35 = vpop.eup %7634  ;;  %v1236_v20 = vadd.f32 1e-05, %v1204_v22  ;;  %v1237_v6 = vadd.f32 1e-05, %v1205_v11  ;;  %1189 = vadd.xlane.f32.xlu1 %v1126_v56 }
 0x268   : > { %v1158_v61 = vpop.xlane.xlu1 %1157  ;;  %v1160_v2 = vpop.xlane.xlu0 %1159  ;;  %v1372_v54 = vadd.f32 %v8761_v42, %v1334_v46  ;;  %v1297_v10 = vmul.f32 %v7635_v35, %v8660_v39 }
 0x269   : > { %7640 = vrsqrt.f32 %v1236_v20  ;;  %v1206_v60 = vmul.f32 0.0078125, %v1158_v61  ;;  %v1207_v14 = vmul.f32 0.0078125, %v1160_v2 }
 0x26a   : > { %7642 = vrsqrt.f32 %v1237_v6  ;;  %v1399_v34 = vpack.c.bf16 %v1372_v54, %v1371_v27  ;;  %v1335_v0 = vmul.f32 %v8747_v32, %v1297_v10 }
 0x26b   : > { %v7637_v25 = vpop.eup %7636  ;;  %v1238_v23 = vadd.f32 1e-05, %v1206_v60  ;;  %v1239_v18 = vadd.f32 1e-05, %v1207_v14 }
 0x26c   : > { %v1162_v19 = vpop.xlane.xlu1 %1161  ;;  %1661 = vmatmul.mubr.bf16.gmra.mrb[32].mxu1 %v1399_v34  ;;  %7371 = vmatprep.mubr.bf16.mxu0 %v1399_v34  ;;  %v1164_v22 = vpop.xlane.xlu0 %1163  ;;  %v1298_v11 = vmul.f32 %v7637_v25, %v8675_v59  ;;  %v1373_v2 = vadd.f32 %v8761_v42, %v1335_v0 }
 0x26d   : > { %7644 = vrsqrt.f32 %v1238_v23  ;;  %v1208_v56 = vmul.f32 0.0078125, %v1162_v19  ;;  %v1209_v46 = vmul.f32 0.0078125, %v1164_v22  ;;  %1670 = vmatprep.mubr.bf16.mxu1 %v12741_v63 }
 0x26e   : > { %7646 = vrsqrt.f32 %v1239_v18  ;;  %v1336_v39 = vmul.f32 %v8747_v32, %v1298_v11 }
 0x26f   : > { %v7639_v35 = vpop.eup %7638  ;;  %v1240_v20 = vadd.f32 1e-05, %v1208_v56  ;;  %v1241_v6 = vadd.f32 1e-05, %v1209_v46 }
 0x270   : > { %v1166_v61 = vpop.xlane.xlu1 %1165  ;;  %v1374_v27 = vadd.f32 %v8761_v42, %v1336_v39  ;;  %v1299_v59 = vmul.f32 %v7639_v35, %v8685_v24 }
 0x271   : > { %7648 = vrsqrt.f32 %v1240_v20  ;;  %v1210_v54 = vmul.f32 0.0078125, %v1166_v61 }
 0x272   : > { %7650 = vrsqrt.f32 %v1241_v6  ;;  %v1400_v19 = vpack.c.bf16 %v1374_v27, %v1373_v2  ;;  %v1337_v34 = vmul.f32 %v8747_v32, %v1299_v59 }
 0x273   : > { %v7641_v23 = vpop.eup %7640  ;;  %v1242_v10 = vadd.f32 1e-05, %v1210_v54 }
 0x274   : > { %v7643_v60 = vpop.eup %7642  ;;  %1671 = vmatmul.mubr.bf16.gmra.mrb[36].mxu1 %v1400_v19  ;;  %7372 = vmatmul.mubr.bf16.gmra.mrb[24].mxu0 %v1400_v19  ;;  %v1300_v14 = vmul.f32 %v7641_v23, %v8693_v33  ;;  %v1375_v0 = vadd.f32 %v8761_v42, %v1337_v34 }
 0x275   : > { %7652 = vrsqrt.f32 %v1242_v10  ;;  %1680 = vmatprep.mubr.bf16.mxu1 %v12741_v63  ;;  %v1301_v25 = vmul.f32 %v7643_v60, %v8698_v41 }
 0x276   : > { %v1338_v24 = vmul.f32 %v8747_v32, %v1300_v14 }
 0x277   : > { %v7645_v18 = vpop.eup %7644  ;;  %v1339_v22 = vmul.f32 %v8747_v32, %v1301_v25 }
 0x278   : > { %v7647_v11 = vpop.eup %7646  ;;  %v1376_v56 = vadd.f32 %v8761_v42, %v1338_v24  ;;  %v1302_v46 = vmul.f32 %v7645_v18, %v8704_v50 }
 0x279   : > { %v1303_v33 = vmul.f32 %v7647_v11, %v8709_v1  ;;  %v1377_v41 = vadd.f32 %v8761_v42, %v1339_v22 }
 0x27a   : > { %v1401_v39 = vpack.c.bf16 %v1376_v56, %v1375_v0  ;;  %v1340_v35 = vmul.f32 %v8747_v32, %v1302_v46 }
 0x27b   : > { %v7649_v20 = vpop.eup %7648  ;;  %v1341_v27 = vmul.f32 %v8747_v32, %v1303_v33 }
 0x27c   : > { %v7651_v6 = vpop.eup %7650  ;;  %1681 = vmatmul.mubr.bf16.gmra.mrb[40].mxu1 %v1401_v39  ;;  %7375 = vmatprep.mubr.bf16.mxu0 %v1401_v39  ;;  %v1378_v61 = vadd.f32 %v8761_v42, %v1340_v35  ;;  %v1304_v2 = vmul.f32 %v7649_v20, %v8716_v29 }
 0x27d   : > { %1690 = vmatprep.mubr.bf16.mxu1 %v12741_v63  ;;  %v1305_v50 = vmul.f32 %v7651_v6, %v8719_v30  ;;  %v1379_v19 = vadd.f32 %v8761_v42, %v1341_v27 }
 0x27e   : > { %v1402_v1 = vpack.c.bf16 %v1378_v61, %v1377_v41  ;;  %v1342_v59 = vmul.f32 %v8747_v32, %v1304_v2 }
 0x27f   : > { %v7653_v54 = vpop.eup %7652  ;;  %v1343_v60 = vmul.f32 %v8747_v32, %v1305_v50 }
 0x280   : > { %7376 = vmatmul.mubr.bf16.gmra.mrb[28].mxu0 %v1402_v1  ;;  %v1380_v23 = vadd.f32 %v8761_v42, %v1342_v59  ;;  %v1306_v10 = vmul.f32 %v7653_v54, %v8726_v38 }
 0x281   : > { %v1381_v30 = vadd.f32 %v8761_v42, %v1343_v60 }
 0x282   : > { %v1403_v29 = vpack.c.bf16 %v1380_v23, %v1379_v19  ;;  %v1344_v14 = vmul.f32 %v8747_v32, %v1306_v10 }
 0x284   : > { %1691 = vmatmul.mubr.bf16.gmra.mrb[44].mxu1 %v1402_v1  ;;  %7379 = vmatprep.mubr.bf16.mxu0 %v1403_v29  ;;  %v1382_v34 = vadd.f32 %v8761_v42, %v1344_v14 }
 0x285   : > { %1700 = vmatprep.mubr.bf16.mxu1 %v12741_v63 }
 0x286   : > { %v1404_v25 = vpack.c.bf16 %v1382_v34, %v1381_v30 }
 0x288   : > { %7380 = vmatmul.mubr.bf16.gmra.mrb[32].mxu0 %v1404_v25 }
 0x28c   : > { %1701 = vmatmul.mubr.bf16.gmra.mrb[48].mxu1 %v1403_v29 }
 0x28d   : > { %1710 = vmatprep.mubr.bf16.mxu1 %v12741_v63 }
 0x294   : > { %1711 = vmatmul.mubr.bf16.gmra.mrb[52].mxu1 %v1404_v25 }
 0x295   : > { %1720 = vmatprep.mubr.bf16.mxu1 %v12741_v63 }
 0x2c8   : > { %v1168_v38 = vpop.xlane.xlu0 %1167 }
 0x2c9   : > { %v1211_v24 = vmul.f32 0.0078125, %v1168_v38 }
 0x2cb   : > { %v1243_v18 = vadd.f32 1e-05, %v1211_v24 }
 0x2cc   : > { %v1170_v22 = vpop.xlane.xlu1 %1169 }
 0x2cd   : > { %7654 = vrsqrt.f32 %v1243_v18  ;;  %v1212_v11 = vmul.f32 0.0078125, %v1170_v22 }
 0x2cf   : > { %v1244_v0 = vadd.f32 1e-05, %v1212_v11 }
 0x2d0   : > { %v1172_v56 = vpop.xlane.xlu0 %1171 }
 0x2d1   : > { %7656 = vrsqrt.f32 %v1244_v0  ;;  %v1213_v46 = vmul.f32 0.0078125, %v1172_v56 }
 0x2d3   : > { %v1245_v33 = vadd.f32 1e-05, %v1213_v46 }
 0x2d4   : > { %v1174_v39 = vpop.xlane.xlu1 %1173 }
 0x2d5   : > { %7658 = vrsqrt.f32 %v1245_v33  ;;  %v1214_v35 = vmul.f32 0.0078125, %v1174_v39 }
 0x2d7   : > { %v7655_v20 = vpop.eup %7654  ;;  %v1246_v41 = vadd.f32 1e-05, %v1214_v35 }
 0x2d8   : > { %v1176_v6 = vpop.xlane.xlu0 %1175  ;;  %v1307_v61 = vmul.f32 %v7655_v20, %v8731_v7 }
 0x2d9   : > { %7660 = vrsqrt.f32 %v1246_v41  ;;  %v1215_v2 = vmul.f32 0.0078125, %v1176_v6 }
 0x2da   : > { %v1345_v54 = vmul.f32 %v8747_v32, %v1307_v61 }
 0x2db   : > { %v7657_v27 = vpop.eup %7656  ;;  %v1247_v50 = vadd.f32 1e-05, %v1215_v2 }
 0x2dc   : > { %v1178_v1 = vpop.xlane.xlu1 %1177  ;;  %v1308_v59 = vmul.f32 %v7657_v27, %v8736_v49  ;;  %v1383_v14 = vadd.f32 %v8761_v42, %v1345_v54 }
 0x2dd   : > { %7662 = vrsqrt.f32 %v1247_v50  ;;  %v1216_v19 = vmul.f32 0.0078125, %v1178_v1 }
 0x2de   : > { %v1346_v23 = vmul.f32 %v8747_v32, %v1308_v59 }
 0x2df   : > { %v7659_v10 = vpop.eup %7658  ;;  %v1248_v60 = vadd.f32 1e-05, %v1216_v19 }
 0x2e0   : > { %v1180_v29 = vpop.xlane.xlu0 %1179  ;;  %v1384_v7 = vadd.f32 %v8761_v42, %v1346_v23  ;;  %v1309_v30 = vmul.f32 %v7659_v10, %v8741_v9 }
 0x2e1   : > { %7664 = vrsqrt.f32 %v1248_v60  ;;  %v1217_v34 = vmul.f32 0.0078125, %v1180_v29 }
 0x2e2   : > { %v1405_v25 = vpack.c.bf16 %v1384_v7, %v1383_v14  ;;  %v1347_v22 = vmul.f32 %v8747_v32, %v1309_v30 }
 0x2e3   : > { %v7661_v38 = vpop.eup %7660  ;;  %v1249_v49 = vadd.f32 1e-05, %v1217_v34 }
 0x2e4   : > { %v1182_v24 = vpop.xlane.xlu1 %1181  ;;  %1721 = vmatmul.mubr.bf16.gmra.mrb[56].mxu1 %v1405_v25  ;;  %7383 = vmatprep.mubr.bf16.mxu0 %v1405_v25  ;;  %v1310_v18 = vmul.f32 %v7661_v38, %v8752_v12  ;;  %v1385_v33 = vadd.f32 %v8761_v42, %v1347_v22 }
 0x2e5   : > { %7666 = vrsqrt.f32 %v1249_v49  ;;  %v1218_v11 = vmul.f32 0.0078125, %v1182_v24  ;;  %1730 = vmatprep.mubr.bf16.mxu1 %v12741_v63 }
 0x2e6   : > { %v1348_v0 = vmul.f32 %v8747_v32, %v1310_v18 }
 0x2e7   : > { %v7663_v56 = vpop.eup %7662  ;;  %v1250_v9 = vadd.f32 1e-05, %v1218_v11 }
 0x2e8   : > { %v1184_v46 = vpop.xlane.xlu0 %1183  ;;  %v1386_v39 = vadd.f32 %v8761_v42, %v1348_v0  ;;  %v1311_v35 = vmul.f32 %v7663_v56, %v8765_v47 }
 0x2e9   : > { %7668 = vrsqrt.f32 %v1250_v9  ;;  %v1219_v20 = vmul.f32 0.0078125, %v1184_v46 }
 0x2ea   : > { %v1406_v12 = vpack.c.bf16 %v1386_v39, %v1385_v33  ;;  %v1349_v27 = vmul.f32 %v8747_v32, %v1311_v35 }
 0x2eb   : > { %v7665_v41 = vpop.eup %7664  ;;  %v1251_v6 = vadd.f32 1e-05, %v1219_v20 }
 0x2ec   : > { %v1186_v61 = vpop.xlane.xlu1 %1185  ;;  %1731 = vmatmul.mubr.bf16.gmra.mrb[60].mxu1 %v1406_v12  ;;  %7384 = vmatmul.mubr.bf16.gmra.mrb[36].mxu0 %v1406_v12  ;;  %v1312_v2 = vmul.f32 %v7665_v41, %v8773_v16  ;;  %v1387_v19 = vadd.f32 %v8761_v42, %v1349_v27 }
 0x2ed   : > { %7670 = vrsqrt.f32 %v1251_v6  ;;  %v1220_v50 = vmul.f32 0.0078125, %v1186_v61  ;;  %1740 = vmatprep.mubr.bf16.mxu1 %v12741_v63 }
 0x2ee   : > { %v1350_v1 = vmul.f32 %v8747_v32, %v1312_v2 }
 0x2ef   : > { %v7667_v59 = vpop.eup %7666  ;;  %v1252_v47 = vadd.f32 1e-05, %v1220_v50 }
 0x2f0   : > { %v1188_v54 = vpop.xlane.xlu0 %1187  ;;  %v1388_v23 = vadd.f32 %v8761_v42, %v1350_v1  ;;  %v1313_v10 = vmul.f32 %v7667_v59, %v8782_v5 }
 0x2f1   : > { %7672 = vrsqrt.f32 %v1252_v47  ;;  %v1221_v60 = vmul.f32 0.0078125, %v1188_v54 }
 0x2f2   : > { %v1407_v16 = vpack.c.bf16 %v1388_v23, %v1387_v19  ;;  %v1351_v34 = vmul.f32 %v8747_v32, %v1313_v10 }
 0x2f3   : > { %v7669_v29 = vpop.eup %7668  ;;  %v1253_v14 = vadd.f32 1e-05, %v1221_v60 }
 0x2f4   : > { %v1190_v7 = vpop.xlane.xlu1 %1189  ;;  %1741 = vmatmul.mubr.bf16.gmra.mrb[64].mxu1 %v1407_v16  ;;  %7387 = vmatprep.mubr.bf16.mxu0 %v1407_v16  ;;  %v1314_v30 = vmul.f32 %v7669_v29, %v8790_v57  ;;  %v1389_v24 = vadd.f32 %v8761_v42, %v1351_v34 }
 0x2f5   : > { %7674 = vrsqrt.f32 %v1253_v14  ;;  %v1222_v25 = vmul.f32 0.0078125, %v1190_v7  ;;  %1750 = vmatprep.mubr.bf16.mxu1 %v12741_v63 }
 0x2f6   : > { %v1352_v38 = vmul.f32 %v8747_v32, %v1314_v30 }
 0x2f7   : > { %v7671_v49 = vpop.eup %7670  ;;  %v1254_v5 = vadd.f32 1e-05, %v1222_v25 }
 0x2f8   : > { %v1390_v18 = vadd.f32 %v8761_v42, %v1352_v38  ;;  %v1315_v22 = vmul.f32 %v7671_v49, %v8799_v58 }
 0x2f9   : > { %7676 = vrsqrt.f32 %v1254_v5 }
 0x2fa   : > { %v1408_v11 = vpack.c.bf16 %v1390_v18, %v1389_v24  ;;  %v1353_v56 = vmul.f32 %v8747_v32, %v1315_v22 }
 0x2fb   : > { %v7673_v0 = vpop.eup %7672 }
 0x2fc   : > { %1751 = vmatmul.mubr.bf16.gmra.mrb[68].mxu1 %v1408_v11  ;;  %7388 = vmatmul.mubr.bf16.gmra.mrb[40].mxu0 %v1408_v11  ;;  %v1316_v57 = vmul.f32 %v7673_v0, %v8807_v55  ;;  %v1391_v33 = vadd.f32 %v8761_v42, %v1353_v56 }
 0x2fd   : > { %1760 = vmatprep.mubr.bf16.mxu1 %v12741_v63 }
 0x2fe   : > { %v1354_v9 = vmul.f32 %v8747_v32, %v1316_v57 }
 0x2ff   : > { %v7675_v46 = vpop.eup %7674 }
 0x300   : > { %v1392_v39 = vadd.f32 %v8761_v42, %v1354_v9  ;;  %v1317_v58 = vmul.f32 %v7675_v46, %v8816_v8  ;;  %v12544_v8 = vlaneseq }
 0x302   : > { %v1409_v35 = vpack.c.bf16 %v1392_v39, %v1391_v33  ;;  %v1355_v55 = vmul.f32 %v8747_v32, %v1317_v58  ;;  %v8912_v27 = vshrl.u32 %v12544_v8, 7 }
 0x303   : > { %v7677_v20 = vpop.eup %7676 }
 0x304   : > { %1761 = vmatmul.mubr.bf16.gmra.mrb[72].mxu1 %v1409_v35  ;;  %7391 = vmatprep.mubr.bf16.mxu0 %v1409_v35  ;;  %v1318_v12 = vmul.f32 %v7677_v20, %v8824_v13  ;;  %v1393_v6 = vadd.f32 %v8761_v42, %v1355_v55  ;;  %12742 = vst [vmem:[#allocation35_spill] sm:$0xff] %v8912_v27  ;;  %v8915_v50 = vsub.s32 0, %v8912_v27  ;;  %v1443_v13 = vld [vmem:[%s12514_s6] sm:$0x7]  ;;  %v12546_v60 = vsub.s32 2, %v8912_v27 }
 0x305   : > { %1770 = vmatprep.mubr.bf16.mxu1 %v12741_v63 }
 0x306   : > { %v1356_v41 = vmul.f32 %v8747_v32, %v1318_v12  ;;  %12743 = vst [vmem:[#allocation36_spill] sm:$0xff] %v8915_v50  ;;  %v12545_v32 = vsub.s32 1, %v8912_v27  ;;  %v8922_v1 = vrot.slane %v1443_v13, %v8915_v50  ;;  %v8944_v30 = vrot.slane %v1443_v13, %v12546_v60 }
 0x308   : > { %v1394_v61 = vadd.f32 %v8761_v42, %v1356_v41  ;;  %v8926_v59 = vrot.slane %v1443_v13, %v12545_v32 }
 0x30a   : > { %v1410_v2 = vpack.c.bf16 %v1394_v61, %v1393_v6 }
 0x30c   : > { %1771 = vmatmul.mubr.bf16.gmra.mrb[76].mxu1 %v1410_v2  ;;  %7392 = vmatmul.mubr.bf16.gmra.mrb[44].mxu0 %v1410_v2 }
 0x31f   : > { %v1622_v42 = vpop.f32.mrb[16].mxu1 }
 0x320   : > { %v1624_v47 = vpop.f32.mrb[17].mxu1  ;;  %v1623_v19 = vadd.f32 %v1622_v42, %v8922_v1 }
 0x321   : > { %v1626_v54 = vpop.f32.mrb[18].mxu1  ;;  %v8932_v16 = vadd.f32 %v1624_v47, %v8926_v59 }
 0x322   : > { %v1627_v23 = vadd.f32 %v1626_v54, %v8922_v1  ;;  %v1628_v10 = vpop.f32.mrb[19].mxu1 }
 0x323   : > { %v8935_v29 = vadd.f32 %v1628_v10, %v8926_v59 }
 0x324   : > { %v8937_v14 = vpack.c.bf16 %v1627_v23, %v1623_v19 }
 0x326   : > { %6889 = vmatprep.mubr.bf16.mxu0 %v8937_v14 }
 0x327   : > { %v1632_v34 = vpop.f32.mrb[20].mxu1  ;;  %v7365_v25 = vpop.f32.mrb[16].mxu0 }
 0x328   : > { %v1634_v38 = vpop.f32.mrb[21].mxu1  ;;  %v1815_v49 = vpop.f32.mrb[17].mxu0  ;;  %v1633_v18 = vadd.f32 %v1632_v34, %v8922_v1  ;;  %v8948_v22 = vadd.f32 %v7365_v25, %v8944_v30 }
 0x329   : > { %v1636_v5 = vpop.f32.mrb[22].mxu1  ;;  %v7366_v24 = vpop.f32.mrb[18].mxu0  ;;  %v8955_v9 = vadd.f32 %v1634_v38, %v8926_v59  ;;  %v8958_v46 = vadd.f32 %v1815_v49, %v8944_v30 }
 0x32a   : > { %v1637_v11 = vadd.f32 %v1636_v5, %v8922_v1  ;;  %v8952_v0 = vadd.f32 %v7366_v24, %v8944_v30  ;;  %v1638_v57 = vpop.f32.mrb[23].mxu1  ;;  %v1818_v56 = vpop.f32.mrb[19].mxu0 }
 0x32b   : > { %v8961_v33 = vadd.f32 %v1638_v57, %v8926_v59  ;;  %v8964_v39 = vadd.f32 %v1818_v56, %v8944_v30 }
 0x32c   : > { %v8966_v58 = vpack.c.bf16 %v1637_v11, %v1633_v18 }
 0x32f   : > { %v1642_v55 = vpop.f32.mrb[24].mxu1 }
 0x330   : > { %v1644_v41 = vpop.f32.mrb[25].mxu1  ;;  %v1643_v61 = vadd.f32 %v1642_v55, %v8922_v1 }
 0x331   : > { %v1646_v6 = vpop.f32.mrb[26].mxu1  ;;  %v8977_v42 = vadd.f32 %v1644_v41, %v8926_v59 }
 0x332   : > { %v1647_v2 = vadd.f32 %v1646_v6, %v8922_v1  ;;  %v1648_v13 = vpop.f32.mrb[27].mxu1 }
 0x333   : > { %v8980_v47 = vadd.f32 %v1648_v13, %v8926_v59 }
 0x334   : > { %v8982_v54 = vpack.c.bf16 %v1647_v2, %v1643_v61 }
 0x337   : > { %v1652_v23 = vpop.f32.mrb[28].mxu1  ;;  %v7369_v10 = vpop.f32.mrb[20].mxu0 }
 0x338   : > { %v1654_v34 = vpop.f32.mrb[29].mxu1  ;;  %v1831_v25 = vpop.f32.mrb[21].mxu0  ;;  %v1653_v5 = vadd.f32 %v1652_v23, %v8922_v1  ;;  %v8988_v24 = vadd.f32 %v7369_v10, %v8944_v30 }
 0x339   : > { %v1656_v38 = vpop.f32.mrb[30].mxu1  ;;  %v7370_v49 = vpop.f32.mrb[22].mxu0  ;;  %v8995_v55 = vadd.f32 %v1654_v34, %v8926_v59  ;;  %v8998_v41 = vadd.f32 %v1831_v25, %v8944_v30 }
 0x33a   : > { %v1657_v18 = vadd.f32 %v1656_v38, %v8922_v1  ;;  %v8992_v11 = vadd.f32 %v7370_v49, %v8944_v30  ;;  %v1658_v57 = vpop.f32.mrb[31].mxu1  ;;  %v1834_v56 = vpop.f32.mrb[23].mxu0 }
 0x33b   : > { %v9001_v6 = vadd.f32 %v1658_v57, %v8926_v59  ;;  %v9004_v61 = vadd.f32 %v1834_v56, %v8944_v30 }
 0x33c   : > { %v9006_v2 = vpack.c.bf16 %v1657_v18, %v1653_v5 }
 0x33f   : > { %v1662_v34 = vpop.f32.mrb[32].mxu1 }
 0x340   : > { %v1664_v25 = vpop.f32.mrb[33].mxu1  ;;  %v1663_v49 = vadd.f32 %v1662_v34, %v8922_v1 }
 0x341   : > { %v1666_v38 = vpop.f32.mrb[34].mxu1  ;;  %v9017_v5 = vadd.f32 %v1664_v25, %v8926_v59 }
 0x342   : > { %v1667_v57 = vadd.f32 %v1666_v38, %v8922_v1  ;;  %v1668_v56 = vpop.f32.mrb[35].mxu1 }
 0x343   : > { %v9020_v18 = vadd.f32 %v1668_v56, %v8926_v59 }
 0x344   : > { %v9022_v8 = vpack.c.bf16 %v1667_v57, %v1663_v49 }
 0x347   : > { %v1672_v60 = vpop.f32.mrb[36].mxu1  ;;  %v7373_v13 = vpop.f32.mrb[24].mxu0 }
 0x348   : > { %v1674_v10 = vpop.f32.mrb[37].mxu1  ;;  %v1847_v23 = vpop.f32.mrb[25].mxu0  ;;  %v1673_v38 = vadd.f32 %v1672_v60, %v8922_v1  ;;  %v9028_v20 = vadd.f32 %v7373_v13, %v8944_v30 }
 0x349   : > { %v1676_v19 = vpop.f32.mrb[38].mxu1  ;;  %v7374_v34 = vpop.f32.mrb[26].mxu0  ;;  %v9035_v32 = vadd.f32 %v1674_v10, %v8926_v59  ;;  %v9038_v35 = vadd.f32 %v1847_v23, %v8944_v30 }
 0x34a   : > { %v1677_v25 = vadd.f32 %v1676_v19, %v8922_v1  ;;  %v9032_v56 = vadd.f32 %v7374_v34, %v8944_v30  ;;  %v1678_v49 = vpop.f32.mrb[39].mxu1  ;;  %v1850_v57 = vpop.f32.mrb[27].mxu0 }
 0x34b   : > { %v9041_v7 = vadd.f32 %v1678_v49, %v8926_v59  ;;  %v9044_v60 = vadd.f32 %v1850_v57, %v8944_v30 }
 0x34c   : > { %v9046_v13 = vpack.c.bf16 %v1677_v25, %v1673_v38 }
 0x34f   : > { %v1682_v12 = vpop.f32.mrb[40].mxu1 }
 0x350   : > { %v1684_v23 = vpop.f32.mrb[41].mxu1  ;;  %v1683_v49 = vadd.f32 %v1682_v12, %v8922_v1 }
 0x351   : > { %v1686_v50 = vpop.f32.mrb[42].mxu1  ;;  %v9057_v38 = vadd.f32 %v1684_v23, %v8926_v59 }
 0x352   : > { %v1687_v27 = vadd.f32 %v1686_v50, %v8922_v1  ;;  %v1688_v57 = vpop.f32.mrb[43].mxu1 }
 0x353   : > { %v9060_v25 = vadd.f32 %v1688_v57, %v8926_v59  ;;  %v7377_v19 = vpop.f32.mrb[28].mxu0 }
 0x354   : > { %v9062_v26 = vpack.c.bf16 %v1687_v27, %v1683_v49  ;;  %v1863_v34 = vpop.f32.mrb[29].mxu0  ;;  %v9067_v15 = vadd.f32 %v7377_v19, %v8944_v30 }
 0x355   : > { %v7378_v21 = vpop.f32.mrb[30].mxu0  ;;  %v9073_v23 = vadd.f32 %v1863_v34, %v8944_v30 }
 0x356   : > { %v9070_v50 = vadd.f32 %v7378_v21, %v8944_v30  ;;  %v1866_v12 = vpop.f32.mrb[31].mxu0 }
 0x357   : > { %v9076_v57 = vadd.f32 %v1866_v12, %v8944_v30  ;;  %v1692_v27 = vpop.f32.mrb[44].mxu1 }
 0x358   : > { %v1694_v17 = vpop.f32.mrb[45].mxu1  ;;  %v1693_v4 = vadd.f32 %v1692_v27, %v8922_v1 }
 0x359   : > { %v1696_v19 = vpop.f32.mrb[46].mxu1  ;;  %v9085_v34 = vadd.f32 %v1694_v17, %v8926_v59 }
 0x35a   : > { %v1697_v21 = vadd.f32 %v1696_v19, %v8922_v1  ;;  %v1698_v3 = vpop.f32.mrb[47].mxu1 }
 0x35b   : > { %v9088_v12 = vadd.f32 %v1698_v3, %v8926_v59  ;;  %v7381_v62 = vpop.f32.mrb[32].mxu0 }
 0x35c   : > { %v9090_v53 = vpack.c.bf16 %v1697_v21, %v1693_v4  ;;  %v1879_v49 = vpop.f32.mrb[33].mxu0  ;;  %v1888_v51 = vadd.f32 %v7381_v62, %v8944_v30 }
 0x35d   : > { %v7382_v10 = vpop.f32.mrb[34].mxu0  ;;  %v1880_v48 = vadd.f32 %v1879_v49, %v8944_v30  ;;  %v12744_v49 = vpack.c.bf16 %v8964_v39, %v8958_v46 }
 0x35e   : > { %v1891_v27 = vadd.f32 %v7382_v10, %v8944_v30  ;;  %v1882_v19 = vpop.f32.mrb[35].mxu0 }
 0x35f   : > { %v1883_v17 = vadd.f32 %v1882_v19, %v8944_v30  ;;  %v1702_v45 = vpop.f32.mrb[48].mxu1 }
 0x360   : > { %v1983_v3 = vpack.c.bf16 %v1891_v27, %v1888_v51  ;;  %v1704_v44 = vpop.f32.mrb[49].mxu1  ;;  %v1703_v21 = vadd.f32 %v1702_v45, %v8922_v1  ;;  %v12745_v45 = vpack.c.bf16 %v8935_v29, %v8932_v16  ;;  %v12747_v16 = vpack.c.bf16 %v8961_v33, %v8955_v9 }
 0x361   : > { %v1982_v43 = vpack.c.bf16 %v1883_v17, %v1880_v48  ;;  %v1706_v4 = vpop.f32.mrb[50].mxu1  ;;  %v1705_v36 = vadd.f32 %v1704_v44, %v8926_v59  ;;  %v12746_v44 = vpack.c.bf16 %v8952_v0, %v8948_v22 }
 0x362   : > { %v1707_v40 = vadd.f32 %v1706_v4, %v8922_v1  ;;  %v1708_v52 = vpop.f32.mrb[51].mxu1 }
 0x363   : > { %v1709_v62 = vadd.f32 %v1708_v52, %v8926_v59  ;;  %6921 = vmatprep.subr.bf16.mxu1 %v1982_v43 }
 0x364   : > { %v9102_v10 = vpack.c.bf16 %v1707_v40, %v1703_v21  ;;  %6922 = vmatpush3.bf16.msra.mxu1 %v12744_v49 }
 0x365   : > { %v1966_v51 = vpack.c.bf16 %v1709_v62, %v1705_v36  ;;  %6923 = vmatprep.subr.bf16.mxu1 %v1983_v3 }
 0x367   : > { %v1712_v48 = vpop.f32.mrb[52].mxu1  ;;  %6873 = vmatprep.subr.bf16.mxu0 %v1966_v51 }
 0x368   : > { %v1714_v27 = vpop.f32.mrb[53].mxu1  ;;  %6874 = vmatpush3.bf16.xpose.msra.mxu0 %v12745_v45  ;;  %6924 = vmatpush3.bf16.msra.mxu1 %v12746_v44  ;;  %v1713_v40 = vadd.f32 %v1712_v48, %v8922_v1  ;;  %v12748_v44 = vpack.c.bf16 %v8980_v47, %v8977_v42 }
 0x369   : > { %v1716_v43 = vpop.f32.mrb[54].mxu1  ;;  %v1715_v36 = vadd.f32 %v1714_v27, %v8926_v59 }
 0x36a   : > { %v1717_v52 = vadd.f32 %v1716_v43, %v8922_v1  ;;  %v1718_v46 = vpop.f32.mrb[55].mxu1 }
 0x36b   : > { %v1719_v39 = vadd.f32 %v1718_v46, %v8926_v59 }
 0x36c   : > { %v9117_v19 = vpack.c.bf16 %v1717_v52, %v1713_v40 }
 0x36d   : > { %v1967_v17 = vpack.c.bf16 %v1719_v39, %v1715_v36 }
 0x36f   : > { %6875 = vmatprep.subr.bf16.mxu0 %v1967_v17 }
 0x370   : > { %6876 = vmatpush3.bf16.xpose.msra.mxu0 %v12747_v16 }
 0x3b7   : > { %v1722_v29 = vpop.f32.mrb[56].mxu1 }
 0x3b8   : > { %v1724_v22 = vpop.f32.mrb[57].mxu1  ;;  %v1723_v3 = vadd.f32 %v1722_v29, %v8922_v1 }
 0x3b9   : > { %v1726_v0 = vpop.f32.mrb[58].mxu1  ;;  %v1725_v62 = vadd.f32 %v1724_v22, %v8926_v59 }
 0x3ba   : > { %v1727_v4 = vadd.f32 %v1726_v0, %v8922_v1  ;;  %v1728_v21 = vpop.f32.mrb[59].mxu1 }
 0x3bb   : > { %v1729_v49 = vadd.f32 %v1728_v21, %v8926_v59 }
 0x3bc   : > { %v9126_v51 = vpack.c.bf16 %v1727_v4, %v1723_v3 }
 0x3bd   : > { %v1968_v48 = vpack.c.bf16 %v1729_v49, %v1725_v62 }
 0x3bf   : > { %v1732_v27 = vpop.f32.mrb[60].mxu1  ;;  %v7385_v45 = vpop.f32.mrb[36].mxu0  ;;  %6877 = vmatprep.subr.bf16.mxu0 %v1968_v48  ;;  %v12749_v48 = vpack.c.bf16 %v9001_v6, %v8995_v55  ;;  %v12751_v55 = vpack.c.bf16 %v8992_v11, %v8988_v24 }
 0x3c0   : > { %v1734_v9 = vpop.f32.mrb[61].mxu1  ;;  %v1895_v33 = vpop.f32.mrb[37].mxu0  ;;  %6878 = vmatpush3.bf16.xpose.msra.mxu0 %v12748_v44  ;;  %v1733_v52 = vadd.f32 %v1732_v27, %v8922_v1  ;;  %v1904_v46 = vadd.f32 %v7385_v45, %v8944_v30  ;;  %v12750_v27 = vpack.c.bf16 %v9004_v61, %v8998_v41 }
 0x3c1   : > { %v1736_v43 = vpop.f32.mrb[62].mxu1  ;;  %v7386_v40 = vpop.f32.mrb[38].mxu0  ;;  %v1735_v29 = vadd.f32 %v1734_v9, %v8926_v59  ;;  %v1896_v22 = vadd.f32 %v1895_v33, %v8944_v30 }
 0x3c2   : > { %v1737_v36 = vadd.f32 %v1736_v43, %v8922_v1  ;;  %v1907_v39 = vadd.f32 %v7386_v40, %v8944_v30  ;;  %v1738_v17 = vpop.f32.mrb[63].mxu1  ;;  %v1898_v16 = vpop.f32.mrb[39].mxu0 }
 0x3c3   : > { %v1739_v0 = vadd.f32 %v1738_v17, %v8926_v59  ;;  %v1899_v42 = vadd.f32 %v1898_v16, %v8944_v30 }
 0x3c4   : > { %v9139_v47 = vpack.c.bf16 %v1737_v36, %v1733_v52  ;;  %v1985_v3 = vpack.c.bf16 %v1907_v39, %v1904_v46  ;;  %v12752_v39 = vpack.c.bf16 %v9020_v18, %v9017_v5 }
 0x3c5   : > { %v1969_v4 = vpack.c.bf16 %v1739_v0, %v1735_v29  ;;  %v1984_v21 = vpack.c.bf16 %v1899_v42, %v1896_v22 }
 0x3c7   : > { %v1742_v62 = vpop.f32.mrb[64].mxu1  ;;  %6879 = vmatprep.subr.bf16.mxu0 %v1969_v4  ;;  %6925 = vmatprep.subr.bf16.mxu1 %v1984_v21 }
 0x3c8   : > { %v1744_v49 = vpop.f32.mrb[65].mxu1  ;;  %6880 = vmatpush3.bf16.xpose.msra.mxu0 %v12749_v48  ;;  %6926 = vmatpush3.bf16.msra.mxu1 %v12750_v27  ;;  %v1743_v9 = vadd.f32 %v1742_v62, %v8922_v1 }
 0x3c9   : > { %v1746_v45 = vpop.f32.mrb[66].mxu1  ;;  %6927 = vmatprep.subr.bf16.mxu1 %v1985_v3  ;;  %v1745_v43 = vadd.f32 %v1744_v49, %v8926_v59 }
 0x3ca   : > { %v1747_v33 = vadd.f32 %v1746_v45, %v8922_v1  ;;  %v1748_v44 = vpop.f32.mrb[67].mxu1 }
 0x3cb   : > { %v1749_v40 = vadd.f32 %v1748_v44, %v8926_v59 }
 0x3cc   : > { %v9151_v52 = vpack.c.bf16 %v1747_v33, %v1743_v9  ;;  %6928 = vmatpush3.bf16.msra.mxu1 %v12751_v55  ;;  %v12753_v9 = vpack.c.bf16 %v9041_v7, %v9035_v32  ;;  %v12754_v33 = vpack.c.bf16 %v9044_v60, %v9038_v35  ;;  %v12755_v32 = vpack.c.bf16 %v9032_v56, %v9028_v20 }
 0x3cd   : > { %v1970_v6 = vpack.c.bf16 %v1749_v40, %v1745_v43 }
 0x3cf   : > { %v1752_v41 = vpop.f32.mrb[68].mxu1  ;;  %v7389_v61 = vpop.f32.mrb[40].mxu0  ;;  %6881 = vmatprep.subr.bf16.mxu0 %v1970_v6 }
 0x3d0   : > { %v1754_v46 = vpop.f32.mrb[69].mxu1  ;;  %v1911_v36 = vpop.f32.mrb[41].mxu0  ;;  %6882 = vmatpush3.bf16.xpose.msra.mxu0 %v12752_v39  ;;  %v1753_v29 = vadd.f32 %v1752_v41, %v8922_v1  ;;  %v1920_v22 = vadd.f32 %v7389_v61, %v8944_v30  ;;  %v12756_v39 = vpack.c.bf16 %v9060_v25, %v9057_v38 }
 0x3d1   : > { %v1756_v17 = vpop.f32.mrb[70].mxu1  ;;  %v7390_v16 = vpop.f32.mrb[42].mxu0  ;;  %v1755_v3 = vadd.f32 %v1754_v46, %v8926_v59  ;;  %v1912_v4 = vadd.f32 %v1911_v36, %v8944_v30 }
 0x3d2   : > { %v1757_v0 = vadd.f32 %v1756_v17, %v8922_v1  ;;  %v1923_v24 = vadd.f32 %v7390_v16, %v8944_v30  ;;  %v1758_v11 = vpop.f32.mrb[71].mxu1  ;;  %v1914_v42 = vpop.f32.mrb[43].mxu0 }
 0x3d3   : > { %v1759_v21 = vadd.f32 %v1758_v11, %v8926_v59  ;;  %v1915_v5 = vadd.f32 %v1914_v42, %v8944_v30 }
 0x3d4   : > { %v9167_v18 = vpack.c.bf16 %v1757_v0, %v1753_v29  ;;  %v1987_v62 = vpack.c.bf16 %v1923_v24, %v1920_v22 }
 0x3d5   : > { %v1971_v49 = vpack.c.bf16 %v1759_v21, %v1755_v3  ;;  %v1986_v48 = vpack.c.bf16 %v1915_v5, %v1912_v4 }
 0x3d7   : > { %v1762_v27 = vpop.f32.mrb[72].mxu1  ;;  %6883 = vmatprep.subr.bf16.mxu0 %v1971_v49  ;;  %6929 = vmatprep.subr.bf16.mxu1 %v1986_v48 }
 0x3d8   : > { %v1764_v45 = vpop.f32.mrb[73].mxu1  ;;  %6884 = vmatpush3.bf16.xpose.msra.mxu0 %v12753_v9  ;;  %6930 = vmatpush3.bf16.msra.mxu1 %v12754_v33  ;;  %v1763_v43 = vadd.f32 %v1762_v27, %v8922_v1 }
 0x3d9   : > { %v1766_v44 = vpop.f32.mrb[74].mxu1  ;;  %6931 = vmatprep.subr.bf16.mxu1 %v1987_v62  ;;  %v1765_v6 = vadd.f32 %v1764_v45, %v8926_v59  ;;  %v12758_v62 = vpack.c.bf16 %v9076_v57, %v9073_v23 }
 0x3da   : > { %v1767_v40 = vadd.f32 %v1766_v44, %v8922_v1  ;;  %v1768_v55 = vpop.f32.mrb[75].mxu1 }
 0x3db   : > { %v1769_v41 = vadd.f32 %v1768_v55, %v8926_v59 }
 0x3dc   : > { %v1956_v61 = vpack.c.bf16 %v1767_v40, %v1763_v43  ;;  %6932 = vmatpush3.bf16.msra.mxu1 %v12755_v32 }
 0x3dd   : > { %v1972_v7 = vpack.c.bf16 %v1769_v41, %v1765_v6 }
 0x3df   : > { %v1772_v46 = vpop.f32.mrb[76].mxu1  ;;  %v7393_v35 = vpop.f32.mrb[44].mxu0  ;;  %6885 = vmatprep.subr.bf16.mxu0 %v1972_v7 }
 0x3e0   : > { %v1774_v60 = vpop.f32.mrb[77].mxu1  ;;  %v1927_v36 = vpop.f32.mrb[45].mxu0  ;;  %6886 = vmatpush3.bf16.xpose.msra.mxu0 %v12756_v39  ;;  %v1773_v29 = vadd.f32 %v1772_v46, %v8922_v1  ;;  %v1936_v22 = vadd.f32 %v7393_v35, %v8944_v30 }
 0x3e1   : > { %v1776_v17 = vpop.f32.mrb[78].mxu1  ;;  %v7394_v16 = vpop.f32.mrb[46].mxu0  ;;  %v1775_v11 = vadd.f32 %v1774_v60, %v8926_v59  ;;  %v1928_v42 = vadd.f32 %v1927_v36, %v8944_v30 }
 0x3e2   : > { %v1777_v0 = vadd.f32 %v1776_v17, %v8922_v1  ;;  %v1939_v20 = vadd.f32 %v7394_v16, %v8944_v30  ;;  %v1778_v56 = vpop.f32.mrb[79].mxu1  ;;  %v1930_v24 = vpop.f32.mrb[47].mxu0  ;;  %v12757_v1 = vpack.c.bf16 %v9088_v12, %v9085_v34 }
 0x3e3   : > { %v1779_v3 = vadd.f32 %v1778_v56, %v8926_v59  ;;  %v1931_v38 = vadd.f32 %v1930_v24, %v8944_v30  ;;  %v12759_v59 = vpack.c.bf16 %v9070_v50, %v9067_v15 }
 0x3e4   : > { %v1957_v25 = vpack.c.bf16 %v1777_v0, %v1773_v29  ;;  %v1989_v4 = vpack.c.bf16 %v1939_v20, %v1936_v22 }
 0x3e5   : > { %v1973_v21 = vpack.c.bf16 %v1779_v3, %v1775_v11  ;;  %v1988_v5 = vpack.c.bf16 %v1931_v38, %v1928_v42 }
 0x3e7   : > { %6887 = vmatprep.subr.bf16.mxu0 %v1973_v21  ;;  %6933 = vmatprep.subr.bf16.mxu1 %v1988_v5 }
 0x3e8   : > { %6888 = vmatpush3.bf16.xpose.msra.mxu0 %v12757_v1  ;;  %6934 = vmatpush3.bf16.msra.mxu1 %v12758_v62 }
 0x3e9   : > { %6935 = vmatprep.subr.bf16.mxu1 %v1989_v4 }
 0x3ec   : > { %6936 = vmatpush3.bf16.msra.mxu1 %v12759_v59 }
 0x3ef   : > { %6890 = vmatmul.mubr.bf16.vlgmr.msra.gmra.mrb[48].mxu0 %v8937_v14 }
 0x3f0   : > { %6891 = vmatprep.mubr.bf16.mxu0 %v8966_v58 }
 0x3f7   : > { %6892 = vmatmul.mubr.bf16.gmra.mrb[52].mxu0 %v8966_v58 }
 0x3f8   : > { %6893 = vmatprep.mubr.bf16.mxu0 %v8982_v54 }
 0x3ff   : > { %6894 = vmatmul.mubr.bf16.gmra.mrb[56].mxu0 %v8982_v54 }
 0x400   : > { %6895 = vmatprep.mubr.bf16.mxu0 %v9006_v2 }
 0x407   : > { %6896 = vmatmul.mubr.bf16.gmra.mrb[60].mxu0 %v9006_v2 }
 0x408   : > { %6897 = vmatprep.mubr.bf16.mxu0 %v9022_v8 }
 0x40f   : > { %6898 = vmatmul.mubr.bf16.gmra.mrb[64].mxu0 %v9022_v8 }
 0x410   : > { %6899 = vmatprep.mubr.bf16.mxu0 %v9046_v13 }
 0x417   : > { %6900 = vmatmul.mubr.bf16.gmra.mrb[68].mxu0 %v9046_v13 }
 0x418   : > { %6901 = vmatprep.mubr.bf16.mxu0 %v9062_v26 }
 0x41f   : > { %6902 = vmatmul.mubr.bf16.gmra.mrb[72].mxu0 %v9062_v26 }
 0x420   : > { %6903 = vmatprep.mubr.bf16.mxu0 %v9090_v53 }
 0x427   : > { %6904 = vmatmul.mubr.bf16.gmra.mrb[76].mxu0 %v9090_v53 }
 0x428   : > { %6905 = vmatprep.mubr.bf16.mxu0 %v9102_v10 }
 0x42f   : > { %6906 = vmatmul.mubr.bf16.gmra.mrb[80].mxu0 %v9102_v10 }
 0x430   : > { %6907 = vmatprep.mubr.bf16.mxu0 %v9117_v19 }
 0x437   : > { %6908 = vmatmul.mubr.bf16.gmra.mrb[84].mxu0 %v9117_v19 }
 0x438   : > { %6909 = vmatprep.mubr.bf16.mxu0 %v9126_v51 }
 0x43f   : > { %6910 = vmatmul.mubr.bf16.gmra.mrb[88].mxu0 %v9126_v51 }
 0x440   : > { %6911 = vmatprep.mubr.bf16.mxu0 %v9139_v47 }
 0x447   : > { %6912 = vmatmul.mubr.bf16.gmra.mrb[92].mxu0 %v9139_v47 }
 0x448   : > { %6913 = vmatprep.mubr.bf16.mxu0 %v9151_v52 }
 0x44f   : > { %6914 = vmatmul.mubr.bf16.gmra.mrb[96].mxu0 %v9151_v52 }
 0x450   : > { %6915 = vmatprep.mubr.bf16.mxu0 %v9167_v18 }
 0x457   : > { %6916 = vmatmul.mubr.bf16.gmra.mrb[100].mxu0 %v9167_v18 }
 0x458   : > { %6917 = vmatprep.mubr.bf16.mxu0 %v1956_v61 }
 0x45f   : > { %6918 = vmatmul.mubr.bf16.gmra.mrb[104].mxu0 %v1956_v61 }
 0x460   : > { %6919 = vmatprep.mubr.bf16.mxu0 %v1957_v25 }
 0x467   : > { %6920 = vmatmul.mubr.bf16.gmra.mrb[108].mxu0 %v1957_v25 }
 0x4c2   : > { %v2024_v53 = vpop.f32.mrb[48].mxu0 }
 0x4c3   : > { %v9229_v15 = vmul.f32 0.088388346, %v2024_v53  ;;  %v2026_v26 = vpop.f32.mrb[49].mxu0 }
 0x4c4   : > { %v9231_v8 = vmul.f32 0.088388346, %v2026_v26  ;;  %v2028_v14 = vpop.f32.mrb[50].mxu0 }
 0x4c5   : > { %v9233_v30 = vmul.f32 0.088388346, %v2028_v14  ;;  %v2030_v58 = vpop.f32.mrb[51].mxu0 }
 0x4c6   : > { %v9235_v54 = vmul.f32 0.088388346, %v2030_v58  ;;  %v2247_v2 = vmax.f32 %v9229_v15, %v9231_v8 }
 0x4c8   : > { %2248 = vmax.xlane.f32.xlu0 %v2247_v2  ;;  %v2250_v13 = vmax.f32 %v9233_v30, %v9235_v54 }
 0x4ca   : > { %2251 = vmax.xlane.f32.xlu1 %v2250_v13  ;;  %v2034_v50 = vpop.f32.mrb[52].mxu0 }
 0x4cb   : > { %v9241_v23 = vmul.f32 0.088388346, %v2034_v50  ;;  %v2036_v57 = vpop.f32.mrb[53].mxu0 }
 0x4cc   : > { %v9243_v34 = vmul.f32 0.088388346, %v2036_v57  ;;  %v2038_v12 = vpop.f32.mrb[54].mxu0 }
 0x4cd   : > { %v9245_v10 = vmul.f32 0.088388346, %v2038_v12  ;;  %v2040_v19 = vpop.f32.mrb[55].mxu0 }
 0x4ce   : > { %v9247_v51 = vmul.f32 0.088388346, %v2040_v19  ;;  %v2253_v47 = vmax.f32 %v9241_v23, %v9243_v34 }
 0x4d0   : > { %2254 = vmax.xlane.f32.xlu0 %v2253_v47  ;;  %v2256_v52 = vmax.f32 %v9245_v10, %v9247_v51 }
 0x4d2   : > { %2257 = vmax.xlane.f32.xlu1 %v2256_v52  ;;  %v2044_v18 = vpop.f32.mrb[56].mxu0 }
 0x4d3   : > { %v9253_v49 = vmul.f32 0.088388346, %v2044_v18  ;;  %v2046_v48 = vpop.f32.mrb[57].mxu0 }
 0x4d4   : > { %v9255_v27 = vmul.f32 0.088388346, %v2046_v48  ;;  %v2048_v45 = vpop.f32.mrb[58].mxu0 }
 0x4d5   : > { %v9257_v9 = vmul.f32 0.088388346, %v2048_v45  ;;  %v2050_v33 = vpop.f32.mrb[59].mxu0 }
 0x4d6   : > { %v9259_v44 = vmul.f32 0.088388346, %v2050_v33  ;;  %v2259_v43 = vmax.f32 %v9253_v49, %v9255_v27 }
 0x4d8   : > { %2260 = vmax.xlane.f32.xlu0 %v2259_v43  ;;  %v2262_v40 = vmax.f32 %v9257_v9, %v9259_v44 }
 0x4da   : > { %2263 = vmax.xlane.f32.xlu1 %v2262_v40  ;;  %v2054_v55 = vpop.f32.mrb[60].mxu0 }
 0x4db   : > { %v9265_v6 = vmul.f32 0.088388346, %v2054_v55  ;;  %v2056_v41 = vpop.f32.mrb[61].mxu0 }
 0x4dc   : > { %v9267_v61 = vmul.f32 0.088388346, %v2056_v41  ;;  %v2058_v32 = vpop.f32.mrb[62].mxu0 }
 0x4dd   : > { %v9269_v7 = vmul.f32 0.088388346, %v2058_v32  ;;  %v2060_v46 = vpop.f32.mrb[63].mxu0 }
 0x4de   : > { %v9271_v35 = vmul.f32 0.088388346, %v2060_v46  ;;  %v2265_v60 = vmax.f32 %v9265_v6, %v9267_v61 }
 0x4e0   : > { %2266 = vmax.xlane.f32.xlu0 %v2265_v60  ;;  %v2268_v36 = vmax.f32 %v9269_v7, %v9271_v35 }
 0x4e2   : > { %2269 = vmax.xlane.f32.xlu1 %v2268_v36  ;;  %v2064_v39 = vpop.f32.mrb[64].mxu0 }
 0x4e3   : > { %v9277_v17 = vmul.f32 0.088388346, %v2064_v39  ;;  %v2066_v16 = vpop.f32.mrb[65].mxu0 }
 0x4e4   : > { %v9279_v29 = vmul.f32 0.088388346, %v2066_v16  ;;  %v2068_v22 = vpop.f32.mrb[66].mxu0 }
 0x4e5   : > { %v9281_v0 = vmul.f32 0.088388346, %v2068_v22  ;;  %v2070_v20 = vpop.f32.mrb[67].mxu0 }
 0x4e6   : > { %v9283_v56 = vmul.f32 0.088388346, %v2070_v20  ;;  %v2271_v24 = vmax.f32 %v9277_v17, %v9279_v29 }
 0x4e8   : > { %2272 = vmax.xlane.f32.xlu0 %v2271_v24  ;;  %v2274_v11 = vmax.f32 %v9281_v0, %v9283_v56 }
 0x4ea   : > { %2275 = vmax.xlane.f32.xlu1 %v2274_v11  ;;  %v2074_v42 = vpop.f32.mrb[68].mxu0 }
 0x4eb   : > { %v9289_v3 = vmul.f32 0.088388346, %v2074_v42  ;;  %v2076_v38 = vpop.f32.mrb[69].mxu0 }
 0x4ec   : > { %v9291_v25 = vmul.f32 0.088388346, %v2076_v38  ;;  %v2078_v4 = vpop.f32.mrb[70].mxu0 }
 0x4ed   : > { %v9293_v21 = vmul.f32 0.088388346, %v2078_v4  ;;  %v2080_v5 = vpop.f32.mrb[71].mxu0 }
 0x4ee   : > { %v9295_v1 = vmul.f32 0.088388346, %v2080_v5  ;;  %v2277_v62 = vmax.f32 %v9289_v3, %v9291_v25 }
 0x4f0   : > { %2278 = vmax.xlane.f32.xlu0 %v2277_v62  ;;  %v2280_v59 = vmax.f32 %v9293_v21, %v9295_v1 }
 0x4f2   : > { %2281 = vmax.xlane.f32.xlu1 %v2280_v59  ;;  %v2084_v53 = vpop.f32.mrb[72].mxu0 }
 0x4f3   : > { %v9301_v26 = vmul.f32 0.088388346, %v2084_v53  ;;  %v2086_v14 = vpop.f32.mrb[73].mxu0 }
 0x4f4   : > { %v9303_v58 = vmul.f32 0.088388346, %v2086_v14  ;;  %v2088_v2 = vpop.f32.mrb[74].mxu0 }
 0x4f5   : > { %v9305_v13 = vmul.f32 0.088388346, %v2088_v2  ;;  %v2090_v50 = vpop.f32.mrb[75].mxu0 }
 0x4f6   : > { %v9307_v57 = vmul.f32 0.088388346, %v2090_v50  ;;  %v2283_v12 = vmax.f32 %v9301_v26, %v9303_v58 }
 0x4f8   : > { %2284 = vmax.xlane.f32.xlu0 %v2283_v12  ;;  %v2286_v19 = vmax.f32 %v9305_v13, %v9307_v57 }
 0x4fa   : > { %2287 = vmax.xlane.f32.xlu1 %v2286_v19  ;;  %v2094_v47 = vpop.f32.mrb[76].mxu0 }
 0x4fb   : > { %v9313_v52 = vmul.f32 0.088388346, %v2094_v47  ;;  %v2096_v18 = vpop.f32.mrb[77].mxu0 }
 0x4fc   : > { %v9315_v48 = vmul.f32 0.088388346, %v2096_v18  ;;  %v2098_v45 = vpop.f32.mrb[78].mxu0 }
 0x4fd   : > { %v9317_v33 = vmul.f32 0.088388346, %v2098_v45  ;;  %v2100_v43 = vpop.f32.mrb[79].mxu0 }
 0x4fe   : > { %v9319_v40 = vmul.f32 0.088388346, %v2100_v43  ;;  %v2289_v55 = vmax.f32 %v9313_v52, %v9315_v48 }
 0x500   : > { %2290 = vmax.xlane.f32.xlu0 %v2289_v55  ;;  %v2292_v41 = vmax.f32 %v9317_v33, %v9319_v40 }
 0x502   : > { %2293 = vmax.xlane.f32.xlu1 %v2292_v41  ;;  %v2104_v32 = vpop.f32.mrb[80].mxu0 }
 0x503   : > { %v9325_v46 = vmul.f32 0.088388346, %v2104_v32  ;;  %v2106_v60 = vpop.f32.mrb[81].mxu0 }
 0x504   : > { %v9327_v36 = vmul.f32 0.088388346, %v2106_v60  ;;  %v2108_v39 = vpop.f32.mrb[82].mxu0 }
 0x505   : > { %v9329_v16 = vmul.f32 0.088388346, %v2108_v39  ;;  %v2110_v22 = vpop.f32.mrb[83].mxu0 }
 0x506   : > { %v9331_v20 = vmul.f32 0.088388346, %v2110_v22  ;;  %v2295_v24 = vmax.f32 %v9325_v46, %v9327_v36 }
 0x508   : > { %2296 = vmax.xlane.f32.xlu0 %v2295_v24  ;;  %v2298_v11 = vmax.f32 %v9329_v16, %v9331_v20 }
 0x50a   : > { %2299 = vmax.xlane.f32.xlu1 %v2298_v11  ;;  %v2114_v42 = vpop.f32.mrb[84].mxu0 }
 0x50b   : > { %v9337_v38 = vmul.f32 0.088388346, %v2114_v42  ;;  %v2116_v4 = vpop.f32.mrb[85].mxu0 }
 0x50c   : > { %v9339_v5 = vmul.f32 0.088388346, %v2116_v4  ;;  %v2118_v62 = vpop.f32.mrb[86].mxu0 }
 0x50d   : > { %v9341_v59 = vmul.f32 0.088388346, %v2118_v62  ;;  %v2120_v53 = vpop.f32.mrb[87].mxu0 }
 0x50e   : > { %v9343_v14 = vmul.f32 0.088388346, %v2120_v53  ;;  %v2301_v2 = vmax.f32 %v9337_v38, %v9339_v5 }
 0x510   : > { %2302 = vmax.xlane.f32.xlu0 %v2301_v2  ;;  %v2304_v50 = vmax.f32 %v9341_v59, %v9343_v14 }
 0x512   : > { %2305 = vmax.xlane.f32.xlu1 %v2304_v50  ;;  %v2124_v12 = vpop.f32.mrb[88].mxu0 }
 0x513   : > { %v9349_v19 = vmul.f32 0.088388346, %v2124_v12  ;;  %v2126_v47 = vpop.f32.mrb[89].mxu0 }
 0x514   : > { %v9351_v18 = vmul.f32 0.088388346, %v2126_v47  ;;  %v2128_v45 = vpop.f32.mrb[90].mxu0 }
 0x515   : > { %v9353_v43 = vmul.f32 0.088388346, %v2128_v45  ;;  %v2130_v55 = vpop.f32.mrb[91].mxu0 }
 0x516   : > { %v9355_v41 = vmul.f32 0.088388346, %v2130_v55  ;;  %v2307_v32 = vmax.f32 %v9349_v19, %v9351_v18 }
 0x518   : > { %2308 = vmax.xlane.f32.xlu0 %v2307_v32  ;;  %v2310_v60 = vmax.f32 %v9353_v43, %v9355_v41 }
 0x51a   : > { %2311 = vmax.xlane.f32.xlu1 %v2310_v60  ;;  %v2134_v39 = vpop.f32.mrb[92].mxu0 }
 0x51b   : > { %v9361_v22 = vmul.f32 0.088388346, %v2134_v39  ;;  %v2136_v24 = vpop.f32.mrb[93].mxu0 }
 0x51c   : > { %v9363_v11 = vmul.f32 0.088388346, %v2136_v24  ;;  %v2138_v42 = vpop.f32.mrb[94].mxu0 }
 0x51d   : > { %v9365_v4 = vmul.f32 0.088388346, %v2138_v42  ;;  %v2140_v62 = vpop.f32.mrb[95].mxu0 }
 0x51e   : > { %v9367_v53 = vmul.f32 0.088388346, %v2140_v62  ;;  %v2313_v2 = vmax.f32 %v9361_v22, %v9363_v11 }
 0x520   : > { %2314 = vmax.xlane.f32.xlu0 %v2313_v2  ;;  %v2316_v50 = vmax.f32 %v9365_v4, %v9367_v53 }
 0x522   : > { %2317 = vmax.xlane.f32.xlu1 %v2316_v50  ;;  %v2144_v12 = vpop.f32.mrb[96].mxu0 }
 0x523   : > { %v9373_v47 = vmul.f32 0.088388346, %v2144_v12  ;;  %v2146_v45 = vpop.f32.mrb[97].mxu0 }
 0x524   : > { %v9375_v55 = vmul.f32 0.088388346, %v2146_v45  ;;  %v2148_v32 = vpop.f32.mrb[98].mxu0 }
 0x525   : > { %v9377_v60 = vmul.f32 0.088388346, %v2148_v32  ;;  %v2150_v39 = vpop.f32.mrb[99].mxu0 }
 0x526   : > { %12760 = vst [vmem:[#allocation37_spill] sm:$0xff] %v9375_v55  ;;  %v9379_v24 = vmul.f32 0.088388346, %v2150_v39  ;;  %v2319_v42 = vmax.f32 %v9373_v47, %v9375_v55 }
 0x527   : > { %12761 = vst [vmem:[#allocation38_spill] sm:$0xff] %v9377_v60 }
 0x528   : > { %12762 = vst [vmem:[#allocation39_spill] sm:$0xff] %v9379_v24  ;;  %2320 = vmax.xlane.f32.xlu0 %v2319_v42  ;;  %v2322_v62 = vmax.f32 %v9377_v60, %v9379_v24 }
 0x52a   : > { %2323 = vmax.xlane.f32.xlu1 %v2322_v62  ;;  %v2154_v2 = vpop.f32.mrb[100].mxu0 }
 0x52b   : > { %v9385_v50 = vmul.f32 0.088388346, %v2154_v2  ;;  %v2156_v12 = vpop.f32.mrb[101].mxu0 }
 0x52c   : > { %v9387_v45 = vmul.f32 0.088388346, %v2156_v12  ;;  %v2158_v37 = vpop.f32.mrb[102].mxu0 }
 0x52d   : > { %12763 = vst [vmem:[#allocation40_spill] sm:$0xff] %v9385_v50  ;;  %v9389_v32 = vmul.f32 0.088388346, %v2158_v37  ;;  %v2160_v28 = vpop.f32.mrb[103].mxu0 }
 0x52e   : > { %12764 = vst [vmem:[#allocation41_spill] sm:$0xff] %v9387_v45  ;;  %v9391_v39 = vmul.f32 0.088388346, %v2160_v28  ;;  %v2325_v31 = vmax.f32 %v9385_v50, %v9387_v45 }
 0x52f   : > { %12765 = vst [vmem:[#allocation42_spill] sm:$0xff] %v9389_v32 }
 0x530   : > { %12766 = vst [vmem:[#allocation43_spill] sm:$0xff] %v9391_v39  ;;  %2326 = vmax.xlane.f32.xlu0 %v2325_v31  ;;  %v2328_v42 = vmax.f32 %v9389_v32, %v9391_v39 }
 0x532   : > { %2329 = vmax.xlane.f32.xlu1 %v2328_v42  ;;  %v2164_v62 = vpop.f32.mrb[104].mxu0 }
 0x533   : > { %v9397_v2 = vmul.f32 0.088388346, %v2164_v62  ;;  %v2166_v63 = vpop.f32.mrb[105].mxu0 }
 0x534   : > { %v9399_v12 = vmul.f32 0.088388346, %v2166_v63  ;;  %v2168_v24 = vpop.f32.mrb[106].mxu0 }
 0x535   : > { %12767 = vst [vmem:[#allocation44_spill] sm:$0xff] %v9397_v2  ;;  %v9401_v37 = vmul.f32 0.088388346, %v2168_v24  ;;  %v2170_v60 = vpop.f32.mrb[107].mxu0 }
 0x536   : > { %12768 = vst [vmem:[#allocation45_spill] sm:$0xff] %v9399_v12  ;;  %v9403_v28 = vmul.f32 0.088388346, %v2170_v60  ;;  %v2331_v45 = vmax.f32 %v9397_v2, %v9399_v12 }
 0x537   : > { %12769 = vst [vmem:[#allocation46_spill] sm:$0xff] %v9401_v37 }
 0x538   : > { %12770 = vst [vmem:[#allocation47_spill] sm:$0xff] %v9403_v28  ;;  %2332 = vmax.xlane.f32.xlu0 %v2331_v45  ;;  %v2334_v31 = vmax.f32 %v9401_v37, %v9403_v28 }
 0x53a   : > { %2335 = vmax.xlane.f32.xlu1 %v2334_v31  ;;  %v2174_v42 = vpop.f32.mrb[108].mxu0 }
 0x53b   : > { %v9409_v62 = vmul.f32 0.088388346, %v2174_v42  ;;  %v2176_v39 = vpop.f32.mrb[109].mxu0 }
 0x53c   : > { %v9411_v63 = vmul.f32 0.088388346, %v2176_v39  ;;  %v2178_v32 = vpop.f32.mrb[110].mxu0 }
 0x53d   : > { %v9413_v24 = vmul.f32 0.088388346, %v2178_v32  ;;  %v2180_v50 = vpop.f32.mrb[111].mxu0 }
 0x53e   : > { %12771 = vst [vmem:[#allocation48_spill] sm:$0xff] %v9411_v63  ;;  %v9415_v60 = vmul.f32 0.088388346, %v2180_v50  ;;  %v2337_v12 = vmax.f32 %v9409_v62, %v9411_v63 }
 0x540   : > { %12772 = vst [vmem:[#allocation49_spill] sm:$0xff] %v9415_v60  ;;  %2338 = vmax.xlane.f32.xlu0 %v2337_v12  ;;  %v2340_v45 = vmax.f32 %v9413_v24, %v9415_v60 }
 0x542   : > { %2341 = vmax.xlane.f32.xlu1 %v2340_v45 }
 0x555   : > { %v2249_v31 = vpop.xlane.xlu0 %2248 }
 0x556   : > { %v2343_v42 = vsub.f32 %v9229_v15, %v2249_v31  ;;  %v2344_v39 = vsub.f32 %v9231_v8, %v2249_v31 }
 0x557   : > { %v2252_v28 = vpop.xlane.xlu1 %2251 }
 0x558   : > { %v2407_v37 = vmul.f32 1.442695, %v2343_v42  ;;  %v2409_v32 = vmul.f32 1.442695, %v2344_v39  ;;  %v2345_v2 = vsub.f32 %v9233_v30, %v2252_v28  ;;  %v2346_v50 = vsub.f32 %v9235_v54, %v2252_v28 }
 0x55a   : > { %7678 = vpow2.f32 %v2407_v37  ;;  %v2411_v55 = vmul.f32 1.442695, %v2345_v2  ;;  %v2413_v63 = vmul.f32 1.442695, %v2346_v50 }
 0x55b   : > { %7680 = vpow2.f32 %v2409_v32 }
 0x55c   : > { %7682 = vpow2.f32 %v2411_v55 }
 0x55d   : > { %7684 = vpow2.f32 %v2413_v63  ;;  %v2255_v12 = vpop.xlane.xlu0 %2254 }
 0x55e   : > { %v2347_v45 = vsub.f32 %v9241_v23, %v2255_v12  ;;  %v2348_v15 = vsub.f32 %v9243_v34, %v2255_v12 }
 0x55f   : > { %v2258_v60 = vpop.xlane.xlu1 %2257 }
 0x560   : > { %v2415_v8 = vmul.f32 1.442695, %v2347_v45  ;;  %v2417_v31 = vmul.f32 1.442695, %v2348_v15  ;;  %v2349_v42 = vsub.f32 %v9245_v10, %v2258_v60  ;;  %v2350_v30 = vsub.f32 %v9247_v51, %v2258_v60 }
 0x562   : > { %7686 = vpow2.f32 %v2415_v8  ;;  %v2419_v54 = vmul.f32 1.442695, %v2349_v42  ;;  %v2421_v37 = vmul.f32 1.442695, %v2350_v30 }
 0x563   : > { %7688 = vpow2.f32 %v2417_v31 }
 0x564   : > { %v7679_v2 = vpop.eup %7678  ;;  %7690 = vpow2.f32 %v2419_v54 }
 0x565   : > { %v7681_v55 = vpop.eup %7680  ;;  %7692 = vpow2.f32 %v2421_v37  ;;  %v2261_v28 = vpop.xlane.xlu0 %2260 }
 0x566   : > { %v7683_v63 = vpop.eup %7682  ;;  %v2351_v23 = vsub.f32 %v9253_v49, %v2261_v28  ;;  %v2352_v34 = vsub.f32 %v9255_v27, %v2261_v28  ;;  %v2535_v39 = vadd.f32 %v7681_v55, %v7679_v2 }
 0x567   : > { %v7685_v32 = vpop.eup %7684  ;;  %v2264_v50 = vpop.xlane.xlu1 %2263  ;;  %v2631_v10 = vpack.c.bf16 %v7683_v63, %v7679_v2 }
 0x568   : > { %v2423_v12 = vmul.f32 1.442695, %v2351_v23  ;;  %v2425_v51 = vmul.f32 1.442695, %v2352_v34  ;;  %v2353_v60 = vsub.f32 %v9257_v9, %v2264_v50  ;;  %v2354_v45 = vsub.f32 %v9259_v44, %v2264_v50  ;;  %2536 = vadd.xlane.f32.xlu0 %v2535_v39 }
 0x569   : > { %v2632_v15 = vpack.c.bf16 %v7685_v32, %v7681_v55  ;;  %v2538_v8 = vadd.f32 %v7685_v32, %v7683_v63 }
 0x56a   : > { %7694 = vpow2.f32 %v2423_v12  ;;  %v2427_v31 = vmul.f32 1.442695, %v2353_v60  ;;  %v2429_v42 = vmul.f32 1.442695, %v2354_v45 }
 0x56b   : > { %7696 = vpow2.f32 %v2425_v51  ;;  %2695 = vmatprep.mubr.bf16.mxu1 %v2632_v15  ;;  %2539 = vadd.xlane.f32.xlu1 %v2538_v8 }
 0x56c   : > { %v7687_v49 = vpop.eup %7686  ;;  %7698 = vpow2.f32 %v2427_v31  ;;  %2696 = vmatmul.mubr.bf16.vlgmr.msra.gmra.mrb[80].mxu1 %v2631_v10 }
 0x56d   : > { %v7689_v27 = vpop.eup %7688  ;;  %7700 = vpow2.f32 %v2429_v42  ;;  %v2267_v30 = vpop.xlane.xlu0 %2266 }
 0x56e   : > { %v7691_v54 = vpop.eup %7690  ;;  %v2355_v9 = vsub.f32 %v9265_v6, %v2267_v30  ;;  %v2356_v44 = vsub.f32 %v9267_v61, %v2267_v30  ;;  %v2541_v37 = vadd.f32 %v7689_v27, %v7687_v49 }
 0x56f   : > { %v7693_v2 = vpop.eup %7692  ;;  %v2270_v55 = vpop.xlane.xlu1 %2269  ;;  %v2633_v28 = vpack.c.bf16 %v7691_v54, %v7687_v49 }
 0x570   : > { %v2431_v63 = vmul.f32 1.442695, %v2355_v9  ;;  %v2433_v23 = vmul.f32 1.442695, %v2356_v44  ;;  %v2357_v34 = vsub.f32 %v9269_v7, %v2270_v55  ;;  %v2358_v39 = vsub.f32 %v9271_v35, %v2270_v55  ;;  %2542 = vadd.xlane.f32.xlu0 %v2541_v37 }
 0x571   : > { %v2634_v32 = vpack.c.bf16 %v7693_v2, %v7689_v27  ;;  %v2544_v50 = vadd.f32 %v7693_v2, %v7691_v54 }
 0x572   : > { %7702 = vpow2.f32 %v2431_v63  ;;  %v2435_v10 = vmul.f32 1.442695, %v2357_v34  ;;  %v2437_v12 = vmul.f32 1.442695, %v2358_v39 }
 0x573   : > { %7704 = vpow2.f32 %v2433_v23  ;;  %2703 = vmatprep.mubr.bf16.mxu1 %v2634_v32  ;;  %2545 = vadd.xlane.f32.xlu1 %v2544_v50 }
 0x574   : > { %v7695_v6 = vpop.eup %7694  ;;  %7706 = vpow2.f32 %v2435_v10  ;;  %2704 = vmatmul.mubr.bf16.gmra.mrb[84].mxu1 %v2633_v28 }
 0x575   : > { %v7697_v61 = vpop.eup %7696  ;;  %7708 = vpow2.f32 %v2437_v12  ;;  %v2273_v51 = vpop.xlane.xlu0 %2272 }
 0x576   : > { %v7699_v60 = vpop.eup %7698  ;;  %v2359_v7 = vsub.f32 %v9277_v17, %v2273_v51  ;;  %v2360_v35 = vsub.f32 %v9279_v29, %v2273_v51  ;;  %v2547_v45 = vadd.f32 %v7697_v61, %v7695_v6 }
 0x577   : > { %v7701_v15 = vpop.eup %7700  ;;  %v2276_v8 = vpop.xlane.xlu1 %2275  ;;  %v2635_v31 = vpack.c.bf16 %v7699_v60, %v7695_v6 }
 0x578   : > { %v2439_v42 = vmul.f32 1.442695, %v2359_v7  ;;  %v2441_v49 = vmul.f32 1.442695, %v2360_v35  ;;  %v2361_v27 = vsub.f32 %v9281_v0, %v2276_v8  ;;  %v2362_v30 = vsub.f32 %v9283_v56, %v2276_v8  ;;  %2548 = vadd.xlane.f32.xlu0 %v2547_v45 }
 0x579   : > { %v2636_v54 = vpack.c.bf16 %v7701_v15, %v7697_v61  ;;  %v2550_v9 = vadd.f32 %v7701_v15, %v7699_v60  ;;  %v7526_v61 = vld [vmem:[%s12515_s7] sm:$0xff]  }
 0x57a   : > { %7710 = vpow2.f32 %v2439_v42  ;;  %v2443_v44 = vmul.f32 1.442695, %v2361_v27  ;;  %v2445_v37 = vmul.f32 1.442695, %v2362_v30  ;;  %7395 = vmatprep.subr.bf16.mxu0 %v7526_v61 }
 0x57b   : > { %7712 = vpow2.f32 %v2441_v49  ;;  %2711 = vmatprep.mubr.bf16.mxu1 %v2636_v54  ;;  %2551 = vadd.xlane.f32.xlu1 %v2550_v9 }
 0x57c   : > { %v7703_v17 = vpop.eup %7702  ;;  %7714 = vpow2.f32 %v2443_v44  ;;  %2712 = vmatmul.mubr.bf16.gmra.mrb[88].mxu1 %v2635_v31  ;;  %7396 = vmatpush3.bf16.msra.mxu0 %v7526_v61 }
 0x57d   : > { %v7705_v29 = vpop.eup %7704  ;;  %7716 = vpow2.f32 %v2445_v37  ;;  %v2279_v2 = vpop.xlane.xlu0 %2278 }
 0x57e   : > { %v7707_v55 = vpop.eup %7706  ;;  %v2363_v0 = vsub.f32 %v9289_v3, %v2279_v2  ;;  %v2364_v56 = vsub.f32 %v9291_v25, %v2279_v2  ;;  %v2553_v28 = vadd.f32 %v7705_v29, %v7703_v17 }
 0x57f   : > { %v7709_v63 = vpop.eup %7708  ;;  %v2282_v23 = vpop.xlane.xlu1 %2281  ;;  %v2637_v34 = vpack.c.bf16 %v7707_v55, %v7703_v17 }
 0x580   : > { %v2447_v39 = vmul.f32 1.442695, %v2363_v0  ;;  %v2449_v32 = vmul.f32 1.442695, %v2364_v56  ;;  %v2365_v50 = vsub.f32 %v9293_v21, %v2282_v23  ;;  %v2366_v10 = vsub.f32 %v9295_v1, %v2282_v23  ;;  %2554 = vadd.xlane.f32.xlu0 %v2553_v28 }
 0x581   : > { %v2638_v12 = vpack.c.bf16 %v7709_v63, %v7705_v29  ;;  %v2556_v6 = vadd.f32 %v7709_v63, %v7707_v55 }
 0x582   : > { %7718 = vpow2.f32 %v2447_v39  ;;  %v2451_v3 = vmul.f32 1.442695, %v2365_v50  ;;  %v2453_v25 = vmul.f32 1.442695, %v2366_v10  ;;  %v7527_v50 = vld [vmem:[%s12515_s7 + $0x8] sm:$0xff]  }
 0x583   : > { %7720 = vpow2.f32 %v2449_v32  ;;  %2719 = vmatprep.mubr.bf16.mxu1 %v2638_v12  ;;  %2557 = vadd.xlane.f32.xlu1 %v2556_v6 }
 0x584   : > { %v7711_v51 = vpop.eup %7710  ;;  %7722 = vpow2.f32 %v2451_v3  ;;  %2720 = vmatmul.mubr.bf16.gmra.mrb[92].mxu1 %v2637_v34  ;;  %7397 = vmatprep.subr.bf16.mxu0 %v7527_v50 }
 0x585   : > { %v7713_v21 = vpop.eup %7712  ;;  %7724 = vpow2.f32 %v2453_v25  ;;  %v2285_v1 = vpop.xlane.xlu0 %2284  ;;  %7398 = vmatpush3.bf16.msra.mxu0 %v7527_v50 }
 0x586   : > { %v7715_v60 = vpop.eup %7714  ;;  %v2367_v7 = vsub.f32 %v9301_v26, %v2285_v1  ;;  %v2368_v35 = vsub.f32 %v9303_v58, %v2285_v1  ;;  %v2559_v45 = vadd.f32 %v7713_v21, %v7711_v51 }
 0x587   : > { %v7717_v15 = vpop.eup %7716  ;;  %v2288_v8 = vpop.xlane.xlu1 %2287  ;;  %v2639_v31 = vpack.c.bf16 %v7715_v60, %v7711_v51 }
 0x588   : > { %v2455_v42 = vmul.f32 1.442695, %v2367_v7  ;;  %v2457_v49 = vmul.f32 1.442695, %v2368_v35  ;;  %v2369_v27 = vsub.f32 %v9305_v13, %v2288_v8  ;;  %v2370_v30 = vsub.f32 %v9307_v57, %v2288_v8  ;;  %2560 = vadd.xlane.f32.xlu0 %v2559_v45 }
 0x589   : > { %v2640_v54 = vpack.c.bf16 %v7717_v15, %v7713_v21  ;;  %v2562_v9 = vadd.f32 %v7717_v15, %v7715_v60 }
 0x58a   : > { %7726 = vpow2.f32 %v2455_v42  ;;  %v2459_v44 = vmul.f32 1.442695, %v2369_v27  ;;  %v2461_v37 = vmul.f32 1.442695, %v2370_v30 }
 0x58b   : > { %7728 = vpow2.f32 %v2457_v49  ;;  %2727 = vmatprep.mubr.bf16.mxu1 %v2640_v54  ;;  %2563 = vadd.xlane.f32.xlu1 %v2562_v9 }
 0x58c   : > { %v7719_v26 = vpop.eup %7718  ;;  %7730 = vpow2.f32 %v2459_v44  ;;  %2728 = vmatmul.mubr.bf16.gmra.mrb[96].mxu1 %v2639_v31 }
 0x58d   : > { %v7721_v58 = vpop.eup %7720  ;;  %7732 = vpow2.f32 %v2461_v37  ;;  %v2291_v17 = vpop.xlane.xlu0 %2290 }
 0x58e   : > { %v7723_v29 = vpop.eup %7722  ;;  %v2371_v13 = vsub.f32 %v9313_v52, %v2291_v17  ;;  %v2372_v57 = vsub.f32 %v9315_v48, %v2291_v17  ;;  %v2565_v2 = vadd.f32 %v7721_v58, %v7719_v26 }
 0x58f   : > { %v7725_v55 = vpop.eup %7724  ;;  %v2294_v0 = vpop.xlane.xlu1 %2293  ;;  %v2641_v56 = vpack.c.bf16 %v7723_v29, %v7719_v26 }
 0x590   : > { %v2463_v28 = vmul.f32 1.442695, %v2371_v13  ;;  %v2465_v63 = vmul.f32 1.442695, %v2372_v57  ;;  %v2373_v23 = vsub.f32 %v9317_v33, %v2294_v0  ;;  %v2374_v34 = vsub.f32 %v9319_v40, %v2294_v0  ;;  %2566 = vadd.xlane.f32.xlu0 %v2565_v2  ;;  %v7528_v13 = vld [vmem:[%s12515_s7 + $0x10] sm:$0xff]  }
 0x591   : > { %v2642_v39 = vpack.c.bf16 %v7725_v55, %v7721_v58  ;;  %v2568_v32 = vadd.f32 %v7725_v55, %v7723_v29  ;;  %7399 = vmatprep.subr.bf16.mxu0 %v7528_v13 }
 0x592   : > { %7734 = vpow2.f32 %v2463_v28  ;;  %v2467_v52 = vmul.f32 1.442695, %v2373_v23  ;;  %v2469_v48 = vmul.f32 1.442695, %v2374_v34  ;;  %7400 = vmatpush3.bf16.msra.mxu0 %v7528_v13 }
 0x593   : > { %7736 = vpow2.f32 %v2465_v63  ;;  %2735 = vmatprep.mubr.bf16.mxu1 %v2642_v39  ;;  %2569 = vadd.xlane.f32.xlu1 %v2568_v32 }
 0x594   : > { %v7727_v10 = vpop.eup %7726  ;;  %7738 = vpow2.f32 %v2467_v52  ;;  %2736 = vmatmul.mubr.bf16.gmra.mrb[100].mxu1 %v2641_v56 }
 0x595   : > { %v7729_v33 = vpop.eup %7728  ;;  %7740 = vpow2.f32 %v2469_v48  ;;  %v2297_v40 = vpop.xlane.xlu0 %2296 }
 0x596   : > { %v7731_v12 = vpop.eup %7730  ;;  %v2375_v6 = vsub.f32 %v9325_v46, %v2297_v40  ;;  %v2376_v61 = vsub.f32 %v9327_v36, %v2297_v40  ;;  %v2571_v3 = vadd.f32 %v7729_v33, %v7727_v10 }
 0x597   : > { %v7733_v25 = vpop.eup %7732  ;;  %v2300_v51 = vpop.xlane.xlu1 %2299  ;;  %v2643_v21 = vpack.c.bf16 %v7731_v12, %v7727_v10 }
 0x598   : > { %v2471_v1 = vmul.f32 1.442695, %v2375_v6  ;;  %v2473_v60 = vmul.f32 1.442695, %v2376_v61  ;;  %v2377_v7 = vsub.f32 %v9329_v16, %v2300_v51  ;;  %v2378_v35 = vsub.f32 %v9331_v20, %v2300_v51  ;;  %2572 = vadd.xlane.f32.xlu0 %v2571_v3 }
 0x599   : > { %v2644_v45 = vpack.c.bf16 %v7733_v25, %v7729_v33  ;;  %v2574_v15 = vadd.f32 %v7733_v25, %v7731_v12 }
 0x59a   : > { %7742 = vpow2.f32 %v2471_v1  ;;  %v2475_v8 = vmul.f32 1.442695, %v2377_v7  ;;  %v2477_v31 = vmul.f32 1.442695, %v2378_v35 }
 0x59b   : > { %7744 = vpow2.f32 %v2473_v60  ;;  %2743 = vmatprep.mubr.bf16.mxu1 %v2644_v45  ;;  %2575 = vadd.xlane.f32.xlu1 %v2574_v15  ;;  %v7529_v45 = vld [vmem:[%s12515_s7 + $0x18] sm:$0xff]  }
 0x59c   : > { %v7735_v46 = vpop.eup %7734  ;;  %7746 = vpow2.f32 %v2475_v8  ;;  %2744 = vmatmul.mubr.bf16.gmra.mrb[104].mxu1 %v2643_v21  ;;  %7401 = vmatprep.subr.bf16.mxu0 %v7529_v45 }
 0x59d   : > { %v7737_v36 = vpop.eup %7736  ;;  %7748 = vpow2.f32 %v2477_v31  ;;  %v2303_v42 = vpop.xlane.xlu0 %2302  ;;  %7402 = vmatpush3.bf16.msra.mxu0 %v7529_v45 }
 0x59e   : > { %v7739_v49 = vpop.eup %7738  ;;  %v2379_v16 = vsub.f32 %v9337_v38, %v2303_v42  ;;  %v2380_v20 = vsub.f32 %v9339_v5, %v2303_v42  ;;  %v2577_v27 = vadd.f32 %v7737_v36, %v7735_v46 }
 0x59f   : > { %v7741_v30 = vpop.eup %7740  ;;  %v2306_v54 = vpop.xlane.xlu1 %2305  ;;  %v2645_v9 = vpack.c.bf16 %v7739_v49, %v7735_v46  ;;  %v12773_v46 = vld [vmem:[#allocation37_spill] sm:$0xff] }
 0x5a0   : > { %v2479_v44 = vmul.f32 1.442695, %v2379_v16  ;;  %v2481_v37 = vmul.f32 1.442695, %v2380_v20  ;;  %v2381_v26 = vsub.f32 %v9341_v59, %v2306_v54  ;;  %v2382_v58 = vsub.f32 %v9343_v14, %v2306_v54  ;;  %2578 = vadd.xlane.f32.xlu0 %v2577_v27  ;;  %v12774_v54 = vld [vmem:[#allocation38_spill] sm:$0xff] }
 0x5a1   : > { %v2646_v17 = vpack.c.bf16 %v7741_v30, %v7737_v36  ;;  %v2580_v29 = vadd.f32 %v7741_v30, %v7739_v49 }
 0x5a2   : > { %7750 = vpow2.f32 %v2479_v44  ;;  %v2483_v38 = vmul.f32 1.442695, %v2381_v26  ;;  %v2485_v5 = vmul.f32 1.442695, %v2382_v58  ;;  %v12775_v44 = vld [vmem:[#allocation39_spill] sm:$0xff] }
 0x5a3   : > { %7752 = vpow2.f32 %v2481_v37  ;;  %2751 = vmatprep.mubr.bf16.mxu1 %v2646_v17  ;;  %2581 = vadd.xlane.f32.xlu1 %v2580_v29 }
 0x5a4   : > { %v7743_v57 = vpop.eup %7742  ;;  %7754 = vpow2.f32 %v2483_v38  ;;  %2752 = vmatmul.mubr.bf16.gmra.mrb[108].mxu1 %v2645_v9 }
 0x5a5   : > { %v7745_v59 = vpop.eup %7744  ;;  %7756 = vpow2.f32 %v2485_v5  ;;  %v2309_v14 = vpop.xlane.xlu0 %2308 }
 0x5a6   : > { %v7747_v2 = vpop.eup %7746  ;;  %v2383_v55 = vsub.f32 %v9349_v19, %v2309_v14  ;;  %v2384_v0 = vsub.f32 %v9351_v18, %v2309_v14  ;;  %v2583_v56 = vadd.f32 %v7745_v59, %v7743_v57  ;;  %v12777_v14 = vld [vmem:[#allocation41_spill] sm:$0xff] }
 0x5a7   : > { %v7749_v28 = vpop.eup %7748  ;;  %v2312_v63 = vpop.xlane.xlu1 %2311  ;;  %v2647_v23 = vpack.c.bf16 %v7747_v2, %v7743_v57  ;;  %v12776_v57 = vld [vmem:[#allocation40_spill] sm:$0xff] }
 0x5a8   : > { %v2487_v34 = vmul.f32 1.442695, %v2383_v55  ;;  %v2489_v39 = vmul.f32 1.442695, %v2384_v0  ;;  %v2385_v32 = vsub.f32 %v9353_v43, %v2312_v63  ;;  %v2386_v50 = vsub.f32 %v9355_v41, %v2312_v63  ;;  %2584 = vadd.xlane.f32.xlu0 %v2583_v56  ;;  %v7530_v63 = vld [vmem:[%s12515_s7 + $0x20] sm:$0xff]  }
 0x5a9   : > { %v2648_v52 = vpack.c.bf16 %v7749_v28, %v7745_v59  ;;  %v2586_v48 = vadd.f32 %v7749_v28, %v7747_v2  ;;  %7403 = vmatprep.subr.bf16.mxu0 %v7530_v63 }
 0x5aa   : > { %7758 = vpow2.f32 %v2487_v34  ;;  %v2491_v10 = vmul.f32 1.442695, %v2385_v32  ;;  %v2493_v33 = vmul.f32 1.442695, %v2386_v50  ;;  %v12779_v50 = vld [vmem:[#allocation43_spill] sm:$0xff]  ;;  %7404 = vmatpush3.bf16.msra.mxu0 %v7530_v63 }
 0x5ab   : > { %7760 = vpow2.f32 %v2489_v39  ;;  %2759 = vmatprep.mubr.bf16.mxu1 %v2648_v52  ;;  %2587 = vadd.xlane.f32.xlu1 %v2586_v48  ;;  %v12778_v39 = vld [vmem:[#allocation42_spill] sm:$0xff] }
 0x5ac   : > { %v7751_v19 = vpop.eup %7750  ;;  %7762 = vpow2.f32 %v2491_v10  ;;  %2760 = vmatmul.mubr.bf16.gmra.mrb[112].mxu1 %v2647_v23 }
 0x5ad   : > { %v7753_v18 = vpop.eup %7752  ;;  %7764 = vpow2.f32 %v2493_v33  ;;  %v2315_v40 = vpop.xlane.xlu0 %2314 }
 0x5ae   : > { %v7755_v12 = vpop.eup %7754  ;;  %v2387_v43 = vsub.f32 %v9361_v22, %v2315_v40  ;;  %v2388_v41 = vsub.f32 %v9363_v11, %v2315_v40  ;;  %v2589_v6 = vadd.f32 %v7753_v18, %v7751_v19 }
 0x5af   : > { %v7757_v61 = vpop.eup %7756  ;;  %v2318_v3 = vpop.xlane.xlu1 %2317  ;;  %v2649_v25 = vpack.c.bf16 %v7755_v12, %v7751_v19 }
 0x5b0   : > { %v2495_v51 = vmul.f32 1.442695, %v2387_v43  ;;  %v2497_v21 = vmul.f32 1.442695, %v2388_v41  ;;  %v2389_v1 = vsub.f32 %v9365_v4, %v2318_v3  ;;  %v2390_v60 = vsub.f32 %v9367_v53, %v2318_v3  ;;  %2590 = vadd.xlane.f32.xlu0 %v2589_v6  ;;  %v12780_v6 = vld [vmem:[#allocation44_spill] sm:$0xff]  ;;  %v12781_v3 = vld [vmem:[#allocation45_spill] sm:$0xff] }
 0x5b1   : > { %v2650_v7 = vpack.c.bf16 %v7757_v61, %v7753_v18  ;;  %v2592_v35 = vadd.f32 %v7757_v61, %v7755_v12  ;;  %v7531_v18 = vld [vmem:[%s12515_s7 + $0x28] sm:$0xff]  }
 0x5b2   : > { %7766 = vpow2.f32 %v2495_v51  ;;  %v2499_v22 = vmul.f32 1.442695, %v2389_v1  ;;  %v2501_v11 = vmul.f32 1.442695, %v2390_v60  ;;  %7405 = vmatprep.subr.bf16.mxu0 %v7531_v18 }
 0x5b3   : > { %7768 = vpow2.f32 %v2497_v21  ;;  %2767 = vmatprep.mubr.bf16.mxu1 %v2650_v7  ;;  %2593 = vadd.xlane.f32.xlu1 %v2592_v35  ;;  %v7532_v7 = vld [vmem:[%s12515_s7 + $0x30] sm:$0xff]  }
 0x5b4   : > { %v7759_v15 = vpop.eup %7758  ;;  %7770 = vpow2.f32 %v2499_v22  ;;  %2768 = vmatmul.mubr.bf16.gmra.mrb[116].mxu1 %v2649_v25  ;;  %7406 = vmatpush3.bf16.msra.mxu0 %v7531_v18  ;;  %v12782_v22 = vld [vmem:[#allocation46_spill] sm:$0xff] }
 0x5b5   : > { %v7761_v4 = vpop.eup %7760  ;;  %7772 = vpow2.f32 %v2501_v11  ;;  %v2321_v53 = vpop.xlane.xlu0 %2320  ;;  %7407 = vmatprep.subr.bf16.mxu0 %v7532_v7 }
 0x5b6   : > { %v7763_v8 = vpop.eup %7762  ;;  %v2391_v31 = vsub.f32 %v9373_v47, %v2321_v53  ;;  %v2392_v36 = vsub.f32 %v12773_v46, %v2321_v53  ;;  %v2595_v42 = vadd.f32 %v7761_v4, %v7759_v15 }
 0x5b7   : > { %v7765_v49 = vpop.eup %7764  ;;  %v2324_v16 = vpop.xlane.xlu1 %2323  ;;  %v2651_v20 = vpack.c.bf16 %v7763_v8, %v7759_v15  ;;  %v12783_v15 = vld [vmem:[#allocation47_spill] sm:$0xff] }
 0x5b8   : > { %v2503_v27 = vmul.f32 1.442695, %v2391_v31  ;;  %v2505_v30 = vmul.f32 1.442695, %v2392_v36  ;;  %v2393_v9 = vsub.f32 %v12774_v54, %v2324_v16  ;;  %v2394_v37 = vsub.f32 %v12775_v44, %v2324_v16  ;;  %2596 = vadd.xlane.f32.xlu0 %v2595_v42  ;;  %7408 = vmatpush3.bf16.msra.mxu0 %v7532_v7  ;;  %v7533_v36 = vld [vmem:[%s12515_s7 + $0x38] sm:$0xff]  }
 0x5b9   : > { %v2652_v26 = vpack.c.bf16 %v7765_v49, %v7761_v4  ;;  %v2598_v58 = vadd.f32 %v7765_v49, %v7763_v8  ;;  %7409 = vmatprep.subr.bf16.mxu0 %v7533_v36 }
 0x5ba   : > { %7774 = vpow2.f32 %v2503_v27  ;;  %v2507_v17 = vmul.f32 1.442695, %v2393_v9  ;;  %v2509_v29 = vmul.f32 1.442695, %v2394_v37 }
 0x5bb   : > { %7776 = vpow2.f32 %v2505_v30  ;;  %2775 = vmatprep.mubr.bf16.mxu1 %v2652_v26  ;;  %2599 = vadd.xlane.f32.xlu1 %v2598_v58  ;;  %v12784_v30 = vld [vmem:[#allocation48_spill] sm:$0xff] }
 0x5bc   : > { %v7767_v47 = vpop.eup %7766  ;;  %7778 = vpow2.f32 %v2507_v17  ;;  %2776 = vmatmul.mubr.bf16.gmra.mrb[120].mxu1 %v2651_v20  ;;  %7410 = vmatpush3.bf16.msra.mxu0 %v7533_v36 }
 0x5bd   : > { %v7769_v13 = vpop.eup %7768  ;;  %7780 = vpow2.f32 %v2509_v29  ;;  %v2327_v38 = vpop.xlane.xlu0 %2326 }
 0x5be   : > { %v7771_v5 = vpop.eup %7770  ;;  %v2395_v59 = vsub.f32 %v12776_v57, %v2327_v38  ;;  %v2396_v2 = vsub.f32 %v12777_v14, %v2327_v38  ;;  %v2601_v55 = vadd.f32 %v7769_v13, %v7767_v47 }
 0x5bf   : > { %v7773_v0 = vpop.eup %7772  ;;  %v2330_v56 = vpop.xlane.xlu1 %2329  ;;  %v2653_v28 = vpack.c.bf16 %v7771_v5, %v7767_v47  ;;  %v12785_v47 = vld [vmem:[#allocation49_spill] sm:$0xff] }
 0x5c0   : > { %v2511_v23 = vmul.f32 1.442695, %v2395_v59  ;;  %v2513_v34 = vmul.f32 1.442695, %v2396_v2  ;;  %v2397_v32 = vsub.f32 %v12778_v39, %v2330_v56  ;;  %v2398_v52 = vsub.f32 %v12779_v50, %v2330_v56  ;;  %2602 = vadd.xlane.f32.xlu0 %v2601_v55 }
 0x5c1   : > { %v2654_v48 = vpack.c.bf16 %v7773_v0, %v7769_v13  ;;  %v2604_v10 = vadd.f32 %v7773_v0, %v7771_v5 }
 0x5c2   : > { %7782 = vpow2.f32 %v2511_v23  ;;  %v2515_v33 = vmul.f32 1.442695, %v2397_v32  ;;  %v2517_v19 = vmul.f32 1.442695, %v2398_v52 }
 0x5c3   : > { %7784 = vpow2.f32 %v2513_v34  ;;  %2783 = vmatprep.mubr.bf16.mxu1 %v2654_v48  ;;  %2605 = vadd.xlane.f32.xlu1 %v2604_v10  ;;  %v12786_v10 = vmov 0  }
 0x5c4   : > { %v7775_v40 = vpop.eup %7774  ;;  %7786 = vpow2.f32 %v2515_v33  ;;  %2784 = vmatmul.mubr.bf16.gmra.mrb[124].mxu1 %v2653_v28 }
 0x5c5   : > { %v7777_v12 = vpop.eup %7776  ;;  %7788 = vpow2.f32 %v2517_v19  ;;  %v2333_v43 = vpop.xlane.xlu0 %2332 }
 0x5c6   : > { %v7779_v41 = vpop.eup %7778  ;;  %v2399_v61 = vsub.f32 %v12780_v6, %v2333_v43  ;;  %v2400_v25 = vsub.f32 %v12781_v3, %v2333_v43  ;;  %v2607_v51 = vadd.f32 %v7777_v12, %v7775_v40 }
 0x5c7   : > { %v7781_v21 = vpop.eup %7780  ;;  %v2336_v1 = vpop.xlane.xlu1 %2335  ;;  %v2655_v60 = vpack.c.bf16 %v7779_v41, %v7775_v40 }
 0x5c8   : > { %v2519_v35 = vmul.f32 1.442695, %v2399_v61  ;;  %v2521_v45 = vmul.f32 1.442695, %v2400_v25  ;;  %v2401_v11 = vsub.f32 %v12782_v22, %v2336_v1  ;;  %v2402_v4 = vsub.f32 %v12783_v15, %v2336_v1  ;;  %2608 = vadd.xlane.f32.xlu0 %v2607_v51 }
 0x5c9   : > { %v2656_v53 = vpack.c.bf16 %v7781_v21, %v7777_v12  ;;  %v2610_v8 = vadd.f32 %v7781_v21, %v7779_v41 }
 0x5ca   : > { %7790 = vpow2.f32 %v2519_v35  ;;  %v2523_v31 = vmul.f32 1.442695, %v2401_v11  ;;  %v2525_v46 = vmul.f32 1.442695, %v2402_v4 }
 0x5cb   : > { %7792 = vpow2.f32 %v2521_v45  ;;  %2791 = vmatprep.mubr.bf16.mxu1 %v2656_v53  ;;  %2611 = vadd.xlane.f32.xlu1 %v2610_v8 }
 0x5cc   : > { %v7783_v42 = vpop.eup %7782  ;;  %7794 = vpow2.f32 %v2523_v31  ;;  %2792 = vmatmul.mubr.bf16.gmra.mrb[128].mxu1 %v2655_v60 }
 0x5cd   : > { %v7785_v49 = vpop.eup %7784  ;;  %7796 = vpow2.f32 %v2525_v46  ;;  %v2339_v16 = vpop.xlane.xlu0 %2338 }
 0x5ce   : > { %v7787_v20 = vpop.eup %7786  ;;  %v2403_v27 = vsub.f32 %v9409_v62, %v2339_v16  ;;  %v2404_v54 = vsub.f32 %v12784_v30, %v2339_v16  ;;  %v2613_v9 = vadd.f32 %v7785_v49, %v7783_v42 }
 0x5cf   : > { %v7789_v44 = vpop.eup %7788  ;;  %v2342_v37 = vpop.xlane.xlu1 %2341  ;;  %v2657_v26 = vpack.c.bf16 %v7787_v20, %v7783_v42 }
 0x5d0   : > { %v2527_v58 = vmul.f32 1.442695, %v2403_v27  ;;  %v2529_v17 = vmul.f32 1.442695, %v2404_v54  ;;  %2614 = vadd.xlane.f32.xlu0 %v2613_v9  ;;  %v2405_v29 = vsub.f32 %v9413_v24, %v2342_v37  ;;  %v2406_v13 = vsub.f32 %v12785_v47, %v2342_v37 }
 0x5d1   : > { %v2658_v38 = vpack.c.bf16 %v7789_v44, %v7785_v49  ;;  %v2616_v5 = vadd.f32 %v7789_v44, %v7787_v20 }
 0x5d2   : > { %7798 = vpow2.f32 %v2527_v58  ;;  %v2531_v57 = vmul.f32 1.442695, %v2405_v29  ;;  %v2533_v59 = vmul.f32 1.442695, %v2406_v13 }
 0x5d3   : > { %7800 = vpow2.f32 %v2529_v17  ;;  %2799 = vmatprep.mubr.bf16.mxu1 %v2658_v38  ;;  %2617 = vadd.xlane.f32.xlu1 %v2616_v5 }
 0x5d4   : > { %v7791_v62 = vpop.eup %7790  ;;  %7802 = vpow2.f32 %v2531_v57  ;;  %2800 = vmatmul.mubr.bf16.gmra.mrb[132].mxu1 %v2657_v26 }
 0x5d5   : > { %v7793_v14 = vpop.eup %7792  ;;  %7804 = vpow2.f32 %v2533_v59 }
 0x5d6   : > { %v7795_v2 = vpop.eup %7794  ;;  %v2619_v55 = vadd.f32 %v7793_v14, %v7791_v62 }
 0x5d7   : > { %v7797_v0 = vpop.eup %7796  ;;  %v2659_v28 = vpack.c.bf16 %v7795_v2, %v7791_v62 }
 0x5d8   : > { %2620 = vadd.xlane.f32.xlu0 %v2619_v55  ;;  %v2660_v24 = vpack.c.bf16 %v7797_v0, %v7793_v14  ;;  %v2622_v56 = vadd.f32 %v7797_v0, %v7795_v2 }
 0x5da   : > { %2807 = vmatprep.mubr.bf16.mxu1 %v2660_v24  ;;  %2623 = vadd.xlane.f32.xlu1 %v2622_v56 }
 0x5dc   : > { %v7799_v63 = vpop.eup %7798  ;;  %2808 = vmatmul.mubr.bf16.gmra.mrb[136].mxu1 %v2659_v28 }
 0x5dd   : > { %v7801_v23 = vpop.eup %7800 }
 0x5de   : > { %v7803_v34 = vpop.eup %7802  ;;  %v2625_v39 = vadd.f32 %v7801_v23, %v7799_v63 }
 0x5df   : > { %v7805_v32 = vpop.eup %7804  ;;  %v2661_v48 = vpack.c.bf16 %v7803_v34, %v7799_v63 }
 0x5e0   : > { %2626 = vadd.xlane.f32.xlu0 %v2625_v39  ;;  %v2662_v50 = vpack.c.bf16 %v7805_v32, %v7801_v23  ;;  %v2628_v52 = vadd.f32 %v7805_v32, %v7803_v34 }
 0x5e2   : > { %2815 = vmatprep.mubr.bf16.mxu1 %v2662_v50  ;;  %2629 = vadd.xlane.f32.xlu1 %v2628_v52 }
 0x5e4   : > { %2816 = vmatmul.mubr.bf16.gmra.mrb[140].mxu1 %v2661_v48 }
 0x5e5   : > { %3892 = vmatprep.mubr.bf16.mxu1 %v12786_v10 }
 0x5f5   : > { %v2537_v33 = vpop.xlane.xlu0 %2536 }
 0x5f6   : > { %7806 = vrcp.f32 %v2537_v33 }
 0x5f8   : > { %v2540_v19 = vpop.xlane.xlu1 %2539 }
 0x5f9   : > { %7808 = vrcp.f32 %v2540_v19 }
 0x5fd   : > { %v2543_v18 = vpop.xlane.xlu0 %2542 }
 0x5fe   : > { %7810 = vrcp.f32 %v2543_v18 }
 0x600   : > { %v2546_v40 = vpop.xlane.xlu1 %2545  ;;  %v7807_v3 = vpop.eup %7806 }
 0x601   : > { %7812 = vrcp.f32 %v2546_v40 }
 0x603   : > { %v7809_v51 = vpop.eup %7808 }
 0x605   : > { %v2549_v60 = vpop.xlane.xlu0 %2548 }
 0x606   : > { %7814 = vrcp.f32 %v2549_v60 }
 0x608   : > { %v2552_v7 = vpop.xlane.xlu1 %2551  ;;  %v7811_v53 = vpop.eup %7810 }
 0x609   : > { %7816 = vrcp.f32 %v2552_v7 }
 0x60b   : > { %v7813_v31 = vpop.eup %7812 }
 0x60d   : > { %v2555_v42 = vpop.xlane.xlu0 %2554 }
 0x60e   : > { %7818 = vrcp.f32 %v2555_v42 }
 0x610   : > { %v2558_v49 = vpop.xlane.xlu1 %2557  ;;  %v7815_v44 = vpop.eup %7814 }
 0x611   : > { %7820 = vrcp.f32 %v2558_v49 }
 0x613   : > { %v7817_v26 = vpop.eup %7816 }
 0x615   : > { %v2561_v29 = vpop.xlane.xlu0 %2560 }
 0x616   : > { %7822 = vrcp.f32 %v2561_v29 }
 0x618   : > { %v2564_v47 = vpop.xlane.xlu1 %2563  ;;  %v7819_v14 = vpop.eup %7818 }
 0x619   : > { %7824 = vrcp.f32 %v2564_v47 }
 0x61b   : > { %v7821_v55 = vpop.eup %7820 }
 0x61d   : > { %v2567_v56 = vpop.xlane.xlu0 %2566 }
 0x61e   : > { %7826 = vrcp.f32 %v2567_v56 }
 0x620   : > { %v2570_v28 = vpop.xlane.xlu1 %2569  ;;  %v7823_v52 = vpop.eup %7822 }
 0x621   : > { %7828 = vrcp.f32 %v2570_v28 }
 0x623   : > { %v7825_v33 = vpop.eup %7824 }
 0x625   : > { %v2573_v40 = vpop.xlane.xlu0 %2572 }
 0x626   : > { %7830 = vrcp.f32 %v2573_v40 }
 0x63f   : > { %v6937_v12 = vpop.f32.mrb[80].mxu1 }
 0x640   : > { %v6938_v43 = vpop.f32.mrb[81].mxu1 }
 0x641   : > { %v6939_v41 = vadd.f32 %v6938_v43, %v6937_v12  ;;  %v6940_v6 = vpop.f32.mrb[82].mxu1  ;;  %v2576_v12 = vpop.xlane.xlu1 %2575 }
 0x642   : > { %v6941_v61 = vpop.f32.mrb[83].mxu1  ;;  %7832 = vrcp.f32 %v2576_v12 }
 0x643   : > { %v6942_v25 = vadd.f32 %v6941_v61, %v6940_v6  ;;  %v2856_v21 = vmul.f32 %v7807_v3, %v6939_v41 }
 0x645   : > { %v2857_v1 = vmul.f32 %v7809_v51, %v6942_v25  ;;  %v7827_v51 = vpop.eup %7826 }
 0x647   : > { %v6943_v35 = vpop.f32.mrb[84].mxu1  ;;  %v2888_v45 = vpack.c.bf16 %v2857_v1, %v2856_v21  ;;  %v7829_v1 = vpop.eup %7828 }
 0x648   : > { %v6944_v22 = vpop.f32.mrb[85].mxu1 }
 0x649   : > { %v6945_v11 = vadd.f32 %v6944_v22, %v6943_v35  ;;  %v6946_v15 = vpop.f32.mrb[86].mxu1  ;;  %7411 = vmatprep.mubr.bf16.mxu0 %v2888_v45  ;;  %v2579_v35 = vpop.xlane.xlu0 %2578 }
 0x64a   : > { %v6947_v4 = vpop.f32.mrb[87].mxu1  ;;  %v2582_v45 = vpop.xlane.xlu1 %2581  ;;  %7834 = vrcp.f32 %v2579_v35 }
 0x64b   : > { %v6948_v8 = vadd.f32 %v6947_v4, %v6946_v15  ;;  %v2858_v46 = vmul.f32 %v7811_v53, %v6945_v11  ;;  %7836 = vrcp.f32 %v2582_v45 }
 0x64d   : > { %v2859_v36 = vmul.f32 %v7813_v31, %v6948_v8  ;;  %v7831_v31 = vpop.eup %7830 }
 0x64f   : > { %v2889_v16 = vpack.c.bf16 %v2859_v36, %v2858_v46  ;;  %v6949_v20 = vpop.f32.mrb[88].mxu1  ;;  %v7833_v36 = vpop.eup %7832 }
 0x650   : > { %v6950_v27 = vpop.f32.mrb[89].mxu1 }
 0x651   : > { %v6951_v30 = vadd.f32 %v6950_v27, %v6949_v20  ;;  %v6952_v54 = vpop.f32.mrb[90].mxu1  ;;  %7412 = vmatmul.mubr.bf16.vlgmr.msra.gmra.mrb[112].mxu0 %v2889_v16  ;;  %v2585_v16 = vpop.xlane.xlu0 %2584 }
 0x652   : > { %v6953_v9 = vpop.f32.mrb[91].mxu1  ;;  %v2588_v20 = vpop.xlane.xlu1 %2587  ;;  %7838 = vrcp.f32 %v2585_v16 }
 0x653   : > { %v6954_v37 = vadd.f32 %v6953_v9, %v6952_v54  ;;  %v2860_v58 = vmul.f32 %v7815_v44, %v6951_v30  ;;  %7840 = vrcp.f32 %v2588_v20 }
 0x655   : > { %v2861_v17 = vmul.f32 %v7817_v26, %v6954_v37  ;;  %v7835_v26 = vpop.eup %7834 }
 0x657   : > { %v6955_v13 = vpop.f32.mrb[92].mxu1  ;;  %v2890_v38 = vpack.c.bf16 %v2861_v17, %v2860_v58  ;;  %v7837_v17 = vpop.eup %7836 }
 0x658   : > { %v6956_v5 = vpop.f32.mrb[93].mxu1 }
 0x659   : > { %v6957_v57 = vadd.f32 %v6956_v5, %v6955_v13  ;;  %v6958_v59 = vpop.f32.mrb[94].mxu1  ;;  %7415 = vmatprep.mubr.bf16.mxu0 %v2890_v38  ;;  %v2591_v13 = vpop.xlane.xlu0 %2590 }
 0x65a   : > { %v6959_v62 = vpop.f32.mrb[95].mxu1  ;;  %v2594_v38 = vpop.xlane.xlu1 %2593  ;;  %7842 = vrcp.f32 %v2591_v13 }
 0x65b   : > { %v6960_v2 = vadd.f32 %v6959_v62, %v6958_v59  ;;  %v2862_v0 = vmul.f32 %v7819_v14, %v6957_v57  ;;  %7844 = vrcp.f32 %v2594_v38 }
 0x65d   : > { %v2863_v24 = vmul.f32 %v7821_v55, %v6960_v2  ;;  %v7839_v55 = vpop.eup %7838 }
 0x65f   : > { %v6961_v63 = vpop.f32.mrb[96].mxu1  ;;  %v2891_v23 = vpack.c.bf16 %v2863_v24, %v2862_v0  ;;  %v7841_v24 = vpop.eup %7840 }
 0x660   : > { %v6962_v34 = vpop.f32.mrb[97].mxu1 }
 0x661   : > { %v6963_v39 = vadd.f32 %v6962_v34, %v6961_v63  ;;  %v6964_v32 = vpop.f32.mrb[98].mxu1  ;;  %7416 = vmatmul.mubr.bf16.gmra.mrb[116].mxu0 %v2891_v23  ;;  %v2597_v63 = vpop.xlane.xlu0 %2596 }
 0x662   : > { %v6965_v50 = vpop.f32.mrb[99].mxu1  ;;  %v2600_v23 = vpop.xlane.xlu1 %2599  ;;  %7846 = vrcp.f32 %v2597_v63 }
 0x663   : > { %v6966_v48 = vadd.f32 %v6965_v50, %v6964_v32  ;;  %v2864_v19 = vmul.f32 %v7823_v52, %v6963_v39  ;;  %7848 = vrcp.f32 %v2600_v23 }
 0x665   : > { %v2865_v18 = vmul.f32 %v7825_v33, %v6966_v48  ;;  %v7843_v33 = vpop.eup %7842 }
 0x667   : > { %v6967_v43 = vpop.f32.mrb[100].mxu1  ;;  %v2892_v41 = vpack.c.bf16 %v2865_v18, %v2864_v19  ;;  %v7845_v18 = vpop.eup %7844 }
 0x668   : > { %v6968_v6 = vpop.f32.mrb[101].mxu1 }
 0x669   : > { %v6969_v61 = vadd.f32 %v6968_v6, %v6967_v43  ;;  %v6970_v3 = vpop.f32.mrb[102].mxu1  ;;  %7419 = vmatprep.mubr.bf16.mxu0 %v2892_v41  ;;  %v2603_v43 = vpop.xlane.xlu0 %2602 }
 0x66a   : > { %v6971_v25 = vpop.f32.mrb[103].mxu1  ;;  %v2606_v41 = vpop.xlane.xlu1 %2605  ;;  %7850 = vrcp.f32 %v2603_v43 }
 0x66b   : > { %v6972_v21 = vadd.f32 %v6971_v25, %v6970_v3  ;;  %v2866_v60 = vmul.f32 %v7827_v51, %v6969_v61  ;;  %7852 = vrcp.f32 %v2606_v41 }
 0x66d   : > { %v2867_v7 = vmul.f32 %v7829_v1, %v6972_v21  ;;  %v7847_v1 = vpop.eup %7846 }
 0x66f   : > { %v6973_v22 = vpop.f32.mrb[104].mxu1  ;;  %v2893_v11 = vpack.c.bf16 %v2867_v7, %v2866_v60  ;;  %v7849_v7 = vpop.eup %7848 }
 0x670   : > { %v6974_v15 = vpop.f32.mrb[105].mxu1 }
 0x671   : > { %v6975_v4 = vadd.f32 %v6974_v15, %v6973_v22  ;;  %v6976_v53 = vpop.f32.mrb[106].mxu1  ;;  %7420 = vmatmul.mubr.bf16.gmra.mrb[120].mxu0 %v2893_v11  ;;  %v2609_v22 = vpop.xlane.xlu0 %2608 }
 0x672   : > { %v6977_v8 = vpop.f32.mrb[107].mxu1  ;;  %v2612_v11 = vpop.xlane.xlu1 %2611  ;;  %7854 = vrcp.f32 %v2609_v22 }
 0x673   : > { %v6978_v46 = vadd.f32 %v6977_v8, %v6976_v53  ;;  %v2868_v42 = vmul.f32 %v7831_v31, %v6975_v4  ;;  %7856 = vrcp.f32 %v2612_v11 }
 0x675   : > { %v2869_v49 = vmul.f32 %v7833_v36, %v6978_v46  ;;  %v7851_v36 = vpop.eup %7850 }
 0x677   : > { %v6979_v27 = vpop.f32.mrb[108].mxu1  ;;  %v2894_v30 = vpack.c.bf16 %v2869_v49, %v2868_v42  ;;  %v7853_v49 = vpop.eup %7852 }
 0x678   : > { %v6980_v54 = vpop.f32.mrb[109].mxu1 }
 0x679   : > { %v6981_v9 = vadd.f32 %v6980_v54, %v6979_v27  ;;  %v6982_v44 = vpop.f32.mrb[110].mxu1  ;;  %7423 = vmatprep.mubr.bf16.mxu0 %v2894_v30  ;;  %v2615_v27 = vpop.xlane.xlu0 %2614 }
 0x67a   : > { %v6983_v37 = vpop.f32.mrb[111].mxu1  ;;  %v2618_v30 = vpop.xlane.xlu1 %2617  ;;  %7858 = vrcp.f32 %v2615_v27  ;;  %v12791_v27 = vld [vmem:[#allocation5_spill] sm:$0xff] }
 0x67b   : > { %v6984_v58 = vadd.f32 %v6983_v37, %v6982_v44  ;;  %v2870_v29 = vmul.f32 %v7835_v26, %v6981_v9  ;;  %7860 = vrcp.f32 %v2618_v30 }
 0x67d   : > { %v2871_v47 = vmul.f32 %v7837_v17, %v6984_v58  ;;  %v7855_v17 = vpop.eup %7854 }
 0x67f   : > { %v6985_v5 = vpop.f32.mrb[112].mxu1  ;;  %v2895_v57 = vpack.c.bf16 %v2871_v47, %v2870_v29  ;;  %v7857_v47 = vpop.eup %7856 }
 0x680   : > { %v6986_v59 = vpop.f32.mrb[113].mxu1 }
 0x681   : > { %v6987_v62 = vadd.f32 %v6986_v59, %v6985_v5  ;;  %v6988_v14 = vpop.f32.mrb[114].mxu1  ;;  %7424 = vmatmul.mubr.bf16.gmra.mrb[124].mxu0 %v2895_v57  ;;  %v2621_v5 = vpop.xlane.xlu0 %2620 }
 0x682   : > { %v6989_v2 = vpop.f32.mrb[115].mxu1  ;;  %v2624_v57 = vpop.xlane.xlu1 %2623  ;;  %7862 = vrcp.f32 %v2621_v5 }
 0x683   : > { %v6990_v0 = vadd.f32 %v6989_v2, %v6988_v14  ;;  %v2872_v56 = vmul.f32 %v7839_v55, %v6987_v62  ;;  %7864 = vrcp.f32 %v2624_v57  ;;  %v12798_v57 = vld [vmem:[#allocation9_spill] sm:$0xff] }
 0x685   : > { %v2873_v28 = vmul.f32 %v7841_v24, %v6990_v0  ;;  %v7859_v24 = vpop.eup %7858 }
 0x687   : > { %v6991_v34 = vpop.f32.mrb[116].mxu1  ;;  %v2896_v39 = vpack.c.bf16 %v2873_v28, %v2872_v56  ;;  %v7861_v28 = vpop.eup %7860 }
 0x688   : > { %v6992_v32 = vpop.f32.mrb[117].mxu1 }
 0x689   : > { %v6993_v50 = vadd.f32 %v6992_v32, %v6991_v34  ;;  %v6994_v52 = vpop.f32.mrb[118].mxu1  ;;  %7427 = vmatprep.mubr.bf16.mxu0 %v2896_v39  ;;  %v2627_v34 = vpop.xlane.xlu0 %2626 }
 0x68a   : > { %v6995_v48 = vpop.f32.mrb[119].mxu1  ;;  %v2630_v39 = vpop.xlane.xlu1 %2629  ;;  %7866 = vrcp.f32 %v2627_v34 }
 0x68b   : > { %v6996_v19 = vadd.f32 %v6995_v48, %v6994_v52  ;;  %v2874_v40 = vmul.f32 %v7843_v33, %v6993_v50  ;;  %7868 = vrcp.f32 %v2630_v39  ;;  %v12804_v39 = vld [vmem:[#allocation12_spill] sm:$0xff] }
 0x68d   : > { %v2875_v12 = vmul.f32 %v7845_v18, %v6996_v19  ;;  %v7863_v18 = vpop.eup %7862 }
 0x68f   : > { %v6997_v6 = vpop.f32.mrb[120].mxu1  ;;  %v2897_v61 = vpack.c.bf16 %v2875_v12, %v2874_v40  ;;  %v7865_v12 = vpop.eup %7864 }
 0x690   : > { %v6998_v3 = vpop.f32.mrb[121].mxu1 }
 0x691   : > { %v6999_v25 = vadd.f32 %v6998_v3, %v6997_v6  ;;  %v7000_v51 = vpop.f32.mrb[122].mxu1  ;;  %7428 = vmatmul.mubr.bf16.gmra.mrb[128].mxu0 %v2897_v61 }
 0x692   : > { %v7001_v21 = vpop.f32.mrb[123].mxu1 }
 0x693   : > { %v7002_v60 = vadd.f32 %v7001_v21, %v7000_v51  ;;  %v2876_v35 = vmul.f32 %v7847_v1, %v6999_v25 }
 0x694   : > { %v7867_v1 = vpop.eup %7866 }
 0x695   : > { %v2877_v45 = vmul.f32 %v7849_v7, %v7002_v60  ;;  %v7869_v7 = vpop.eup %7868 }
 0x697   : > { %v7003_v15 = vpop.f32.mrb[124].mxu1  ;;  %v2898_v4 = vpack.c.bf16 %v2877_v45, %v2876_v35 }
 0x698   : > { %v7004_v53 = vpop.f32.mrb[125].mxu1 }
 0x699   : > { %v7005_v8 = vadd.f32 %v7004_v53, %v7003_v15  ;;  %v7006_v31 = vpop.f32.mrb[126].mxu1  ;;  %7431 = vmatprep.mubr.bf16.mxu0 %v2898_v4  ;;  %v9514_v15 = vld [vmem:[%s12516_s8] ss:$0 sm:$0xff]  ;;  %v12787_v53 = vld [vmem:[#allocation4_spill] sm:$0xff] }
 0x69a   : > { %v7007_v46 = vpop.f32.mrb[127].mxu1 }
 0x69b   : > { %v7008_v42 = vadd.f32 %v7007_v46, %v7006_v31  ;;  %v2878_v16 = vmul.f32 %v7851_v36, %v7005_v8  ;;  %v12788_v36 = vld [vmem:[#allocation3_spill] sm:$0xff] }
 0x69d   : > { %v2879_v20 = vmul.f32 %v7853_v49, %v7008_v42 }
 0x69f   : > { %v7009_v54 = vpop.f32.mrb[128].mxu1  ;;  %v2899_v9 = vpack.c.bf16 %v2879_v20, %v2878_v16  ;;  %v12790_v16 = vld [vmem:[#allocation6_spill] sm:$0xff] }
 0x6a0   : > { %v7010_v44 = vpop.f32.mrb[129].mxu1 }
 0x6a1   : > { %v7011_v37 = vadd.f32 %v7010_v44, %v7009_v54  ;;  %v7012_v26 = vpop.f32.mrb[130].mxu1  ;;  %7432 = vmatmul.mubr.bf16.gmra.mrb[132].mxu0 %v2899_v9 }
 0x6a2   : > { %v7013_v58 = vpop.f32.mrb[131].mxu1 }
 0x6a3   : > { %v7014_v29 = vadd.f32 %v7013_v58, %v7012_v26  ;;  %v2880_v13 = vmul.f32 %v7855_v17, %v7011_v37  ;;  %v12795_v58 = vld [vmem:[#allocation7_spill] sm:$0xff] }
 0x6a5   : > { %v2881_v38 = vmul.f32 %v7857_v47, %v7014_v29 }
 0x6a7   : > { %v7015_v59 = vpop.f32.mrb[132].mxu1  ;;  %v2900_v62 = vpack.c.bf16 %v2881_v38, %v2880_v13  ;;  %v12796_v13 = vld [vmem:[#allocation8_spill] sm:$0xff] }
 0x6a8   : > { %v7016_v14 = vpop.f32.mrb[133].mxu1 }
 0x6a9   : > { %v7017_v2 = vadd.f32 %v7016_v14, %v7015_v59  ;;  %v7018_v55 = vpop.f32.mrb[134].mxu1  ;;  %7435 = vmatprep.mubr.bf16.mxu0 %v2900_v62  ;;  %v12799_v62 = vld [vmem:[#allocation10_spill] sm:$0xff] }
 0x6aa   : > { %v7019_v0 = vpop.f32.mrb[135].mxu1 }
 0x6ab   : > { %v7020_v56 = vadd.f32 %v7019_v0, %v7018_v55  ;;  %v2882_v63 = vmul.f32 %v7859_v24, %v7017_v2 }
 0x6ad   : > { %v2883_v23 = vmul.f32 %v7861_v28, %v7020_v56  ;;  %v12803_v28 = vld [vmem:[#allocation11_spill] sm:$0xff] }
 0x6af   : > { %v7021_v32 = vpop.f32.mrb[136].mxu1  ;;  %v2901_v50 = vpack.c.bf16 %v2883_v23, %v2882_v63 }
 0x6b0   : > { %v7022_v52 = vpop.f32.mrb[137].mxu1 }
 0x6b1   : > { %v7023_v48 = vadd.f32 %v7022_v52, %v7021_v32  ;;  %v7024_v33 = vpop.f32.mrb[138].mxu1  ;;  %7436 = vmatmul.mubr.bf16.gmra.mrb[136].mxu0 %v2901_v50  ;;  %v12806_v52 = vld [vmem:[#allocation13_spill] sm:$0xff] }
 0x6b2   : > { %v7025_v19 = vpop.f32.mrb[139].mxu1 }
 0x6b3   : > { %v7026_v40 = vadd.f32 %v7025_v19, %v7024_v33  ;;  %v2884_v43 = vmul.f32 %v7863_v18, %v7023_v48  ;;  %v12807_v33 = vld [vmem:[#allocation14_spill] sm:$0xff] }
 0x6b5   : > { %v2885_v41 = vmul.f32 %v7865_v12, %v7026_v40 }
 0x6b7   : > { %v7027_v6 = vpop.f32.mrb[140].mxu1  ;;  %v2902_v61 = vpack.c.bf16 %v2885_v41, %v2884_v43 }
 0x6b8   : > { %v7028_v3 = vpop.f32.mrb[141].mxu1 }
 0x6b9   : > { %v7029_v25 = vadd.f32 %v7028_v3, %v7027_v6  ;;  %v7030_v51 = vpop.f32.mrb[142].mxu1  ;;  %7439 = vmatprep.mubr.bf16.mxu0 %v2902_v61  ;;  %v12811_v6 = vld [vmem:[#allocation18_spill] sm:$0xff] }
 0x6ba   : > { %v7031_v21 = vpop.f32.mrb[143].mxu1 }
 0x6bb   : > { %v7032_v60 = vadd.f32 %v7031_v21, %v7030_v51  ;;  %v2886_v35 = vmul.f32 %v7867_v1, %v7029_v25  ;;  %v12812_v51 = vld [vmem:[#allocation20_spill] sm:$0xff] }
 0x6bd   : > { %v2887_v45 = vmul.f32 %v7869_v7, %v7032_v60  ;;  %v12814_v60 = vld [vmem:[#allocation21_spill] sm:$0xff] }
 0x6bf   : > { %v2903_v22 = vpack.c.bf16 %v2887_v45, %v2886_v35  ;;  %v12815_v35 = vld [vmem:[#allocation22_spill] sm:$0xff] }
 0x6c1   : > { %7440 = vmatmul.mubr.bf16.gmra.mrb[140].mxu0 %v2903_v22 }
 0x6c2   : > { %4085 = vmatprep.mubr.bf16.mxu0 %v12786_v10 }
 0x724   : > { %v7413_v11 = vpop.f32.mrb[112].mxu0 }
 0x725   : > { %v3002_v4 = vpop.f32.mrb[113].mxu0  ;;  %v3131_v42 = vadd.f32 %v7413_v11, %v12788_v36 }
 0x726   : > { %v3129_v8 = vadd.f32 %v3002_v4, %v12787_v53  ;;  %v7414_v31 = vpop.f32.mrb[114].mxu0 }
 0x727   : > { %v3005_v46 = vpop.f32.mrb[115].mxu0  ;;  %v3132_v30 = vadd.f32 %v7414_v31, %v12791_v27  ;;  %v9528_v9 = vadd.f32 %v9514_v15, %v3131_v42  ;;  %v12819_v31 = vld [vmem:[#allocation23_spill] sm:$0xff] }
 0x728   : > { %v9519_v49 = vadd.f32 %v9514_v15, %v3129_v8  ;;  %v3130_v20 = vadd.f32 %v3005_v46, %v12790_v16  ;;  %v12820_v16 = vld [vmem:[#allocation25_spill] sm:$0xff] }
 0x729   : > { %12793 = vst [vmem:[#allocation39_spill] sm:$0xff] %v9528_v9  ;;  %v9532_v44 = vadd.f32 %v9514_v15, %v3132_v30  ;;  %v12822_v30 = vld [vmem:[#allocation24_spill] sm:$0xff] }
 0x72a   : > { %12789 = vst [vmem:[#allocation37_spill] sm:$0xff] %v9519_v49  ;;  %v9524_v54 = vadd.f32 %v9514_v15, %v3130_v20  ;;  %3202 = vadd.xlane.f32.xlu0 %v9519_v49 }
 0x72b   : > { %12794 = vst [vmem:[#allocation40_spill] sm:$0xff] %v9532_v44 }
 0x72c   : > { %12792 = vst [vmem:[#allocation38_spill] sm:$0xff] %v9524_v54  ;;  %3204 = vadd.xlane.f32.xlu1 %v9524_v54 }
 0x72e   : > { %3206 = vadd.xlane.f32.xlu0 %v9528_v9 }
 0x730   : > { %3208 = vadd.xlane.f32.xlu1 %v9532_v44 }
 0x734   : > { %v7417_v37 = vpop.f32.mrb[116].mxu0 }
 0x735   : > { %v3018_v26 = vpop.f32.mrb[117].mxu0  ;;  %v3135_v38 = vadd.f32 %v7417_v37, %v12796_v13 }
 0x736   : > { %v3133_v17 = vadd.f32 %v3018_v26, %v12795_v58  ;;  %v7418_v29 = vpop.f32.mrb[118].mxu0  ;;  %v12823_v26 = vld [vmem:[#allocation26_spill] sm:$0xff] }
 0x737   : > { %v3021_v47 = vpop.f32.mrb[119].mxu0  ;;  %v3136_v14 = vadd.f32 %v7418_v29, %v12799_v62  ;;  %v9548_v55 = vadd.f32 %v9514_v15, %v3135_v38 }
 0x738   : > { %v9539_v5 = vadd.f32 %v9514_v15, %v3133_v17  ;;  %v3134_v59 = vadd.f32 %v3021_v47, %v12798_v57 }
 0x739   : > { %12801 = vst [vmem:[#allocation43_spill] sm:$0xff] %v9548_v55  ;;  %v9552_v0 = vadd.f32 %v9514_v15, %v3136_v14  ;;  %v7534_v14 = vld [vmem:[%s12519_s11] ss:$16 sps:$4 sm:$0xff]  }
 0x73a   : > { %12797 = vst [vmem:[#allocation41_spill] sm:$0xff] %v9539_v5  ;;  %v9544_v2 = vadd.f32 %v9514_v15, %v3134_v59  ;;  %3210 = vadd.xlane.f32.xlu0 %v9539_v5 }
 0x73b   : > { %12802 = vst [vmem:[#allocation44_spill] sm:$0xff] %v9552_v0 }
 0x73c   : > { %12800 = vst [vmem:[#allocation42_spill] sm:$0xff] %v9544_v2  ;;  %3212 = vadd.xlane.f32.xlu1 %v9544_v2 }
 0x73e   : > { %3214 = vadd.xlane.f32.xlu0 %v9548_v55 }
 0x740   : > { %3216 = vadd.xlane.f32.xlu1 %v9552_v0 }
 0x744   : > { %v7421_v24 = vpop.f32.mrb[120].mxu0 }
 0x745   : > { %v3034_v56 = vpop.f32.mrb[121].mxu0  ;;  %v3139_v32 = vadd.f32 %v7421_v24, %v12804_v39  ;;  %v7536_v24 = vld [vmem:[%s12519_s11 + $0x4] ss:$16 sps:$4 sm:$0xff]  }
 0x746   : > { %v3137_v63 = vadd.f32 %v3034_v56, %v12803_v28  ;;  %v7422_v23 = vpop.f32.mrb[122].mxu0  ;;  %v7537_v28 = vld [vmem:[%s12519_s11 + $0x8] ss:$16 sps:$4 sm:$0xff]   ;;  %3860 = vmatprep.subr.bf16.mxu1 %v7536_v24 }
 0x747   : > { %v3037_v34 = vpop.f32.mrb[123].mxu0  ;;  %v3140_v19 = vadd.f32 %v7422_v23, %v12807_v33  ;;  %v9568_v40 = vadd.f32 %v9514_v15, %v3139_v32  ;;  %3861 = vmatpush1.bf16.msra.mxu1 %v7534_v14  ;;  %v7540_v32 = vld [vmem:[%s12519_s11 + $0x20] ss:$16 sps:$4 sm:$0xff]  }
 0x748   : > { %v9559_v50 = vadd.f32 %v9514_v15, %v3137_v63  ;;  %v3138_v48 = vadd.f32 %v3037_v34, %v12806_v52  ;;  %v7539_v63 = vld [vmem:[%s12519_s11 + $0xc] ss:$16 sps:$4 sm:$0xff]   ;;  %v7542_v34 = vld [vmem:[%s12519_s11 + $0x24] ss:$16 sps:$4 sm:$0xff]  }
 0x749   : > { %12809 = vst [vmem:[#allocation47_spill] sm:$0xff] %v9568_v40  ;;  %v9572_v12 = vadd.f32 %v9514_v15, %v3140_v19  ;;  %4053 = vmatprep.subr.bf16.mxu0 %v7539_v63  ;;  %v7545_v52 = vld [vmem:[%s12519_s11 + $0x2c] ss:$16 sps:$4 sm:$0xff]   ;;  %3862 = vmatprep.subr.bf16.mxu1 %v7542_v34 }
 0x74a   : > { %12805 = vst [vmem:[#allocation45_spill] sm:$0xff] %v9559_v50  ;;  %v9564_v18 = vadd.f32 %v9514_v15, %v3138_v48  ;;  %3218 = vadd.xlane.f32.xlu0 %v9559_v50  ;;  %4054 = vmatpush1.bf16.msra.mxu0 %v7537_v28  ;;  %v7543_v48 = vld [vmem:[%s12519_s11 + $0x28] ss:$16 sps:$4 sm:$0xff]  }
 0x74b   : > { %12810 = vst [vmem:[#allocation48_spill] sm:$0xff] %v9572_v12  ;;  %4055 = vmatprep.subr.bf16.mxu0 %v7545_v52  ;;  %3863 = vmatpush1.bf16.msra.mxu1 %v7540_v32 }
 0x74c   : > { %12808 = vst [vmem:[#allocation46_spill] sm:$0xff] %v9564_v18  ;;  %3220 = vadd.xlane.f32.xlu1 %v9564_v18 }
 0x74e   : > { %3222 = vadd.xlane.f32.xlu0 %v9568_v40  ;;  %4056 = vmatpush1.bf16.msra.mxu0 %v7543_v48 }
 0x750   : > { %3224 = vadd.xlane.f32.xlu1 %v9572_v12 }
 0x754   : > { %v7425_v43 = vpop.f32.mrb[124].mxu0 }
 0x755   : > { %v3050_v41 = vpop.f32.mrb[125].mxu0  ;;  %v3143_v21 = vadd.f32 %v7425_v43, %v12812_v51 }
 0x756   : > { %v3141_v61 = vadd.f32 %v3050_v41, %v12811_v6  ;;  %v7426_v3 = vpop.f32.mrb[126].mxu0 }
 0x757   : > { %v3053_v25 = vpop.f32.mrb[127].mxu0  ;;  %v3144_v45 = vadd.f32 %v7426_v3, %v12815_v35  ;;  %v9588_v11 = vadd.f32 %v9514_v15, %v3143_v21 }
 0x758   : > { %v9579_v1 = vadd.f32 %v9514_v15, %v3141_v61  ;;  %v3142_v7 = vadd.f32 %v3053_v25, %v12814_v60  ;;  %v12827_v60 = vld [vmem:[#allocation16_spill] sm:$0xff] }
 0x759   : > { %12817 = vst [vmem:[#allocation3_spill] sm:$0xff] %v9588_v11  ;;  %v9592_v4 = vadd.f32 %v9514_v15, %v3144_v45 }
 0x75a   : > { %12813 = vst [vmem:[#allocation49_spill] sm:$0xff] %v9579_v1  ;;  %v9584_v22 = vadd.f32 %v9514_v15, %v3142_v7  ;;  %3226 = vadd.xlane.f32.xlu0 %v9579_v1 }
 0x75b   : > { %12818 = vst [vmem:[#allocation6_spill] sm:$0xff] %v9592_v4 }
 0x75c   : > { %12816 = vst [vmem:[#allocation4_spill] sm:$0xff] %v9584_v22  ;;  %3228 = vadd.xlane.f32.xlu1 %v9584_v22 }
 0x75e   : > { %3230 = vadd.xlane.f32.xlu0 %v9588_v11 }
 0x760   : > { %3232 = vadd.xlane.f32.xlu1 %v9592_v4 }
 0x764   : > { %v7429_v53 = vpop.f32.mrb[128].mxu0 }
 0x765   : > { %v3066_v8 = vpop.f32.mrb[129].mxu0  ;;  %v3147_v20 = vadd.f32 %v7429_v53, %v12820_v16 }
 0x766   : > { %v3145_v46 = vadd.f32 %v3066_v8, %v12819_v31  ;;  %v7430_v36 = vpop.f32.mrb[130].mxu0  ;;  %v12828_v31 = vld [vmem:[#allocation19_spill] sm:$0xff] }
 0x767   : > { %v3069_v42 = vpop.f32.mrb[131].mxu0  ;;  %v3148_v58 = vadd.f32 %v7430_v36, %v12823_v26  ;;  %v9608_v29 = vadd.f32 %v9514_v15, %v3147_v20  ;;  %v12831_v26 = vld [vmem:[#allocation15_spill] sm:$0xff] }
 0x768   : > { %v9599_v27 = vadd.f32 %v9514_v15, %v3145_v46  ;;  %v3146_v37 = vadd.f32 %v3069_v42, %v12822_v30 }
 0x769   : > { %12825 = vst [vmem:[#allocation8_spill] sm:$0xff] %v9608_v29  ;;  %v9612_v47 = vadd.f32 %v9514_v15, %v3148_v58 }
 0x76a   : > { %12821 = vst [vmem:[#allocation5_spill] sm:$0xff] %v9599_v27  ;;  %v9604_v17 = vadd.f32 %v9514_v15, %v3146_v37  ;;  %3234 = vadd.xlane.f32.xlu0 %v9599_v27 }
 0x76b   : > { %12826 = vst [vmem:[#allocation9_spill] sm:$0xff] %v9612_v47 }
 0x76c   : > { %12824 = vst [vmem:[#allocation7_spill] sm:$0xff] %v9604_v17  ;;  %3236 = vadd.xlane.f32.xlu1 %v9604_v17 }
 0x76e   : > { %3238 = vadd.xlane.f32.xlu0 %v9608_v29 }
 0x770   : > { %3240 = vadd.xlane.f32.xlu1 %v9612_v47 }
 0x774   : > { %v7433_v13 = vpop.f32.mrb[132].mxu0 }
 0x775   : > { %v3082_v38 = vpop.f32.mrb[133].mxu0  ;;  %v3151_v58 = vadd.f32 %v7433_v13, %v12831_v26  ;;  %v7557_v26 = vld [vmem:[%s12519_s11 + $0x6c] ss:$16 sps:$4 sm:$0xff]  }
 0x776   : > { %v7434_v57 = vpop.f32.mrb[134].mxu0  ;;  %v3149_v7 = vadd.f32 %v3082_v38, %v12827_v60 }
 0x777   : > { %v3085_v59 = vpop.f32.mrb[135].mxu0  ;;  %v9687_v63 = vadd.f32 %v9514_v15, %v3151_v58 }
 0x778   : > { %v3150_v46 = vadd.f32 %v3085_v59, %v12828_v31  ;;  %v9667_v16 = vadd.f32 %v9514_v15, %v3149_v7  ;;  %v12832_v59 = vld [vmem:[#allocation17_spill] sm:$0xff] }
 0x779   : > { %v3152_v14 = vadd.f32 %v7434_v57, %v12832_v59  ;;  %12833 = vst [vmem:[#allocation12_spill] sm:$0xff] %v9687_v63  ;;  %v7555_v59 = vld [vmem:[%s12519_s11 + $0x68] ss:$16 sps:$4 sm:$0xff]  }
 0x77a   : > { %12829 = vst [vmem:[#allocation10_spill] sm:$0xff] %v9667_v16  ;;  %v9673_v30 = vadd.f32 %v9514_v15, %v3150_v46 }
 0x77b   : > { %v9690_v13 = vadd.f32 %v9514_v15, %v3152_v14 }
 0x77c   : > { %12830 = vst [vmem:[#allocation11_spill] sm:$0xff] %v9673_v30 }
 0x77d   : > { %12834 = vst [vmem:[#allocation13_spill] sm:$0xff] %v9690_v13 }
 0x784   : > { %v9616_v62 = vpop.f32.mrb[136].mxu0 }
 0x785   : > { %v3098_v56 = vpop.f32.mrb[137].mxu0 }
 0x786   : > { %v9630_v23 = vpop.f32.mrb[138].mxu0 }
 0x787   : > { %v9635_v39 = vpop.f32.mrb[139].mxu0 }
 0x794   : > { %v9646_v33 = vpop.f32.mrb[140].mxu0 }
 0x795   : > { %v9648_v19 = vpop.f32.mrb[141].mxu0 }
 0x796   : > { %v9650_v43 = vpop.f32.mrb[142].mxu0 }
 0x797   : > { %v9652_v41 = vpop.f32.mrb[143].mxu0 }
 0x7b7   : > { %v3203_v6 = vpop.xlane.xlu0 %3202 }
 0x7b8   : > { %v3266_v61 = vmul.f32 0.0078125, %v3203_v6  ;;  %v7548_v6 = vld [vmem:[%s12519_s11 + $0x44] ss:$16 sps:$4 sm:$0xff]  }
 0x7b9   : > { %v3205_v3 = vpop.xlane.xlu1 %3204  ;;  %3864 = vmatprep.subr.bf16.mxu1 %v7548_v6  ;;  %v7558_v6 = vld [vmem:[%s12519_s11 + $0x80] ss:$16 sps:$4 sm:$0xff]  }
 0x7ba   : > { %v9655_v25 = vsub.f32 %v9519_v49, %v3266_v61  ;;  %v3267_v51 = vmul.f32 0.0078125, %v3205_v3  ;;  %v7551_v61 = vld [vmem:[%s12519_s11 + $0x4c] ss:$16 sps:$4 sm:$0xff]  }
 0x7bb   : > { %v3207_v21 = vpop.xlane.xlu0 %3206  ;;  %v12835_v3 = vld [vmem:[#allocation28_spill] sm:$0xff]  ;;  %4057 = vmatprep.subr.bf16.mxu0 %v7551_v61 }
 0x7bc   : > { %v9659_v35 = vsub.f32 %v9524_v54, %v3267_v51  ;;  %v3268_v45 = vmul.f32 0.0078125, %v3207_v21  ;;  %v3330_v53 = vmul.f32 %v9655_v25, %v9655_v25  ;;  %v3153_v51 = vadd.f32 %v3098_v56, %v12835_v3  ;;  %v12836_v56 = vld [vmem:[#allocation30_spill] sm:$0xff]  ;;  %v12840_v3 = vld [vmem:[#allocation29_spill] sm:$0xff] }
 0x7bd   : > { %v3209_v8 = vpop.xlane.xlu1 %3208  ;;  %v3154_v31 = vadd.f32 %v9635_v39, %v12836_v56  ;;  %v7561_v61 = vld [vmem:[%s12519_s11 + $0x88] ss:$16 sps:$4 sm:$0xff]  }
 0x7be   : > { %v3269_v36 = vmul.f32 0.0078125, %v3209_v8  ;;  %3362 = vadd.xlane.f32.xlu0 %v3330_v53  ;;  %v3331_v42 = vmul.f32 %v9659_v35, %v9659_v35  ;;  %v9670_v20 = vsub.f32 %v9528_v9, %v3268_v45  ;;  %v7546_v45 = vld [vmem:[%s12519_s11 + $0x40] ss:$16 sps:$4 sm:$0xff]   ;;  %v7549_v53 = vld [vmem:[%s12519_s11 + $0x48] ss:$16 sps:$4 sm:$0xff]   ;;  %v9726_v58 = vadd.f32 %v9514_v15, %v3153_v51 }
 0x7bf   : > { %3865 = vmatpush1.bf16.msra.mxu1 %v7546_v45  ;;  %4058 = vmatpush1.bf16.msra.mxu0 %v7549_v53  ;;  %v9738_v14 = vadd.f32 %v9514_v15, %v3154_v31  ;;  %v3156_v51 = vadd.f32 %v9630_v23, %v12840_v3  ;;  %v7569_v45 = vld [vmem:[%s12519_s11 + $0xac] ss:$16 sps:$4 sm:$0xff]   ;;  %v7564_v23 = vld [vmem:[%s12519_s11 + $0xa0] ss:$16 sps:$4 sm:$0xff]   ;;  %v7567_v56 = vld [vmem:[%s12519_s11 + $0xa8] ss:$16 sps:$4 sm:$0xff]  }
 0x7c0   : > { %3364 = vadd.xlane.f32.xlu1 %v3331_v42  ;;  %v9676_v37 = vsub.f32 %v9532_v44, %v3269_v36  ;;  %v3332_v38 = vmul.f32 %v9670_v20, %v9670_v20  ;;  %v7554_v42 = vld [vmem:[%s12519_s11 + $0x64] ss:$16 sps:$4 sm:$0xff]   ;;  %12837 = vst [vmem:[#allocation14_spill] sm:$0xff] %v9726_v58  ;;  %4059 = vmatprep.subr.bf16.mxu0 %v7557_v26 }
 0x7c1   : > { %3866 = vmatprep.subr.bf16.mxu1 %v7554_v42  ;;  %12838 = vst [vmem:[#allocation18_spill] sm:$0xff] %v9738_v14 }
 0x7c2   : > { %3242 = vadd.xlane.f32.xlu0 %v9667_v16  ;;  %v3333_v24 = vmul.f32 %v9676_v37, %v9676_v37 }
 0x7c3   : > { %4060 = vmatpush1.bf16.msra.mxu0 %v7555_v59  ;;  %v7575_v59 = vld [vmem:[%s12519_s11 + $0xcc] ss:$16 sps:$4 sm:$0xff]  }
 0x7c4   : > { %3244 = vadd.xlane.f32.xlu1 %v9673_v30 }
 0x7c6   : > { %3366 = vadd.xlane.f32.xlu0 %v3332_v38  ;;  %v7552_v38 = vld [vmem:[%s12519_s11 + $0x60] ss:$16 sps:$4 sm:$0xff]  }
 0x7c7   : > { %v3211_v28 = vpop.xlane.xlu0 %3210  ;;  %3867 = vmatpush1.bf16.msra.mxu1 %v7552_v38  ;;  %v7572_v38 = vld [vmem:[%s12519_s11 + $0xc4] ss:$16 sps:$4 sm:$0xff]  }
 0x7c8   : > { %v3270_v34 = vmul.f32 0.0078125, %v3211_v28  ;;  %3368 = vadd.xlane.f32.xlu1 %v3333_v24  ;;  %v7560_v28 = vld [vmem:[%s12519_s11 + $0x84] ss:$16 sps:$4 sm:$0xff]  }
 0x7c9   : > { %v3213_v32 = vpop.xlane.xlu1 %3212  ;;  %3868 = vmatprep.subr.bf16.mxu1 %v7560_v28  ;;  %v12843_v28 = vld [vmem:[#allocation32_spill] sm:$0xff] }
 0x7ca   : > { %v9693_v52 = vsub.f32 %v9539_v5, %v3270_v34  ;;  %v3271_v48 = vmul.f32 0.0078125, %v3213_v32  ;;  %3246 = vadd.xlane.f32.xlu0 %v9687_v63  ;;  %v7563_v34 = vld [vmem:[%s12519_s11 + $0x8c] ss:$16 sps:$4 sm:$0xff]   ;;  %v12839_v32 = vld [vmem:[#allocation27_spill] sm:$0xff] }
 0x7cb   : > { %v3215_v57 = vpop.xlane.xlu0 %3214  ;;  %4061 = vmatprep.subr.bf16.mxu0 %v7563_v34  ;;  %3869 = vmatpush1.bf16.msra.mxu1 %v7558_v6  ;;  %v3157_v34 = vadd.f32 %v9648_v19, %v12843_v28  ;;  %v7570_v6 = vld [vmem:[%s12519_s11 + $0xc0] ss:$16 sps:$4 sm:$0xff]  }
 0x7cc   : > { %v9704_v21 = vsub.f32 %v9544_v2, %v3271_v48  ;;  %v3272_v60 = vmul.f32 0.0078125, %v3215_v57  ;;  %3248 = vadd.xlane.f32.xlu1 %v9690_v13  ;;  %v3334_v7 = vmul.f32 %v9693_v52, %v9693_v52  ;;  %v3155_v48 = vadd.f32 %v9616_v62, %v12839_v32  ;;  %4062 = vmatpush1.bf16.msra.mxu0 %v7561_v61  ;;  %v7573_v61 = vld [vmem:[%s12519_s11 + $0xc8] ss:$16 sps:$4 sm:$0xff]  }
 0x7cd   : > { %v3217_v8 = vpop.xlane.xlu1 %3216  ;;  %4063 = vmatprep.subr.bf16.mxu0 %v7569_v45  ;;  %v12844_v19 = vld [vmem:[#allocation34_spill] sm:$0xff]  ;;  %v12848_v28 = vld [vmem:[#allocation33_spill] sm:$0xff] }
 0x7ce   : > { %v3273_v46 = vmul.f32 0.0078125, %v3217_v8  ;;  %3370 = vadd.xlane.f32.xlu0 %v3334_v7  ;;  %v3335_v36 = vmul.f32 %v9704_v21, %v9704_v21  ;;  %v9729_v39 = vsub.f32 %v9548_v55, %v3272_v60  ;;  %v7566_v7 = vld [vmem:[%s12519_s11 + $0xa4] ss:$16 sps:$4 sm:$0xff]   ;;  %v9772_v53 = vadd.f32 %v9514_v15, %v3155_v48  ;;  %v7581_v45 = vld [vmem:[%s12519_s11 + $0xec] ss:$16 sps:$4 sm:$0xff]  }
 0x7cf   : > { %3870 = vmatprep.subr.bf16.mxu1 %v7566_v7  ;;  %v7578_v7 = vld [vmem:[%s12519_s11 + $0xe4] ss:$16 sps:$4 sm:$0xff]  }
 0x7d0   : > { %3372 = vadd.xlane.f32.xlu1 %v3335_v36  ;;  %v9741_v24 = vsub.f32 %v9552_v0, %v3273_v46  ;;  %v3336_v57 = vmul.f32 %v9729_v39, %v9729_v39  ;;  %12841 = vst [vmem:[#allocation20_spill] sm:$0xff] %v9772_v53  ;;  %v9781_v46 = vadd.f32 %v9514_v15, %v3156_v51 }
 0x7d1   : > { %3871 = vmatpush1.bf16.msra.mxu1 %v7564_v23  ;;  %4064 = vmatpush1.bf16.msra.mxu0 %v7567_v56  ;;  %v3158_v51 = vadd.f32 %v9652_v41, %v12844_v19  ;;  %v7576_v23 = vld [vmem:[%s12519_s11 + $0xe0] ss:$16 sps:$4 sm:$0xff]   ;;  %v7579_v56 = vld [vmem:[%s12519_s11 + $0xe8] ss:$16 sps:$4 sm:$0xff]  }
 0x7d2   : > { %3250 = vadd.xlane.f32.xlu0 %v9726_v58  ;;  %v3337_v62 = vmul.f32 %v9741_v24, %v9741_v24  ;;  %12842 = vst [vmem:[#allocation21_spill] sm:$0xff] %v9781_v46  ;;  %3872 = vmatprep.subr.bf16.mxu1 %v7572_v38 }
 0x7d3   : > { %4065 = vmatprep.subr.bf16.mxu0 %v7575_v59 }
 0x7d4   : > { %3252 = vadd.xlane.f32.xlu1 %v9738_v14 }
 0x7d5   : > { %3873 = vmatpush1.bf16.msra.mxu1 %v7570_v6  ;;  %4066 = vmatpush1.bf16.msra.mxu0 %v7573_v61 }
 0x7d6   : > { %3374 = vadd.xlane.f32.xlu0 %v3336_v57  ;;  %3874 = vmatprep.subr.bf16.mxu1 %v7578_v7 }
 0x7d7   : > { %v3219_v60 = vpop.xlane.xlu0 %3218  ;;  %4067 = vmatprep.subr.bf16.mxu0 %v7581_v45 }
 0x7d8   : > { %v3274_v8 = vmul.f32 0.0078125, %v3219_v60  ;;  %3376 = vadd.xlane.f32.xlu1 %v3337_v62 }
 0x7d9   : > { %v3221_v31 = vpop.xlane.xlu1 %3220  ;;  %3875 = vmatpush1.bf16.msra.mxu1 %v7576_v23  ;;  %4068 = vmatpush1.bf16.msra.mxu0 %v7579_v56 }
 0x7da   : > { %v9784_v36 = vsub.f32 %v9559_v50, %v3274_v8  ;;  %v3275_v42 = vmul.f32 0.0078125, %v3221_v31  ;;  %3254 = vadd.xlane.f32.xlu0 %v9772_v53  ;;  %v9818_v8 = vadd.f32 %v9514_v15, %v3157_v34  ;;  %v9830_v31 = vadd.f32 %v9514_v15, %v3158_v51 }
 0x7db   : > { %v3223_v26 = vpop.xlane.xlu0 %3222  ;;  %v3160_v34 = vadd.f32 %v9650_v43, %v12848_v28 }
 0x7dc   : > { %v9796_v32 = vsub.f32 %v9564_v18, %v3275_v42  ;;  %v3276_v48 = vmul.f32 0.0078125, %v3223_v26  ;;  %3256 = vadd.xlane.f32.xlu1 %v9781_v46  ;;  %v3338_v57 = vmul.f32 %v9784_v36, %v9784_v36  ;;  %12845 = vst [vmem:[#allocation22_spill] sm:$0xff] %v9818_v8  ;;  %12846 = vst [vmem:[#allocation23_spill] sm:$0xff] %v9830_v31  ;;  %v12847_v26 = vld [vmem:[#allocation31_spill] sm:$0xff] }
 0x7dd   : > { %v3225_v3 = vpop.xlane.xlu1 %3224  ;;  %v3159_v38 = vadd.f32 %v9646_v33, %v12847_v26  ;;  %v9849_v33 = vadd.f32 %v9514_v15, %v3160_v34 }
 0x7de   : > { %v3277_v62 = vmul.f32 0.0078125, %v3225_v3  ;;  %3378 = vadd.xlane.f32.xlu0 %v3338_v57  ;;  %v3339_v60 = vmul.f32 %v9796_v32, %v9796_v32  ;;  %v9821_v41 = vsub.f32 %v9568_v40, %v3276_v48 }
 0x7df   : > { %v9846_v6 = vadd.f32 %v9514_v15, %v3159_v38  ;;  %12850 = vst [vmem:[#allocation24_spill] sm:$0xff] %v9849_v33 }
 0x7e0   : > { %3380 = vadd.xlane.f32.xlu1 %v3339_v60  ;;  %v9833_v42 = vsub.f32 %v9572_v12, %v3277_v62  ;;  %v3340_v59 = vmul.f32 %v9821_v41, %v9821_v41 }
 0x7e1   : > { %12849 = vst [vmem:[#allocation25_spill] sm:$0xff] %v9846_v6 }
 0x7e2   : > { %3258 = vadd.xlane.f32.xlu0 %v9818_v8  ;;  %v3341_v48 = vmul.f32 %v9833_v42, %v9833_v42 }
 0x7e4   : > { %3260 = vadd.xlane.f32.xlu1 %v9830_v31 }
 0x7e6   : > { %3382 = vadd.xlane.f32.xlu0 %v3340_v59 }
 0x7e7   : > { %v3227_v57 = vpop.xlane.xlu0 %3226 }
 0x7e8   : > { %v3278_v61 = vmul.f32 0.0078125, %v3227_v57  ;;  %3384 = vadd.xlane.f32.xlu1 %v3341_v48 }
 0x7e9   : > { %v3229_v3 = vpop.xlane.xlu1 %3228 }
 0x7ea   : > { %v9852_v19 = vsub.f32 %v9579_v1, %v3278_v61  ;;  %v3279_v51 = vmul.f32 0.0078125, %v3229_v3  ;;  %3262 = vadd.xlane.f32.xlu0 %v9846_v6 }
 0x7eb   : > { %v3231_v43 = vpop.xlane.xlu0 %3230 }
 0x7ec   : > { %v9856_v62 = vsub.f32 %v9584_v22, %v3279_v51  ;;  %v3280_v60 = vmul.f32 0.0078125, %v3231_v43  ;;  %3264 = vadd.xlane.f32.xlu1 %v9849_v33  ;;  %v3342_v7 = vmul.f32 %v9852_v19, %v9852_v19 }
 0x7ed   : > { %v3233_v45 = vpop.xlane.xlu1 %3232 }
 0x7ee   : > { %v9862_v15 = vsub.f32 %v9588_v11, %v3280_v60  ;;  %v3281_v23 = vmul.f32 0.0078125, %v3233_v45  ;;  %3386 = vadd.xlane.f32.xlu0 %v3342_v7  ;;  %v3343_v56 = vmul.f32 %v9856_v62, %v9856_v62 }
 0x7f0   : > { %v9867_v26 = vsub.f32 %v9592_v4, %v3281_v23  ;;  %3388 = vadd.xlane.f32.xlu1 %v3343_v56  ;;  %v3344_v38 = vmul.f32 %v9862_v15, %v9862_v15 }
 0x7f2   : > { %3390 = vadd.xlane.f32.xlu0 %v3344_v38  ;;  %v3345_v59 = vmul.f32 %v9867_v26, %v9867_v26 }
 0x7f4   : > { %3392 = vadd.xlane.f32.xlu1 %v3345_v59 }
 0x7f7   : > { %v3235_v28 = vpop.xlane.xlu0 %3234 }
 0x7f8   : > { %v3282_v34 = vmul.f32 0.0078125, %v3235_v28 }
 0x7f9   : > { %v3237_v48 = vpop.xlane.xlu1 %3236 }
 0x7fa   : > { %v9874_v57 = vsub.f32 %v9599_v27, %v3282_v34  ;;  %v3283_v61 = vmul.f32 0.0078125, %v3237_v48 }
 0x7fb   : > { %v3239_v3 = vpop.xlane.xlu0 %3238 }
 0x7fc   : > { %v9877_v51 = vsub.f32 %v9604_v17, %v3283_v61  ;;  %v3284_v43 = vmul.f32 0.0078125, %v3239_v3  ;;  %v3346_v60 = vmul.f32 %v9874_v57, %v9874_v57 }
 0x7fd   : > { %v3241_v7 = vpop.xlane.xlu1 %3240 }
 0x7fe   : > { %v9882_v45 = vsub.f32 %v9608_v29, %v3284_v43  ;;  %v3285_v23 = vmul.f32 0.0078125, %v3241_v7  ;;  %3394 = vadd.xlane.f32.xlu0 %v3346_v60  ;;  %v3347_v56 = vmul.f32 %v9877_v51, %v9877_v51 }
 0x800   : > { %v9887_v38 = vsub.f32 %v9612_v47, %v3285_v23  ;;  %3396 = vadd.xlane.f32.xlu1 %v3347_v56  ;;  %v3348_v59 = vmul.f32 %v9882_v45, %v9882_v45 }
 0x802   : > { %3398 = vadd.xlane.f32.xlu0 %v3348_v59  ;;  %v3349_v28 = vmul.f32 %v9887_v38, %v9887_v38 }
 0x804   : > { %3400 = vadd.xlane.f32.xlu1 %v3349_v28 }
 0x84b   : > { %v3363_v34 = vpop.xlane.xlu0 %3362 }
 0x84c   : > { %v3426_v48 = vmul.f32 0.0078125, %v3363_v34 }
 0x84d   : > { %v3365_v61 = vpop.xlane.xlu1 %3364 }
 0x84e   : > { %v3458_v3 = vadd.f32 1e-05, %v3426_v48  ;;  %v3427_v43 = vmul.f32 0.0078125, %v3365_v61 }
 0x84f   : > { %v3243_v60 = vpop.xlane.xlu0 %3242 }
 0x850   : > { %7870 = vrsqrt.f32 %v3458_v3  ;;  %v3459_v7 = vadd.f32 1e-05, %v3427_v43  ;;  %v3286_v4 = vmul.f32 0.0078125, %v3243_v60 }
 0x851   : > { %v3245_v23 = vpop.xlane.xlu1 %3244 }
 0x852   : > { %7872 = vrsqrt.f32 %v3459_v7  ;;  %v9894_v56 = vsub.f32 %v9667_v16, %v3286_v4  ;;  %v3287_v11 = vmul.f32 0.0078125, %v3245_v23 }
 0x853   : > { %v3367_v59 = vpop.xlane.xlu0 %3366 }
 0x854   : > { %v9897_v22 = vsub.f32 %v9673_v30, %v3287_v11  ;;  %v3428_v28 = vmul.f32 0.0078125, %v3367_v59  ;;  %v3350_v34 = vmul.f32 %v9894_v56, %v9894_v56  ;;  %v9906_v11 = vld [vmem:[%s12517_s9] ss:$0 sm:$0xff] }
 0x855   : > { %v3369_v48 = vpop.xlane.xlu1 %3368 }
 0x856   : > { %v3460_v61 = vadd.f32 1e-05, %v3428_v28  ;;  %v3429_v1 = vmul.f32 0.0078125, %v3369_v48  ;;  %3402 = vadd.xlane.f32.xlu0 %v3350_v34  ;;  %v3351_v3 = vmul.f32 %v9897_v22, %v9897_v22 }
 0x857   : > { %v3247_v43 = vpop.xlane.xlu0 %3246 }
 0x858   : > { %7874 = vrsqrt.f32 %v3460_v61  ;;  %v3461_v4 = vadd.f32 1e-05, %v3429_v1  ;;  %v3288_v60 = vmul.f32 0.0078125, %v3247_v43  ;;  %3404 = vadd.xlane.f32.xlu1 %v3351_v3 }
 0x859   : > { %v3249_v7 = vpop.xlane.xlu1 %3248 }
 0x85a   : > { %v7871_v23 = vpop.eup %7870  ;;  %7876 = vrsqrt.f32 %v3461_v4  ;;  %v9909_v59 = vsub.f32 %v9687_v63, %v3288_v60  ;;  %v3289_v28 = vmul.f32 0.0078125, %v3249_v7  ;;  %v9924_v7 = vld [vmem:[%s12518_s10] ss:$0 sm:$0xff] }
 0x85b   : > { %v3522_v34 = vmul.f32 %v7871_v23, %v9655_v25  ;;  %v3371_v48 = vpop.xlane.xlu0 %3370 }
 0x85c   : > { %v7873_v12 = vpop.eup %7872  ;;  %v9913_v1 = vsub.f32 %v9690_v13, %v3289_v28  ;;  %v3430_v61 = vmul.f32 0.0078125, %v3371_v48  ;;  %v3352_v3 = vmul.f32 %v9909_v59, %v9909_v59 }
 0x85d   : > { %v3560_v43 = vmul.f32 %v9906_v11, %v3522_v34  ;;  %v3523_v40 = vmul.f32 %v7873_v12, %v9659_v35  ;;  %v3373_v4 = vpop.xlane.xlu1 %3372 }
 0x85e   : > { %v3462_v18 = vadd.f32 1e-05, %v3430_v61  ;;  %v3431_v60 = vmul.f32 0.0078125, %v3373_v4  ;;  %3406 = vadd.xlane.f32.xlu0 %v3352_v3  ;;  %v3353_v25 = vmul.f32 %v9913_v1, %v9913_v1 }
 0x85f   : > { %v3561_v23 = vmul.f32 %v9906_v11, %v3523_v40  ;;  %v3251_v28 = vpop.xlane.xlu0 %3250  ;;  %v3598_v35 = vadd.f32 %v9924_v7, %v3560_v43 }
 0x860   : > { %7878 = vrsqrt.f32 %v3462_v18  ;;  %v3463_v48 = vadd.f32 1e-05, %v3431_v60  ;;  %v3290_v34 = vmul.f32 0.0078125, %v3251_v28  ;;  %3408 = vadd.xlane.f32.xlu1 %v3353_v25 }
 0x861   : > { %v3253_v12 = vpop.xlane.xlu1 %3252  ;;  %v3599_v61 = vadd.f32 %v9924_v7, %v3561_v23 }
 0x862   : > { %v7875_v3 = vpop.eup %7874  ;;  %7880 = vrsqrt.f32 %v3463_v48  ;;  %v9930_v4 = vsub.f32 %v9726_v58, %v3290_v34  ;;  %v3291_v50 = vmul.f32 0.0078125, %v3253_v12 }
 0x863   : > { %v3375_v0 = vpop.xlane.xlu0 %3374  ;;  %v3630_v13 = vpack.c.bf16 %v3599_v61, %v3598_v35  ;;  %v3524_v40 = vmul.f32 %v7875_v3, %v9670_v20 }
 0x864   : > { %v7877_v55 = vpop.eup %7876  ;;  %v9934_v18 = vsub.f32 %v9738_v14, %v3291_v50  ;;  %v3432_v60 = vmul.f32 0.0078125, %v3375_v0  ;;  %v3354_v43 = vmul.f32 %v9930_v4, %v9930_v4 }
 0x865   : > { %3893 = vmatmul.mubr.bf16.vlgmr.msra.gmra.mrb[144].mxu1 %v3630_v13  ;;  %4086 = vmatmul.mubr.bf16.vlgmr.msra.gmra.mrb[144].mxu0 %v3630_v13  ;;  %v3377_v25 = vpop.xlane.xlu1 %3376  ;;  %v3525_v23 = vmul.f32 %v7877_v55, %v9676_v37  ;;  %v3562_v28 = vmul.f32 %v9906_v11, %v3524_v40 }
 0x866   : > { %v3464_v48 = vadd.f32 1e-05, %v3432_v60  ;;  %v3433_v34 = vmul.f32 0.0078125, %v3377_v25  ;;  %3410 = vadd.xlane.f32.xlu0 %v3354_v43  ;;  %v3355_v20 = vmul.f32 %v9934_v18, %v9934_v18  ;;  %3902 = vmatprep.mubr.bf16.mxu1 %v12786_v10 }
 0x867   : > { %v3255_v50 = vpop.xlane.xlu0 %3254  ;;  %4095 = vmatprep.mubr.bf16.mxu0 %v12786_v10  ;;  %v3563_v0 = vmul.f32 %v9906_v11, %v3525_v23  ;;  %v3600_v37 = vadd.f32 %v9924_v7, %v3562_v28 }
 0x868   : > { %7882 = vrsqrt.f32 %v3464_v48  ;;  %v3465_v13 = vadd.f32 1e-05, %v3433_v34  ;;  %v3292_v12 = vmul.f32 0.0078125, %v3255_v50  ;;  %3412 = vadd.xlane.f32.xlu1 %v3355_v20 }
 0x869   : > { %v3257_v55 = vpop.xlane.xlu1 %3256  ;;  %v3601_v35 = vadd.f32 %v9924_v7, %v3563_v0 }
 0x86a   : > { %v7879_v61 = vpop.eup %7878  ;;  %7884 = vrsqrt.f32 %v3465_v13  ;;  %v9948_v3 = vsub.f32 %v9772_v53, %v3292_v12  ;;  %v3293_v40 = vmul.f32 0.0078125, %v3257_v55 }
 0x86b   : > { %v3379_v60 = vpop.xlane.xlu0 %3378  ;;  %v3631_v43 = vpack.c.bf16 %v3601_v35, %v3600_v37  ;;  %v3526_v25 = vmul.f32 %v7879_v61, %v9693_v52 }
 0x86c   : > { %v7881_v23 = vpop.eup %7880  ;;  %v9952_v48 = vsub.f32 %v9781_v46, %v3293_v40  ;;  %v3434_v34 = vmul.f32 0.0078125, %v3379_v60  ;;  %v3356_v28 = vmul.f32 %v9948_v3, %v9948_v3 }
 0x86d   : > { %3903 = vmatmul.mubr.bf16.gmra.mrb[148].mxu1 %v3631_v43  ;;  %4096 = vmatmul.mubr.bf16.gmra.mrb[148].mxu0 %v3631_v43  ;;  %v3381_v20 = vpop.xlane.xlu1 %3380  ;;  %v3527_v50 = vmul.f32 %v7881_v23, %v9704_v21  ;;  %v3564_v0 = vmul.f32 %v9906_v11, %v3526_v25 }
 0x86e   : > { %v3466_v13 = vadd.f32 1e-05, %v3434_v34  ;;  %v3435_v12 = vmul.f32 0.0078125, %v3381_v20  ;;  %3414 = vadd.xlane.f32.xlu0 %v3356_v28  ;;  %v3357_v52 = vmul.f32 %v9952_v48, %v9952_v48  ;;  %3912 = vmatprep.mubr.bf16.mxu1 %v12786_v10 }
 0x86f   : > { %v3259_v55 = vpop.xlane.xlu0 %3258  ;;  %4105 = vmatprep.mubr.bf16.mxu0 %v12786_v10  ;;  %v3565_v37 = vmul.f32 %v9906_v11, %v3527_v50  ;;  %v3602_v40 = vadd.f32 %v9924_v7, %v3564_v0 }
 0x870   : > { %7886 = vrsqrt.f32 %v3466_v13  ;;  %v3467_v35 = vadd.f32 1e-05, %v3435_v12  ;;  %v3294_v61 = vmul.f32 0.0078125, %v3259_v55  ;;  %3416 = vadd.xlane.f32.xlu1 %v3357_v52 }
 0x871   : > { %v3261_v21 = vpop.xlane.xlu1 %3260  ;;  %v3603_v60 = vadd.f32 %v9924_v7, %v3565_v37 }
 0x872   : > { %v7883_v43 = vpop.eup %7882  ;;  %7888 = vrsqrt.f32 %v3467_v35  ;;  %v9966_v25 = vsub.f32 %v9818_v8, %v3294_v61  ;;  %v3295_v23 = vmul.f32 0.0078125, %v3261_v21 }
 0x873   : > { %v3383_v34 = vpop.xlane.xlu0 %3382  ;;  %v3632_v28 = vpack.c.bf16 %v3603_v60, %v3602_v40  ;;  %v3528_v20 = vmul.f32 %v7883_v43, %v9729_v39 }
 0x874   : > { %v7885_v50 = vpop.eup %7884  ;;  %v9970_v13 = vsub.f32 %v9830_v31, %v3295_v23  ;;  %v3436_v12 = vmul.f32 0.0078125, %v3383_v34  ;;  %v3358_v0 = vmul.f32 %v9966_v25, %v9966_v25 }
 0x875   : > { %3913 = vmatmul.mubr.bf16.gmra.mrb[152].mxu1 %v3632_v28  ;;  %4106 = vmatmul.mubr.bf16.gmra.mrb[152].mxu0 %v3632_v28  ;;  %v3385_v52 = vpop.xlane.xlu1 %3384  ;;  %v3529_v55 = vmul.f32 %v7885_v50, %v9741_v24  ;;  %v3566_v37 = vmul.f32 %v9906_v11, %v3528_v20 }
 0x876   : > { %v3468_v35 = vadd.f32 1e-05, %v3436_v12  ;;  %v3437_v61 = vmul.f32 0.0078125, %v3385_v52  ;;  %3418 = vadd.xlane.f32.xlu0 %v3358_v0  ;;  %v3359_v39 = vmul.f32 %v9970_v13, %v9970_v13  ;;  %3922 = vmatprep.mubr.bf16.mxu1 %v12786_v10 }
 0x877   : > { %v3263_v21 = vpop.xlane.xlu0 %3262  ;;  %4115 = vmatprep.mubr.bf16.mxu0 %v12786_v10  ;;  %v3567_v40 = vmul.f32 %v9906_v11, %v3529_v55  ;;  %v3604_v23 = vadd.f32 %v9924_v7, %v3566_v37 }
 0x878   : > { %7890 = vrsqrt.f32 %v3468_v35  ;;  %v3469_v60 = vadd.f32 1e-05, %v3437_v61  ;;  %v3296_v43 = vmul.f32 0.0078125, %v3263_v21  ;;  %3420 = vadd.xlane.f32.xlu1 %v3359_v39 }
 0x879   : > { %v3265_v24 = vpop.xlane.xlu1 %3264  ;;  %v3605_v34 = vadd.f32 %v9924_v7, %v3567_v40 }
 0x87a   : > { %v7887_v28 = vpop.eup %7886  ;;  %7892 = vrsqrt.f32 %v3469_v60  ;;  %v9984_v20 = vsub.f32 %v9846_v6, %v3296_v43  ;;  %v3297_v50 = vmul.f32 0.0078125, %v3265_v24 }
 0x87b   : > { %v3387_v12 = vpop.xlane.xlu0 %3386  ;;  %v3633_v0 = vpack.c.bf16 %v3605_v34, %v3604_v23  ;;  %v3530_v52 = vmul.f32 %v7887_v28, %v9784_v36 }
 0x87c   : > { %v7889_v55 = vpop.eup %7888  ;;  %v9988_v35 = vsub.f32 %v9849_v33, %v3297_v50  ;;  %v3438_v61 = vmul.f32 0.0078125, %v3387_v12  ;;  %v3360_v37 = vmul.f32 %v9984_v20, %v9984_v20 }
 0x87d   : > { %3923 = vmatmul.mubr.bf16.gmra.mrb[156].mxu1 %v3633_v0  ;;  %4116 = vmatmul.mubr.bf16.gmra.mrb[156].mxu0 %v3633_v0  ;;  %v3389_v39 = vpop.xlane.xlu1 %3388  ;;  %v3531_v21 = vmul.f32 %v7889_v55, %v9796_v32  ;;  %v3568_v40 = vmul.f32 %v9906_v11, %v3530_v52 }
 0x87e   : > { %v3470_v60 = vadd.f32 1e-05, %v3438_v61  ;;  %v3439_v43 = vmul.f32 0.0078125, %v3389_v39  ;;  %3422 = vadd.xlane.f32.xlu0 %v3360_v37  ;;  %v3361_v36 = vmul.f32 %v9988_v35, %v9988_v35  ;;  %3932 = vmatprep.mubr.bf16.mxu1 %v12786_v10 }
 0x87f   : > { %v3391_v24 = vpop.xlane.xlu0 %3390  ;;  %4125 = vmatprep.mubr.bf16.mxu0 %v12786_v10  ;;  %v3569_v23 = vmul.f32 %v9906_v11, %v3531_v21  ;;  %v3606_v50 = vadd.f32 %v9924_v7, %v3568_v40 }
 0x880   : > { %7894 = vrsqrt.f32 %v3470_v60  ;;  %v3471_v34 = vadd.f32 1e-05, %v3439_v43  ;;  %v3440_v28 = vmul.f32 0.0078125, %v3391_v24  ;;  %3424 = vadd.xlane.f32.xlu1 %v3361_v36 }
 0x881   : > { %v3393_v32 = vpop.xlane.xlu1 %3392  ;;  %v3607_v12 = vadd.f32 %v9924_v7, %v3569_v23 }
 0x882   : > { %v7891_v0 = vpop.eup %7890  ;;  %7896 = vrsqrt.f32 %v3471_v34  ;;  %v3472_v52 = vadd.f32 1e-05, %v3440_v28  ;;  %v3441_v55 = vmul.f32 0.0078125, %v3393_v32 }
 0x883   : > { %v3634_v61 = vpack.c.bf16 %v3607_v12, %v3606_v50  ;;  %v3532_v37 = vmul.f32 %v7891_v0, %v9821_v41 }
 0x884   : > { %v7893_v39 = vpop.eup %7892  ;;  %7898 = vrsqrt.f32 %v3472_v52  ;;  %v3473_v33 = vadd.f32 1e-05, %v3441_v55 }
 0x885   : > { %3933 = vmatmul.mubr.bf16.gmra.mrb[160].mxu1 %v3634_v61  ;;  %4126 = vmatmul.mubr.bf16.gmra.mrb[160].mxu0 %v3634_v61  ;;  %v3533_v21 = vmul.f32 %v7893_v39, %v9833_v42  ;;  %v3570_v60 = vmul.f32 %v9906_v11, %v3532_v37 }
 0x886   : > { %7900 = vrsqrt.f32 %v3473_v33  ;;  %3942 = vmatprep.mubr.bf16.mxu1 %v12786_v10  ;;  %4135 = vmatprep.mubr.bf16.mxu0 %v12786_v10 }
 0x887   : > { %v3571_v40 = vmul.f32 %v9906_v11, %v3533_v21  ;;  %v3608_v43 = vadd.f32 %v9924_v7, %v3570_v60 }
 0x889   : > { %v3609_v41 = vadd.f32 %v9924_v7, %v3571_v40 }
 0x88a   : > { %v7895_v36 = vpop.eup %7894 }
 0x88b   : > { %v3395_v24 = vpop.xlane.xlu0 %3394  ;;  %v3635_v23 = vpack.c.bf16 %v3609_v41, %v3608_v43  ;;  %v3534_v34 = vmul.f32 %v7895_v36, %v9852_v19 }
 0x88c   : > { %v7897_v28 = vpop.eup %7896  ;;  %v3442_v42 = vmul.f32 0.0078125, %v3395_v24 }
 0x88d   : > { %3943 = vmatmul.mubr.bf16.gmra.mrb[164].mxu1 %v3635_v23  ;;  %4136 = vmatmul.mubr.bf16.gmra.mrb[164].mxu0 %v3635_v23  ;;  %v3397_v33 = vpop.xlane.xlu1 %3396  ;;  %v3535_v32 = vmul.f32 %v7897_v28, %v9856_v62  ;;  %v3572_v50 = vmul.f32 %v9906_v11, %v3534_v34 }
 0x88e   : > { %v7899_v12 = vpop.eup %7898  ;;  %v3474_v0 = vadd.f32 1e-05, %v3442_v42  ;;  %v3443_v52 = vmul.f32 0.0078125, %v3397_v33  ;;  %3952 = vmatprep.mubr.bf16.mxu1 %v12786_v10  ;;  %4145 = vmatprep.mubr.bf16.mxu0 %v12786_v10 }
 0x88f   : > { %v3399_v55 = vpop.xlane.xlu0 %3398  ;;  %v3573_v61 = vmul.f32 %v9906_v11, %v3535_v32  ;;  %v3610_v60 = vadd.f32 %v9924_v7, %v3572_v50  ;;  %v3536_v40 = vmul.f32 %v7899_v12, %v9862_v15 }
 0x890   : > { %v7901_v19 = vpop.eup %7900  ;;  %7902 = vrsqrt.f32 %v3474_v0  ;;  %v3475_v37 = vadd.f32 1e-05, %v3443_v52  ;;  %v3444_v39 = vmul.f32 0.0078125, %v3399_v55 }
 0x891   : > { %v3401_v21 = vpop.xlane.xlu1 %3400  ;;  %v3611_v62 = vadd.f32 %v9924_v7, %v3573_v61  ;;  %v3537_v43 = vmul.f32 %v7901_v19, %v9867_v26  ;;  %v3574_v28 = vmul.f32 %v9906_v11, %v3536_v40 }
 0x892   : > { %7904 = vrsqrt.f32 %v3475_v37  ;;  %v3476_v41 = vadd.f32 1e-05, %v3444_v39  ;;  %v3445_v36 = vmul.f32 0.0078125, %v3401_v21 }
 0x893   : > { %v3636_v24 = vpack.c.bf16 %v3611_v62, %v3610_v60  ;;  %v3575_v23 = vmul.f32 %v9906_v11, %v3537_v43  ;;  %v3612_v26 = vadd.f32 %v9924_v7, %v3574_v28  ;;  %v7589_v28 = vld [vmem:[%s12521_s13 + $0x88] sm:$0xff]  }
 0x894   : > { %7906 = vrsqrt.f32 %v3476_v41  ;;  %v3477_v34 = vadd.f32 1e-05, %v3445_v36  ;;  %v7584_v41 = vld [vmem:[%s12521_s13] sm:$0xff]  }
 0x895   : > { %3953 = vmatmul.mubr.bf16.gmra.mrb[168].mxu1 %v3636_v24  ;;  %4146 = vmatmul.mubr.bf16.gmra.mrb[168].mxu0 %v3636_v24  ;;  %v3613_v15 = vadd.f32 %v9924_v7, %v3575_v23  ;;  %v7585_v36 = vld [vmem:[%s12521_s13 + $0x80] sm:$0xff]   ;;  %v7586_v24 = vld [vmem:[%s12521_s13 + $0x48] sm:$0xff]  }
 0x896   : > { %7908 = vrsqrt.f32 %v3477_v34  ;;  %3962 = vmatprep.mubr.bf16.mxu1 %v12786_v10  ;;  %4155 = vmatprep.mubr.bf16.mxu0 %v12786_v10  ;;  %v7587_v23 = vld [vmem:[%s12521_s13 + $0xc8] sm:$0xff]  }
 0x897   : > { %v3637_v33 = vpack.c.bf16 %v3613_v15, %v3612_v26  ;;  %v7588_v34 = vld [vmem:[%s12521_s13 + $0x8] sm:$0xff]   ;;  %v7590_v15 = vld [vmem:[%s12521_s13 + $0x50] sm:$0xff]  }
 0x898   : > { %v7591_v26 = vld [vmem:[%s12521_s13 + $0xd0] sm:$0xff]  }
 0x89a   : > { %v7903_v42 = vpop.eup %7902 }
 0x89b   : > { %v3538_v32 = vmul.f32 %v7903_v42, %v9874_v57  ;;  %v7592_v42 = vld [vmem:[%s12521_s13 + $0x10] sm:$0xff]  }
 0x89c   : > { %v7905_v50 = vpop.eup %7904 }
 0x89d   : > { %3963 = vmatmul.mubr.bf16.gmra.mrb[172].mxu1 %v3637_v33  ;;  %4156 = vmatmul.mubr.bf16.gmra.mrb[172].mxu0 %v3637_v33  ;;  %v3539_v12 = vmul.f32 %v7905_v50, %v9877_v51  ;;  %v3576_v0 = vmul.f32 %v9906_v11, %v3538_v32  ;;  %v7593_v33 = vld [vmem:[%s12521_s13 + $0x90] sm:$0xff]   ;;  %v7594_v32 = vld [vmem:[%s12521_s13 + $0x58] sm:$0xff]  }
 0x89e   : > { %v7907_v52 = vpop.eup %7906  ;;  %3972 = vmatprep.mubr.bf16.mxu1 %v12786_v10  ;;  %4165 = vmatprep.mubr.bf16.mxu0 %v12786_v10  ;;  %v7595_v50 = vld [vmem:[%s12521_s13 + $0xd8] sm:$0xff]  }
 0x89f   : > { %v3577_v55 = vmul.f32 %v9906_v11, %v3539_v12  ;;  %v3614_v19 = vadd.f32 %v9924_v7, %v3576_v0  ;;  %v3540_v57 = vmul.f32 %v7907_v52, %v9882_v45  ;;  %v7582_v45 = vld [vmem:[%s12521_s13 + $0x40] sm:$0xff]   ;;  %v7596_v12 = vld [vmem:[%s12521_s13 + $0x18] sm:$0xff]  }
 0x8a0   : > { %v7909_v61 = vpop.eup %7908  ;;  %7057 = vmatprep.subr.bf16.mxu1 %v7582_v45  ;;  %v7597_v0 = vld [vmem:[%s12521_s13 + $0x98] sm:$0xff]   ;;  %v7598_v52 = vld [vmem:[%s12521_s13 + $0x60] sm:$0xff]  }
 0x8a1   : > { %v3615_v37 = vadd.f32 %v9924_v7, %v3577_v55  ;;  %v3541_v39 = vmul.f32 %v7909_v61, %v9887_v38  ;;  %v3578_v60 = vmul.f32 %v9906_v11, %v3540_v57  ;;  %v7583_v38 = vld [vmem:[%s12521_s13 + $0xc0] sm:$0xff]   ;;  %7058 = vmatpush3.bf16.msra.mxu1 %v7584_v41  ;;  %v7603_v57 = vld [vmem:[%s12521_s13 + $0xe8] sm:$0xff]  }
 0x8a2   : > { %7169 = vmatprep.subr.bf16.mxu0 %v7583_v38  ;;  %7059 = vmatprep.subr.bf16.mxu1 %v7586_v24  ;;  %v7599_v55 = vld [vmem:[%s12521_s13 + $0xe0] sm:$0xff]   ;;  %v7607_v24 = vld [vmem:[%s12521_s13 + $0xf0] sm:$0xff]  }
 0x8a3   : > { %v3638_v21 = vpack.c.bf16 %v3615_v37, %v3614_v19  ;;  %v3579_v51 = vmul.f32 %v9906_v11, %v3541_v39  ;;  %v3616_v40 = vadd.f32 %v9924_v7, %v3578_v60  ;;  %7170 = vmatpush3.bf16.msra.mxu0 %v7585_v36  ;;  %v7600_v61 = vld [vmem:[%s12521_s13 + $0x20] sm:$0xff]   ;;  %v7602_v37 = vld [vmem:[%s12521_s13 + $0x68] sm:$0xff]   ;;  %v7606_v36 = vld [vmem:[%s12521_s13 + $0x70] sm:$0xff]  }
 0x8a4   : > { %7171 = vmatprep.subr.bf16.mxu0 %v7587_v23  ;;  %v7601_v19 = vld [vmem:[%s12521_s13 + $0xa0] sm:$0xff]   ;;  %v7605_v60 = vld [vmem:[%s12521_s13 + $0xa8] sm:$0xff]  }
 0x8a5   : > { %3973 = vmatmul.mubr.bf16.gmra.mrb[176].mxu1 %v3638_v21  ;;  %4166 = vmatmul.mubr.bf16.gmra.mrb[176].mxu0 %v3638_v21  ;;  %v3617_v62 = vadd.f32 %v9924_v7, %v3579_v51  ;;  %v7604_v51 = vld [vmem:[%s12521_s13 + $0x28] sm:$0xff]  }
 0x8a6   : > { %3982 = vmatprep.mubr.bf16.mxu1 %v12786_v10  ;;  %4175 = vmatprep.mubr.bf16.mxu0 %v12786_v10 }
 0x8a7   : > { %v3639_v43 = vpack.c.bf16 %v3617_v62, %v3616_v40  ;;  %7060 = vmatpush3.bf16.msra.mxu1 %v7588_v34  ;;  %7172 = vmatpush3.bf16.msra.mxu0 %v7589_v28  ;;  %v7608_v34 = vld [vmem:[%s12521_s13 + $0x30] sm:$0xff]  }
 0x8a8   : > { %7061 = vmatprep.subr.bf16.mxu1 %v7590_v15  ;;  %7173 = vmatprep.subr.bf16.mxu0 %v7591_v26  ;;  %v7609_v28 = vld [vmem:[%s12521_s13 + $0xb0] sm:$0xff]  }
 0x8ab   : > { %7062 = vmatpush3.bf16.msra.mxu1 %v7592_v42  ;;  %7174 = vmatpush3.bf16.msra.mxu0 %v7593_v33  ;;  %v7610_v33 = vld [vmem:[%s12521_s13 + $0x78] sm:$0xff]  }
 0x8ac   : > { %7063 = vmatprep.subr.bf16.mxu1 %v7594_v32  ;;  %7175 = vmatprep.subr.bf16.mxu0 %v7595_v50  ;;  %v7611_v32 = vld [vmem:[%s12521_s13 + $0xf8] sm:$0xff]  }
 0x8ad   : > { %3983 = vmatmul.mubr.bf16.gmra.mrb[180].mxu1 %v3639_v43  ;;  %4176 = vmatmul.mubr.bf16.gmra.mrb[180].mxu0 %v3639_v43 }
 0x8ae   : > { %3992 = vmatprep.mubr.bf16.mxu1 %v12786_v10  ;;  %4185 = vmatprep.mubr.bf16.mxu0 %v12786_v10 }
 0x8af   : > { %7064 = vmatpush3.bf16.msra.mxu1 %v7596_v12  ;;  %7176 = vmatpush3.bf16.msra.mxu0 %v7597_v0  ;;  %v7612_v12 = vld [vmem:[%s12521_s13 + $0x38] sm:$0xff]  }
 0x8b0   : > { %7065 = vmatprep.subr.bf16.mxu1 %v7598_v52  ;;  %7177 = vmatprep.subr.bf16.mxu0 %v7599_v55  ;;  %v7613_v0 = vld [vmem:[%s12521_s13 + $0xb8] sm:$0xff]  }
 0x8b3   : > { %7066 = vmatpush3.bf16.msra.mxu1 %v7600_v61  ;;  %7178 = vmatpush3.bf16.msra.mxu0 %v7601_v19 }
 0x8b4   : > { %7067 = vmatprep.subr.bf16.mxu1 %v7602_v37  ;;  %7179 = vmatprep.subr.bf16.mxu0 %v7603_v57 }
 0x8b7   : > { %7068 = vmatpush3.bf16.msra.mxu1 %v7604_v51  ;;  %7180 = vmatpush3.bf16.msra.mxu0 %v7605_v60 }
 0x8b8   : > { %7069 = vmatprep.subr.bf16.mxu1 %v7606_v36  ;;  %7181 = vmatprep.subr.bf16.mxu0 %v7607_v24 }
 0x8bb   : > { %7070 = vmatpush3.bf16.msra.mxu1 %v7608_v34  ;;  %7182 = vmatpush3.bf16.msra.mxu0 %v7609_v28 }
 0x8bc   : > { %7071 = vmatprep.subr.bf16.mxu1 %v7610_v33  ;;  %7183 = vmatprep.subr.bf16.mxu0 %v7611_v32 }
 0x8bf   : > { %7072 = vmatpush3.bf16.msra.mxu1 %v7612_v12  ;;  %7184 = vmatpush3.bf16.msra.mxu0 %v7613_v0 }
 0x8e3   : > { %v3403_v39 = vpop.xlane.xlu0 %3402 }
 0x8e4   : > { %v3446_v21 = vmul.f32 0.0078125, %v3403_v39 }
 0x8e5   : > { %v3405_v62 = vpop.xlane.xlu1 %3404 }
 0x8e6   : > { %v3478_v40 = vadd.f32 1e-05, %v3446_v21  ;;  %v3447_v43 = vmul.f32 0.0078125, %v3405_v62 }
 0x8e8   : > { %7910 = vrsqrt.f32 %v3478_v40  ;;  %v3479_v45 = vadd.f32 1e-05, %v3447_v43 }
 0x8ea   : > { %7912 = vrsqrt.f32 %v3479_v45 }
 0x8eb   : > { %v3407_v38 = vpop.xlane.xlu0 %3406 }
 0x8ec   : > { %v3448_v41 = vmul.f32 0.0078125, %v3407_v38 }
 0x8ed   : > { %v3409_v23 = vpop.xlane.xlu1 %3408 }
 0x8ee   : > { %v3480_v15 = vadd.f32 1e-05, %v3448_v41  ;;  %v3449_v26 = vmul.f32 0.0078125, %v3409_v23 }
 0x8f0   : > { %7914 = vrsqrt.f32 %v3480_v15  ;;  %v3481_v42 = vadd.f32 1e-05, %v3449_v26 }
 0x8f2   : > { %v7911_v50 = vpop.eup %7910  ;;  %7916 = vrsqrt.f32 %v3481_v42 }
 0x8f3   : > { %v3411_v52 = vpop.xlane.xlu0 %3410  ;;  %v3542_v55 = vmul.f32 %v7911_v50, %v9894_v56 }
 0x8f4   : > { %v7913_v61 = vpop.eup %7912  ;;  %v3450_v19 = vmul.f32 0.0078125, %v3411_v52 }
 0x8f5   : > { %v3413_v37 = vpop.xlane.xlu1 %3412  ;;  %v3543_v57 = vmul.f32 %v7913_v61, %v9897_v22  ;;  %v3580_v39 = vmul.f32 %v9906_v11, %v3542_v55 }
 0x8f6   : > { %v3482_v21 = vadd.f32 1e-05, %v3450_v19  ;;  %v3451_v51 = vmul.f32 0.0078125, %v3413_v37 }
 0x8f7   : > { %v3581_v60 = vmul.f32 %v9906_v11, %v3543_v57  ;;  %v3618_v40 = vadd.f32 %v9924_v7, %v3580_v39 }
 0x8f8   : > { %7918 = vrsqrt.f32 %v3482_v21  ;;  %v3483_v62 = vadd.f32 1e-05, %v3451_v51 }
 0x8f9   : > { %v3619_v43 = vadd.f32 %v9924_v7, %v3581_v60 }
 0x8fa   : > { %v7915_v56 = vpop.eup %7914  ;;  %7920 = vrsqrt.f32 %v3483_v62 }
 0x8fb   : > { %v3415_v45 = vpop.xlane.xlu0 %3414  ;;  %v3640_v38 = vpack.c.bf16 %v3619_v43, %v3618_v40  ;;  %v3544_v41 = vmul.f32 %v7915_v56, %v9909_v59 }
 0x8fc   : > { %v7917_v36 = vpop.eup %7916  ;;  %v3452_v22 = vmul.f32 0.0078125, %v3415_v45 }
 0x8fd   : > { %3993 = vmatmul.mubr.bf16.gmra.mrb[184].mxu1 %v3640_v38  ;;  %4186 = vmatmul.mubr.bf16.gmra.mrb[184].mxu0 %v3640_v38  ;;  %v3417_v24 = vpop.xlane.xlu1 %3416  ;;  %v3545_v23 = vmul.f32 %v7917_v36, %v9913_v1  ;;  %v3582_v34 = vmul.f32 %v9906_v11, %v3544_v41 }
 0x8fe   : > { %v3484_v28 = vadd.f32 1e-05, %v3452_v22  ;;  %v3453_v15 = vmul.f32 0.0078125, %v3417_v24  ;;  %4002 = vmatprep.mubr.bf16.mxu1 %v12786_v10  ;;  %4195 = vmatprep.mubr.bf16.mxu0 %v12786_v10 }
 0x8ff   : > { %v3583_v26 = vmul.f32 %v9906_v11, %v3545_v23  ;;  %v3620_v59 = vadd.f32 %v9924_v7, %v3582_v34 }
 0x900   : > { %7922 = vrsqrt.f32 %v3484_v28  ;;  %v3485_v42 = vadd.f32 1e-05, %v3453_v15 }
 0x901   : > { %v3621_v33 = vadd.f32 %v9924_v7, %v3583_v26 }
 0x902   : > { %v7919_v32 = vpop.eup %7918  ;;  %7924 = vrsqrt.f32 %v3485_v42 }
 0x903   : > { %v3419_v50 = vpop.xlane.xlu0 %3418  ;;  %v3641_v1 = vpack.c.bf16 %v3621_v33, %v3620_v59  ;;  %v3546_v12 = vmul.f32 %v7919_v32, %v9930_v4 }
 0x904   : > { %v7921_v0 = vpop.eup %7920  ;;  %v3454_v52 = vmul.f32 0.0078125, %v3419_v50 }
 0x905   : > { %4003 = vmatmul.mubr.bf16.gmra.mrb[188].mxu1 %v3641_v1  ;;  %4196 = vmatmul.mubr.bf16.gmra.mrb[188].mxu0 %v3641_v1  ;;  %v3421_v55 = vpop.xlane.xlu1 %3420  ;;  %v3547_v61 = vmul.f32 %v7921_v0, %v9934_v18  ;;  %v3584_v19 = vmul.f32 %v9906_v11, %v3546_v12 }
 0x906   : > { %v3486_v37 = vadd.f32 1e-05, %v3454_v52  ;;  %v3455_v57 = vmul.f32 0.0078125, %v3421_v55  ;;  %4012 = vmatprep.mubr.bf16.mxu1 %v12786_v10  ;;  %4205 = vmatprep.mubr.bf16.mxu0 %v12786_v10 }
 0x907   : > { %v3585_v39 = vmul.f32 %v9906_v11, %v3547_v61  ;;  %v3622_v4 = vadd.f32 %v9924_v7, %v3584_v19 }
 0x908   : > { %7926 = vrsqrt.f32 %v3486_v37  ;;  %v3487_v21 = vadd.f32 1e-05, %v3455_v57 }
 0x909   : > { %v3623_v51 = vadd.f32 %v9924_v7, %v3585_v39  ;;  %v12852_v39 = vld [vmem:[#allocation36_spill] sm:$0xff] }
 0x90a   : > { %v7923_v60 = vpop.eup %7922  ;;  %7928 = vrsqrt.f32 %v3487_v21 }
 0x90b   : > { %v3423_v62 = vpop.xlane.xlu0 %3422  ;;  %v3642_v18 = vpack.c.bf16 %v3623_v51, %v3622_v4  ;;  %v3548_v40 = vmul.f32 %v7923_v60, %v9948_v3 }
 0x90c   : > { %v7925_v43 = vpop.eup %7924  ;;  %v3456_v56 = vmul.f32 0.0078125, %v3423_v62 }
 0x90d   : > { %4013 = vmatmul.mubr.bf16.gmra.mrb[192].mxu1 %v3642_v18  ;;  %4206 = vmatmul.mubr.bf16.gmra.mrb[192].mxu0 %v3642_v18  ;;  %v3425_v45 = vpop.xlane.xlu1 %3424  ;;  %v3549_v38 = vmul.f32 %v7925_v43, %v9952_v48  ;;  %v3586_v41 = vmul.f32 %v9906_v11, %v3548_v40 }
 0x90e   : > { %v3488_v36 = vadd.f32 1e-05, %v3456_v56  ;;  %v3457_v22 = vmul.f32 0.0078125, %v3425_v45  ;;  %4022 = vmatprep.mubr.bf16.mxu1 %v12786_v10  ;;  %4215 = vmatprep.mubr.bf16.mxu0 %v12786_v10 }
 0x90f   : > { %v3587_v24 = vmul.f32 %v9906_v11, %v3549_v38  ;;  %v3624_v3 = vadd.f32 %v9924_v7, %v3586_v41 }
 0x910   : > { %7930 = vrsqrt.f32 %v3488_v36  ;;  %v3489_v23 = vadd.f32 1e-05, %v3457_v22 }
 0x911   : > { %v3625_v34 = vadd.f32 %v9924_v7, %v3587_v24 }
 0x912   : > { %v7927_v28 = vpop.eup %7926  ;;  %7932 = vrsqrt.f32 %v3489_v23 }
 0x913   : > { %v3643_v15 = vpack.c.bf16 %v3625_v34, %v3624_v3  ;;  %v3550_v48 = vmul.f32 %v7927_v28, %v9966_v25 }
 0x914   : > { %v7929_v26 = vpop.eup %7928 }
 0x915   : > { %4023 = vmatmul.mubr.bf16.gmra.mrb[196].mxu1 %v3643_v15  ;;  %4216 = vmatmul.mubr.bf16.gmra.mrb[196].mxu0 %v3643_v15  ;;  %v3551_v42 = vmul.f32 %v7929_v26, %v9970_v13  ;;  %v3588_v59 = vmul.f32 %v9906_v11, %v3550_v48 }
 0x916   : > { %4032 = vmatprep.mubr.bf16.mxu1 %v12786_v10  ;;  %4225 = vmatprep.mubr.bf16.mxu0 %v12786_v10 }
 0x917   : > { %v3589_v33 = vmul.f32 %v9906_v11, %v3551_v42  ;;  %v3626_v32 = vadd.f32 %v9924_v7, %v3588_v59 }
 0x919   : > { %v3627_v50 = vadd.f32 %v9924_v7, %v3589_v33 }
 0x91a   : > { %v7931_v1 = vpop.eup %7930 }
 0x91b   : > { %v3644_v12 = vpack.c.bf16 %v3627_v50, %v3626_v32  ;;  %v3552_v25 = vmul.f32 %v7931_v1, %v9984_v20  ;;  %v3678_v20 = vld [vmem:[%s12520_s12] sm:$0xf] }
 0x91c   : > { %v7933_v0 = vpop.eup %7932  ;;  %v10190_v21 = vrot.slane %v3678_v20, %v12852_v39 }
 0x91d   : > { %4033 = vmatmul.mubr.bf16.gmra.mrb[200].mxu1 %v3644_v12  ;;  %4226 = vmatmul.mubr.bf16.gmra.mrb[200].mxu0 %v3644_v12  ;;  %v3553_v13 = vmul.f32 %v7933_v0, %v9988_v35  ;;  %v3590_v52 = vmul.f32 %v9906_v11, %v3552_v25  ;;  %v12851_v35 = vld [vmem:[#allocation35_spill] sm:$0xff] }
 0x91e   : > { %4042 = vmatprep.mubr.bf16.mxu1 %v12786_v10  ;;  %4235 = vmatprep.mubr.bf16.mxu0 %v12786_v10  ;;  %v3694_v57 = vsub.s32 3, %v12851_v35  ;;  %v12853_v10 = vsub.s32 2, %v12851_v35 }
 0x91f   : > { %v3591_v55 = vmul.f32 %v9906_v11, %v3553_v13  ;;  %v3628_v61 = vadd.f32 %v9924_v7, %v3590_v52  ;;  %v12854_v11 = vsub.s32 1, %v12851_v35 }
 0x920   : > { %v10194_v4 = vrot.slane %v3678_v20, %v12853_v10 }
 0x921   : > { %v3629_v19 = vadd.f32 %v9924_v7, %v3591_v55  ;;  %v10198_v51 = vrot.slane %v3678_v20, %v12854_v11  ;;  %v10200_v7 = vrot.slane %v3678_v20, %v3694_v57 }
 0x923   : > { %v3645_v37 = vpack.c.bf16 %v3629_v19, %v3628_v61  ;;  %12855 = vst [vmem:[#allocation26_spill] sm:$0xff] %v10198_v51  ;;  %12856 = vst [vmem:[#allocation16_spill] sm:$0xff] %v10200_v7 }
 0x925   : > { %4043 = vmatmul.mubr.bf16.gmra.mrb[204].mxu1 %v3645_v37  ;;  %4236 = vmatmul.mubr.bf16.gmra.mrb[204].mxu0 %v3645_v37 }
 0x938   : > { %v3894_v60 = vpop.f32.mrb[144].mxu1  ;;  %v4087_v62 = vpop.f32.mrb[144].mxu0 }
 0x939   : > { %v10203_v18 = vadd.f32 %v3894_v60, %v10190_v21  ;;  %v10206_v40 = vadd.f32 %v4087_v62, %v10194_v4  ;;  %v3896_v43 = vpop.f32.mrb[145].mxu1  ;;  %v4089_v56 = vpop.f32.mrb[145].mxu0 }
 0x93a   : > { %v10209_v45 = vadd.f32 %v3896_v43, %v10198_v51  ;;  %v10212_v38 = vadd.f32 %v4089_v56, %v10200_v7  ;;  %v3898_v41 = vpop.f32.mrb[146].mxu1  ;;  %v4091_v36 = vpop.f32.mrb[146].mxu0 }
 0x93b   : > { %v4246_v22 = vmul.f32 %v10203_v18, %v10203_v18  ;;  %v4248_v24 = vmul.f32 %v10206_v40, %v10206_v40  ;;  %v10219_v23 = vadd.f32 %v3898_v41, %v10190_v21  ;;  %v10222_v3 = vadd.f32 %v4091_v36, %v10194_v4  ;;  %v3900_v34 = vpop.f32.mrb[147].mxu1  ;;  %v4093_v28 = vpop.f32.mrb[147].mxu0 }
 0x93c   : > { %v4247_v15 = vmul.f32 %v10209_v45, %v10209_v45  ;;  %v4249_v48 = vmul.f32 %v10212_v38, %v10212_v38  ;;  %v10229_v26 = vadd.f32 %v3900_v34, %v10198_v51  ;;  %v10232_v42 = vadd.f32 %v4093_v28, %v10200_v7 }
 0x93d   : > { %v4374_v59 = vmul.f32 %v4246_v22, %v10203_v18  ;;  %v4376_v33 = vmul.f32 %v4248_v24, %v10206_v40  ;;  %v4250_v32 = vmul.f32 %v10219_v23, %v10219_v23  ;;  %v4252_v50 = vmul.f32 %v10222_v3, %v10222_v3 }
 0x93e   : > { %v4375_v1 = vmul.f32 %v4247_v15, %v10209_v45  ;;  %v4377_v12 = vmul.f32 %v4249_v48, %v10212_v38  ;;  %v4251_v25 = vmul.f32 %v10229_v26, %v10229_v26  ;;  %v4253_v0 = vmul.f32 %v10232_v42, %v10232_v42 }
 0x93f   : > { %v4502_v13 = vmul.f32 0.044715, %v4374_v59  ;;  %v4504_v52 = vmul.f32 0.044715, %v4376_v33  ;;  %v4378_v55 = vmul.f32 %v4250_v32, %v10219_v23  ;;  %v4380_v61 = vmul.f32 %v4252_v50, %v10222_v3 }
 0x940   : > { %v4503_v19 = vmul.f32 0.044715, %v4375_v1  ;;  %v4505_v37 = vmul.f32 0.044715, %v4377_v12  ;;  %v4379_v20 = vmul.f32 %v4251_v25, %v10229_v26  ;;  %v4381_v57 = vmul.f32 %v4253_v0, %v10232_v42  ;;  %v3904_v10 = vpop.f32.mrb[148].mxu1  ;;  %v4097_v11 = vpop.f32.mrb[148].mxu0 }
 0x941   : > { %v4630_v60 = vadd.f32 %v4502_v13, %v10203_v18  ;;  %v4632_v62 = vadd.f32 %v4504_v52, %v10206_v40  ;;  %v4506_v43 = vmul.f32 0.044715, %v4378_v55  ;;  %v4508_v56 = vmul.f32 0.044715, %v4380_v61  ;;  %v3906_v41 = vpop.f32.mrb[149].mxu1  ;;  %v4099_v36 = vpop.f32.mrb[149].mxu0 }
 0x942   : > { %v4631_v22 = vadd.f32 %v4503_v19, %v10209_v45  ;;  %v4633_v24 = vadd.f32 %v4505_v37, %v10212_v38  ;;  %v4507_v34 = vmul.f32 0.044715, %v4379_v20  ;;  %v4509_v28 = vmul.f32 0.044715, %v4381_v57  ;;  %v3908_v15 = vpop.f32.mrb[150].mxu1  ;;  %v4101_v48 = vpop.f32.mrb[150].mxu0 }
 0x943   : > { %v4758_v59 = vmul.f32 0.7978846, %v4630_v60  ;;  %v4760_v33 = vmul.f32 0.7978846, %v4632_v62  ;;  %v4634_v32 = vadd.f32 %v4506_v43, %v10219_v23  ;;  %v4636_v50 = vadd.f32 %v4508_v56, %v10222_v3  ;;  %v3910_v1 = vpop.f32.mrb[151].mxu1  ;;  %v4103_v12 = vpop.f32.mrb[151].mxu0 }
 0x944   : > { %v4759_v25 = vmul.f32 0.7978846, %v4631_v22  ;;  %v4761_v0 = vmul.f32 0.7978846, %v4633_v24  ;;  %v4635_v13 = vadd.f32 %v4507_v34, %v10229_v26  ;;  %v4637_v52 = vadd.f32 %v4509_v28, %v10232_v42 }
 0x945   : > { %7934 = vtanh.f32 %v4758_v59  ;;  %v4762_v55 = vmul.f32 0.7978846, %v4634_v32  ;;  %v4764_v61 = vmul.f32 0.7978846, %v4636_v50  ;;  %v10259_v19 = vadd.f32 %v3904_v10, %v10190_v21 }
 0x946   : > { %7936 = vtanh.f32 %v4760_v33  ;;  %v4763_v37 = vmul.f32 0.7978846, %v4635_v13  ;;  %v4765_v20 = vmul.f32 0.7978846, %v4637_v52  ;;  %v10262_v57 = vadd.f32 %v4097_v11, %v10194_v4 }
 0x947   : > { %12857 = vst [vmem:[#allocation19_spill] sm:$0xff] %v10259_v19  ;;  %7938 = vtanh.f32 %v4759_v25  ;;  %v4254_v60 = vmul.f32 %v10259_v19, %v10259_v19  ;;  %v10267_v62 = vadd.f32 %v3906_v41, %v10198_v51  ;;  %v10270_v43 = vadd.f32 %v4099_v36, %v10200_v7 }
 0x948   : > { %12858 = vst [vmem:[#allocation15_spill] sm:$0xff] %v10262_v57  ;;  %7940 = vtanh.f32 %v4761_v0  ;;  %v4256_v10 = vmul.f32 %v10262_v57, %v10262_v57  ;;  %v10275_v56 = vadd.f32 %v3908_v15, %v10190_v21  ;;  %v10278_v11 = vadd.f32 %v4101_v48, %v10194_v4  ;;  %v10280_v22 = vpop.f32.mrb[152].mxu1  ;;  %v10282_v24 = vpop.f32.mrb[152].mxu0 }
 0x949   : > { %12859 = vst [vmem:[#allocation17_spill] sm:$0xff] %v10270_v43  ;;  %7942 = vtanh.f32 %v4762_v55  ;;  %v4382_v41 = vmul.f32 %v4254_v60, %v10259_v19  ;;  %v4255_v36 = vmul.f32 %v10267_v62, %v10267_v62  ;;  %v4257_v34 = vmul.f32 %v10270_v43, %v10270_v43  ;;  %v10289_v28 = vpop.f32.mrb[153].mxu1  ;;  %v10291_v15 = vpop.f32.mrb[153].mxu0 }
 0x94a   : > { %12860 = vst [vmem:[#allocation28_spill] sm:$0xff] %v10275_v56  ;;  %12861 = vst [vmem:[#allocation30_spill] sm:$0xff] %v10278_v11  ;;  %7944 = vtanh.f32 %v4764_v61  ;;  %v4384_v48 = vmul.f32 %v4256_v10, %v10262_v57  ;;  %v4258_v59 = vmul.f32 %v10275_v56, %v10275_v56  ;;  %v4260_v33 = vmul.f32 %v10278_v11, %v10278_v11  ;;  %v10298_v32 = vpop.f32.mrb[154].mxu1  ;;  %v10300_v50 = vpop.f32.mrb[154].mxu0 }
 0x94b   : > { %7946 = vtanh.f32 %v4763_v37  ;;  %v4510_v25 = vmul.f32 0.044715, %v4382_v41  ;;  %v4383_v0 = vmul.f32 %v4255_v36, %v10267_v62  ;;  %v4385_v13 = vmul.f32 %v4257_v34, %v10270_v43  ;;  %v10304_v52 = vpop.f32.mrb[155].mxu1  ;;  %v10306_v55 = vpop.f32.mrb[155].mxu0 }
 0x94c   : > { %7948 = vtanh.f32 %v4765_v20  ;;  %v4512_v61 = vmul.f32 0.044715, %v4384_v48  ;;  %v4386_v60 = vmul.f32 %v4258_v59, %v10275_v56  ;;  %v4388_v10 = vmul.f32 %v4260_v33, %v10278_v11 }
 0x94d   : > { %v4638_v35 = vadd.f32 %v4510_v25, %v10259_v19  ;;  %v4511_v39 = vmul.f32 0.044715, %v4383_v0  ;;  %v4513_v6 = vmul.f32 0.044715, %v4385_v13  ;;  %v10312_v37 = vadd.f32 %v3910_v1, %v10198_v51 }
 0x94e   : > { %v4640_v41 = vadd.f32 %v4512_v61, %v10262_v57  ;;  %v4514_v36 = vmul.f32 0.044715, %v4386_v60  ;;  %v4516_v34 = vmul.f32 0.044715, %v4388_v10  ;;  %v10316_v31 = vadd.f32 %v4103_v12, %v10200_v7 }
 0x94f   : > { %12862 = vst [vmem:[#allocation27_spill] sm:$0xff] %v10312_v37  ;;  %v7935_v20 = vpop.eup %7934  ;;  %v4766_v48 = vmul.f32 0.7978846, %v4638_v35  ;;  %v4639_v59 = vadd.f32 %v4511_v39, %v10267_v62  ;;  %v4641_v33 = vadd.f32 %v4513_v6, %v10270_v43  ;;  %v4259_v25 = vmul.f32 %v10312_v37, %v10312_v37 }
 0x950   : > { %12863 = vst [vmem:[#allocation29_spill] sm:$0xff] %v10316_v31  ;;  %v7937_v0 = vpop.eup %7936  ;;  %v5014_v13 = vadd.f32 1.0, %v7935_v20  ;;  %v4768_v1 = vmul.f32 0.7978846, %v4640_v41  ;;  %v4642_v8 = vadd.f32 %v4514_v36, %v10275_v56  ;;  %v4644_v61 = vadd.f32 %v4516_v34, %v10278_v11  ;;  %v10324_v60 = vpop.f32.mrb[156].mxu1 }
 0x951   : > { %v10326_v12 = vpop.f32.mrb[156].mxu0  ;;  %v10328_v10 = vpop.eup %7938  ;;  %v5016_v35 = vadd.f32 1.0, %v7937_v0  ;;  %7950 = vtanh.f32 %v4766_v48  ;;  %v4767_v39 = vmul.f32 0.7978846, %v4639_v59  ;;  %v4769_v6 = vmul.f32 0.7978846, %v4641_v33 }
 0x952   : > { %v10330_v46 = vpop.f32.mrb[157].mxu1  ;;  %v10332_v53 = vpop.eup %7940  ;;  %v5142_v20 = vmul.f32 0.5, %v5014_v13  ;;  %7952 = vtanh.f32 %v4768_v1  ;;  %v4770_v41 = vmul.f32 0.7978846, %v4642_v8  ;;  %v4772_v36 = vmul.f32 0.7978846, %v4644_v61 }
 0x953   : > { %v10334_v14 = vpop.f32.mrb[157].mxu0  ;;  %v7943_v34 = vpop.eup %7942  ;;  %v5144_v58 = vmul.f32 0.5, %v5016_v35  ;;  %7954 = vtanh.f32 %v4767_v39  ;;  %v4387_v63 = vmul.f32 %v4259_v25, %v10312_v37  ;;  %v4261_v48 = vmul.f32 %v10316_v31, %v10316_v31 }
 0x954   : > { %v10339_v59 = vpop.f32.mrb[158].mxu1  ;;  %v10341_v33 = vpop.f32.mrb[158].mxu0  ;;  %v10344_v13 = vmul.f32 %v5142_v20, %v10203_v18  ;;  %v5018_v8 = vadd.f32 1.0, %v7943_v34  ;;  %7956 = vtanh.f32 %v4769_v6  ;;  %v10348_v1 = vadd.f32 %v10280_v22, %v10190_v21 }
 0x955   : > { %v7945_v0 = vpop.eup %7944  ;;  %v10350_v61 = vpop.f32.mrb[159].mxu1  ;;  %v10357_v39 = vmul.f32 %v5144_v58, %v10206_v40  ;;  %7958 = vtanh.f32 %v4770_v41  ;;  %v4515_v30 = vmul.f32 0.044715, %v4387_v63  ;;  %v4389_v6 = vmul.f32 %v4261_v48, %v10316_v31 }
 0x956   : > { %12864 = vst [vmem:[#allocation32_spill] sm:$0xff] %v10348_v1  ;;  %v10352_v25 = vpop.f32.mrb[159].mxu0  ;;  %v10354_v35 = vpop.eup %7946  ;;  %v5020_v2 = vadd.f32 1.0, %v7945_v0  ;;  %v5146_v20 = vmul.f32 0.5, %v5018_v8  ;;  %7960 = vtanh.f32 %v4772_v36  ;;  %v4262_v22 = vmul.f32 %v10348_v1, %v10348_v1 }
 0x957   : > { %v10359_v18 = vpop.eup %7948  ;;  %v4643_v5 = vadd.f32 %v4515_v30, %v10312_v37  ;;  %v10367_v16 = vadd.f32 %v10282_v24, %v10194_v4  ;;  %v10371_v58 = vadd.f32 %v10289_v28, %v10198_v51  ;;  %v4517_v40 = vmul.f32 0.044715, %v4389_v6 }
 0x958   : > { %v5148_v34 = vmul.f32 0.5, %v5020_v2  ;;  %v10374_v63 = vmul.f32 %v5146_v20, %v10219_v23  ;;  %v4390_v41 = vmul.f32 %v4262_v22, %v10348_v1  ;;  %v10379_v36 = vadd.f32 %v10291_v15, %v10200_v7  ;;  %v10381_v2 = vpop.f32.mrb[160].mxu1  ;;  %v10383_v30 = vpop.f32.mrb[160].mxu0 }
 0x959   : > { %12865 = vst [vmem:[#allocation34_spill] sm:$0xff] %v10367_v16  ;;  %12866 = vst [vmem:[#allocation31_spill] sm:$0xff] %v10371_v58  ;;  %v4771_v48 = vmul.f32 0.7978846, %v4643_v5  ;;  %v4264_v28 = vmul.f32 %v10367_v16, %v10367_v16  ;;  %v4263_v23 = vmul.f32 %v10371_v58, %v10371_v58  ;;  %v10392_v0 = vpop.f32.mrb[161].mxu1  ;;  %v10394_v8 = vpop.f32.mrb[161].mxu0  ;;  %v4645_v20 = vadd.f32 %v4517_v40, %v10316_v31 }
 0x95a   : > { %12867 = vst [vmem:[#allocation33_spill] sm:$0xff] %v10379_v36  ;;  %v10386_v24 = vmul.f32 %v5148_v34, %v10222_v3  ;;  %v4518_v6 = vmul.f32 0.044715, %v4390_v41  ;;  %v4265_v3 = vmul.f32 %v10379_v36, %v10379_v36  ;;  %v10401_v5 = vpop.f32.mrb[162].mxu1  ;;  %v10403_v22 = vpop.f32.mrb[162].mxu0  ;;  %v10421_v49 = vadd.f32 %v10298_v32, %v10190_v21 }
 0x95b   : > { %v10405_v34 = vpop.eup %7950  ;;  %7962 = vtanh.f32 %v4771_v48  ;;  %v4392_v47 = vmul.f32 %v4264_v28, %v10367_v16  ;;  %v4391_v15 = vmul.f32 %v4263_v23, %v10371_v58  ;;  %v10411_v9 = vpop.f32.mrb[163].mxu1  ;;  %v4773_v29 = vmul.f32 0.7978846, %v4645_v20 }
 0x95c   : > { %v10413_v40 = vpop.f32.mrb[163].mxu0  ;;  %v10415_v41 = vpop.eup %7952  ;;  %v4646_v54 = vadd.f32 %v4518_v6, %v10348_v1  ;;  %v4393_v17 = vmul.f32 %v4265_v3, %v10379_v36  ;;  %12869 = vst [vmem:[#allocation51_spill] sm:$0xff] %v10421_v49  ;;  %v10427_v23 = vadd.f32 %v10300_v50, %v10194_v4  ;;  %v10431_v27 = vadd.f32 %v10304_v52, %v10198_v51 }
 0x95d   : > { %12868 = vst [vmem:[#allocation50_spill] sm:$0xff] %v10415_v41  ;;  %v10423_v48 = vpop.eup %7954  ;;  %v4520_v28 = vmul.f32 0.044715, %v4392_v47  ;;  %v4519_v44 = vmul.f32 0.044715, %v4391_v15  ;;  %7964 = vtanh.f32 %v4773_v29  ;;  %v4266_v32 = vmul.f32 %v10421_v49, %v10421_v49 }
 0x95e   : > { %12870 = vst [vmem:[#allocation52_spill] sm:$0xff] %v10427_v23  ;;  %12871 = vst [vmem:[#allocation53_spill] sm:$0xff] %v10431_v27  ;;  %v10433_v20 = vpop.eup %7956  ;;  %v4774_v6 = vmul.f32 0.7978846, %v4646_v54  ;;  %v4521_v3 = vmul.f32 0.044715, %v4393_v17  ;;  %v4268_v50 = vmul.f32 %v10427_v23, %v10427_v23  ;;  %v4267_v52 = vmul.f32 %v10431_v27, %v10431_v27 }
 0x95f   : > { %v10437_v1 = vpop.eup %7958  ;;  %v4648_v47 = vadd.f32 %v4520_v28, %v10367_v16  ;;  %v4647_v15 = vadd.f32 %v4519_v44, %v10371_v58  ;;  %v4394_v17 = vmul.f32 %v4266_v32, %v10421_v49  ;;  %v10451_v29 = vadd.f32 %v10306_v55, %v10200_v7 }
 0x960   : > { %12872 = vst [vmem:[#allocation54_spill] sm:$0xff] %v10437_v1  ;;  %v10445_v11 = vpop.eup %7960  ;;  %7966 = vtanh.f32 %v4774_v6  ;;  %v4649_v54 = vadd.f32 %v4521_v3, %v10379_v36  ;;  %v10453_v28 = vpop.f32.mrb[164].mxu1  ;;  %v4396_v57 = vmul.f32 %v4268_v50, %v10427_v23  ;;  %v4395_v56 = vmul.f32 %v4267_v52, %v10431_v27 }
 0x961   : > { %12873 = vst [vmem:[#allocation55_spill] sm:$0xff] %v10445_v11  ;;  %12874 = vst [vmem:[#allocation56_spill] sm:$0xff] %v10451_v29  ;;  %v10455_v44 = vpop.f32.mrb[164].mxu0  ;;  %v4776_v16 = vmul.f32 0.7978846, %v4648_v47  ;;  %v10459_v19 = vpop.f32.mrb[165].mxu1  ;;  %v4269_v55 = vmul.f32 %v10451_v29, %v10451_v29  ;;  %v10467_v36 = vadd.f32 %v10324_v60, %v10190_v21  ;;  %v10475_v52 = vadd.f32 %v10326_v12, %v10194_v4 }
 0x962   : > { %v4775_v58 = vmul.f32 0.7978846, %v4647_v15  ;;  %v10461_v6 = vpop.f32.mrb[165].mxu0  ;;  %v4777_v3 = vmul.f32 0.7978846, %v4649_v54  ;;  %v10469_v11 = vpop.f32.mrb[166].mxu1 }
 0x963   : > { %v4522_v32 = vmul.f32 0.044715, %v4394_v17  ;;  %12875 = vst [vmem:[#allocation57_spill] sm:$0xff] %v10467_v36  ;;  %v10471_v47 = vpop.f32.mrb[166].mxu0  ;;  %7968 = vtanh.f32 %v4776_v16  ;;  %v4524_v15 = vmul.f32 0.044715, %v4396_v57  ;;  %v4397_v60 = vmul.f32 %v4269_v55, %v10451_v29 }
 0x964   : > { %v4523_v50 = vmul.f32 0.044715, %v4395_v56  ;;  %12876 = vst [vmem:[#allocation58_spill] sm:$0xff] %v10475_v52  ;;  %v10477_v54 = vpop.f32.mrb[167].mxu1  ;;  %v10479_v17 = vpop.f32.mrb[167].mxu0  ;;  %7970 = vtanh.f32 %v4775_v58  ;;  %v4270_v31 = vmul.f32 %v10467_v36, %v10467_v36  ;;  %v4272_v56 = vmul.f32 %v10475_v52, %v10475_v52 }
 0x965   : > { %v4650_v41 = vadd.f32 %v4522_v32, %v10421_v49  ;;  %v10485_v1 = vpop.eup %7962  ;;  %7972 = vtanh.f32 %v4777_v3  ;;  %v4652_v16 = vadd.f32 %v4524_v15, %v10427_v23  ;;  %v4525_v43 = vmul.f32 0.044715, %v4397_v60 }
 0x966   : > { %v4651_v57 = vadd.f32 %v4523_v50, %v10431_v27  ;;  %v4398_v58 = vmul.f32 %v4270_v31, %v10467_v36  ;;  %v10494_v32 = vadd.f32 %v10330_v46, %v10198_v51  ;;  %v4400_v37 = vmul.f32 %v4272_v56, %v10475_v52 }
 0x967   : > { %v4778_v12 = vmul.f32 0.7978846, %v4650_v41  ;;  %v4780_v55 = vmul.f32 0.7978846, %v4652_v16  ;;  %v10499_v3 = vadd.f32 %v10334_v14, %v10200_v7  ;;  %v10501_v15 = vpop.eup %7964  ;;  %v4653_v41 = vadd.f32 %v4525_v43, %v10451_v29 }
 0x968   : > { %12877 = vst [vmem:[#allocation59_spill] sm:$0xff] %v10494_v32  ;;  %v4779_v49 = vmul.f32 0.7978846, %v4651_v57  ;;  %v4526_v50 = vmul.f32 0.044715, %v4398_v58  ;;  %v4271_v31 = vmul.f32 %v10494_v32, %v10494_v32  ;;  %v10506_v60 = vpop.f32.mrb[168].mxu1  ;;  %v10514_v14 = vadd.f32 %v10339_v59, %v10190_v21 }
 0x969   : > { %12878 = vst [vmem:[#allocation60_spill] sm:$0xff] %v10499_v3  ;;  %7974 = vtanh.f32 %v4778_v12  ;;  %v10508_v46 = vpop.f32.mrb[168].mxu0  ;;  %v4528_v16 = vmul.f32 0.044715, %v4400_v37  ;;  %v4273_v57 = vmul.f32 %v10499_v3, %v10499_v3  ;;  %v10516_v56 = vpop.f32.mrb[169].mxu1 }
 0x96a   : > { %7976 = vtanh.f32 %v4780_v55  ;;  %12879 = vst [vmem:[#allocation61_spill] sm:$0xff] %v10514_v14  ;;  %12880 = vst [vmem:[#allocation62_spill] sm:$0xff] %v10516_v56  ;;  %v10518_v43 = vpop.f32.mrb[169].mxu0  ;;  %v10520_v12 = vpop.eup %7966  ;;  %v4781_v58 = vmul.f32 0.7978846, %v4653_v41  ;;  %v4654_v23 = vadd.f32 %v4526_v50, %v10467_v36  ;;  %v4399_v55 = vmul.f32 %v4271_v31, %v10494_v32 }
 0x96b   : > { %12881 = vst [vmem:[#allocation63_spill] sm:$0xff] %v10520_v12  ;;  %7978 = vtanh.f32 %v4779_v49  ;;  %v10524_v37 = vpop.f32.mrb[170].mxu1  ;;  %v10526_v29 = vpop.f32.mrb[170].mxu0  ;;  %v4656_v27 = vadd.f32 %v4528_v16, %v10475_v52  ;;  %v4401_v59 = vmul.f32 %v4273_v57, %v10499_v3  ;;  %v4274_v56 = vmul.f32 %v10514_v14, %v10514_v14 }
 0x96c   : > { %12882 = vst [vmem:[#allocation64_spill] sm:$0xff] %v10524_v37  ;;  %12883 = vst [vmem:[#allocation65_spill] sm:$0xff] %v10526_v29  ;;  %v10534_v12 = vadd.f32 %v10341_v33, %v10194_v4  ;;  %v10536_v49 = vpop.f32.mrb[171].mxu1  ;;  %v10538_v41 = vpop.f32.mrb[171].mxu0  ;;  %7980 = vtanh.f32 %v4781_v58  ;;  %v4782_v50 = vmul.f32 0.7978846, %v4654_v23  ;;  %v10542_v36 = vadd.f32 %v10350_v61, %v10198_v51 }
 0x96d   : > { %v4527_v31 = vmul.f32 0.044715, %v4399_v55  ;;  %v10544_v16 = vpop.eup %7968  ;;  %v4784_v57 = vmul.f32 0.7978846, %v4656_v27  ;;  %v4529_v52 = vmul.f32 0.044715, %v4401_v59  ;;  %v4402_v29 = vmul.f32 %v4274_v56, %v10514_v14 }
 0x96e   : > { %12884 = vst [vmem:[#allocation66_spill] sm:$0xff] %v10534_v12  ;;  %12885 = vst [vmem:[#allocation67_spill] sm:$0xff] %v10542_v36  ;;  %v4276_v33 = vmul.f32 %v10534_v12, %v10534_v12  ;;  %v10549_v37 = vpop.eup %7970  ;;  %7982 = vtanh.f32 %v4782_v50  ;;  %v4275_v23 = vmul.f32 %v10542_v36, %v10542_v36  ;;  %v10556_v61 = vadd.f32 %v10352_v25, %v10200_v7 }
 0x96f   : > { %12886 = vst [vmem:[#allocation68_spill] sm:$0xff] %v10544_v16  ;;  %12887 = vst [vmem:[#allocation69_spill] sm:$0xff] %v10549_v37  ;;  %v4655_v58 = vadd.f32 %v4527_v31, %v10494_v32  ;;  %v10558_v55 = vpop.eup %7972  ;;  %7984 = vtanh.f32 %v4784_v57  ;;  %v4657_v27 = vadd.f32 %v4529_v52, %v10499_v3  ;;  %v4530_v56 = vmul.f32 0.044715, %v4402_v29 }
 0x970   : > { %12888 = vst [vmem:[#allocation70_spill] sm:$0xff] %v10556_v61  ;;  %v4404_v59 = vmul.f32 %v4276_v33, %v10534_v12  ;;  %v4403_v50 = vmul.f32 %v4275_v23, %v10542_v36  ;;  %v4277_v31 = vmul.f32 %v10556_v61, %v10556_v61  ;;  %v10567_v32 = vadd.f32 %v10381_v2, %v10190_v21  ;;  %v10569_v25 = vpop.f32.mrb[172].mxu1  ;;  %v10571_v37 = vpop.f32.mrb[172].mxu0 }
 0x971   : > { %v4783_v16 = vmul.f32 0.7978846, %v4655_v58  ;;  %12890 = vst [vmem:[#allocation72_spill] sm:$0xff] %v10569_v25  ;;  %12891 = vst [vmem:[#allocation73_spill] sm:$0xff] %v10571_v37  ;;  %v4785_v57 = vmul.f32 0.7978846, %v4657_v27  ;;  %v4658_v52 = vadd.f32 %v4530_v56, %v10514_v14  ;;  %v10576_v33 = vadd.f32 %v10383_v30, %v10194_v4 }
 0x972   : > { %12889 = vst [vmem:[#allocation71_spill] sm:$0xff] %v10567_v32  ;;  %v4532_v29 = vmul.f32 0.044715, %v4404_v59  ;;  %v10578_v58 = vpop.f32.mrb[173].mxu1  ;;  %v10580_v23 = vpop.f32.mrb[173].mxu0  ;;  %v4405_v25 = vmul.f32 %v4277_v31, %v10556_v61  ;;  %v4278_v27 = vmul.f32 %v10567_v32, %v10567_v32 }
 0x973   : > { %12892 = vst [vmem:[#allocation74_spill] sm:$0xff] %v10576_v33  ;;  %12893 = vst [vmem:[#allocation75_spill] sm:$0xff] %v10578_v58  ;;  %v10582_v3 = vpop.eup %7974  ;;  %7986 = vtanh.f32 %v4783_v16  ;;  %v4531_v2 = vmul.f32 0.044715, %v4403_v50  ;;  %v10587_v37 = vpop.f32.mrb[174].mxu1 }
 0x974   : > { %12894 = vst [vmem:[#allocation76_spill] sm:$0xff] %v10580_v23  ;;  %12895 = vst [vmem:[#allocation77_spill] sm:$0xff] %v10587_v37  ;;  %v10589_v56 = vpop.f32.mrb[174].mxu0  ;;  %v10591_v59 = vpop.eup %7976  ;;  %7988 = vtanh.f32 %v4785_v57  ;;  %v4786_v30 = vmul.f32 0.7978846, %v4658_v52  ;;  %v4660_v14 = vadd.f32 %v4532_v29, %v10534_v12  ;;  %v4280_v23 = vmul.f32 %v10576_v33, %v10576_v33 }
 0x975   : > { %12896 = vst [vmem:[#allocation78_spill] sm:$0xff] %v10589_v56  ;;  %v10596_v16 = vpop.f32.mrb[175].mxu1  ;;  %v10598_v50 = vpop.f32.mrb[175].mxu0  ;;  %v4659_v58 = vadd.f32 %v4531_v2, %v10542_v36  ;;  %v4533_v37 = vmul.f32 0.044715, %v4405_v25  ;;  %v4406_v56 = vmul.f32 %v4278_v27, %v10567_v32  ;;  %v10606_v57 = vadd.f32 %v10392_v0, %v10198_v51 }
 0x976   : > { %12897 = vst [vmem:[#allocation79_spill] sm:$0xff] %v10596_v16  ;;  %12898 = vst [vmem:[#allocation80_spill] sm:$0xff] %v10598_v50  ;;  %v10600_v31 = vpop.eup %7978  ;;  %7990 = vtanh.f32 %v4786_v30  ;;  %v4788_v52 = vmul.f32 0.7978846, %v4660_v14  ;;  %v4408_v29 = vmul.f32 %v4280_v23, %v10576_v33  ;;  %v10611_v12 = vadd.f32 %v10394_v8, %v10200_v7 }
 0x977   : > { %12899 = vst [vmem:[#allocation81_spill] sm:$0xff] %v10606_v57  ;;  %v10613_v50 = vpop.eup %7980  ;;  %v4787_v16 = vmul.f32 0.7978846, %v4659_v58  ;;  %v4661_v2 = vadd.f32 %v4533_v37, %v10556_v61  ;;  %v4534_v25 = vmul.f32 0.044715, %v4406_v56  ;;  %v4279_v27 = vmul.f32 %v10606_v57, %v10606_v57 }
 0x978   : > { %12900 = vst [vmem:[#allocation82_spill] sm:$0xff] %v10611_v12  ;;  %7992 = vtanh.f32 %v4788_v52  ;;  %v4536_v0 = vmul.f32 0.044715, %v4408_v29  ;;  %v4281_v14 = vmul.f32 %v10611_v12, %v10611_v12  ;;  %v10622_v23 = vadd.f32 %v10401_v5, %v10190_v21  ;;  %v10624_v8 = vpop.eup %7982  ;;  %v10628_v56 = vpop.f32.mrb[176].mxu1 }
 0x979   : > { %12902 = vst [vmem:[#allocation84_spill] sm:$0xff] %v10624_v8  ;;  %7994 = vtanh.f32 %v4787_v16  ;;  %v4789_v30 = vmul.f32 0.7978846, %v4661_v2  ;;  %v4662_v58 = vadd.f32 %v4534_v25, %v10567_v32  ;;  %v4407_v37 = vmul.f32 %v4279_v27, %v10606_v57  ;;  %12903 = vst [vmem:[#allocation85_spill] sm:$0xff] %v10628_v56  ;;  %v10630_v61 = vpop.f32.mrb[176].mxu0  ;;  %v10632_v52 = vpop.eup %7984 }
 0x97a   : > { %12901 = vst [vmem:[#allocation83_spill] sm:$0xff] %v10622_v23  ;;  %12904 = vst [vmem:[#allocation86_spill] sm:$0xff] %v10630_v61  ;;  %v4664_v29 = vadd.f32 %v4536_v0, %v10576_v33  ;;  %v4409_v36 = vmul.f32 %v4281_v14, %v10611_v12  ;;  %v4282_v5 = vmul.f32 %v10622_v23, %v10622_v23  ;;  %v10642_v2 = vpop.f32.mrb[177].mxu1  ;;  %v10644_v25 = vpop.f32.mrb[177].mxu0 }
 0x97b   : > { %12905 = vst [vmem:[#allocation87_spill] sm:$0xff] %v10632_v52  ;;  %v10640_v16 = vadd.f32 %v10403_v22, %v10194_v4  ;;  %12907 = vst [vmem:[#allocation89_spill] sm:$0xff] %v10642_v2  ;;  %7996 = vtanh.f32 %v4789_v30  ;;  %v4790_v27 = vmul.f32 0.7978846, %v4662_v58  ;;  %v4535_v32 = vmul.f32 0.044715, %v4407_v37 }
 0x97c   : > { %12908 = vst [vmem:[#allocation90_spill] sm:$0xff] %v10644_v25  ;;  %v10648_v61 = vadd.f32 %v10411_v9, %v10198_v51  ;;  %v10650_v0 = vpop.f32.mrb[178].mxu1  ;;  %v10652_v14 = vpop.f32.mrb[178].mxu0  ;;  %v4792_v33 = vmul.f32 0.7978846, %v4664_v29  ;;  %v4410_v22 = vmul.f32 %v4282_v5, %v10622_v23 }
 0x97d   : > { %12906 = vst [vmem:[#allocation88_spill] sm:$0xff] %v10640_v16  ;;  %12909 = vst [vmem:[#allocation91_spill] sm:$0xff] %v10650_v0  ;;  %v4537_v56 = vmul.f32 0.044715, %v4409_v36  ;;  %v4284_v2 = vmul.f32 %v10640_v16, %v10640_v16  ;;  %v10657_v52 = vpop.f32.mrb[179].mxu1  ;;  %v10659_v30 = vpop.f32.mrb[179].mxu0  ;;  %7998 = vtanh.f32 %v4790_v27  ;;  %v4663_v9 = vadd.f32 %v4535_v32, %v10606_v57 }
 0x97e   : > { %12910 = vst [vmem:[#allocation92_spill] sm:$0xff] %v10652_v14  ;;  %12911 = vst [vmem:[#allocation93_spill] sm:$0xff] %v10657_v52  ;;  %v10661_v58 = vpop.eup %7986  ;;  %v4283_v37 = vmul.f32 %v10648_v61, %v10648_v61  ;;  %v10668_v36 = vadd.f32 %v10413_v40, %v10200_v7  ;;  %8000 = vtanh.f32 %v4792_v33  ;;  %v4538_v52 = vmul.f32 0.044715, %v4410_v22 }
 0x97f   : > { %12912 = vst [vmem:[#allocation94_spill] sm:$0xff] %v10659_v30  ;;  %v10670_v29 = vpop.eup %7988  ;;  %v4665_v5 = vadd.f32 %v4537_v56, %v10611_v12  ;;  %v4412_v30 = vmul.f32 %v4284_v2, %v10640_v16  ;;  %v4791_v14 = vmul.f32 0.7978846, %v4663_v9  ;;  %v5015_v57 = vadd.f32 1.0, %v10328_v10 }
 0x980   : > { %v4411_v27 = vmul.f32 %v4283_v37, %v10648_v61  ;;  %v4285_v32 = vmul.f32 %v10668_v36, %v10668_v36  ;;  %v10678_v0 = vpop.eup %7990  ;;  %v4666_v25 = vadd.f32 %v4538_v52, %v10622_v23  ;;  %v5019_v33 = vadd.f32 1.0, %v10354_v35  ;;  %v10683_v9 = vpop.f32.mrb[180].mxu1 }
 0x981   : > { %12913 = vst [vmem:[#allocation95_spill] sm:$0xff] %v10678_v0  ;;  %v4793_v40 = vmul.f32 0.7978846, %v4665_v5  ;;  %v4540_v8 = vmul.f32 0.044715, %v4412_v30  ;;  %8002 = vtanh.f32 %v4791_v14  ;;  %v5143_v22 = vmul.f32 0.5, %v5015_v57 }
 0x982   : > { %v4539_v56 = vmul.f32 0.044715, %v4411_v27  ;;  %v4413_v2 = vmul.f32 %v4285_v32, %v10668_v36  ;;  %v10685_v37 = vpop.f32.mrb[180].mxu0  ;;  %v10687_v12 = vpop.eup %7992  ;;  %v4794_v10 = vmul.f32 0.7978846, %v4666_v25  ;;  %v5147_v0 = vmul.f32 0.5, %v5019_v33 }
 0x983   : > { %8004 = vtanh.f32 %v4793_v40  ;;  %v4668_v5 = vadd.f32 %v4540_v8, %v10640_v16  ;;  %v10690_v52 = vpop.f32.mrb[181].mxu1  ;;  %v10692_v30 = vpop.f32.mrb[181].mxu0  ;;  %v5271_v27 = vmul.f32 %v5143_v22, %v10209_v45  ;;  %v5017_v32 = vadd.f32 1.0, %v10332_v53 }
 0x984   : > { %12914 = vst [vmem:[#allocation96_spill] sm:$0xff] %v10692_v30  ;;  %v10694_v35 = vpop.eup %7994  ;;  %v4667_v14 = vadd.f32 %v4539_v56, %v10648_v61  ;;  %v4541_v57 = vmul.f32 0.044715, %v4413_v2  ;;  %v10699_v23 = vpop.f32.mrb[182].mxu1  ;;  %8006 = vtanh.f32 %v4794_v10  ;;  %v5275_v25 = vmul.f32 %v5147_v0, %v10229_v26 }
 0x985   : > { %v10701_v40 = vpop.f32.mrb[182].mxu0  ;;  %v4796_v8 = vmul.f32 0.7978846, %v4668_v5  ;;  %v5021_v33 = vadd.f32 1.0, %v10359_v18  ;;  %v10705_v30 = vpop.f32.mrb[183].mxu1  ;;  %v5145_v53 = vmul.f32 0.5, %v5017_v32  ;;  %v10714_v22 = vadd.f32 %v10453_v28, %v10190_v21 }
 0x986   : > { %12915 = vst [vmem:[#allocation97_spill] sm:$0xff] %v10705_v30  ;;  %v10707_v16 = vpop.f32.mrb[183].mxu0  ;;  %v10709_v56 = vpop.eup %7996  ;;  %v4795_v2 = vmul.f32 0.7978846, %v4667_v14  ;;  %v4669_v45 = vadd.f32 %v4541_v57, %v10668_v36  ;;  %v5399_v10 = vpack.c.bf16 %v5275_v25, %v5271_v27  ;;  %v10718_v26 = vadd.f32 %v10455_v44, %v10194_v4 }
 0x987   : > { %12916 = vst [vmem:[#allocation98_spill] sm:$0xff] %v10707_v16  ;;  %12917 = vst [vmem:[#allocation99_spill] sm:$0xff] %v10714_v22  ;;  %8008 = vtanh.f32 %v4796_v8  ;;  %v5149_v5 = vmul.f32 0.5, %v5021_v33  ;;  %v10720_v18 = vpop.eup %7998  ;;  %v5273_v14 = vmul.f32 %v5145_v53, %v10212_v38  ;;  %v4286_v57 = vmul.f32 %v10714_v22, %v10714_v22 }
 0x988   : > { %12918 = vst [vmem:[#allocation100_spill] sm:$0xff] %v10718_v26  ;;  %8010 = vtanh.f32 %v4795_v2  ;;  %v4797_v0 = vmul.f32 0.7978846, %v4669_v45  ;;  %v10725_v32 = vpop.eup %8000  ;;  %5750 = vmatprep.mubr.bf16.mxu1 %v5399_v10  ;;  %v4288_v27 = vmul.f32 %v10718_v26, %v10718_v26  ;;  %v10732_v44 = vadd.f32 %v10459_v19, %v10198_v51 }
 0x989   : > { %v5277_v28 = vmul.f32 %v5149_v5, %v10232_v42  ;;  %v10736_v8 = vadd.f32 %v10461_v6, %v10200_v7  ;;  %v12919_v38 = vpack.c.bf16 %v10374_v63, %v10344_v13  ;;  %v4414_v25 = vmul.f32 %v4286_v57, %v10714_v22 }
 0x98a   : > { %8012 = vtanh.f32 %v4797_v0  ;;  %v10744_v42 = vadd.f32 %v10469_v11, %v10190_v21  ;;  %v10748_v33 = vadd.f32 %v10471_v47, %v10194_v4  ;;  %v4416_v2 = vmul.f32 %v4288_v27, %v10718_v26 }
 0x98b   : > { %5751 = vmatmul.mubr.bf16.vlgmr.msra.gmra.mrb[208].mxu1 %v12919_v38  ;;  %v5401_v19 = vpack.c.bf16 %v5277_v28, %v5273_v14  ;;  %v4287_v6 = vmul.f32 %v10732_v44, %v10732_v44  ;;  %v4289_v13 = vmul.f32 %v10736_v8, %v10736_v8  ;;  %v10755_v63 = vpop.eup %8002  ;;  %v4542_v45 = vmul.f32 0.044715, %v4414_v25 }
 0x98c   : > { %12920 = vst [vmem:[#allocation101_spill] sm:$0xff] %v10744_v42  ;;  %12921 = vst [vmem:[#allocation102_spill] sm:$0xff] %v10748_v33  ;;  %v4290_v11 = vmul.f32 %v10744_v42, %v10744_v42  ;;  %v4292_v53 = vmul.f32 %v10748_v33, %v10748_v33  ;;  %v10763_v47 = vadd.f32 %v10477_v54, %v10198_v51  ;;  %v4544_v5 = vmul.f32 0.044715, %v4416_v2 }
 0x98d   : > { %v10765_v10 = vpop.eup %8004  ;;  %5911 = vmatprep.mubr.bf16.mxu0 %v5401_v19  ;;  %v4415_v0 = vmul.f32 %v4287_v6, %v10732_v44  ;;  %v4417_v14 = vmul.f32 %v4289_v13, %v10736_v8  ;;  %v10771_v57 = vadd.f32 %v10479_v17, %v10200_v7  ;;  %v12923_v28 = vpack.c.bf16 %v10386_v24, %v10357_v39 }
 0x98e   : > { %v4670_v27 = vadd.f32 %v4542_v45, %v10714_v22  ;;  %v4418_v54 = vmul.f32 %v4290_v11, %v10744_v42  ;;  %v4420_v38 = vmul.f32 %v4292_v53, %v10748_v33  ;;  %v4291_v25 = vmul.f32 %v10763_v47, %v10763_v47  ;;  %v10781_v19 = vpop.eup %8006 }
 0x98f   : > { %12922 = vst [vmem:[#allocation103_spill] sm:$0xff] %v10771_v57  ;;  %5912 = vmatmul.mubr.bf16.vlgmr.msra.gmra.mrb[208].mxu0 %v12923_v28  ;;  %v4672_v2 = vadd.f32 %v4544_v5, %v10718_v26  ;;  %v4543_v6 = vmul.f32 0.044715, %v4415_v0  ;;  %v4545_v17 = vmul.f32 0.044715, %v4417_v14  ;;  %v4293_v13 = vmul.f32 %v10771_v57, %v10771_v57 }
 0x990   : > { %v4798_v39 = vmul.f32 0.7978846, %v4670_v27  ;;  %v4546_v24 = vmul.f32 0.044715, %v4418_v54  ;;  %v4548_v28 = vmul.f32 0.044715, %v4420_v38  ;;  %v4419_v45 = vmul.f32 %v4291_v25, %v10763_v47 }
 0x991   : > { %v10787_v11 = vpop.eup %8008  ;;  %v4800_v53 = vmul.f32 0.7978846, %v4672_v2  ;;  %v4671_v22 = vadd.f32 %v4543_v6, %v10732_v44  ;;  %v4673_v16 = vadd.f32 %v4545_v17, %v10736_v8  ;;  %v4421_v30 = vmul.f32 %v4293_v13, %v10771_v57 }
 0x992   : > { %v10792_v5 = vpop.eup %8010  ;;  %8014 = vtanh.f32 %v4798_v39  ;;  %v4674_v0 = vadd.f32 %v4546_v24, %v10744_v42  ;;  %v4676_v14 = vadd.f32 %v4548_v28, %v10748_v33  ;;  %v4547_v27 = vmul.f32 0.044715, %v4419_v45  ;;  %v12929_v33 = vld [vmem:[#allocation55_spill] sm:$0xff] }
 0x993   : > { %8016 = vtanh.f32 %v4800_v53  ;;  %v4799_v54 = vmul.f32 0.7978846, %v4671_v22  ;;  %v4801_v38 = vmul.f32 0.7978846, %v4673_v16  ;;  %v4549_v25 = vmul.f32 0.044715, %v4421_v30 }
 0x994   : > { %v10796_v26 = vpop.eup %8012  ;;  %v4802_v2 = vmul.f32 0.7978846, %v4674_v0  ;;  %v4804_v6 = vmul.f32 0.7978846, %v4676_v14  ;;  %v4675_v17 = vadd.f32 %v4547_v27, %v10763_v47  ;;  %v5023_v13 = vadd.f32 1.0, %v10423_v48 }
 0x995   : > { %8018 = vtanh.f32 %v4799_v54  ;;  %v4677_v39 = vadd.f32 %v4549_v25, %v10771_v57  ;;  %v5027_v24 = vadd.f32 1.0, %v10485_v1  ;;  %v5025_v28 = vadd.f32 1.0, %v10433_v20  ;;  %v12924_v54 = vld [vmem:[#allocation27_spill] sm:$0xff]  ;;  %v12925_v25 = vld [vmem:[#allocation17_spill] sm:$0xff] }
 0x996   : > { %8020 = vtanh.f32 %v4801_v38  ;;  %v4803_v45 = vmul.f32 0.7978846, %v4675_v17  ;;  %v5151_v22 = vmul.f32 0.5, %v5023_v13  ;;  %v5029_v16 = vadd.f32 1.0, %v10501_v15  ;;  %v12926_v38 = vld [vmem:[#allocation54_spill] sm:$0xff]  ;;  %v12927_v13 = vld [vmem:[#allocation29_spill] sm:$0xff] }
 0x997   : > { %8022 = vtanh.f32 %v4802_v2  ;;  %v4805_v30 = vmul.f32 0.7978846, %v4677_v39  ;;  %v5155_v53 = vmul.f32 0.5, %v5027_v24  ;;  %v5153_v0 = vmul.f32 0.5, %v5025_v28  ;;  %v12928_v39 = vld [vmem:[#allocation50_spill] sm:$0xff] }
 0x998   : > { %8024 = vtanh.f32 %v4804_v6  ;;  %v5279_v14 = vmul.f32 %v5151_v22, %v10267_v62  ;;  %v5157_v48 = vmul.f32 0.5, %v5029_v16  ;;  %v5022_v27 = vadd.f32 1.0, %v10405_v34  ;;  %v12931_v16 = vld [vmem:[#allocation19_spill] sm:$0xff] }
 0x999   : > { %8026 = vtanh.f32 %v4803_v45  ;;  %v5283_v1 = vmul.f32 %v5155_v53, %v12924_v54  ;;  %v5281_v20 = vmul.f32 %v5153_v0, %v12925_v25  ;;  %v5026_v17 = vadd.f32 1.0, %v12926_v38  ;;  %v12935_v54 = vld [vmem:[#allocation62_spill] sm:$0xff]  ;;  %v12937_v25 = vld [vmem:[#allocation15_spill] sm:$0xff] }
 0x99a   : > { %8028 = vtanh.f32 %v4805_v30  ;;  %v5285_v15 = vmul.f32 %v5157_v48, %v12927_v13  ;;  %v5150_v2 = vmul.f32 0.5, %v5022_v27  ;;  %v5024_v24 = vadd.f32 1.0, %v12928_v39  ;;  %v12941_v39 = vld [vmem:[#allocation30_spill] sm:$0xff] }
 0x99b   : > { %v5403_v28 = vpack.c.bf16 %v5283_v1, %v5279_v14  ;;  %v5154_v6 = vmul.f32 0.5, %v5026_v17  ;;  %v5028_v62 = vadd.f32 1.0, %v12929_v33  ;;  %v10814_v34 = vadd.f32 %v10506_v60, %v10190_v21  ;;  %v12934_v14 = vld [vmem:[#allocation28_spill] sm:$0xff] }
 0x99c   : > { %v10816_v45 = vpop.eup %8014  ;;  %v5405_v22 = vpack.c.bf16 %v5285_v15, %v5281_v20  ;;  %v5278_v53 = vmul.f32 %v5150_v2, %v12931_v16  ;;  %v5152_v0 = vmul.f32 0.5, %v5024_v24  ;;  %v10821_v30 = vadd.f32 %v10508_v46, %v10194_v4  ;;  %v12939_v17 = vld [vmem:[#allocation64_spill] sm:$0xff] }
 0x99d   : > { %12930 = vst [vmem:[#allocation27_spill] sm:$0xff] %v10814_v34  ;;  %v10823_v48 = vpop.eup %8016  ;;  %5758 = vmatprep.mubr.bf16.mxu1 %v5403_v28  ;;  %v5282_v27 = vmul.f32 %v5154_v6, %v12934_v14  ;;  %v5156_v33 = vmul.f32 0.5, %v5028_v62  ;;  %v4294_v60 = vmul.f32 %v10814_v34, %v10814_v34  ;;  %v10830_v1 = vadd.f32 %v12935_v54, %v10198_v51 }
 0x99e   : > { %12932 = vst [vmem:[#allocation17_spill] sm:$0xff] %v10821_v30  ;;  %12933 = vst [vmem:[#allocation54_spill] sm:$0xff] %v10823_v48  ;;  %5919 = vmatprep.mubr.bf16.mxu0 %v5405_v22  ;;  %v5280_v20 = vmul.f32 %v5152_v0, %v12937_v25  ;;  %v4296_v46 = vmul.f32 %v10821_v30, %v10821_v30  ;;  %v10837_v38 = vadd.f32 %v10518_v43, %v10200_v7  ;;  %v12942_v0 = vld [vmem:[#allocation65_spill] sm:$0xff] }
 0x99f   : > { %12936 = vst [vmem:[#allocation29_spill] sm:$0xff] %v10830_v1  ;;  %v10841_v13 = vadd.f32 %v12939_v17, %v10190_v21  ;;  %v10843_v15 = vpop.eup %8018  ;;  %v5402_v2 = vpack.c.bf16 %v5282_v27, %v5278_v53  ;;  %v5284_v24 = vmul.f32 %v5156_v33, %v12941_v39  ;;  %v4422_v28 = vmul.f32 %v4294_v60, %v10814_v34 }
 0x9a0   : > { %12938 = vst [vmem:[#allocation50_spill] sm:$0xff] %v10837_v38  ;;  %v4295_v6 = vmul.f32 %v10830_v1, %v10830_v1  ;;  %v10849_v62 = vpop.eup %8020  ;;  %v4424_v22 = vmul.f32 %v4296_v46, %v10821_v30  ;;  %v4297_v43 = vmul.f32 %v10837_v38, %v10837_v38  ;;  %v10858_v53 = vadd.f32 %v12942_v0, %v10194_v4 }
 0x9a1   : > { %12940 = vst [vmem:[#allocation55_spill] sm:$0xff] %v10841_v13  ;;  %v4298_v16 = vmul.f32 %v10841_v13, %v10841_v13  ;;  %v10860_v14 = vpop.eup %8022  ;;  %5759 = vmatmul.mubr.bf16.gmra.mrb[212].mxu1 %v5402_v2  ;;  %v5404_v27 = vpack.c.bf16 %v5284_v24, %v5280_v20  ;;  %v4550_v33 = vmul.f32 0.044715, %v4422_v28  ;;  %v10865_v54 = vadd.f32 %v10536_v49, %v10198_v51 }
 0x9a2   : > { %12943 = vst [vmem:[#allocation19_spill] sm:$0xff] %v10858_v53  ;;  %v4423_v60 = vmul.f32 %v4295_v6, %v10830_v1  ;;  %v10867_v25 = vpop.eup %8024  ;;  %v4552_v46 = vmul.f32 0.044715, %v4424_v22  ;;  %v4425_v17 = vmul.f32 %v4297_v43, %v10837_v38  ;;  %v4300_v0 = vmul.f32 %v10858_v53, %v10858_v53 }
 0x9a3   : > { %12944 = vst [vmem:[#allocation28_spill] sm:$0xff] %v10865_v54  ;;  %12945 = vst [vmem:[#allocation62_spill] sm:$0xff] %v10867_v25  ;;  %v4426_v39 = vmul.f32 %v4298_v16, %v10841_v13  ;;  %v10873_v42 = vpop.eup %8026  ;;  %5920 = vmatmul.mubr.bf16.gmra.mrb[212].mxu0 %v5404_v27  ;;  %v4678_v20 = vadd.f32 %v4550_v33, %v10814_v34  ;;  %v4299_v49 = vmul.f32 %v10865_v54, %v10865_v54 }
 0x9a4   : > { %v4551_v2 = vmul.f32 0.044715, %v4423_v60  ;;  %v10880_v24 = vadd.f32 %v10538_v41, %v10200_v7  ;;  %v10882_v28 = vpop.eup %8028  ;;  %v4680_v6 = vadd.f32 %v4552_v46, %v10821_v30  ;;  %v4553_v22 = vmul.f32 0.044715, %v4425_v17 }
 0x9a5   : > { %v4554_v43 = vmul.f32 0.044715, %v4426_v39  ;;  %v4428_v16 = vmul.f32 %v4300_v0, %v10858_v53  ;;  %v4806_v57 = vmul.f32 0.7978846, %v4678_v20  ;;  %v4427_v33 = vmul.f32 %v4299_v49, %v10865_v54 }
 0x9a6   : > { %12946 = vst [vmem:[#allocation15_spill] sm:$0xff] %v10880_v24  ;;  %v4679_v27 = vadd.f32 %v4551_v2, %v10830_v1  ;;  %v4301_v60 = vmul.f32 %v10880_v24, %v10880_v24  ;;  %v4808_v34 = vmul.f32 0.7978846, %v4680_v6  ;;  %v4681_v41 = vadd.f32 %v4553_v22, %v10837_v38  ;;  %v12947_v6 = vld [vmem:[#allocation69_spill] sm:$0xff] }
 0x9a7   : > { %v4682_v25 = vadd.f32 %v4554_v43, %v10841_v13  ;;  %v4556_v48 = vmul.f32 0.044715, %v4428_v16  ;;  %8030 = vtanh.f32 %v4806_v57  ;;  %v4555_v17 = vmul.f32 0.044715, %v4427_v33 }
 0x9a8   : > { %v4807_v46 = vmul.f32 0.7978846, %v4679_v27  ;;  %v4429_v39 = vmul.f32 %v4301_v60, %v10880_v24  ;;  %8032 = vtanh.f32 %v4808_v34  ;;  %v4809_v0 = vmul.f32 0.7978846, %v4681_v41  ;;  %v12948_v41 = vld [vmem:[#allocation31_spill] sm:$0xff] }
 0x9a9   : > { %v4810_v20 = vmul.f32 0.7978846, %v4682_v25  ;;  %v4684_v2 = vadd.f32 %v4556_v48, %v10858_v53  ;;  %v4683_v49 = vadd.f32 %v4555_v17, %v10865_v54  ;;  %v5031_v1 = vadd.f32 1.0, %v12947_v6  ;;  %v12949_v17 = vld [vmem:[#allocation63_spill] sm:$0xff] }
 0x9aa   : > { %8034 = vtanh.f32 %v4807_v46  ;;  %v4557_v30 = vmul.f32 0.044715, %v4429_v39  ;;  %v5035_v43 = vadd.f32 1.0, %v10600_v31  ;;  %v5033_v57 = vadd.f32 1.0, %v10558_v55  ;;  %v12951_v55 = vld [vmem:[#allocation33_spill] sm:$0xff] }
 0x9ab   : > { %8036 = vtanh.f32 %v4809_v0  ;;  %v4812_v22 = vmul.f32 0.7978846, %v4684_v2  ;;  %v4811_v16 = vmul.f32 0.7978846, %v4683_v49  ;;  %v5159_v27 = vmul.f32 0.5, %v5031_v1  ;;  %v12950_v0 = vld [vmem:[#allocation53_spill] sm:$0xff] }
 0x9ac   : > { %8038 = vtanh.f32 %v4810_v20  ;;  %v4685_v34 = vadd.f32 %v4557_v30, %v10880_v24  ;;  %v5163_v25 = vmul.f32 0.5, %v5035_v43  ;;  %v5037_v48 = vadd.f32 1.0, %v10613_v50  ;;  %v12952_v1 = vld [vmem:[#allocation68_spill] sm:$0xff] }
 0x9ad   : > { %8040 = vtanh.f32 %v4812_v22  ;;  %v5161_v33 = vmul.f32 0.5, %v5033_v57  ;;  %v5287_v46 = vmul.f32 %v5159_v27, %v12948_v41  ;;  %v5030_v39 = vadd.f32 1.0, %v12949_v17  ;;  %v12953_v43 = vld [vmem:[#allocation56_spill] sm:$0xff] }
 0x9ae   : > { %8042 = vtanh.f32 %v4811_v16  ;;  %v4813_v60 = vmul.f32 0.7978846, %v4685_v34  ;;  %v5291_v31 = vmul.f32 %v5163_v25, %v12950_v0  ;;  %v5165_v2 = vmul.f32 0.5, %v5037_v48  ;;  %v12954_v34 = vld [vmem:[#allocation72_spill] sm:$0xff] }
 0x9af   : > { %v5289_v20 = vmul.f32 %v5161_v33, %v12951_v55  ;;  %v5034_v49 = vadd.f32 1.0, %v10582_v3  ;;  %v5158_v30 = vmul.f32 0.5, %v5030_v39  ;;  %v5032_v6 = vadd.f32 1.0, %v12952_v1  ;;  %v12957_v48 = vld [vmem:[#allocation32_spill] sm:$0xff] }
 0x9b0   : > { %8044 = vtanh.f32 %v4813_v60  ;;  %v5036_v50 = vadd.f32 1.0, %v10591_v59  ;;  %v5407_v22 = vpack.c.bf16 %v5291_v31, %v5287_v46  ;;  %v5293_v57 = vmul.f32 %v5165_v2, %v12953_v43  ;;  %v12958_v60 = vld [vmem:[#allocation73_spill] sm:$0xff]  ;;  %v12961_v46 = vld [vmem:[#allocation51_spill] sm:$0xff] }
 0x9b1   : > { %v5162_v16 = vmul.f32 0.5, %v5034_v49  ;;  %v10910_v27 = vadd.f32 %v12954_v34, %v10190_v21  ;;  %v10912_v25 = vpop.eup %8030  ;;  %v5286_v33 = vmul.f32 %v5158_v30, %v12957_v48  ;;  %v5160_v41 = vmul.f32 0.5, %v5032_v6  ;;  %v12962_v2 = vld [vmem:[#allocation75_spill] sm:$0xff]  ;;  %v12963_v30 = vld [vmem:[#allocation34_spill] sm:$0xff]  ;;  %v12964_v6 = vld [vmem:[#allocation52_spill] sm:$0xff] }
 0x9b2   : > { %12956 = vst [vmem:[#allocation30_spill] sm:$0xff] %v10912_v25  ;;  %v5164_v3 = vmul.f32 0.5, %v5036_v50  ;;  %v10917_v17 = vadd.f32 %v12958_v60, %v10194_v4  ;;  %v10919_v39 = vpop.eup %8032  ;;  %5766 = vmatprep.mubr.bf16.mxu1 %v5407_v22  ;;  %v5409_v59 = vpack.c.bf16 %v5293_v57, %v5289_v20  ;;  %v10926_v55 = vadd.f32 %v12962_v2, %v10198_v51  ;;  %v12965_v20 = vld [vmem:[#allocation76_spill] sm:$0xff] }
 0x9b3   : > { %12955 = vst [vmem:[#allocation64_spill] sm:$0xff] %v10910_v27  ;;  %12960 = vst [vmem:[#allocation69_spill] sm:$0xff] %v10919_v39  ;;  %v5290_v0 = vmul.f32 %v5162_v16, %v12961_v46  ;;  %v4302_v31 = vmul.f32 %v10910_v27, %v10910_v27  ;;  %v5288_v1 = vmul.f32 %v5160_v41, %v12963_v30  ;;  %v12967_v41 = vld [vmem:[#allocation77_spill] sm:$0xff] }
 0x9b4   : > { %12959 = vst [vmem:[#allocation65_spill] sm:$0xff] %v10917_v17  ;;  %v10928_v49 = vpop.eup %8034  ;;  %v5292_v50 = vmul.f32 %v5164_v3, %v12964_v6  ;;  %v4304_v43 = vmul.f32 %v10917_v17, %v10917_v17  ;;  %v10936_v22 = vadd.f32 %v12965_v20, %v10200_v7  ;;  %5927 = vmatprep.mubr.bf16.mxu0 %v5409_v59  ;;  %v12970_v59 = vld [vmem:[#allocation78_spill] sm:$0xff] }
 0x9b5   : > { %v10938_v57 = vpop.eup %8036  ;;  %v5406_v16 = vpack.c.bf16 %v5290_v0, %v5286_v33  ;;  %v4430_v34 = vmul.f32 %v4302_v31, %v10910_v27  ;;  %v4303_v48 = vmul.f32 %v10926_v55, %v10926_v55  ;;  %v10945_v60 = vadd.f32 %v12967_v41, %v10190_v21 }
 0x9b6   : > { %12966 = vst [vmem:[#allocation31_spill] sm:$0xff] %v10936_v22  ;;  %v10947_v3 = vpop.eup %8038  ;;  %v5408_v46 = vpack.c.bf16 %v5292_v50, %v5288_v1  ;;  %v4432_v2 = vmul.f32 %v4304_v43, %v10917_v17  ;;  %v4305_v30 = vmul.f32 %v10936_v22, %v10936_v22  ;;  %v10954_v33 = vadd.f32 %v12970_v59, %v10194_v4  ;;  %v12973_v1 = vld [vmem:[#allocation79_spill] sm:$0xff] }
 0x9b7   : > { %12968 = vst [vmem:[#allocation63_spill] sm:$0xff] %v10945_v60  ;;  %12969 = vst [vmem:[#allocation53_spill] sm:$0xff] %v10947_v3  ;;  %v10956_v0 = vpop.eup %8040  ;;  %5767 = vmatmul.mubr.bf16.gmra.mrb[216].mxu1 %v5406_v16  ;;  %v4558_v31 = vmul.f32 0.044715, %v4430_v34  ;;  %v4431_v6 = vmul.f32 %v4303_v48, %v10926_v55  ;;  %v4306_v20 = vmul.f32 %v10945_v60, %v10945_v60  ;;  %v12975_v16 = vld [vmem:[#allocation80_spill] sm:$0xff] }
 0x9b8   : > { %12971 = vst [vmem:[#allocation33_spill] sm:$0xff] %v10954_v33  ;;  %12972 = vst [vmem:[#allocation68_spill] sm:$0xff] %v10956_v0  ;;  %v10963_v50 = vadd.f32 %v12973_v1, %v10198_v51  ;;  %v10965_v43 = vpop.eup %8042  ;;  %5928 = vmatmul.mubr.bf16.gmra.mrb[216].mxu0 %v5408_v46  ;;  %v4560_v41 = vmul.f32 0.044715, %v4432_v2  ;;  %v4433_v59 = vmul.f32 %v4305_v30, %v10936_v22 }
 0x9b9   : > { %v4308_v53 = vmul.f32 %v10954_v33, %v10954_v33  ;;  %v10972_v34 = vadd.f32 %v12975_v16, %v10200_v7  ;;  %v4686_v48 = vadd.f32 %v4558_v31, %v10910_v27  ;;  %v4559_v13 = vmul.f32 0.044715, %v4431_v6 }
 0x9ba   : > { %12974 = vst [vmem:[#allocation56_spill] sm:$0xff] %v10963_v50  ;;  %v4434_v24 = vmul.f32 %v4306_v20, %v10945_v60  ;;  %v4307_v1 = vmul.f32 %v10963_v50, %v10963_v50  ;;  %v10978_v0 = vpop.eup %8044  ;;  %v4688_v46 = vadd.f32 %v4560_v41, %v10917_v17  ;;  %v4561_v2 = vmul.f32 0.044715, %v4433_v59 }
 0x9bb   : > { %12976 = vst [vmem:[#allocation72_spill] sm:$0xff] %v10972_v34  ;;  %v4436_v30 = vmul.f32 %v4308_v53, %v10954_v33  ;;  %v4309_v39 = vmul.f32 %v10972_v34, %v10972_v34  ;;  %v4814_v16 = vmul.f32 0.7978846, %v4686_v48  ;;  %v4687_v38 = vadd.f32 %v4559_v13, %v10926_v55 }
 0x9bc   : > { %v4562_v31 = vmul.f32 0.044715, %v4434_v24  ;;  %v4435_v6 = vmul.f32 %v4307_v1, %v10963_v50  ;;  %v4816_v20 = vmul.f32 0.7978846, %v4688_v46  ;;  %v4689_v27 = vadd.f32 %v4561_v2, %v10936_v22 }
 0x9bd   : > { %v4564_v3 = vmul.f32 0.044715, %v4436_v30  ;;  %v4437_v54 = vmul.f32 %v4309_v39, %v10972_v34  ;;  %8046 = vtanh.f32 %v4814_v16  ;;  %v4815_v41 = vmul.f32 0.7978846, %v4687_v38 }
 0x9be   : > { %v4690_v59 = vadd.f32 %v4562_v31, %v10945_v60  ;;  %v4563_v53 = vmul.f32 0.044715, %v4435_v6  ;;  %8048 = vtanh.f32 %v4816_v20  ;;  %v4817_v17 = vmul.f32 0.7978846, %v4689_v27  ;;  %v12977_v31 = vld [vmem:[#allocation59_spill] sm:$0xff] }
 0x9bf   : > { %v4692_v48 = vadd.f32 %v4564_v3, %v10954_v33  ;;  %v4565_v25 = vmul.f32 0.044715, %v4437_v54  ;;  %8050 = vtanh.f32 %v4815_v41  ;;  %v5039_v1 = vadd.f32 1.0, %v10661_v58 }
 0x9c0   : > { %v4818_v13 = vmul.f32 0.7978846, %v4690_v59  ;;  %v4691_v24 = vadd.f32 %v4563_v53, %v10963_v50  ;;  %8052 = vtanh.f32 %v4817_v17  ;;  %v5043_v38 = vadd.f32 1.0, %v10694_v35  ;;  %v12978_v17 = vld [vmem:[#allocation84_spill] sm:$0xff]  ;;  %v12980_v59 = vld [vmem:[#allocation95_spill] sm:$0xff] }
 0x9c1   : > { %v4820_v46 = vmul.f32 0.7978846, %v4692_v48  ;;  %v4693_v39 = vadd.f32 %v4565_v25, %v10972_v34  ;;  %v5167_v30 = vmul.f32 0.5, %v5039_v1  ;;  %v5041_v27 = vadd.f32 1.0, %v10670_v29  ;;  %v12979_v25 = vld [vmem:[#allocation67_spill] sm:$0xff]  ;;  %v12981_v48 = vld [vmem:[#allocation60_spill] sm:$0xff] }
 0x9c2   : > { %8054 = vtanh.f32 %v4818_v13  ;;  %v4819_v2 = vmul.f32 0.7978846, %v4691_v24  ;;  %v5171_v54 = vmul.f32 0.5, %v5043_v38  ;;  %v5045_v16 = vadd.f32 1.0, %v10709_v56  ;;  %v12982_v24 = vld [vmem:[#allocation87_spill] sm:$0xff] }
 0x9c3   : > { %8056 = vtanh.f32 %v4820_v46  ;;  %v4821_v3 = vmul.f32 0.7978846, %v4693_v39  ;;  %v5295_v6 = vmul.f32 %v5167_v30, %v12977_v31  ;;  %v5169_v58 = vmul.f32 0.5, %v5041_v27  ;;  %v12983_v39 = vld [vmem:[#allocation70_spill] sm:$0xff]  ;;  %v12984_v30 = vld [vmem:[#allocation85_spill] sm:$0xff] }
 0x9c4   : > { %8058 = vtanh.f32 %v4819_v2  ;;  %v5038_v20 = vadd.f32 1.0, %v12978_v17  ;;  %v5299_v41 = vmul.f32 %v5171_v54, %v12979_v25  ;;  %v5173_v35 = vmul.f32 0.5, %v5045_v16  ;;  %v12987_v54 = vld [vmem:[#allocation57_spill] sm:$0xff] }
 0x9c5   : > { %8060 = vtanh.f32 %v4821_v3  ;;  %v5042_v53 = vadd.f32 1.0, %v12980_v59  ;;  %v5297_v13 = vmul.f32 %v5169_v58, %v12981_v48  ;;  %v5040_v1 = vadd.f32 1.0, %v12982_v24  ;;  %v12988_v58 = vld [vmem:[#allocation86_spill] sm:$0xff]  ;;  %v12992_v59 = vld [vmem:[#allocation89_spill] sm:$0xff] }
 0x9c6   : > { %v5166_v29 = vmul.f32 0.5, %v5038_v20  ;;  %v5044_v46 = vadd.f32 1.0, %v10687_v12  ;;  %v5411_v56 = vpack.c.bf16 %v5299_v41, %v5295_v6  ;;  %v5301_v38 = vmul.f32 %v5173_v35, %v12983_v39  ;;  %v12991_v6 = vld [vmem:[#allocation61_spill] sm:$0xff] }
 0x9c7   : > { %v5170_v2 = vmul.f32 0.5, %v5042_v53  ;;  %v11006_v27 = vadd.f32 %v12984_v30, %v10190_v21  ;;  %v11008_v3 = vpop.eup %8046  ;;  %v5168_v31 = vmul.f32 0.5, %v5040_v1  ;;  %v11013_v20 = vadd.f32 %v12988_v58, %v10194_v4  ;;  %v12994_v1 = vld [vmem:[#allocation66_spill] sm:$0xff] }
 0x9c8   : > { %12986 = vst [vmem:[#allocation73_spill] sm:$0xff] %v11008_v3  ;;  %v5294_v16 = vmul.f32 %v5166_v29, %v12987_v54  ;;  %v5172_v17 = vmul.f32 0.5, %v5044_v46  ;;  %v11015_v25 = vpop.eup %8048  ;;  %5774 = vmatprep.mubr.bf16.mxu1 %v5411_v56  ;;  %v5413_v12 = vpack.c.bf16 %v5301_v38, %v5297_v13  ;;  %v11022_v53 = vadd.f32 %v12992_v59, %v10198_v51  ;;  %v12993_v29 = vld [vmem:[#allocation58_spill] sm:$0xff] }
 0x9c9   : > { %12985 = vst [vmem:[#allocation32_spill] sm:$0xff] %v11006_v27  ;;  %12989 = vst [vmem:[#allocation51_spill] sm:$0xff] %v11013_v20  ;;  %v5298_v41 = vmul.f32 %v5170_v2, %v12991_v6  ;;  %v4310_v35 = vmul.f32 %v11006_v27, %v11006_v27  ;;  %v11024_v48 = vpop.eup %8050  ;;  %v5296_v24 = vmul.f32 %v5168_v31, %v12993_v29  ;;  %v12995_v13 = vld [vmem:[#allocation90_spill] sm:$0xff]  ;;  %v12996_v31 = vld [vmem:[#allocation91_spill] sm:$0xff] }
 0x9ca   : > { %12990 = vst [vmem:[#allocation75_spill] sm:$0xff] %v11015_v25  ;;  %v5300_v46 = vmul.f32 %v5172_v17, %v12994_v1  ;;  %v4312_v39 = vmul.f32 %v11013_v20, %v11013_v20  ;;  %v11032_v56 = vadd.f32 %v12995_v13, %v10200_v7  ;;  %v11034_v38 = vpop.eup %8052  ;;  %5935 = vmatprep.mubr.bf16.mxu0 %v5413_v12  ;;  %v12998_v12 = vld [vmem:[#allocation92_spill] sm:$0xff] }
 0x9cb   : > { %v5410_v2 = vpack.c.bf16 %v5298_v41, %v5294_v16  ;;  %v4438_v30 = vmul.f32 %v4310_v35, %v11006_v27  ;;  %v4311_v54 = vmul.f32 %v11022_v53, %v11022_v53  ;;  %v11041_v58 = vadd.f32 %v12996_v31, %v10190_v21 }
 0x9cc   : > { %v11043_v17 = vpop.eup %8054  ;;  %v5412_v6 = vpack.c.bf16 %v5300_v46, %v5296_v24  ;;  %v4440_v59 = vmul.f32 %v4312_v39, %v11013_v20  ;;  %v4313_v29 = vmul.f32 %v11032_v56, %v11032_v56  ;;  %v11050_v16 = vadd.f32 %v12998_v12, %v10194_v4  ;;  %v13000_v24 = vld [vmem:[#allocation93_spill] sm:$0xff] }
 0x9cd   : > { %12997 = vst [vmem:[#allocation34_spill] sm:$0xff] %v11043_v17  ;;  %v11052_v41 = vpop.eup %8056  ;;  %5775 = vmatmul.mubr.bf16.gmra.mrb[220].mxu1 %v5410_v2  ;;  %v4566_v35 = vmul.f32 0.044715, %v4438_v30  ;;  %v4439_v1 = vmul.f32 %v4311_v54, %v11022_v53  ;;  %v4314_v13 = vmul.f32 %v11041_v58, %v11041_v58  ;;  %v11059_v46 = vadd.f32 %v13000_v24, %v10198_v51  ;;  %v13001_v2 = vld [vmem:[#allocation94_spill] sm:$0xff] }
 0x9ce   : > { %12999 = vst [vmem:[#allocation52_spill] sm:$0xff] %v11052_v41  ;;  %v11061_v39 = vpop.eup %8058  ;;  %5936 = vmatmul.mubr.bf16.gmra.mrb[220].mxu0 %v5412_v6  ;;  %v4568_v31 = vmul.f32 0.044715, %v4440_v59  ;;  %v4441_v12 = vmul.f32 %v4313_v29, %v11032_v56  ;;  %v4316_v33 = vmul.f32 %v11050_v16, %v11050_v16  ;;  %v11068_v30 = vadd.f32 %v13001_v2, %v10200_v7 }
 0x9cf   : > { %v11070_v54 = vpop.eup %8060  ;;  %v4694_v60 = vadd.f32 %v4566_v35, %v11006_v27  ;;  %v4567_v34 = vmul.f32 0.044715, %v4439_v1  ;;  %v4442_v24 = vmul.f32 %v4314_v13, %v11041_v58  ;;  %v4315_v6 = vmul.f32 %v11059_v46, %v11059_v46 }
 0x9d0   : > { %v4696_v59 = vadd.f32 %v4568_v31, %v11013_v20  ;;  %v4569_v29 = vmul.f32 0.044715, %v4441_v12  ;;  %v4444_v41 = vmul.f32 %v4316_v33, %v11050_v16  ;;  %v4317_v25 = vmul.f32 %v11068_v30, %v11068_v30 }
 0x9d1   : > { %v4822_v2 = vmul.f32 0.7978846, %v4694_v60  ;;  %v4695_v22 = vadd.f32 %v4567_v34, %v11022_v53  ;;  %v4570_v17 = vmul.f32 0.044715, %v4442_v24  ;;  %v4443_v35 = vmul.f32 %v4315_v6, %v11059_v46  ;;  %v11086_v34 = vpop.f32.mrb[184].mxu1  ;;  %v11088_v24 = vpop.f32.mrb[184].mxu0 }
 0x9d2   : > { %v4824_v1 = vmul.f32 0.7978846, %v4696_v59  ;;  %v4697_v13 = vadd.f32 %v4569_v29, %v11032_v56  ;;  %v4572_v27 = vmul.f32 0.044715, %v4444_v41  ;;  %v4445_v50 = vmul.f32 %v4317_v25, %v11068_v30  ;;  %v11092_v59 = vpop.f32.mrb[185].mxu1 }
 0x9d3   : > { %8062 = vtanh.f32 %v4822_v2  ;;  %v4823_v31 = vmul.f32 0.7978846, %v4695_v22  ;;  %v4698_v12 = vadd.f32 %v4570_v17, %v11041_v58  ;;  %v4571_v33 = vmul.f32 0.044715, %v4443_v35  ;;  %13002 = vst [vmem:[#allocation76_spill] sm:$0xff] %v11092_v59  ;;  %v11094_v22 = vpop.f32.mrb[185].mxu0 }
 0x9d4   : > { %8064 = vtanh.f32 %v4824_v1  ;;  %v4825_v20 = vmul.f32 0.7978846, %v4697_v13  ;;  %v4700_v60 = vadd.f32 %v4572_v27, %v11050_v16  ;;  %v4573_v3 = vmul.f32 0.044715, %v4445_v50  ;;  %13003 = vst [vmem:[#allocation77_spill] sm:$0xff] %v11094_v22  ;;  %v11098_v27 = vpop.f32.mrb[186].mxu1 }
 0x9d5   : > { %8066 = vtanh.f32 %v4823_v31  ;;  %v4826_v6 = vmul.f32 0.7978846, %v4698_v12  ;;  %v4699_v41 = vadd.f32 %v4571_v33, %v11059_v46  ;;  %v5047_v25 = vadd.f32 1.0, %v10755_v63  ;;  %13004 = vst [vmem:[#allocation78_spill] sm:$0xff] %v11098_v27  ;;  %v11100_v2 = vpop.f32.mrb[186].mxu0  ;;  %v11103_v63 = vpop.f32.mrb[187].mxu1 }
 0x9d6   : > { %8068 = vtanh.f32 %v4825_v20  ;;  %v4828_v17 = vmul.f32 0.7978846, %v4700_v60  ;;  %v4701_v29 = vadd.f32 %v4573_v3, %v11068_v30  ;;  %v5051_v50 = vadd.f32 1.0, %v10792_v5  ;;  %13005 = vst [vmem:[#allocation79_spill] sm:$0xff] %v11100_v2  ;;  %13006 = vst [vmem:[#allocation80_spill] sm:$0xff] %v11103_v63  ;;  %v11105_v31 = vpop.f32.mrb[187].mxu0 }
 0x9d7   : > { %8070 = vtanh.f32 %v4826_v6  ;;  %v4827_v35 = vmul.f32 0.7978846, %v4699_v41  ;;  %v5175_v1 = vmul.f32 0.5, %v5047_v25  ;;  %v5049_v13 = vadd.f32 1.0, %v10765_v10  ;;  %13007 = vst [vmem:[#allocation59_spill] sm:$0xff] %v11105_v31  ;;  %v13008_v5 = vld [vmem:[#allocation81_spill] sm:$0xff] }
 0x9d8   : > { %8072 = vtanh.f32 %v4828_v17  ;;  %v4829_v20 = vmul.f32 0.7978846, %v4701_v29  ;;  %v5179_v12 = vmul.f32 0.5, %v5051_v50  ;;  %v5053_v3 = vadd.f32 1.0, %v10796_v26  ;;  %v13009_v25 = vld [vmem:[#allocation82_spill] sm:$0xff] }
 0x9d9   : > { %8074 = vtanh.f32 %v4827_v35  ;;  %v5303_v33 = vmul.f32 %v5175_v1, %v13008_v5  ;;  %v5177_v60 = vmul.f32 0.5, %v5049_v13  ;;  %v5046_v2 = vadd.f32 1.0, %v10720_v18  ;;  %v11120_v1 = vpop.f32.mrb[188].mxu1  ;;  %v13012_v13 = vld [vmem:[#allocation71_spill] sm:$0xff] }
 0x9da   : > { %8076 = vtanh.f32 %v4829_v20  ;;  %v5307_v6 = vmul.f32 %v5179_v12, %v10648_v61  ;;  %v5181_v41 = vmul.f32 0.5, %v5053_v3  ;;  %v5050_v10 = vadd.f32 1.0, %v10781_v19  ;;  %13010 = vst [vmem:[#allocation84_spill] sm:$0xff] %v11120_v1  ;;  %v11122_v61 = vpop.f32.mrb[188].mxu0  ;;  %v13016_v5 = vld [vmem:[#allocation83_spill] sm:$0xff] }
 0x9db   : > { %v5305_v63 = vmul.f32 %v5177_v60, %v13009_v25  ;;  %v5174_v31 = vmul.f32 0.5, %v5046_v2  ;;  %v5048_v17 = vadd.f32 1.0, %v10725_v32  ;;  %v5052_v29 = vadd.f32 1.0, %v10787_v11  ;;  %13011 = vst [vmem:[#allocation67_spill] sm:$0xff] %v11122_v61  ;;  %v11133_v12 = vpop.f32.mrb[189].mxu0 }
 0x9dc   : > { %v5415_v26 = vpack.c.bf16 %v5307_v6, %v5303_v33  ;;  %v5309_v50 = vmul.f32 %v5181_v41, %v10668_v36  ;;  %v5178_v35 = vmul.f32 0.5, %v5050_v10  ;;  %v11118_v18 = vadd.f32 %v10683_v9, %v10190_v21  ;;  %v11131_v36 = vpop.f32.mrb[189].mxu1  ;;  %13015 = vst [vmem:[#allocation87_spill] sm:$0xff] %v11133_v12  ;;  %v13019_v10 = vld [vmem:[#allocation74_spill] sm:$0xff] }
 0x9dd   : > { %v11124_v19 = vpop.eup %8062  ;;  %v5302_v2 = vmul.f32 %v5174_v31, %v13012_v13  ;;  %v5176_v20 = vmul.f32 0.5, %v5048_v17  ;;  %v5180_v32 = vmul.f32 0.5, %v5052_v29  ;;  %v11129_v11 = vadd.f32 %v10685_v37, %v10194_v4  ;;  %13014 = vst [vmem:[#allocation60_spill] sm:$0xff] %v11131_v36  ;;  %v11144_v6 = vpop.f32.mrb[190].mxu1  ;;  %v13020_v17 = vld [vmem:[#allocation88_spill] sm:$0xff] }
 0x9de   : > { %v11135_v9 = vpop.eup %8064  ;;  %5782 = vmatprep.mubr.bf16.mxu1 %v5415_v26  ;;  %v5417_v3 = vpack.c.bf16 %v5309_v50, %v5305_v63  ;;  %v5306_v33 = vmul.f32 %v5178_v35, %v13016_v5  ;;  %v4318_v60 = vmul.f32 %v11118_v18, %v11118_v18  ;;  %v11142_v31 = vadd.f32 %v10690_v52, %v10198_v51  ;;  %v11146_v37 = vpop.f32.mrb[190].mxu0  ;;  %v13021_v26 = vld [vmem:[#allocation96_spill] sm:$0xff] }
 0x9df   : > { %13013 = vst [vmem:[#allocation95_spill] sm:$0xff] %v11129_v11  ;;  %13017 = vst [vmem:[#allocation70_spill] sm:$0xff] %v11144_v6  ;;  %v11148_v41 = vpop.eup %8066  ;;  %v5304_v25 = vmul.f32 %v5176_v20, %v13019_v10  ;;  %v5308_v29 = vmul.f32 %v5180_v32, %v13020_v17  ;;  %v4320_v63 = vmul.f32 %v11129_v11, %v11129_v11  ;;  %v11158_v35 = vpop.f32.mrb[191].mxu1 }
 0x9e0   : > { %13018 = vst [vmem:[#allocation85_spill] sm:$0xff] %v11146_v37  ;;  %v11156_v50 = vadd.f32 %v13021_v26, %v10200_v7  ;;  %13022 = vst [vmem:[#allocation57_spill] sm:$0xff] %v11158_v35  ;;  %v11160_v52 = vpop.f32.mrb[191].mxu0  ;;  %v11162_v13 = vpop.eup %8068  ;;  %5943 = vmatprep.mubr.bf16.mxu0 %v5417_v3  ;;  %v5414_v5 = vpack.c.bf16 %v5306_v33, %v5302_v2  ;;  %v4446_v37 = vmul.f32 %v4318_v60, %v11118_v18 }
 0x9e1   : > { %13023 = vst [vmem:[#allocation86_spill] sm:$0xff] %v11160_v52  ;;  %v4319_v20 = vmul.f32 %v11142_v31, %v11142_v31  ;;  %v11169_v32 = vadd.f32 %v10699_v23, %v10190_v21  ;;  %v11171_v10 = vpop.eup %8070  ;;  %v5416_v17 = vpack.c.bf16 %v5308_v29, %v5304_v25  ;;  %v4448_v26 = vmul.f32 %v4320_v63, %v11129_v11  ;;  %v13024_v25 = vld [vmem:[#allocation97_spill] sm:$0xff] }
 0x9e2   : > { %v4321_v52 = vmul.f32 %v11156_v50, %v11156_v50  ;;  %v11178_v2 = vadd.f32 %v10701_v40, %v10194_v4  ;;  %v11180_v3 = vpop.eup %8072  ;;  %5783 = vmatmul.mubr.bf16.gmra.mrb[224].mxu1 %v5414_v5  ;;  %v4574_v33 = vmul.f32 0.044715, %v4446_v37  ;;  %v11187_v29 = vadd.f32 %v13024_v25, %v10198_v51  ;;  %v13025_v37 = vld [vmem:[#allocation98_spill] sm:$0xff] }
 0x9e3   : > { %v4447_v60 = vmul.f32 %v4319_v20, %v11142_v31  ;;  %v4322_v23 = vmul.f32 %v11169_v32, %v11169_v32  ;;  %v11189_v63 = vpop.eup %8074  ;;  %5944 = vmatmul.mubr.bf16.gmra.mrb[224].mxu0 %v5416_v17  ;;  %v4576_v35 = vmul.f32 0.044715, %v4448_v26  ;;  %v11196_v5 = vadd.f32 %v13025_v37, %v10200_v7  ;;  %v11204_v26 = vpop.f32.mrb[192].mxu1 }
 0x9e4   : > { %v4449_v40 = vmul.f32 %v4321_v52, %v11156_v50  ;;  %v4324_v6 = vmul.f32 %v11178_v2, %v11178_v2  ;;  %v11198_v20 = vpop.eup %8076  ;;  %v4702_v12 = vadd.f32 %v4574_v33, %v11118_v18  ;;  %v4323_v17 = vmul.f32 %v11187_v29, %v11187_v29  ;;  %13026 = vst [vmem:[#allocation61_spill] sm:$0xff] %v11204_v26  ;;  %v11206_v52 = vpop.f32.mrb[192].mxu0 }
 0x9e5   : > { %v4575_v36 = vmul.f32 0.044715, %v4447_v60  ;;  %v4450_v25 = vmul.f32 %v4322_v23, %v11169_v32  ;;  %13027 = vst [vmem:[#allocation89_spill] sm:$0xff] %v11206_v52  ;;  %v4704_v61 = vadd.f32 %v4576_v35, %v11129_v11  ;;  %v4325_v27 = vmul.f32 %v11196_v5, %v11196_v5  ;;  %v11212_v22 = vpop.f32.mrb[193].mxu1  ;;  %v11214_v33 = vpop.f32.mrb[193].mxu0 }
 0x9e6   : > { %v4577_v1 = vmul.f32 0.044715, %v4449_v40  ;;  %v4452_v37 = vmul.f32 %v4324_v6, %v11178_v2  ;;  %13028 = vst [vmem:[#allocation58_spill] sm:$0xff] %v11212_v22  ;;  %v4830_v60 = vmul.f32 0.7978846, %v4702_v12  ;;  %v4451_v26 = vmul.f32 %v4323_v17, %v11187_v29  ;;  %v11218_v59 = vpop.f32.mrb[194].mxu1 }
 0x9e7   : > { %v4703_v23 = vadd.f32 %v4575_v36, %v11142_v31  ;;  %v4578_v7 = vmul.f32 0.044715, %v4450_v25  ;;  %13029 = vst [vmem:[#allocation66_spill] sm:$0xff] %v11218_v59  ;;  %v11220_v52 = vpop.f32.mrb[194].mxu0  ;;  %v4832_v35 = vmul.f32 0.7978846, %v4704_v61  ;;  %v4453_v11 = vmul.f32 %v4325_v27, %v11196_v5 }
 0x9e8   : > { %13030 = vst [vmem:[#allocation90_spill] sm:$0xff] %v11220_v52  ;;  %v4705_v6 = vadd.f32 %v4577_v1, %v11156_v50  ;;  %v4580_v40 = vmul.f32 0.044715, %v4452_v37  ;;  %v11224_v51 = vpop.f32.mrb[195].mxu1  ;;  %v11226_v22 = vpop.f32.mrb[195].mxu0  ;;  %8078 = vtanh.f32 %v4830_v60  ;;  %v5055_v27 = vadd.f32 1.0, %v10843_v15 }
 0x9e9   : > { %13031 = vst [vmem:[#allocation91_spill] sm:$0xff] %v11226_v22  ;;  %v4831_v12 = vmul.f32 0.7978846, %v4703_v23  ;;  %v4706_v36 = vadd.f32 %v4578_v7, %v11169_v32  ;;  %v4579_v25 = vmul.f32 0.044715, %v4451_v26  ;;  %8080 = vtanh.f32 %v4832_v35  ;;  %v11235_v35 = vpop.f32.mrb[196].mxu1 }
 0x9ea   : > { %v4833_v17 = vmul.f32 0.7978846, %v4705_v6  ;;  %v4708_v59 = vadd.f32 %v4580_v40, %v11178_v2  ;;  %v4581_v52 = vmul.f32 0.044715, %v4453_v11  ;;  %v5059_v60 = vadd.f32 1.0, %v10873_v42  ;;  %v11237_v11 = vpop.f32.mrb[196].mxu0 }
 0x9eb   : > { %8082 = vtanh.f32 %v4831_v12  ;;  %v4834_v61 = vmul.f32 0.7978846, %v4706_v36  ;;  %v4707_v1 = vadd.f32 %v4579_v25, %v11187_v29  ;;  %v5183_v26 = vmul.f32 0.5, %v5055_v27  ;;  %13032 = vst [vmem:[#allocation92_spill] sm:$0xff] %v11237_v11  ;;  %v11240_v12 = vpop.f32.mrb[197].mxu1 }
 0x9ec   : > { %8084 = vtanh.f32 %v4833_v17  ;;  %v4836_v37 = vmul.f32 0.7978846, %v4708_v59  ;;  %v4709_v22 = vadd.f32 %v4581_v52, %v11196_v5  ;;  %v5057_v23 = vadd.f32 1.0, %v10849_v62  ;;  %13033 = vst [vmem:[#allocation93_spill] sm:$0xff] %v11240_v12  ;;  %v11242_v59 = vpop.f32.mrb[197].mxu0  ;;  %v11246_v62 = vpop.f32.mrb[198].mxu1 }
 0x9ed   : > { %8086 = vtanh.f32 %v4834_v61  ;;  %v4835_v7 = vmul.f32 0.7978846, %v4707_v1  ;;  %v5187_v40 = vmul.f32 0.5, %v5059_v60  ;;  %v5061_v15 = vadd.f32 1.0, %v10882_v28  ;;  %13034 = vst [vmem:[#allocation94_spill] sm:$0xff] %v11242_v59  ;;  %13035 = vst [vmem:[#allocation81_spill] sm:$0xff] %v11246_v62 }
 0x9ee   : > { %8088 = vtanh.f32 %v4836_v37  ;;  %v4837_v6 = vmul.f32 0.7978846, %v4709_v22  ;;  %v5311_v42 = vmul.f32 %v5183_v26, %v10732_v44  ;;  %v5185_v52 = vmul.f32 0.5, %v5057_v23  ;;  %v11248_v25 = vpop.f32.mrb[198].mxu0  ;;  %v11252_v61 = vpop.f32.mrb[199].mxu1  ;;  %v13039_v37 = vld [vmem:[#allocation54_spill] sm:$0xff] }
 0x9ef   : > { %8090 = vtanh.f32 %v4835_v7  ;;  %v5054_v36 = vadd.f32 1.0, %v10816_v45  ;;  %13036 = vst [vmem:[#allocation82_spill] sm:$0xff] %v11248_v25  ;;  %v5315_v22 = vmul.f32 %v5187_v40, %v10763_v47  ;;  %v5189_v17 = vmul.f32 0.5, %v5061_v15  ;;  %13037 = vst [vmem:[#allocation71_spill] sm:$0xff] %v11252_v61  ;;  %v11254_v1 = vpop.f32.mrb[199].mxu0  ;;  %v13040_v45 = vld [vmem:[#allocation62_spill] sm:$0xff] }
 0x9f0   : > { %8092 = vtanh.f32 %v4837_v6  ;;  %v5058_v28 = vadd.f32 1.0, %v10860_v14  ;;  %13038 = vst [vmem:[#allocation83_spill] sm:$0xff] %v11254_v1  ;;  %v5313_v27 = vmul.f32 %v5185_v52, %v10736_v8  ;;  %v5056_v60 = vadd.f32 1.0, %v13039_v37  ;;  %v13041_v23 = vld [vmem:[#allocation103_spill] sm:$0xff] }
 0x9f1   : > { %v5182_v44 = vmul.f32 0.5, %v5054_v36  ;;  %v5060_v7 = vadd.f32 1.0, %v13040_v45  ;;  %v5419_v26 = vpack.c.bf16 %v5315_v22, %v5311_v42  ;;  %v5317_v25 = vmul.f32 %v5189_v17, %v13041_v23  ;;  %v13042_v14 = vld [vmem:[#allocation99_spill] sm:$0xff]  ;;  %v13043_v36 = vld [vmem:[#allocation101_spill] sm:$0xff]  ;;  %v13045_v45 = vld [vmem:[#allocation102_spill] sm:$0xff] }
 0x9f2   : > { %v5186_v6 = vmul.f32 0.5, %v5058_v28  ;;  %v5063_v47 = vadd.f32 1.0, %v10928_v49  ;;  %v11261_v40 = vpop.eup %8078  ;;  %v5184_v61 = vmul.f32 0.5, %v5056_v60  ;;  %v5067_v1 = vadd.f32 1.0, %v10965_v43  ;;  %v13044_v49 = vld [vmem:[#allocation100_spill] sm:$0xff]  ;;  %v11276_v43 = vpop.f32.mrb[200].mxu0 }
 0x9f3   : > { %v5310_v15 = vmul.f32 %v5182_v44, %v13042_v14  ;;  %v5188_v62 = vmul.f32 0.5, %v5060_v7  ;;  %v11265_v8 = vpop.eup %8080  ;;  %5790 = vmatprep.mubr.bf16.mxu1 %v5419_v26  ;;  %v5421_v52 = vpack.c.bf16 %v5317_v25, %v5313_v27  ;;  %v5065_v22 = vadd.f32 1.0, %v10938_v57  ;;  %v11274_v7 = vpop.f32.mrb[200].mxu1  ;;  %13047 = vst [vmem:[#allocation88_spill] sm:$0xff] %v11276_v43  ;;  %v13048_v27 = vld [vmem:[#allocation29_spill] sm:$0xff] }
 0x9f4   : > { %v5314_v37 = vmul.f32 %v5186_v6, %v13043_v36  ;;  %v5191_v42 = vmul.f32 0.5, %v5063_v47  ;;  %v5312_v28 = vmul.f32 %v5184_v61, %v13044_v49  ;;  %v5195_v44 = vmul.f32 0.5, %v5067_v1  ;;  %13046 = vst [vmem:[#allocation74_spill] sm:$0xff] %v11274_v7  ;;  %v13049_v47 = vld [vmem:[#allocation30_spill] sm:$0xff]  ;;  %v11282_v36 = vpop.f32.mrb[201].mxu1  ;;  %v11284_v61 = vpop.f32.mrb[201].mxu0 }
 0x9f5   : > { %v11269_v17 = vpop.eup %8082  ;;  %v5316_v23 = vmul.f32 %v5188_v62, %v13045_v45  ;;  %v5069_v60 = vadd.f32 1.0, %v10978_v0  ;;  %5951 = vmatprep.mubr.bf16.mxu0 %v5421_v52  ;;  %v5193_v57 = vmul.f32 0.5, %v5065_v22  ;;  %v5062_v14 = vadd.f32 1.0, %v13049_v47  ;;  %13050 = vst [vmem:[#allocation96_spill] sm:$0xff] %v11282_v36  ;;  %13051 = vst [vmem:[#allocation97_spill] sm:$0xff] %v11284_v61  ;;  %v13052_v1 = vld [vmem:[#allocation28_spill] sm:$0xff] }
 0x9f6   : > { %v11278_v26 = vpop.eup %8084  ;;  %v5418_v25 = vpack.c.bf16 %v5314_v37, %v5310_v15  ;;  %v5319_v6 = vmul.f32 %v5191_v42, %v13048_v27  ;;  %v5323_v49 = vmul.f32 %v5195_v44, %v13052_v1  ;;  %v13053_v43 = vld [vmem:[#allocation53_spill] sm:$0xff]  ;;  %v11290_v59 = vpop.f32.mrb[202].mxu1  ;;  %v13056_v37 = vld [vmem:[#allocation50_spill] sm:$0xff]  ;;  %v13058_v61 = vld [vmem:[#allocation68_spill] sm:$0xff] }
 0x9f7   : > { %v11286_v62 = vpop.eup %8086  ;;  %v5420_v0 = vpack.c.bf16 %v5316_v23, %v5312_v28  ;;  %v5197_v45 = vmul.f32 0.5, %v5069_v60  ;;  %v5066_v7 = vadd.f32 1.0, %v13053_v43  ;;  %13054 = vst [vmem:[#allocation98_spill] sm:$0xff] %v11290_v59  ;;  %v11292_v15 = vpop.f32.mrb[202].mxu0  ;;  %v5321_v42 = vmul.f32 %v5193_v57, %v13056_v37  ;;  %v13057_v27 = vld [vmem:[#allocation69_spill] sm:$0xff]  ;;  %v13061_v43 = vld [vmem:[#allocation15_spill] sm:$0xff] }
 0x9f8   : > { %13055 = vst [vmem:[#allocation54_spill] sm:$0xff] %v11292_v15  ;;  %v11294_v52 = vpop.eup %8088  ;;  %5791 = vmatmul.mubr.bf16.gmra.mrb[228].mxu1 %v5418_v25  ;;  %v5190_v22 = vmul.f32 0.5, %v5062_v14  ;;  %v5064_v47 = vadd.f32 1.0, %v13057_v27  ;;  %v5068_v36 = vadd.f32 1.0, %v13058_v61  ;;  %v11299_v28 = vpop.f32.mrb[203].mxu1  ;;  %v5423_v60 = vpack.c.bf16 %v5323_v49, %v5319_v6  ;;  %v13062_v57 = vld [vmem:[#allocation27_spill] sm:$0xff] }
 0x9f9   : > { %13059 = vst [vmem:[#allocation62_spill] sm:$0xff] %v11299_v28  ;;  %v11301_v23 = vpop.f32.mrb[203].mxu0  ;;  %v11303_v44 = vpop.eup %8090  ;;  %5952 = vmatmul.mubr.bf16.gmra.mrb[228].mxu0 %v5420_v0  ;;  %v5325_v1 = vmul.f32 %v5197_v45, %v13061_v43  ;;  %v5194_v15 = vmul.f32 0.5, %v5066_v7  ;;  %v5071_v25 = vadd.f32 1.0, %v11024_v48  ;;  %v5075_v61 = vadd.f32 1.0, %v11061_v39  ;;  %v13064_v0 = vld [vmem:[#allocation17_spill] sm:$0xff] }
 0x9fa   : > { %13060 = vst [vmem:[#allocation103_spill] sm:$0xff] %v11301_v23  ;;  %v11307_v59 = vpop.eup %8092  ;;  %v5318_v14 = vmul.f32 %v5190_v22, %v13062_v57  ;;  %v5192_v37 = vmul.f32 0.5, %v5064_v47  ;;  %v5196_v27 = vmul.f32 0.5, %v5068_v36  ;;  %5798 = vmatprep.mubr.bf16.mxu1 %v5423_v60  ;;  %v13063_v23 = vld [vmem:[#allocation55_spill] sm:$0xff]  ;;  %v5073_v6 = vadd.f32 1.0, %v11034_v38  ;;  %v13066_v39 = vld [vmem:[#allocation73_spill] sm:$0xff] }
 0x9fb   : > { %v5425_v28 = vpack.c.bf16 %v5325_v1, %v5321_v42  ;;  %v5322_v12 = vmul.f32 %v5194_v15, %v13063_v23  ;;  %v5199_v11 = vmul.f32 0.5, %v5071_v25  ;;  %v13065_v7 = vld [vmem:[#allocation19_spill] sm:$0xff]  ;;  %v5203_v48 = vmul.f32 0.5, %v5075_v61  ;;  %v11318_v42 = vpop.f32.mrb[204].mxu1  ;;  %v11320_v15 = vpop.f32.mrb[204].mxu0  ;;  %v13067_v38 = vld [vmem:[#allocation56_spill] sm:$0xff] }
 0x9fc   : > { %v5320_v49 = vmul.f32 %v5192_v37, %v13064_v0  ;;  %v5324_v45 = vmul.f32 %v5196_v27, %v13065_v7  ;;  %v5077_v43 = vadd.f32 1.0, %v11070_v54  ;;  %v5201_v47 = vmul.f32 0.5, %v5073_v6  ;;  %v13068_v57 = vld [vmem:[#allocation34_spill] sm:$0xff]  ;;  %v11324_v27 = vpop.f32.mrb[205].mxu1  ;;  %v11326_v54 = vpop.f32.mrb[205].mxu0  ;;  %v13071_v61 = vld [vmem:[#allocation52_spill] sm:$0xff] }
 0x9fd   : > { %5959 = vmatprep.mubr.bf16.mxu0 %v5425_v28  ;;  %v5422_v22 = vpack.c.bf16 %v5322_v12, %v5318_v14  ;;  %v5327_v36 = vmul.f32 %v5199_v11, %v10926_v55  ;;  %v5070_v60 = vadd.f32 1.0, %v13066_v39  ;;  %v5331_v1 = vmul.f32 %v5203_v48, %v13067_v38  ;;  %v13069_v12 = vld [vmem:[#allocation31_spill] sm:$0xff]  ;;  %v11331_v0 = vpop.f32.mrb[206].mxu1  ;;  %v11333_v7 = vpop.f32.mrb[206].mxu0 }
 0x9fe   : > { %v5424_v23 = vpack.c.bf16 %v5324_v45, %v5320_v49  ;;  %v5205_v25 = vmul.f32 0.5, %v5077_v43  ;;  %v5074_v37 = vadd.f32 1.0, %v13068_v57  ;;  %v5329_v28 = vmul.f32 %v5201_v47, %v13069_v12  ;;  %v13070_v11 = vld [vmem:[#allocation75_spill] sm:$0xff]  ;;  %13072 = vst [vmem:[#allocation99_spill] sm:$0xff] %v11331_v0  ;;  %13073 = vst [vmem:[#allocation101_spill] sm:$0xff] %v11333_v7  ;;  %v13074_v45 = vld [vmem:[#allocation72_spill] sm:$0xff] }
 0x9ff   : > { %v5198_v55 = vmul.f32 0.5, %v5070_v60  ;;  %v5072_v14 = vadd.f32 1.0, %v13070_v11  ;;  %v5076_v6 = vadd.f32 1.0, %v13071_v61  ;;  %v5427_v49 = vpack.c.bf16 %v5331_v1, %v5327_v36  ;;  %v11337_v38 = vpop.f32.mrb[207].mxu1  ;;  %v11339_v57 = vpop.f32.mrb[207].mxu0  ;;  %v13076_v47 = vld [vmem:[#allocation64_spill] sm:$0xff] }
 0xa00   : > { %5799 = vmatmul.mubr.bf16.gmra.mrb[232].mxu1 %v5422_v22  ;;  %v5333_v48 = vmul.f32 %v5205_v25, %v13074_v45  ;;  %v5202_v43 = vmul.f32 0.5, %v5074_v37  ;;  %v5079_v39 = vadd.f32 1.0, %v11148_v41  ;;  %13075 = vst [vmem:[#allocation100_spill] sm:$0xff] %v11337_v38  ;;  %v5083_v61 = vadd.f32 1.0, %v11189_v63  ;;  %v13077_v22 = vld [vmem:[#allocation63_spill] sm:$0xff]  ;;  %v13078_v37 = vld [vmem:[#allocation65_spill] sm:$0xff] }
 0xa01   : > { %5960 = vmatmul.mubr.bf16.gmra.mrb[232].mxu0 %v5424_v23  ;;  %v5326_v60 = vmul.f32 %v5198_v55, %v13076_v47  ;;  %v5200_v12 = vmul.f32 0.5, %v5072_v14  ;;  %v5204_v11 = vmul.f32 0.5, %v5076_v6  ;;  %5806 = vmatprep.mubr.bf16.mxu1 %v5427_v49  ;;  %v5081_v25 = vadd.f32 1.0, %v11162_v13  ;;  %v13079_v45 = vld [vmem:[#allocation33_spill] sm:$0xff] }
 0xa02   : > { %v5429_v7 = vpack.c.bf16 %v5333_v48, %v5329_v28  ;;  %v5330_v36 = vmul.f32 %v5202_v43, %v13077_v22  ;;  %v5207_v1 = vmul.f32 0.5, %v5079_v39  ;;  %v5211_v0 = vmul.f32 0.5, %v5083_v61  ;;  %v13081_v61 = vld [vmem:[#allocation51_spill] sm:$0xff] }
 0xa03   : > { %v5328_v41 = vmul.f32 %v5200_v12, %v13078_v37  ;;  %v5332_v38 = vmul.f32 %v5204_v11, %v13079_v45  ;;  %v5085_v23 = vadd.f32 1.0, %v11198_v20  ;;  %v5209_v6 = vmul.f32 0.5, %v5081_v25 }
 0xa04   : > { %5967 = vmatprep.mubr.bf16.mxu0 %v5429_v7  ;;  %v5426_v55 = vpack.c.bf16 %v5330_v36, %v5326_v60  ;;  %v5335_v14 = vmul.f32 %v5207_v1, %v11022_v53  ;;  %v5078_v63 = vadd.f32 1.0, %v11124_v19  ;;  %v5339_v49 = vmul.f32 %v5211_v0, %v11059_v46  ;;  %v13080_v19 = vld [vmem:[#allocation32_spill] sm:$0xff] }
 0xa05   : > { %v5428_v28 = vpack.c.bf16 %v5332_v38, %v5328_v41  ;;  %v5213_v48 = vmul.f32 0.5, %v5085_v23  ;;  %v5082_v13 = vadd.f32 1.0, %v11171_v10  ;;  %v5337_v43 = vmul.f32 %v5209_v6, %v11032_v56 }
 0xa06   : > { %v5206_v39 = vmul.f32 0.5, %v5078_v63  ;;  %v5080_v47 = vadd.f32 1.0, %v11135_v9  ;;  %v5084_v20 = vadd.f32 1.0, %v11180_v3  ;;  %v5431_v7 = vpack.c.bf16 %v5339_v49, %v5335_v14  ;;  %v13083_v49 = vld [vmem:[#allocation76_spill] sm:$0xff] }
 0xa07   : > { %v5341_v60 = vmul.f32 %v5213_v48, %v11068_v30  ;;  %v5210_v53 = vmul.f32 0.5, %v5082_v13  ;;  %v5087_v12 = vadd.f32 1.0, %v11269_v17  ;;  %v5091_v10 = vadd.f32 1.0, %v11303_v44 }
 0xa08   : > { %5807 = vmatmul.mubr.bf16.gmra.mrb[236].mxu1 %v5426_v55  ;;  %v5334_v38 = vmul.f32 %v5206_v39, %v13080_v19  ;;  %v5208_v46 = vmul.f32 0.5, %v5080_v47  ;;  %v5212_v0 = vmul.f32 0.5, %v5084_v20  ;;  %v5089_v3 = vadd.f32 1.0, %v11278_v26  ;;  %v13085_v47 = vld [vmem:[#allocation16_spill] sm:$0xff]  ;;  %v13086_v20 = vld [vmem:[#allocation77_spill] sm:$0xff]  ;;  %v13088_v19 = vld [vmem:[#allocation79_spill] sm:$0xff] }
 0xa09   : > { %5968 = vmatmul.mubr.bf16.gmra.mrb[236].mxu0 %v5428_v28  ;;  %5814 = vmatprep.mubr.bf16.mxu1 %v5431_v7  ;;  %v5433_v56 = vpack.c.bf16 %v5341_v60, %v5337_v43  ;;  %v5338_v9 = vmul.f32 %v5210_v53, %v11041_v58  ;;  %v5215_v11 = vmul.f32 0.5, %v5087_v12  ;;  %v5219_v17 = vmul.f32 0.5, %v5091_v10  ;;  %v13087_v12 = vld [vmem:[#allocation78_spill] sm:$0xff] }
 0xa0a   : > { %v5336_v30 = vmul.f32 %v5208_v46, %v13081_v61  ;;  %v5340_v22 = vmul.f32 %v5212_v0, %v11050_v16  ;;  %v5093_v36 = vadd.f32 1.0, %v11307_v59  ;;  %v5217_v44 = vmul.f32 0.5, %v5089_v3 }
 0xa0b   : > { %5975 = vmatprep.mubr.bf16.mxu0 %v5433_v56  ;;  %v5430_v1 = vpack.c.bf16 %v5338_v9, %v5334_v38  ;;  %v5343_v25 = vmul.f32 %v5215_v11, %v11142_v31  ;;  %v5086_v37 = vadd.f32 1.0, %v11261_v40  ;;  %v5347_v58 = vmul.f32 %v5219_v17, %v11187_v29  ;;  %v13089_v56 = vld [vmem:[#allocation80_spill] sm:$0xff] }
 0xa0c   : > { %v5432_v41 = vpack.c.bf16 %v5340_v22, %v5336_v30  ;;  %v5221_v45 = vmul.f32 0.5, %v5093_v36  ;;  %v5090_v26 = vadd.f32 1.0, %v11286_v62  ;;  %v5345_v23 = vmul.f32 %v5217_v44, %v11156_v50  ;;  %v13090_v30 = vld [vmem:[#allocation59_spill] sm:$0xff] }
 0xa0d   : > { %v5214_v55 = vmul.f32 0.5, %v5086_v37  ;;  %v5088_v16 = vadd.f32 1.0, %v11265_v8  ;;  %v5092_v59 = vadd.f32 1.0, %v11294_v52  ;;  %v5435_v14 = vpack.c.bf16 %v5347_v58, %v5343_v25  ;;  %v13082_v52 = vld [vmem:[#allocation26_spill] sm:$0xff] }
 0xa0e   : > { %v5349_v6 = vmul.f32 %v5221_v45, %v11196_v5  ;;  %v5218_v31 = vmul.f32 0.5, %v5090_v26  ;;  %v11374_v40 = vadd.f32 %v11086_v34, %v10190_v21  ;;  %v11379_v50 = vadd.f32 %v11088_v24, %v10194_v4  ;;  %v13084_v34 = vld [vmem:[#allocation95_spill] sm:$0xff] }
 0xa0f   : > { %v5342_v29 = vmul.f32 %v5214_v55, %v11118_v18  ;;  %v5216_v63 = vmul.f32 0.5, %v5088_v16  ;;  %v5220_v28 = vmul.f32 0.5, %v5092_v59  ;;  %v11386_v48 = vadd.f32 %v13083_v49, %v13082_v52 }
 0xa10   : > { %5815 = vmatmul.mubr.bf16.gmra.mrb[240].mxu1 %v5430_v1  ;;  %v5437_v8 = vpack.c.bf16 %v5349_v6, %v5345_v23  ;;  %v5346_v62 = vmul.f32 %v5218_v31, %v11169_v32  ;;  %v4326_v5 = vmul.f32 %v11374_v40, %v11374_v40  ;;  %v4328_v24 = vmul.f32 %v11379_v50, %v11379_v50 }
 0xa11   : > { %5976 = vmatmul.mubr.bf16.gmra.mrb[240].mxu0 %v5432_v41  ;;  %5822 = vmatprep.mubr.bf16.mxu1 %v5435_v14  ;;  %v5344_v18 = vmul.f32 %v5216_v63, %v13084_v34  ;;  %v5348_v13 = vmul.f32 %v5220_v28, %v11178_v2  ;;  %v4327_v39 = vmul.f32 %v11386_v48, %v11386_v48  ;;  %v13091_v34 = vld [vmem:[#allocation84_spill] sm:$0xff] }
 0xa12   : > { %5983 = vmatprep.mubr.bf16.mxu0 %v5437_v8  ;;  %v5434_v43 = vpack.c.bf16 %v5346_v62, %v5342_v29  ;;  %v4454_v32 = vmul.f32 %v4326_v5, %v11374_v40  ;;  %v11397_v7 = vadd.f32 %v13086_v20, %v13085_v47  ;;  %v4456_v53 = vmul.f32 %v4328_v24, %v11379_v50 }
 0xa13   : > { %v5436_v60 = vpack.c.bf16 %v5348_v13, %v5344_v18  ;;  %v11402_v2 = vadd.f32 %v13087_v12, %v10190_v21  ;;  %v11406_v38 = vadd.f32 %v13088_v19, %v10194_v4  ;;  %v4455_v0 = vmul.f32 %v4327_v39, %v11386_v48 }
 0xa14   : > { %v4582_v46 = vmul.f32 0.044715, %v4454_v32  ;;  %v4329_v10 = vmul.f32 %v11397_v7, %v11397_v7  ;;  %v11413_v9 = vadd.f32 %v13089_v56, %v13082_v52  ;;  %v4584_v11 = vmul.f32 0.044715, %v4456_v53  ;;  %v13093_v32 = vld [vmem:[#allocation67_spill] sm:$0xff]  ;;  %v13095_v53 = vld [vmem:[#allocation60_spill] sm:$0xff] }
 0xa15   : > { %v4330_v3 = vmul.f32 %v11402_v2, %v11402_v2  ;;  %v4332_v61 = vmul.f32 %v11406_v38, %v11406_v38  ;;  %v11421_v22 = vadd.f32 %v13090_v30, %v13085_v47  ;;  %v4583_v36 = vmul.f32 0.044715, %v4455_v0  ;;  %v13097_v0 = vld [vmem:[#allocation87_spill] sm:$0xff] }
 0xa16   : > { %v4710_v17 = vadd.f32 %v4582_v46, %v11374_v40  ;;  %v4457_v1 = vmul.f32 %v4329_v10, %v11397_v7  ;;  %v4331_v25 = vmul.f32 %v11413_v9, %v11413_v9  ;;  %v4712_v44 = vadd.f32 %v4584_v11, %v11379_v50 }
 0xa17   : > { %v4458_v37 = vmul.f32 %v4330_v3, %v11402_v2  ;;  %v4460_v41 = vmul.f32 %v4332_v61, %v11406_v38  ;;  %v4333_v58 = vmul.f32 %v11421_v22, %v11421_v22  ;;  %v4711_v26 = vadd.f32 %v4583_v36, %v11386_v48  ;;  %v13099_v3 = vld [vmem:[#allocation70_spill] sm:$0xff]  ;;  %v13101_v36 = vld [vmem:[#allocation85_spill] sm:$0xff] }
 0xa18   : > { %5823 = vmatmul.mubr.bf16.gmra.mrb[244].mxu1 %v5434_v43  ;;  %v4838_v45 = vmul.f32 0.7978846, %v4710_v17  ;;  %v4585_v23 = vmul.f32 0.044715, %v4457_v1  ;;  %v4459_v55 = vmul.f32 %v4331_v25, %v11413_v9  ;;  %v4840_v16 = vmul.f32 0.7978846, %v4712_v44 }
 0xa19   : > { %5984 = vmatmul.mubr.bf16.gmra.mrb[244].mxu0 %v5436_v60  ;;  %v4586_v59 = vmul.f32 0.044715, %v4458_v37  ;;  %v4588_v14 = vmul.f32 0.044715, %v4460_v41  ;;  %v4461_v6 = vmul.f32 %v4333_v58, %v11421_v22  ;;  %v4839_v31 = vmul.f32 0.7978846, %v4711_v26 }
 0xa1a   : > { %8094 = vtanh.f32 %v4838_v45  ;;  %v4713_v29 = vadd.f32 %v4585_v23, %v11397_v7  ;;  %v4587_v63 = vmul.f32 0.044715, %v4459_v55  ;;  %v11441_v18 = vadd.f32 %v13091_v34, %v10190_v21  ;;  %v13103_v26 = vld [vmem:[#allocation57_spill] sm:$0xff] }
 0xa1b   : > { %8096 = vtanh.f32 %v4840_v16  ;;  %v4714_v28 = vadd.f32 %v4586_v59, %v11402_v2  ;;  %v4716_v8 = vadd.f32 %v4588_v14, %v11406_v38  ;;  %v4589_v62 = vmul.f32 0.044715, %v4461_v6  ;;  %v13105_v6 = vld [vmem:[#allocation86_spill] sm:$0xff] }
 0xa1c   : > { %8098 = vtanh.f32 %v4839_v31  ;;  %v4841_v5 = vmul.f32 0.7978846, %v4713_v29  ;;  %v4715_v49 = vadd.f32 %v4587_v63, %v11413_v9  ;;  %13092 = vst [vmem:[#allocation102_spill] sm:$0xff] %v11441_v18  ;;  %v11446_v39 = vadd.f32 %v13093_v32, %v10194_v4 }
 0xa1d   : > { %v4842_v13 = vmul.f32 0.7978846, %v4714_v28  ;;  %v4844_v24 = vmul.f32 0.7978846, %v4716_v8  ;;  %v4717_v43 = vadd.f32 %v4589_v62, %v11421_v22  ;;  %v4334_v60 = vmul.f32 %v11441_v18, %v11441_v18 }
 0xa1e   : > { %13094 = vst [vmem:[#allocation29_spill] sm:$0xff] %v11446_v39  ;;  %8100 = vtanh.f32 %v4841_v5  ;;  %v4843_v20 = vmul.f32 0.7978846, %v4715_v49  ;;  %v11452_v12 = vadd.f32 %v13095_v53, %v13082_v52  ;;  %v4336_v46 = vmul.f32 %v11446_v39, %v11446_v39 }
 0xa1f   : > { %8102 = vtanh.f32 %v4842_v13  ;;  %v4845_v19 = vmul.f32 0.7978846, %v4717_v43  ;;  %v11458_v10 = vadd.f32 %v13097_v0, %v13085_v47  ;;  %v4462_v56 = vmul.f32 %v4334_v60, %v11441_v18 }
 0xa20   : > { %13096 = vst [vmem:[#allocation30_spill] sm:$0xff] %v11452_v12  ;;  %8104 = vtanh.f32 %v4844_v24  ;;  %v4335_v11 = vmul.f32 %v11452_v12, %v11452_v12  ;;  %v11465_v61 = vadd.f32 %v13099_v3, %v10190_v21  ;;  %v4464_v30 = vmul.f32 %v4336_v46, %v11446_v39 }
 0xa21   : > { %13098 = vst [vmem:[#allocation28_spill] sm:$0xff] %v11458_v10  ;;  %8106 = vtanh.f32 %v4843_v20  ;;  %v4337_v17 = vmul.f32 %v11458_v10, %v11458_v10  ;;  %v11472_v1 = vadd.f32 %v13101_v36, %v10194_v4  ;;  %v4590_v25 = vmul.f32 0.044715, %v4462_v56 }
 0xa22   : > { %13100 = vst [vmem:[#allocation53_spill] sm:$0xff] %v11465_v61  ;;  %8108 = vtanh.f32 %v4845_v19  ;;  %v4463_v44 = vmul.f32 %v4335_v11, %v11452_v12  ;;  %v4338_v37 = vmul.f32 %v11465_v61, %v11465_v61  ;;  %v4592_v41 = vmul.f32 0.044715, %v4464_v30 }
 0xa23   : > { %13102 = vst [vmem:[#allocation50_spill] sm:$0xff] %v11472_v1  ;;  %v4465_v58 = vmul.f32 %v4337_v17, %v11458_v10  ;;  %v4340_v45 = vmul.f32 %v11472_v1, %v11472_v1  ;;  %v11482_v23 = vadd.f32 %v13103_v26, %v13082_v52  ;;  %v4718_v16 = vadd.f32 %v4590_v25, %v11441_v18  ;;  %v13108_v26 = vld [vmem:[#allocation89_spill] sm:$0xff] }
 0xa24   : > { %v11484_v55 = vpop.eup %8094  ;;  %v4591_v59 = vmul.f32 0.044715, %v4463_v44  ;;  %v4466_v14 = vmul.f32 %v4338_v37, %v11465_v61  ;;  %v11490_v31 = vadd.f32 %v13105_v6, %v13085_v47  ;;  %v4720_v63 = vadd.f32 %v4592_v41, %v11446_v39  ;;  %v13107_v44 = vld [vmem:[#allocation61_spill] sm:$0xff] }
 0xa25   : > { %13104 = vst [vmem:[#allocation69_spill] sm:$0xff] %v11482_v23  ;;  %v11492_v29 = vpop.eup %8096  ;;  %v4593_v28 = vmul.f32 0.044715, %v4465_v58  ;;  %v4468_v8 = vmul.f32 %v4340_v45, %v11472_v1  ;;  %v4339_v62 = vmul.f32 %v11482_v23, %v11482_v23  ;;  %v4846_v49 = vmul.f32 0.7978846, %v4718_v16 }
 0xa26   : > { %13106 = vst [vmem:[#allocation68_spill] sm:$0xff] %v11490_v31  ;;  %v11498_v5 = vpop.eup %8098  ;;  %v4719_v34 = vadd.f32 %v4591_v59, %v11452_v12  ;;  %v4594_v13 = vmul.f32 0.044715, %v4466_v14  ;;  %v4341_v24 = vmul.f32 %v11490_v31, %v11490_v31  ;;  %v4848_v43 = vmul.f32 0.7978846, %v4720_v63  ;;  %v13109_v63 = vld [vmem:[#allocation58_spill] sm:$0xff] }
 0xa27   : > { %v4721_v32 = vadd.f32 %v4593_v28, %v11458_v10  ;;  %v4596_v20 = vmul.f32 0.044715, %v4468_v8  ;;  %v4467_v60 = vmul.f32 %v4339_v62, %v11482_v23  ;;  %8110 = vtanh.f32 %v4846_v49 }
 0xa28   : > { %v11505_v53 = vpop.eup %8100  ;;  %v4847_v19 = vmul.f32 0.7978846, %v4719_v34  ;;  %v4722_v46 = vadd.f32 %v4594_v13, %v11465_v61  ;;  %v4469_v0 = vmul.f32 %v4341_v24, %v11490_v31  ;;  %8112 = vtanh.f32 %v4848_v43  ;;  %v13112_v43 = vld [vmem:[#allocation66_spill] sm:$0xff] }
 0xa29   : > { %v11509_v56 = vpop.eup %8102  ;;  %v4849_v11 = vmul.f32 0.7978846, %v4721_v32  ;;  %v4724_v3 = vadd.f32 %v4596_v20, %v11472_v1  ;;  %v4595_v30 = vmul.f32 0.044715, %v4467_v60  ;;  %v11516_v37 = vadd.f32 %v13107_v44, %v10190_v21 }
 0xa2a   : > { %v11512_v17 = vpop.eup %8104  ;;  %8114 = vtanh.f32 %v4847_v19  ;;  %v4850_v36 = vmul.f32 0.7978846, %v4722_v46  ;;  %v4597_v25 = vmul.f32 0.044715, %v4469_v0  ;;  %v11523_v16 = vadd.f32 %v13108_v26, %v10194_v4  ;;  %v13113_v19 = vld [vmem:[#allocation90_spill] sm:$0xff] }
 0xa2b   : > { %v11518_v41 = vpop.eup %8106  ;;  %8116 = vtanh.f32 %v4849_v11  ;;  %v4852_v58 = vmul.f32 0.7978846, %v4724_v3  ;;  %v4723_v45 = vadd.f32 %v4595_v30, %v11482_v23  ;;  %v4342_v6 = vmul.f32 %v11516_v37, %v11516_v37 }
 0xa2c   : > { %v11525_v59 = vpop.eup %8108  ;;  %8118 = vtanh.f32 %v4850_v36  ;;  %v4725_v14 = vadd.f32 %v4597_v25, %v11490_v31  ;;  %v11532_v28 = vadd.f32 %v13109_v63, %v13082_v52  ;;  %v4344_v62 = vmul.f32 %v11523_v16, %v11523_v16 }
 0xa2d   : > { %8120 = vtanh.f32 %v4852_v58  ;;  %v4851_v8 = vmul.f32 0.7978846, %v4723_v45  ;;  %v11538_v49 = vadd.f32 %v11214_v33, %v13085_v47  ;;  %v4470_v13 = vmul.f32 %v4342_v6, %v11516_v37 }
 0xa2e   : > { %13110 = vst [vmem:[#allocation15_spill] sm:$0xff] %v11532_v28  ;;  %v4853_v34 = vmul.f32 0.7978846, %v4725_v14  ;;  %v4343_v24 = vmul.f32 %v11532_v28, %v11532_v28  ;;  %v11545_v32 = vadd.f32 %v13112_v43, %v10190_v21  ;;  %v4472_v20 = vmul.f32 %v4344_v62, %v11523_v16  ;;  %v13116_v14 = vld [vmem:[#allocation91_spill] sm:$0xff] }
 0xa2f   : > { %13111 = vst [vmem:[#allocation27_spill] sm:$0xff] %v11538_v49  ;;  %8122 = vtanh.f32 %v4851_v8  ;;  %v4345_v60 = vmul.f32 %v11538_v49, %v11538_v49  ;;  %v11552_v33 = vadd.f32 %v13113_v19, %v10194_v4  ;;  %v4598_v46 = vmul.f32 0.044715, %v4470_v13 }
 0xa30   : > { %8124 = vtanh.f32 %v4853_v34  ;;  %v4471_v0 = vmul.f32 %v4343_v24, %v11532_v28  ;;  %v4346_v11 = vmul.f32 %v11545_v32, %v11545_v32  ;;  %v4600_v3 = vmul.f32 0.044715, %v4472_v20 }
 0xa31   : > { %v4473_v30 = vmul.f32 %v4345_v60, %v11538_v49  ;;  %v4348_v36 = vmul.f32 %v11552_v33, %v11552_v33  ;;  %v11562_v25 = vadd.f32 %v11224_v51, %v13082_v52  ;;  %v11564_v44 = vpop.eup %8110  ;;  %v4726_v58 = vadd.f32 %v4598_v46, %v11516_v37 }
 0xa32   : > { %13115 = vst [vmem:[#allocation17_spill] sm:$0xff] %v11564_v44  ;;  %v4599_v45 = vmul.f32 0.044715, %v4471_v0  ;;  %v4474_v26 = vmul.f32 %v4346_v11, %v11545_v32  ;;  %v11570_v6 = vadd.f32 %v13116_v14, %v13085_v47  ;;  %v11572_v63 = vpop.eup %8112  ;;  %v4728_v8 = vadd.f32 %v4600_v3, %v11523_v16 }
 0xa33   : > { %13114 = vst [vmem:[#allocation55_spill] sm:$0xff] %v11562_v25  ;;  %13118 = vst [vmem:[#allocation73_spill] sm:$0xff] %v11572_v63  ;;  %v4601_v62 = vmul.f32 0.044715, %v4473_v30  ;;  %v4476_v34 = vmul.f32 %v4348_v36, %v11552_v33  ;;  %v4347_v51 = vmul.f32 %v11562_v25, %v11562_v25  ;;  %v4854_v24 = vmul.f32 0.7978846, %v4726_v58 }
 0xa34   : > { %13117 = vst [vmem:[#allocation19_spill] sm:$0xff] %v11570_v6  ;;  %v11578_v13 = vpop.eup %8114  ;;  %v4727_v43 = vadd.f32 %v4599_v45, %v11532_v28  ;;  %v4602_v20 = vmul.f32 0.044715, %v4474_v26  ;;  %v4349_v60 = vmul.f32 %v11570_v6, %v11570_v6  ;;  %v4856_v46 = vmul.f32 0.7978846, %v4728_v8 }
 0xa35   : > { %v11583_v19 = vpop.eup %8116  ;;  %v4729_v0 = vadd.f32 %v4601_v62, %v11538_v49  ;;  %v4604_v11 = vmul.f32 0.044715, %v4476_v34  ;;  %v4475_v3 = vmul.f32 %v4347_v51, %v11562_v25  ;;  %8126 = vtanh.f32 %v4854_v24 }
 0xa36   : > { %v11587_v30 = vpop.eup %8118  ;;  %v4855_v36 = vmul.f32 0.7978846, %v4727_v43  ;;  %v4730_v58 = vadd.f32 %v4602_v20, %v11545_v32  ;;  %v4477_v45 = vmul.f32 %v4349_v60, %v11570_v6  ;;  %8128 = vtanh.f32 %v4856_v46  ;;  %v13121_v60 = vld [vmem:[#allocation92_spill] sm:$0xff] }
 0xa37   : > { %13119 = vst [vmem:[#allocation56_spill] sm:$0xff] %v11587_v30  ;;  %v11591_v26 = vpop.eup %8120  ;;  %v4857_v14 = vmul.f32 0.7978846, %v4729_v0  ;;  %v4732_v28 = vadd.f32 %v4604_v11, %v11552_v33  ;;  %v4603_v8 = vmul.f32 0.044715, %v4475_v3  ;;  %v11596_v51 = vadd.f32 %v11235_v35, %v10190_v21  ;;  %v13122_v35 = vld [vmem:[#allocation93_spill] sm:$0xff] }
 0xa38   : > { %13120 = vst [vmem:[#allocation34_spill] sm:$0xff] %v11591_v26  ;;  %8130 = vtanh.f32 %v4855_v36  ;;  %v4858_v62 = vmul.f32 0.7978846, %v4730_v58  ;;  %v4605_v34 = vmul.f32 0.044715, %v4477_v45  ;;  %v11603_v46 = vadd.f32 %v13121_v60, %v10194_v4  ;;  %v13124_v45 = vld [vmem:[#allocation94_spill] sm:$0xff] }
 0xa39   : > { %v11598_v24 = vpop.eup %8122  ;;  %8132 = vtanh.f32 %v4857_v14  ;;  %v4860_v43 = vmul.f32 0.7978846, %v4732_v28  ;;  %v4731_v20 = vadd.f32 %v4603_v8, %v11562_v25  ;;  %v4350_v3 = vmul.f32 %v11596_v51, %v11596_v51  ;;  %v13126_v60 = vld [vmem:[#allocation81_spill] sm:$0xff] }
 0xa3a   : > { %v11605_v0 = vpop.eup %8124  ;;  %8134 = vtanh.f32 %v4858_v62  ;;  %v4733_v11 = vadd.f32 %v4605_v34, %v11570_v6  ;;  %v11612_v36 = vadd.f32 %v13122_v35, %v13082_v52  ;;  %v4352_v58 = vmul.f32 %v11603_v46, %v11603_v46  ;;  %v13127_v35 = vld [vmem:[#allocation82_spill] sm:$0xff] }
 0xa3b   : > { %8136 = vtanh.f32 %v4860_v43  ;;  %v4859_v28 = vmul.f32 0.7978846, %v4731_v20  ;;  %v11618_v14 = vadd.f32 %v13124_v45, %v13085_v47  ;;  %v4478_v62 = vmul.f32 %v4350_v3, %v11596_v51 }
 0xa3c   : > { %13123 = vst [vmem:[#allocation31_spill] sm:$0xff] %v11612_v36  ;;  %v4861_v8 = vmul.f32 0.7978846, %v4733_v11  ;;  %v4351_v34 = vmul.f32 %v11612_v36, %v11612_v36  ;;  %v11625_v6 = vadd.f32 %v13126_v60, %v10190_v21  ;;  %v4480_v43 = vmul.f32 %v4352_v58, %v11603_v46  ;;  %v13128_v58 = vld [vmem:[#allocation71_spill] sm:$0xff] }
 0xa3d   : > { %13125 = vst [vmem:[#allocation75_spill] sm:$0xff] %v11618_v14  ;;  %8138 = vtanh.f32 %v4859_v28  ;;  %v4353_v20 = vmul.f32 %v11618_v14, %v11618_v14  ;;  %v11632_v45 = vadd.f32 %v13127_v35, %v10194_v4  ;;  %v4606_v11 = vmul.f32 0.044715, %v4478_v62 }
 0xa3e   : > { %8140 = vtanh.f32 %v4861_v8  ;;  %v4479_v3 = vmul.f32 %v4351_v34, %v11612_v36  ;;  %v4354_v49 = vmul.f32 %v11625_v6, %v11625_v6  ;;  %v4608_v25 = vmul.f32 0.044715, %v4480_v43  ;;  %v13130_v34 = vld [vmem:[#allocation83_spill] sm:$0xff] }
 0xa3f   : > { %v4481_v60 = vmul.f32 %v4353_v20, %v11618_v14  ;;  %v4356_v28 = vmul.f32 %v11632_v45, %v11632_v45  ;;  %v11642_v1 = vadd.f32 %v13128_v58, %v13082_v52  ;;  %v8127_v39 = vpop.eup %8126  ;;  %v4734_v35 = vadd.f32 %v4606_v11, %v11596_v51 }
 0xa40   : > { %v4607_v8 = vmul.f32 0.044715, %v4479_v3  ;;  %v4482_v62 = vmul.f32 %v4354_v49, %v11625_v6  ;;  %v11648_v61 = vadd.f32 %v13130_v34, %v13085_v47  ;;  %v8129_v43 = vpop.eup %8128  ;;  %v5110_v18 = vadd.f32 1.0, %v8127_v39 }
 0xa41   : > { %13129 = vst [vmem:[#allocation52_spill] sm:$0xff] %v11642_v1  ;;  %v4736_v20 = vadd.f32 %v4608_v25, %v11603_v46  ;;  %v4609_v26 = vmul.f32 0.044715, %v4481_v60  ;;  %v4484_v31 = vmul.f32 %v4356_v28, %v11632_v45  ;;  %v5112_v58 = vadd.f32 1.0, %v8129_v43 }
 0xa42   : > { %13131 = vst [vmem:[#allocation72_spill] sm:$0xff] %v11648_v61  ;;  %v11652_v63 = vpop.eup %8130  ;;  %v4862_v30 = vmul.f32 0.7978846, %v4734_v35  ;;  %v4735_v11 = vadd.f32 %v4607_v8, %v11612_v36  ;;  %v4610_v3 = vmul.f32 0.044715, %v4482_v62  ;;  %v5238_v49 = vmul.f32 0.5, %v5110_v18 }
 0xa43   : > { %v11655_v10 = vpop.eup %8132  ;;  %v4864_v44 = vmul.f32 0.7978846, %v4736_v20  ;;  %v4737_v34 = vadd.f32 %v4609_v26, %v11618_v14  ;;  %v4612_v23 = vmul.f32 0.044715, %v4484_v31  ;;  %v5240_v12 = vmul.f32 0.5, %v5112_v58 }
 0xa44   : > { %v8135_v39 = vpop.eup %8134  ;;  %8142 = vtanh.f32 %v4862_v30  ;;  %v4863_v25 = vmul.f32 0.7978846, %v4735_v11  ;;  %v4738_v60 = vadd.f32 %v4610_v3, %v11625_v6  ;;  %v11660_v43 = vmul.f32 %v5238_v49, %v11516_v37 }
 0xa45   : > { %v8137_v28 = vpop.eup %8136  ;;  %v5114_v35 = vadd.f32 1.0, %v8135_v39  ;;  %8144 = vtanh.f32 %v4864_v44  ;;  %v4865_v8 = vmul.f32 0.7978846, %v4737_v34  ;;  %v11663_v62 = vmul.f32 %v5240_v12, %v11523_v16  ;;  %v13134_v16 = vld [vmem:[#allocation74_spill] sm:$0xff]  ;;  %v13136_v34 = vld [vmem:[#allocation88_spill] sm:$0xff] }
 0xa46   : > { %13132 = vst [vmem:[#allocation64_spill] sm:$0xff] %v11660_v43  ;;  %v5116_v18 = vadd.f32 1.0, %v8137_v28  ;;  %8146 = vtanh.f32 %v4863_v25  ;;  %v4866_v26 = vmul.f32 0.7978846, %v4738_v60  ;;  %v4740_v30 = vadd.f32 %v4612_v23, %v11632_v45 }
 0xa47   : > { %13133 = vst [vmem:[#allocation63_spill] sm:$0xff] %v11663_v62  ;;  %v11665_v31 = vpop.eup %8138  ;;  %v5242_v20 = vmul.f32 0.5, %v5114_v35  ;;  %8148 = vtanh.f32 %v4865_v8  ;;  %v4355_v58 = vmul.f32 %v11642_v1, %v11642_v1  ;;  %v4357_v12 = vmul.f32 %v11648_v61, %v11648_v61  ;;  %v13138_v35 = vld [vmem:[#allocation96_spill] sm:$0xff] }
 0xa48   : > { %v11670_v37 = vpop.eup %8140  ;;  %v5244_v11 = vmul.f32 0.5, %v5116_v18  ;;  %8150 = vtanh.f32 %v4866_v26  ;;  %v11676_v44 = vadd.f32 %v13134_v16, %v10190_v21  ;;  %v4868_v49 = vmul.f32 0.7978846, %v4740_v30  ;;  %v13139_v16 = vld [vmem:[#allocation97_spill] sm:$0xff] }
 0xa49   : > { %v11679_v3 = vmul.f32 %v5242_v20, %v11545_v32  ;;  %v4483_v23 = vmul.f32 %v4355_v58, %v11642_v1  ;;  %v11684_v39 = vadd.f32 %v13136_v34, %v10194_v4  ;;  %v4485_v60 = vmul.f32 %v4357_v12, %v11648_v61  ;;  %v13141_v32 = vld [vmem:[#allocation54_spill] sm:$0xff] }
 0xa4a   : > { %v11687_v25 = vmul.f32 %v5244_v11, %v11552_v33  ;;  %v4358_v28 = vmul.f32 %v11676_v44, %v11676_v44  ;;  %v11694_v8 = vadd.f32 %v13138_v35, %v13082_v52  ;;  %8152 = vtanh.f32 %v4868_v49 }
 0xa4b   : > { %13135 = vst [vmem:[#allocation65_spill] sm:$0xff] %v11679_v3  ;;  %v4611_v18 = vmul.f32 0.044715, %v4483_v23  ;;  %v4360_v26 = vmul.f32 %v11684_v39, %v11684_v39  ;;  %v4613_v20 = vmul.f32 0.044715, %v4485_v60  ;;  %v11709_v49 = vadd.f32 %v13139_v16, %v13085_v47  ;;  %v13140_v23 = vld [vmem:[#allocation98_spill] sm:$0xff] }
 0xa4c   : > { %13137 = vst [vmem:[#allocation33_spill] sm:$0xff] %v11687_v25  ;;  %v4486_v30 = vmul.f32 %v4358_v28, %v11676_v44  ;;  %v4359_v58 = vmul.f32 %v11694_v8, %v11694_v8  ;;  %v11713_v34 = vadd.f32 %v13140_v23, %v10190_v21  ;;  %v11719_v62 = vadd.f32 %v13141_v32, %v10194_v4 }
 0xa4d   : > { %v4739_v11 = vadd.f32 %v4611_v18, %v11642_v1  ;;  %v4488_v12 = vmul.f32 %v4360_v26, %v11684_v39  ;;  %v4741_v60 = vadd.f32 %v4613_v20, %v11648_v61  ;;  %v4361_v16 = vmul.f32 %v11709_v49, %v11709_v49 }
 0xa4e   : > { %v8143_v35 = vpop.eup %8142  ;;  %v4614_v33 = vmul.f32 0.044715, %v4486_v30  ;;  %v4487_v28 = vmul.f32 %v4359_v58, %v11694_v8 }
 0xa4f   : > { %v8145_v18 = vpop.eup %8144  ;;  %v5118_v26 = vadd.f32 1.0, %v8143_v35  ;;  %v4867_v25 = vmul.f32 0.7978846, %v4739_v11  ;;  %v4616_v43 = vmul.f32 0.044715, %v4488_v12  ;;  %v4489_v35 = vmul.f32 %v4361_v16, %v11709_v49 }
 0xa50   : > { %v11723_v3 = vpop.eup %8146  ;;  %v5120_v23 = vadd.f32 1.0, %v8145_v18  ;;  %v4869_v14 = vmul.f32 0.7978846, %v4741_v60  ;;  %v4742_v20 = vadd.f32 %v4614_v33, %v11676_v44  ;;  %v4615_v30 = vmul.f32 0.044715, %v4487_v28 }
 0xa51   : > { %v11726_v61 = vpop.eup %8148  ;;  %v5246_v58 = vmul.f32 0.5, %v5118_v26  ;;  %8154 = vtanh.f32 %v4867_v25  ;;  %v4744_v32 = vadd.f32 %v4616_v43, %v11684_v39  ;;  %v4617_v28 = vmul.f32 0.044715, %v4489_v35 }
 0xa52   : > { %13142 = vst [vmem:[#allocation32_spill] sm:$0xff] %v11726_v61  ;;  %v8151_v11 = vpop.eup %8150  ;;  %v5248_v12 = vmul.f32 0.5, %v5120_v23  ;;  %8156 = vtanh.f32 %v4869_v14  ;;  %v4870_v1 = vmul.f32 0.7978846, %v4742_v20  ;;  %v4743_v36 = vadd.f32 %v4615_v30, %v11694_v8 }
 0xa53   : > { %v11732_v18 = vmul.f32 %v5246_v58, %v11596_v51  ;;  %v5122_v60 = vadd.f32 1.0, %v8151_v11  ;;  %v4872_v33 = vmul.f32 0.7978846, %v4744_v32  ;;  %v4362_v43 = vmul.f32 %v11713_v34, %v11713_v34  ;;  %v13147_v32 = vld [vmem:[#allocation103_spill] sm:$0xff] }
 0xa54   : > { %v11735_v61 = vmul.f32 %v5248_v12, %v11603_v46  ;;  %8158 = vtanh.f32 %v4870_v1  ;;  %v4871_v25 = vmul.f32 0.7978846, %v4743_v36  ;;  %v8153_v26 = vpop.eup %8152  ;;  %v4745_v14 = vadd.f32 %v4617_v28, %v11709_v49  ;;  %v13145_v46 = vld [vmem:[#allocation62_spill] sm:$0xff] }
 0xa55   : > { %13143 = vst [vmem:[#allocation51_spill] sm:$0xff] %v11732_v18  ;;  %v5250_v16 = vmul.f32 0.5, %v5122_v60  ;;  %8160 = vtanh.f32 %v4872_v33  ;;  %v4364_v51 = vmul.f32 %v11719_v62, %v11719_v62  ;;  %v5124_v23 = vadd.f32 1.0, %v8153_v26 }
 0xa56   : > { %13144 = vst [vmem:[#allocation26_spill] sm:$0xff] %v11735_v61  ;;  %8162 = vtanh.f32 %v4871_v25  ;;  %v4490_v20 = vmul.f32 %v4362_v43, %v11713_v34  ;;  %v11745_v30 = vadd.f32 %v13145_v46, %v13082_v52  ;;  %v4873_v36 = vmul.f32 0.7978846, %v4745_v14 }
 0xa57   : > { %v11748_v1 = vmul.f32 %v5250_v16, %v11625_v6  ;;  %v4492_v58 = vmul.f32 %v4364_v51, %v11719_v62  ;;  %v11753_v35 = vadd.f32 %v13147_v32, %v13085_v47  ;;  %v5252_v11 = vmul.f32 0.5, %v5124_v23 }
 0xa58   : > { %v4618_v12 = vmul.f32 0.044715, %v4490_v20  ;;  %v4363_v60 = vmul.f32 %v11745_v30, %v11745_v30  ;;  %v5095_v33 = vadd.f32 1.0, %v11498_v5  ;;  %8164 = vtanh.f32 %v4873_v36 }
 0xa59   : > { %13146 = vst [vmem:[#allocation76_spill] sm:$0xff] %v11748_v1  ;;  %v4620_v6 = vmul.f32 0.044715, %v4492_v58  ;;  %v4365_v25 = vmul.f32 %v11753_v35, %v11753_v35  ;;  %v11763_v43 = vmul.f32 %v5252_v11, %v11632_v45  ;;  %v5099_v14 = vadd.f32 1.0, %v11518_v41 }
 0xa5a   : > { %v4746_v26 = vadd.f32 %v4618_v12, %v11713_v34  ;;  %v4491_v16 = vmul.f32 %v4363_v60, %v11745_v30  ;;  %v5223_v20 = vmul.f32 0.5, %v5095_v33  ;;  %v5097_v46 = vadd.f32 1.0, %v11505_v53 }
 0xa5b   : > { %13148 = vst [vmem:[#allocation95_spill] sm:$0xff] %v11763_v43  ;;  %v11768_v51 = vpop.eup %8154  ;;  %v4748_v5 = vadd.f32 %v4620_v6, %v11719_v62  ;;  %v4493_v23 = vmul.f32 %v4365_v25, %v11753_v35  ;;  %v5227_v11 = vmul.f32 0.5, %v5099_v14  ;;  %v5101_v28 = vadd.f32 1.0, %v11525_v59 }
 0xa5c   : > { %v11773_v36 = vpop.eup %8156  ;;  %v4874_v58 = vmul.f32 0.7978846, %v4746_v26  ;;  %v4619_v32 = vmul.f32 0.044715, %v4491_v16  ;;  %v5351_v41 = vmul.f32 %v5223_v20, %v11386_v48  ;;  %v5225_v25 = vmul.f32 0.5, %v5097_v46 }
 0xa5d   : > { %v4876_v12 = vmul.f32 0.7978846, %v4748_v5  ;;  %v4621_v60 = vmul.f32 0.044715, %v4493_v23  ;;  %v5355_v53 = vmul.f32 %v5227_v11, %v11413_v9  ;;  %v5229_v16 = vmul.f32 0.5, %v5101_v28 }
 0xa5e   : > { %v8159_v6 = vpop.eup %8158  ;;  %8166 = vtanh.f32 %v4874_v58  ;;  %v4747_v33 = vadd.f32 %v4619_v32, %v11745_v30  ;;  %v5353_v59 = vmul.f32 %v5225_v25, %v11397_v7  ;;  %v11785_v20 = vpop.f32.mrb[208].mxu1  ;;  %v5094_v46 = vadd.f32 1.0, %v11484_v55 }
 0xa5f   : > { %v8161_v18 = vpop.eup %8160  ;;  %v5126_v1 = vadd.f32 1.0, %v8159_v6  ;;  %8168 = vtanh.f32 %v4876_v12  ;;  %v4749_v26 = vadd.f32 %v4621_v60, %v11753_v35  ;;  %v5439_v48 = vpack.c.bf16 %v5355_v53, %v5351_v41  ;;  %v11789_v11 = vpop.f32.mrb[209].mxu1 }
 0xa60   : > { %v11782_v14 = vpop.eup %8162  ;;  %v5128_v5 = vadd.f32 1.0, %v8161_v18  ;;  %v4875_v23 = vmul.f32 0.7978846, %v4747_v33  ;;  %v5357_v9 = vmul.f32 %v5229_v16, %v11421_v22  ;;  %v5098_v28 = vadd.f32 1.0, %v11509_v56  ;;  %v11793_v60 = vpop.f32.mrb[210].mxu1 }
 0xa61   : > { %v5254_v58 = vmul.f32 0.5, %v5126_v1  ;;  %v4877_v32 = vmul.f32 0.7978846, %v4749_v26  ;;  %5830 = vmatprep.mubr.bf16.mxu1 %v5439_v48  ;;  %v5096_v18 = vadd.f32 1.0, %v11492_v29  ;;  %v5222_v41 = vmul.f32 0.5, %v5094_v46  ;;  %v11800_v55 = vpop.f32.mrb[211].mxu1 }
 0xa62   : > { %v5256_v12 = vmul.f32 0.5, %v5128_v5  ;;  %8170 = vtanh.f32 %v4875_v23  ;;  %v11795_v7 = vpop.eup %8164  ;;  %v5441_v22 = vpack.c.bf16 %v5357_v9, %v5353_v59  ;;  %v5226_v33 = vmul.f32 0.5, %v5098_v28  ;;  %v11806_v29 = vpop.f32.mrb[208].mxu0  ;;  %v13152_v46 = vld [vmem:[#allocation101_spill] sm:$0xff] }
 0xa63   : > { %v11798_v1 = vmul.f32 %v5254_v58, %v11676_v44  ;;  %8172 = vtanh.f32 %v4877_v32  ;;  %v5100_v56 = vadd.f32 1.0, %v11512_v17  ;;  %v5224_v53 = vmul.f32 0.5, %v5096_v18  ;;  %v11821_v16 = vpop.f32.mrb[209].mxu0 }
 0xa64   : > { %v11803_v6 = vmul.f32 %v5256_v12, %v11684_v39  ;;  %5991 = vmatprep.mubr.bf16.mxu0 %v5441_v22  ;;  %v5350_v25 = vmul.f32 %v5222_v41, %v11374_v40  ;;  %v11811_v44 = vadd.f32 %v11318_v42, %v10190_v21  ;;  %v11815_v26 = vadd.f32 %v11320_v15, %v10194_v4  ;;  %v11829_v42 = vpop.f32.mrb[210].mxu0 }
 0xa65   : > { %13149 = vst [vmem:[#allocation16_spill] sm:$0xff] %v11798_v1  ;;  %v11819_v39 = vadd.f32 %v11324_v27, %v13082_v52  ;;  %v5354_v17 = vmul.f32 %v5226_v33, %v11402_v2  ;;  %v5228_v5 = vmul.f32 0.5, %v5100_v56  ;;  %v5352_v23 = vmul.f32 %v5224_v53, %v11379_v50  ;;  %v13151_v2 = vld [vmem:[#allocation99_spill] sm:$0xff]  ;;  %v11841_v50 = vpop.f32.mrb[211].mxu0 }
 0xa66   : > { %13150 = vst [vmem:[#allocation77_spill] sm:$0xff] %v11803_v6  ;;  %v11827_v40 = vadd.f32 %v11326_v54, %v13085_v47  ;;  %v4366_v15 = vmul.f32 %v11811_v44, %v11811_v44  ;;  %v4368_v27 = vmul.f32 %v11815_v26, %v11815_v26  ;;  %v11839_v59 = vadd.f32 %v13151_v2, %v10190_v21 }
 0xa67   : > { %v4367_v48 = vmul.f32 %v11819_v39, %v11819_v39  ;;  %v5438_v54 = vpack.c.bf16 %v5354_v17, %v5350_v25  ;;  %v5356_v32 = vmul.f32 %v5228_v5, %v11406_v38  ;;  %v11848_v12 = vadd.f32 %v13152_v46, %v10194_v4 }
 0xa68   : > { %v8167_v58 = vpop.eup %8166  ;;  %v4369_v9 = vmul.f32 %v11827_v40, %v11827_v40  ;;  %v4494_v22 = vmul.f32 %v4366_v15, %v11811_v44  ;;  %v4496_v21 = vmul.f32 %v4368_v27, %v11815_v26  ;;  %v4370_v53 = vmul.f32 %v11839_v59, %v11839_v59 }
 0xa69   : > { %v8169_v28 = vpop.eup %8168  ;;  %v5130_v18 = vadd.f32 1.0, %v8167_v58  ;;  %v4495_v41 = vmul.f32 %v4367_v48, %v11819_v39  ;;  %5831 = vmatmul.mubr.bf16.gmra.mrb[248].mxu1 %v5438_v54  ;;  %v5440_v56 = vpack.c.bf16 %v5356_v32, %v5352_v23  ;;  %v4372_v5 = vmul.f32 %v11848_v12, %v11848_v12 }
 0xa6a   : > { %v5132_v33 = vadd.f32 1.0, %v8169_v28  ;;  %v4497_v38 = vmul.f32 %v4369_v9, %v11827_v40  ;;  %v4622_v17 = vmul.f32 0.044715, %v4494_v22  ;;  %v4624_v4 = vmul.f32 0.044715, %v4496_v21 }
 0xa6b   : > { %v5258_v25 = vmul.f32 0.5, %v5130_v18  ;;  %5992 = vmatmul.mubr.bf16.gmra.mrb[248].mxu0 %v5440_v56  ;;  %v4623_v27 = vmul.f32 0.044715, %v4495_v41  ;;  %v4498_v58 = vmul.f32 %v4370_v53, %v11839_v59  ;;  %v4500_v46 = vmul.f32 %v4372_v5, %v11848_v12 }
 0xa6c   : > { %v11858_v2 = vpop.eup %8170  ;;  %v5260_v15 = vmul.f32 0.5, %v5132_v33  ;;  %v4625_v48 = vmul.f32 0.044715, %v4497_v38  ;;  %v4750_v32 = vadd.f32 %v4622_v17, %v11811_v44  ;;  %v4752_v9 = vadd.f32 %v4624_v4, %v11815_v26  ;;  %v13155_v4 = vld [vmem:[#allocation100_spill] sm:$0xff]  ;;  %v13161_v38 = vld [vmem:[#allocation73_spill] sm:$0xff] }
 0xa6d   : > { %v11861_v23 = vpop.eup %8172  ;;  %v11864_v54 = vmul.f32 %v5258_v25, %v11713_v34  ;;  %v4751_v18 = vadd.f32 %v4623_v27, %v11819_v39  ;;  %v4626_v21 = vmul.f32 0.044715, %v4498_v58  ;;  %v4628_v56 = vmul.f32 0.044715, %v4500_v46 }
 0xa6e   : > { %v11870_v28 = vmul.f32 %v5260_v15, %v11719_v62  ;;  %v4753_v22 = vadd.f32 %v4625_v48, %v11827_v40  ;;  %v4878_v33 = vmul.f32 0.7978846, %v4750_v32  ;;  %v4880_v34 = vmul.f32 0.7978846, %v4752_v9 }
 0xa6f   : > { %13153 = vst [vmem:[#allocation78_spill] sm:$0xff] %v11864_v54  ;;  %v4879_v53 = vmul.f32 0.7978846, %v4751_v18  ;;  %v4754_v17 = vadd.f32 %v4626_v21, %v11839_v59  ;;  %v4756_v62 = vadd.f32 %v4628_v56, %v11848_v12  ;;  %v11882_v5 = vadd.f32 %v13155_v4, %v13082_v52 }
 0xa70   : > { %13154 = vst [vmem:[#allocation79_spill] sm:$0xff] %v11870_v28  ;;  %v4881_v25 = vmul.f32 0.7978846, %v4753_v22  ;;  %8174 = vtanh.f32 %v4878_v33  ;;  %v11886_v15 = vadd.f32 %v11339_v57, %v13085_v47  ;;  %v5103_v48 = vadd.f32 1.0, %v11578_v13  ;;  %v13156_v22 = vld [vmem:[#allocation30_spill] sm:$0xff]  ;;  %v13157_v33 = vld [vmem:[#allocation69_spill] sm:$0xff] }
 0xa71   : > { %8176 = vtanh.f32 %v4880_v34  ;;  %v4882_v27 = vmul.f32 0.7978846, %v4754_v17  ;;  %v5107_v58 = vadd.f32 1.0, %v11598_v24  ;;  %v4884_v32 = vmul.f32 0.7978846, %v4756_v62  ;;  %v13158_v62 = vld [vmem:[#allocation17_spill] sm:$0xff] }
 0xa72   : > { %8178 = vtanh.f32 %v4879_v53  ;;  %v4371_v9 = vmul.f32 %v11882_v5, %v11882_v5  ;;  %v4373_v46 = vmul.f32 %v11886_v15, %v11886_v15  ;;  %v5231_v52 = vmul.f32 0.5, %v5103_v48 }
 0xa73   : > { %8180 = vtanh.f32 %v4881_v25  ;;  %v5235_v18 = vmul.f32 0.5, %v5107_v58  ;;  %v5105_v57 = vadd.f32 1.0, %v11583_v19  ;;  %v5109_v24 = vadd.f32 1.0, %v11605_v0  ;;  %v13159_v19 = vld [vmem:[#allocation28_spill] sm:$0xff] }
 0xa74   : > { %8182 = vtanh.f32 %v4882_v27  ;;  %v4499_v47 = vmul.f32 %v4371_v9, %v11882_v5  ;;  %v4501_v13 = vmul.f32 %v4373_v46, %v11886_v15  ;;  %v5359_v21 = vmul.f32 %v5231_v52, %v13156_v22  ;;  %v13160_v58 = vld [vmem:[#allocation56_spill] sm:$0xff]  ;;  %v11904_v41 = vpop.f32.mrb[212].mxu1  ;;  %v13163_v22 = vld [vmem:[#allocation34_spill] sm:$0xff] }
 0xa75   : > { %8184 = vtanh.f32 %v4884_v32  ;;  %v5363_v34 = vmul.f32 %v5235_v18, %v13157_v33  ;;  %v5233_v56 = vmul.f32 0.5, %v5105_v57  ;;  %v5237_v25 = vmul.f32 0.5, %v5109_v24  ;;  %v13162_v52 = vld [vmem:[#allocation68_spill] sm:$0xff] }
 0xa76   : > { %v4627_v53 = vmul.f32 0.044715, %v4499_v47  ;;  %v4629_v17 = vmul.f32 0.044715, %v4501_v13  ;;  %v5102_v4 = vadd.f32 1.0, %v13158_v62  ;;  %v5106_v9 = vadd.f32 1.0, %v13160_v58 }
 0xa77   : > { %v5443_v48 = vpack.c.bf16 %v5363_v34, %v5359_v21  ;;  %v5361_v27 = vmul.f32 %v5233_v56, %v13159_v19  ;;  %v5104_v46 = vadd.f32 1.0, %v13161_v38  ;;  %v5365_v18 = vmul.f32 %v5237_v25, %v13162_v52  ;;  %v11909_v47 = vpop.f32.mrb[212].mxu0  ;;  %v11911_v13 = vpop.f32.mrb[213].mxu1 }
 0xa78   : > { %v4755_v0 = vadd.f32 %v4627_v53, %v11882_v5  ;;  %v4757_v32 = vadd.f32 %v4629_v17, %v11886_v15  ;;  %v5230_v57 = vmul.f32 0.5, %v5102_v4  ;;  %v5234_v24 = vmul.f32 0.5, %v5106_v9  ;;  %v11915_v34 = vpop.f32.mrb[213].mxu0  ;;  %v11917_v56 = vpop.f32.mrb[214].mxu1  ;;  %v13164_v4 = vld [vmem:[#allocation102_spill] sm:$0xff] }
 0xa79   : > { %5838 = vmatprep.mubr.bf16.mxu1 %v5443_v48  ;;  %v5108_v21 = vadd.f32 1.0, %v13163_v22  ;;  %v5232_v33 = vmul.f32 0.5, %v5104_v46  ;;  %v5111_v38 = vadd.f32 1.0, %v11652_v63  ;;  %v5445_v25 = vpack.c.bf16 %v5365_v18, %v5361_v27  ;;  %v11920_v58 = vpop.f32.mrb[214].mxu0  ;;  %v11922_v52 = vpop.f32.mrb[215].mxu1  ;;  %v13165_v22 = vld [vmem:[#allocation53_spill] sm:$0xff] }
 0xa7a   : > { %v8175_v53 = vpop.eup %8174  ;;  %v4883_v17 = vmul.f32 0.7978846, %v4755_v0  ;;  %v4885_v62 = vmul.f32 0.7978846, %v4757_v32  ;;  %v5358_v19 = vmul.f32 %v5230_v57, %v13164_v4  ;;  %v5362_v46 = vmul.f32 %v5234_v24, %v13165_v22  ;;  %v13166_v63 = vld [vmem:[#allocation29_spill] sm:$0xff]  ;;  %v11926_v28 = vpop.f32.mrb[215].mxu0 }
 0xa7b   : > { %v8177_v48 = vpop.eup %8176  ;;  %v5134_v9 = vadd.f32 1.0, %v8175_v53  ;;  %v5236_v45 = vmul.f32 0.5, %v5108_v21  ;;  %v5360_v6 = vmul.f32 %v5232_v33, %v13166_v63  ;;  %5999 = vmatprep.mubr.bf16.mxu0 %v5445_v25  ;;  %v5115_v27 = vadd.f32 1.0, %v11665_v31  ;;  %v13167_v4 = vld [vmem:[#allocation50_spill] sm:$0xff]  ;;  %v13168_v22 = vld [vmem:[#allocation15_spill] sm:$0xff] }
 0xa7c   : > { %v8179_v1 = vpop.eup %8178  ;;  %v5136_v54 = vadd.f32 1.0, %v8177_v48  ;;  %8186 = vtanh.f32 %v4883_v17  ;;  %v5239_v0 = vmul.f32 0.5, %v5111_v38  ;;  %v5442_v57 = vpack.c.bf16 %v5362_v46, %v5358_v19  ;;  %v13169_v19 = vld [vmem:[#allocation55_spill] sm:$0xff] }
 0xa7d   : > { %v8181_v32 = vpop.eup %8180  ;;  %v5262_v18 = vmul.f32 0.5, %v5134_v9  ;;  %8188 = vtanh.f32 %v4885_v62  ;;  %v5364_v53 = vmul.f32 %v5236_v45, %v13167_v4  ;;  %v5243_v21 = vmul.f32 0.5, %v5115_v27 }
 0xa7e   : > { %v8183_v61 = vpop.eup %8182  ;;  %v5264_v24 = vmul.f32 0.5, %v5136_v54  ;;  %v5367_v33 = vmul.f32 %v5239_v0, %v13168_v22  ;;  %v5113_v63 = vadd.f32 1.0, %v11655_v10  ;;  %5839 = vmatmul.mubr.bf16.gmra.mrb[252].mxu1 %v5442_v57  ;;  %v5117_v38 = vadd.f32 1.0, %v11670_v37  ;;  %v13170_v0 = vld [vmem:[#allocation27_spill] sm:$0xff] }
 0xa7f   : > { %v8185_v43 = vpop.eup %8184  ;;  %v11933_v17 = vmul.f32 %v5262_v18, %v11811_v44  ;;  %v5138_v25 = vadd.f32 1.0, %v8183_v61  ;;  %v5444_v31 = vpack.c.bf16 %v5364_v53, %v5360_v6  ;;  %v5371_v54 = vmul.f32 %v5243_v21, %v13169_v19  ;;  %v13171_v18 = vld [vmem:[#allocation32_spill] sm:$0xff]  ;;  %v13175_v19 = vld [vmem:[#allocation75_spill] sm:$0xff] }
 0xa80   : > { %v11937_v62 = vmul.f32 %v5264_v24, %v11815_v26  ;;  %v5140_v45 = vadd.f32 1.0, %v8185_v43  ;;  %v5241_v48 = vmul.f32 0.5, %v5113_v63  ;;  %v5245_v46 = vmul.f32 0.5, %v5117_v38  ;;  %v13172_v43 = vld [vmem:[#allocation19_spill] sm:$0xff] }
 0xa81   : > { %v5266_v9 = vmul.f32 0.5, %v5138_v25  ;;  %6000 = vmatmul.mubr.bf16.gmra.mrb[252].mxu0 %v5444_v31  ;;  %v5119_v10 = vadd.f32 1.0, %v11723_v3  ;;  %v5123_v44 = vadd.f32 1.0, %v11768_v51  ;;  %v5447_v61 = vpack.c.bf16 %v5371_v54, %v5367_v33  ;;  %v13173_v63 = vld [vmem:[#allocation31_spill] sm:$0xff]  ;;  %v13174_v25 = vld [vmem:[#allocation52_spill] sm:$0xff] }
 0xa82   : > { %v5268_v27 = vmul.f32 0.5, %v5140_v45  ;;  %v5369_v6 = vmul.f32 %v5241_v48, %v13170_v0  ;;  %v5121_v37 = vadd.f32 1.0, %v13171_v18  ;;  %v5373_v57 = vmul.f32 %v5245_v46, %v13172_v43  ;;  %v13179_v0 = vld [vmem:[#allocation72_spill] sm:$0xff] }
 0xa83   : > { %v11945_v26 = vmul.f32 %v5266_v9, %v11839_v59  ;;  %v5247_v4 = vmul.f32 0.5, %v5119_v10  ;;  %v5251_v53 = vmul.f32 0.5, %v5123_v44  ;;  %5846 = vmatprep.mubr.bf16.mxu1 %v5447_v61  ;;  %v5125_v3 = vadd.f32 1.0, %v11773_v36  ;;  %v13177_v9 = vld [vmem:[#allocation64_spill] sm:$0xff] }
 0xa84   : > { %v11949_v24 = vmul.f32 %v5268_v27, %v11848_v12  ;;  %v5249_v51 = vmul.f32 0.5, %v5121_v37  ;;  %v5127_v21 = vadd.f32 1.0, %v11782_v14  ;;  %v5449_v33 = vpack.c.bf16 %v5373_v57, %v5369_v6  ;;  %v13176_v14 = vld [vmem:[#allocation65_spill] sm:$0xff] }
 0xa85   : > { %v5458_v22 = vpack.c.bf16 %v11945_v26, %v11933_v17  ;;  %v5375_v59 = vmul.f32 %v5247_v4, %v13173_v63  ;;  %v5379_v31 = vmul.f32 %v5251_v53, %v13174_v25  ;;  %v5253_v12 = vmul.f32 0.5, %v5125_v3  ;;  %v13180_v57 = vld [vmem:[#allocation33_spill] sm:$0xff]  ;;  %v13181_v4 = vld [vmem:[#allocation63_spill] sm:$0xff] }
 0xa86   : > { %v8187_v38 = vpop.eup %8186  ;;  %v5460_v45 = vpack.c.bf16 %v11949_v24, %v11937_v62  ;;  %v5377_v54 = vmul.f32 %v5249_v51, %v13175_v19  ;;  %v5131_v36 = vadd.f32 1.0, %v11858_v2  ;;  %6007 = vmatprep.mubr.bf16.mxu0 %v5449_v33  ;;  %v13178_v46 = vpack.c.bf16 %v13176_v14, %v13177_v9 }
 0xa87   : > { %v8189_v48 = vpop.eup %8188  ;;  %v5451_v10 = vpack.c.bf16 %v5379_v31, %v5375_v59  ;;  %v5255_v44 = vmul.f32 0.5, %v5127_v21  ;;  %v5129_v27 = vadd.f32 1.0, %v11795_v7  ;;  %v5133_v61 = vadd.f32 1.0, %v11861_v23 }
 0xa88   : > { %5847 = vmatmul.mubr.bf16.gmra.mrb[0].mxu1 %v13178_v46  ;;  %v5381_v6 = vmul.f32 %v5253_v12, %v13179_v0  ;;  %v5259_v18 = vmul.f32 0.5, %v5131_v36  ;;  %v5135_v37 = vadd.f32 1.0, %v8179_v1  ;;  %v5139_v43 = vadd.f32 1.0, %v8187_v38  ;;  %v13186_v0 = vld [vmem:[#allocation95_spill] sm:$0xff] }
 0xa89   : > { %v13182_v2 = vpack.c.bf16 %v13180_v57, %v13181_v4  ;;  %5854 = vmatprep.mubr.bf16.mxu1 %v5451_v10  ;;  %v5383_v53 = vmul.f32 %v5255_v44, %v11694_v8  ;;  %v5257_v3 = vmul.f32 0.5, %v5129_v27  ;;  %v5261_v51 = vmul.f32 0.5, %v5133_v61  ;;  %v13183_v44 = vld [vmem:[#allocation76_spill] sm:$0xff]  ;;  %v13184_v27 = vld [vmem:[#allocation51_spill] sm:$0xff]  ;;  %v13189_v57 = vld [vmem:[#allocation78_spill] sm:$0xff] }
 0xa8a   : > { %v5137_v33 = vadd.f32 1.0, %v8181_v32  ;;  %v5453_v21 = vpack.c.bf16 %v5381_v6, %v5377_v54  ;;  %v5387_v7 = vmul.f32 %v5259_v18, %v11745_v30  ;;  %v5263_v63 = vmul.f32 0.5, %v5135_v37  ;;  %v7085_v38 = vpop.f32.mrb[216].mxu1  ;;  %v13187_v6 = vld [vmem:[#allocation26_spill] sm:$0xff]  ;;  %v13192_v4 = vld [vmem:[#allocation79_spill] sm:$0xff] }
 0xa8b   : > { %6008 = vmatmul.mubr.bf16.gmra.mrb[0].mxu0 %v13182_v2  ;;  %v5267_v23 = vmul.f32 0.5, %v5139_v43  ;;  %v5385_v59 = vmul.f32 %v5257_v3, %v11709_v49  ;;  %v5389_v1 = vmul.f32 %v5261_v51, %v11753_v35  ;;  %v5141_v25 = vadd.f32 1.0, %v8189_v48  ;;  %v7197_v54 = vpop.f32.mrb[216].mxu0  ;;  %v7086_v30 = vpop.f32.mrb[217].mxu1  ;;  %v13193_v2 = vld [vmem:[#allocation77_spill] sm:$0xff] }
 0xa8c   : > { %v5265_v31 = vmul.f32 0.5, %v5137_v33  ;;  %6015 = vmatprep.mubr.bf16.mxu0 %v5453_v21  ;;  %v5455_v12 = vpack.c.bf16 %v5387_v7, %v5383_v53  ;;  %v5391_v19 = vmul.f32 %v5263_v63, %v11819_v39  ;;  %v7075_v32 = vadd.f32 %v11789_v11, %v11785_v20  ;;  %v7198_v48 = vpop.f32.mrb[217].mxu0  ;;  %v7088_v9 = vpop.f32.mrb[218].mxu1 }
 0xa8d   : > { %v5395_v8 = vmul.f32 %v5267_v23, %v11882_v5  ;;  %v5457_v36 = vpack.c.bf16 %v5389_v1, %v5385_v59  ;;  %v5269_v14 = vmul.f32 0.5, %v5141_v25  ;;  %v7187_v35 = vadd.f32 %v11821_v16, %v11806_v29  ;;  %v7200_v11 = vpop.f32.mrb[218].mxu0  ;;  %v7089_v10 = vpop.f32.mrb[219].mxu1 }
 0xa8e   : > { %v5393_v49 = vmul.f32 %v5265_v31, %v11827_v40  ;;  %v7078_v39 = vadd.f32 %v11800_v55, %v11793_v60  ;;  %v7190_v5 = vadd.f32 %v11841_v50, %v11829_v42  ;;  %v7081_v20 = vadd.f32 %v11911_v13, %v11904_v41  ;;  %v7201_v55 = vpop.f32.mrb[219].mxu0 }
 0xa8f   : > { %v5459_v46 = vpack.c.bf16 %v5395_v8, %v5391_v19  ;;  %v13185_v40 = vpack.c.bf16 %v13183_v44, %v13184_v27  ;;  %v5397_v29 = vmul.f32 %v5269_v14, %v11886_v15  ;;  %v11991_v16 = vadd.f32 %v7187_v35, %v7075_v32 }
 0xa90   : > { %v7193_v61 = vadd.f32 %v11915_v34, %v11909_v47  ;;  %v7084_v60 = vadd.f32 %v11922_v52, %v11917_v56  ;;  %v11997_v42 = vadd.f32 %v7190_v5, %v7078_v39  ;;  %v7196_v50 = vadd.f32 %v11926_v28, %v11920_v58  ;;  %v13190_v28 = vld [vmem:[#allocation16_spill] sm:$0xff] }
 0xa91   : > { %5855 = vmatmul.mubr.bf16.gmra.mrb[4].mxu1 %v13185_v40  ;;  %v7087_v41 = vadd.f32 %v7086_v30, %v7085_v38  ;;  %v7199_v13 = vadd.f32 %v7198_v48, %v7197_v54  ;;  %v13188_v15 = vpack.c.bf16 %v13186_v0, %v13187_v6  ;;  %v5461_v18 = vpack.c.bf16 %v5397_v29, %v5393_v49 }
 0xa92   : > { %5862 = vmatprep.mubr.bf16.mxu1 %v5455_v12  ;;  %v12004_v37 = vadd.f32 %v7193_v61, %v7081_v20  ;;  %v7090_v47 = vadd.f32 %v7089_v10, %v7088_v9  ;;  %v12006_v34 = vadd.f32 %v7196_v50, %v7084_v60  ;;  %v7202_v52 = vadd.f32 %v7201_v55, %v7200_v11 }
 0xa93   : > { %6016 = vmatmul.mubr.bf16.gmra.mrb[4].mxu0 %v13188_v15  ;;  %v12008_v56 = vadd.f32 %v7199_v13, %v7087_v41  ;;  %v13191_v58 = vpack.c.bf16 %v13189_v57, %v13190_v28  ;;  %v13194_v53 = vpack.c.bf16 %v13192_v4, %v13193_v2 }
 0xa94   : > { %6023 = vmatprep.mubr.bf16.mxu0 %v5457_v36  ;;  %v12010_v43 = vadd.f32 %v7202_v52, %v7090_v47 }
 0xa99   : > { %5863 = vmatmul.mubr.bf16.gmra.mrb[8].mxu1 %v13191_v58 }
 0xa9a   : > { %5870 = vmatprep.mubr.bf16.mxu1 %v5459_v46 }
 0xa9b   : > { %6024 = vmatmul.mubr.bf16.gmra.mrb[8].mxu0 %v13194_v53 }
 0xa9c   : > { %6031 = vmatprep.mubr.bf16.mxu0 %v5461_v18 }
 0xaa0   : > { %v7091_v3 = vpop.f32.mrb[220].mxu1 }
 0xaa1   : > { %5871 = vmatmul.mubr.bf16.gmra.mrb[12].mxu1 %v5458_v22  ;;  %v7203_v51 = vpop.f32.mrb[220].mxu0  ;;  %v7092_v33 = vpop.f32.mrb[221].mxu1 }
 0xaa2   : > { %v7093_v21 = vadd.f32 %v7092_v33, %v7091_v3  ;;  %v7204_v7 = vpop.f32.mrb[221].mxu0  ;;  %v7094_v63 = vpop.f32.mrb[222].mxu1 }
 0xaa3   : > { %6032 = vmatmul.mubr.bf16.gmra.mrb[12].mxu0 %v5460_v45  ;;  %v7205_v23 = vadd.f32 %v7204_v7, %v7203_v51  ;;  %v7206_v59 = vpop.f32.mrb[222].mxu0  ;;  %v7095_v1 = vpop.f32.mrb[223].mxu1 }
 0xaa4   : > { %v7096_v25 = vadd.f32 %v7095_v1, %v7094_v63  ;;  %v7207_v31 = vpop.f32.mrb[223].mxu0 }
 0xaa5   : > { %v12024_v38 = vadd.f32 %v7205_v23, %v7093_v21  ;;  %v7208_v12 = vadd.f32 %v7207_v31, %v7206_v59 }
 0xaa7   : > { %v12026_v17 = vadd.f32 %v7208_v12, %v7096_v25 }
 0xab5   : > { %v7097_v26 = vpop.f32.mrb[224].mxu1 }
 0xab6   : > { %v7209_v22 = vpop.f32.mrb[224].mxu0  ;;  %v7098_v19 = vpop.f32.mrb[225].mxu1 }
 0xab7   : > { %v7099_v62 = vadd.f32 %v7098_v19, %v7097_v26  ;;  %v7210_v24 = vpop.f32.mrb[225].mxu0  ;;  %v7100_v45 = vpop.f32.mrb[226].mxu1 }
 0xab8   : > { %v7211_v8 = vadd.f32 %v7210_v24, %v7209_v22  ;;  %v7212_v32 = vpop.f32.mrb[226].mxu0  ;;  %v7101_v54 = vpop.f32.mrb[227].mxu1 }
 0xab9   : > { %v7102_v30 = vadd.f32 %v7101_v54, %v7100_v45  ;;  %v7213_v36 = vpop.f32.mrb[227].mxu0 }
 0xaba   : > { %v12028_v14 = vadd.f32 %v7211_v8, %v7099_v62  ;;  %v7214_v49 = vadd.f32 %v7213_v36, %v7212_v32 }
 0xabc   : > { %v12030_v35 = vadd.f32 %v7214_v49, %v7102_v30 }
 0xacb   : > { %v7103_v48 = vpop.f32.mrb[228].mxu1 }
 0xacc   : > { %v7215_v9 = vpop.f32.mrb[228].mxu0  ;;  %v7104_v46 = vpop.f32.mrb[229].mxu1 }
 0xacd   : > { %v7105_v39 = vadd.f32 %v7104_v46, %v7103_v48  ;;  %v7216_v5 = vpop.f32.mrb[229].mxu0  ;;  %v7106_v20 = vpop.f32.mrb[230].mxu1 }
 0xace   : > { %v7217_v11 = vadd.f32 %v7216_v5, %v7215_v9  ;;  %v7218_v10 = vpop.f32.mrb[230].mxu0  ;;  %v7107_v44 = vpop.f32.mrb[231].mxu1  ;;  %v13195_v9 = vld [vmem:[#allocation5_spill] sm:$0xff] }
 0xacf   : > { %v7108_v27 = vadd.f32 %v7107_v44, %v7106_v20  ;;  %v7219_v40 = vpop.f32.mrb[231].mxu0  ;;  %v12048_v20 = vld [vmem:[%s12522_s14] ss:$0 sm:$0xff]  ;;  %v13197_v44 = vld [vmem:[#allocation7_spill] sm:$0xff] }
 0xad0   : > { %v12032_v29 = vadd.f32 %v7217_v11, %v7105_v39  ;;  %v7220_v61 = vadd.f32 %v7219_v40, %v7218_v10  ;;  %v13196_v11 = vld [vmem:[#allocation37_spill] sm:$0xff] }
 0xad1   : > { %v6040_v10 = vadd.f32 %v11991_v16, %v13196_v11  ;;  %v13204_v11 = vld [vmem:[#allocation41_spill] sm:$0xff] }
 0xad2   : > { %v12034_v60 = vadd.f32 %v7220_v61, %v7108_v27 }
 0xad3   : > { %v7109_v55 = vpop.f32.mrb[232].mxu1 }
 0xad4   : > { %v7221_v50 = vpop.f32.mrb[232].mxu0  ;;  %v7110_v41 = vpop.f32.mrb[233].mxu1 }
 0xad5   : > { %v7111_v13 = vadd.f32 %v7110_v41, %v7109_v55  ;;  %v7222_v0 = vpop.f32.mrb[233].mxu0  ;;  %v7112_v6 = vpop.f32.mrb[234].mxu1 }
 0xad6   : > { %v7223_v15 = vadd.f32 %v7222_v0, %v7221_v50  ;;  %v7224_v18 = vpop.f32.mrb[234].mxu0  ;;  %v7113_v47 = vpop.f32.mrb[235].mxu1  ;;  %v13198_v0 = vld [vmem:[#allocation38_spill] sm:$0xff] }
 0xad7   : > { %v7114_v52 = vadd.f32 %v7113_v47, %v7112_v6  ;;  %v7225_v57 = vpop.f32.mrb[235].mxu0  ;;  %v6041_v6 = vadd.f32 %v11997_v42, %v13198_v0 }
 0xad8   : > { %v12036_v28 = vadd.f32 %v7223_v15, %v7111_v13  ;;  %v7226_v58 = vadd.f32 %v7225_v57, %v7224_v18 }
 0xada   : > { %v12038_v4 = vadd.f32 %v7226_v58, %v7114_v52 }
 0xadb   : > { %v7115_v2 = vpop.f32.mrb[236].mxu1 }
 0xadc   : > { %v7227_v53 = vpop.f32.mrb[236].mxu0  ;;  %v7116_v3 = vpop.f32.mrb[237].mxu1 }
 0xadd   : > { %v7117_v51 = vadd.f32 %v7116_v3, %v7115_v2  ;;  %v7228_v33 = vpop.f32.mrb[237].mxu0  ;;  %v7118_v21 = vpop.f32.mrb[238].mxu1  ;;  %v13199_v3 = vld [vmem:[#allocation8_spill] sm:$0xff] }
 0xade   : > { %v7229_v7 = vadd.f32 %v7228_v33, %v7227_v53  ;;  %v7230_v63 = vpop.f32.mrb[238].mxu0  ;;  %v7119_v23 = vpop.f32.mrb[239].mxu1  ;;  %v12064_v53 = vadd.f32 %v12048_v20, %v6040_v10  ;;  %v12069_v33 = vadd.f32 %v12048_v20, %v6041_v6  ;;  %v6044_v10 = vadd.f32 %v12008_v56, %v13204_v11 }
 0xadf   : > { %v7120_v59 = vadd.f32 %v7119_v23, %v7118_v21  ;;  %v7231_v1 = vpop.f32.mrb[239].mxu0  ;;  %v13200_v21 = vld [vmem:[#allocation39_spill] sm:$0xff] }
 0xae0   : > { %v12040_v25 = vadd.f32 %v7229_v7, %v7117_v51  ;;  %v7232_v31 = vadd.f32 %v7231_v1, %v7230_v63  ;;  %v6042_v7 = vadd.f32 %v12004_v37, %v13200_v21  ;;  %v13201_v63 = vld [vmem:[#allocation9_spill] sm:$0xff]  ;;  %v13202_v1 = vld [vmem:[#allocation40_spill] sm:$0xff] }
 0xae1   : > { %v13207_v21 = vld [vmem:[#allocation12_spill] sm:$0xff] }
 0xae2   : > { %v12042_v12 = vadd.f32 %v7232_v31, %v7120_v59  ;;  %v6043_v31 = vadd.f32 %v12006_v34, %v13202_v1 }
 0xae3   : > { %v7121_v26 = vpop.f32.mrb[240].mxu1 }
 0xae4   : > { %v7233_v22 = vpop.f32.mrb[240].mxu0  ;;  %v7122_v19 = vpop.f32.mrb[241].mxu1  ;;  %v12090_v37 = vadd.f32 %v12048_v20, %v6043_v31  ;;  %v13208_v31 = vld [vmem:[#allocation43_spill] sm:$0xff] }
 0xae5   : > { %v7123_v62 = vadd.f32 %v7122_v19, %v7121_v26  ;;  %v7234_v24 = vpop.f32.mrb[241].mxu0  ;;  %v7124_v45 = vpop.f32.mrb[242].mxu1 }
 0xae6   : > { %v7235_v8 = vadd.f32 %v7234_v24, %v7233_v22  ;;  %v7236_v32 = vpop.f32.mrb[242].mxu0  ;;  %v7125_v54 = vpop.f32.mrb[243].mxu1  ;;  %v12086_v22 = vadd.f32 %v12048_v20, %v6042_v7 }
 0xae7   : > { %v7126_v30 = vadd.f32 %v7125_v54, %v7124_v45  ;;  %v7237_v36 = vpop.f32.mrb[243].mxu0 }
 0xae8   : > { %v5978_v49 = vadd.f32 %v7235_v8, %v7123_v62  ;;  %v7238_v48 = vadd.f32 %v7237_v36, %v7236_v32 }
 0xaea   : > { %v6056_v46 = vadd.f32 %v5978_v49, %v13195_v9  ;;  %v5981_v39 = vadd.f32 %v7238_v48, %v7126_v30 }
 0xaeb   : > { %v7127_v5 = vpop.f32.mrb[244].mxu1 }
 0xaec   : > { %v6057_v27 = vadd.f32 %v5981_v39, %v13197_v44  ;;  %v7239_v40 = vpop.f32.mrb[244].mxu0  ;;  %v7128_v61 = vpop.f32.mrb[245].mxu1  ;;  %v12054_v55 = vadd.f32 %v12048_v20, %v6056_v46  ;;  %v13203_v46 = vld [vmem:[#allocation10_spill] sm:$0xff]  ;;  %v13205_v44 = vld [vmem:[#allocation11_spill] sm:$0xff] }
 0xaed   : > { %v7129_v50 = vadd.f32 %v7128_v61, %v7127_v5  ;;  %v7240_v41 = vpop.f32.mrb[245].mxu0  ;;  %v7130_v13 = vpop.f32.mrb[246].mxu1  ;;  %v13206_v61 = vld [vmem:[#allocation42_spill] sm:$0xff] }
 0xaee   : > { %v7241_v15 = vadd.f32 %v7240_v41, %v7239_v40  ;;  %v7242_v18 = vpop.f32.mrb[246].mxu0  ;;  %6145 = vadd.xlane.f32.xlu0 %v12054_v55  ;;  %v7131_v47 = vpop.f32.mrb[247].mxu1  ;;  %v12060_v16 = vadd.f32 %v12048_v20, %v6057_v27 }
 0xaef   : > { %v7132_v52 = vadd.f32 %v7131_v47, %v7130_v13  ;;  %v7243_v57 = vpop.f32.mrb[247].mxu0  ;;  %v12108_v13 = vadd.f32 %v12048_v20, %v6044_v10 }
 0xaf0   : > { %v5986_v58 = vadd.f32 %v7241_v15, %v7129_v50  ;;  %v7244_v2 = vadd.f32 %v7243_v57, %v7242_v18  ;;  %6147 = vadd.xlane.f32.xlu1 %v12060_v16  ;;  %v6045_v50 = vadd.f32 %v12010_v43, %v13206_v61 }
 0xaf2   : > { %v6058_v51 = vadd.f32 %v5986_v58, %v13199_v3  ;;  %v5989_v42 = vadd.f32 %v7244_v2, %v7132_v52  ;;  %6113 = vadd.xlane.f32.xlu0 %v12064_v53  ;;  %v12112_v56 = vadd.f32 %v12048_v20, %v6045_v50 }
 0xaf4   : > { %v6059_v23 = vadd.f32 %v5989_v42, %v13201_v63  ;;  %6115 = vadd.xlane.f32.xlu1 %v12069_v33  ;;  %v12076_v59 = vadd.f32 %v12048_v20, %v6058_v51 }
 0xaf6   : > { %6149 = vadd.xlane.f32.xlu0 %v12076_v59  ;;  %v12082_v26 = vadd.f32 %v12048_v20, %v6059_v23 }
 0xaf8   : > { %6151 = vadd.xlane.f32.xlu1 %v12082_v26 }
 0xafa   : > { %6117 = vadd.xlane.f32.xlu0 %v12086_v22 }
 0xafc   : > { %6119 = vadd.xlane.f32.xlu1 %v12090_v37 }
 0xb3c   : > { %v7133_v19 = vpop.f32.mrb[248].mxu1 }
 0xb3d   : > { %v7134_v62 = vpop.f32.mrb[249].mxu1 }
 0xb3e   : > { %v7245_v34 = vpop.f32.mrb[248].mxu0  ;;  %v7135_v24 = vadd.f32 %v7134_v62, %v7133_v19  ;;  %v7136_v45 = vpop.f32.mrb[250].mxu1  ;;  %v6046_v19 = vadd.f32 %v12024_v38, %v13208_v31  ;;  %v13209_v62 = vld [vmem:[#allocation13_spill] sm:$0xff] }
 0xb3f   : > { %v7246_v8 = vpop.f32.mrb[249].mxu0  ;;  %v7137_v32 = vpop.f32.mrb[251].mxu1 }
 0xb40   : > { %v7247_v54 = vadd.f32 %v7246_v8, %v7245_v34  ;;  %v7248_v30 = vpop.f32.mrb[250].mxu0  ;;  %v7138_v36 = vadd.f32 %v7137_v32, %v7136_v45  ;;  %v12130_v10 = vadd.f32 %v12048_v20, %v6046_v19 }
 0xb41   : > { %v7249_v49 = vpop.f32.mrb[251].mxu0 }
 0xb42   : > { %v5994_v48 = vadd.f32 %v7247_v54, %v7135_v24  ;;  %v7250_v9 = vadd.f32 %v7249_v49, %v7248_v30 }
 0xb44   : > { %v6060_v39 = vadd.f32 %v5994_v48, %v13203_v46  ;;  %v5997_v5 = vadd.f32 %v7250_v9, %v7138_v36  ;;  %v13210_v36 = vld [vmem:[#allocation44_spill] sm:$0xff] }
 0xb45   : > { %v6047_v49 = vadd.f32 %v12026_v17, %v13210_v36  ;;  %v13217_v36 = vld [vmem:[#allocation21_spill] sm:$0xff] }
 0xb46   : > { %v6061_v27 = vadd.f32 %v5997_v5, %v13205_v44  ;;  %v12098_v40 = vadd.f32 %v12048_v20, %v6060_v39  ;;  %v13211_v44 = vld [vmem:[#allocation14_spill] sm:$0xff] }
 0xb47   : > { %v12135_v50 = vadd.f32 %v12048_v20, %v6047_v49 }
 0xb48   : > { %6153 = vadd.xlane.f32.xlu0 %v12098_v40  ;;  %v12104_v41 = vadd.f32 %v12048_v20, %v6061_v27 }
 0xb4a   : > { %6155 = vadd.xlane.f32.xlu1 %v12104_v41 }
 0xb4c   : > { %6121 = vadd.xlane.f32.xlu0 %v12108_v13 }
 0xb4e   : > { %6123 = vadd.xlane.f32.xlu1 %v12112_v56 }
 0xb51   : > { %v7139_v0 = vpop.f32.mrb[252].mxu1 }
 0xb52   : > { %v7140_v6 = vpop.f32.mrb[253].mxu1 }
 0xb53   : > { %v7141_v15 = vadd.f32 %v7140_v6, %v7139_v0  ;;  %v7142_v18 = vpop.f32.mrb[254].mxu1  ;;  %v13212_v6 = vld [vmem:[#allocation45_spill] sm:$0xff] }
 0xb54   : > { %v7251_v43 = vpop.f32.mrb[252].mxu0  ;;  %v7143_v52 = vpop.f32.mrb[255].mxu1 }
 0xb55   : > { %v7252_v47 = vpop.f32.mrb[253].mxu0  ;;  %v7144_v2 = vadd.f32 %v7143_v52, %v7142_v18 }
 0xb56   : > { %v7253_v57 = vadd.f32 %v7252_v47, %v7251_v43  ;;  %v7254_v58 = vpop.f32.mrb[254].mxu0  ;;  %v6048_v43 = vadd.f32 %v12028_v14, %v13212_v6 }
 0xb57   : > { %v7255_v3 = vpop.f32.mrb[255].mxu0 }
 0xb58   : > { %v6002_v51 = vadd.f32 %v7253_v57, %v7141_v15  ;;  %v7256_v42 = vadd.f32 %v7255_v3, %v7254_v58  ;;  %v13213_v15 = vld [vmem:[#allocation18_spill] sm:$0xff]  ;;  %v12152_v19 = vadd.f32 %v12048_v20, %v6048_v43 }
 0xb5a   : > { %v6062_v7 = vadd.f32 %v6002_v51, %v13207_v21  ;;  %v6005_v63 = vadd.f32 %v7256_v42, %v7144_v2  ;;  %v13214_v51 = vld [vmem:[#allocation46_spill] sm:$0xff] }
 0xb5b   : > { %v7145_v23 = vpop.f32.mrb[0].mxu1  ;;  %v6049_v42 = vadd.f32 %v12030_v35, %v13214_v51  ;;  %v13220_v51 = vld [vmem:[#allocation49_spill] sm:$0xff] }
 0xb5c   : > { %v7146_v1 = vpop.f32.mrb[1].mxu1  ;;  %v6063_v34 = vadd.f32 %v6005_v63, %v13209_v62  ;;  %v12120_v32 = vadd.f32 %v12048_v20, %v6062_v7  ;;  %v13215_v62 = vld [vmem:[#allocation20_spill] sm:$0xff] }
 0xb5d   : > { %v7147_v45 = vadd.f32 %v7146_v1, %v7145_v23  ;;  %v7148_v8 = vpop.f32.mrb[2].mxu1 }
 0xb5e   : > { %v7257_v24 = vpop.f32.mrb[0].mxu0  ;;  %v7149_v30 = vpop.f32.mrb[3].mxu1  ;;  %6157 = vadd.xlane.f32.xlu0 %v12120_v32  ;;  %v12126_v38 = vadd.f32 %v12048_v20, %v6063_v34 }
 0xb5f   : > { %v7258_v54 = vpop.f32.mrb[1].mxu0  ;;  %v7150_v46 = vadd.f32 %v7149_v30, %v7148_v8 }
 0xb60   : > { %v7259_v48 = vadd.f32 %v7258_v54, %v7257_v24  ;;  %v7260_v9 = vpop.f32.mrb[2].mxu0  ;;  %6159 = vadd.xlane.f32.xlu1 %v12126_v38  ;;  %v13216_v54 = vld [vmem:[#allocation47_spill] sm:$0xff] }
 0xb61   : > { %v7261_v39 = vpop.f32.mrb[3].mxu0  ;;  %v6050_v30 = vadd.f32 %v12032_v29, %v13216_v54 }
 0xb62   : > { %v6010_v5 = vadd.f32 %v7259_v48, %v7147_v45  ;;  %v7262_v11 = vadd.f32 %v7261_v39, %v7260_v9  ;;  %6125 = vadd.xlane.f32.xlu0 %v12130_v10  ;;  %v12157_v45 = vadd.f32 %v12048_v20, %v6049_v42  ;;  %v6052_v42 = vadd.f32 %v12036_v28, %v13220_v51 }
 0xb64   : > { %v6064_v27 = vadd.f32 %v6010_v5, %v13211_v44  ;;  %v6013_v61 = vadd.f32 %v7262_v11, %v7150_v46  ;;  %v7151_v17 = vpop.f32.mrb[4].mxu1  ;;  %6127 = vadd.xlane.f32.xlu1 %v12135_v50  ;;  %v13218_v44 = vld [vmem:[#allocation48_spill] sm:$0xff] }
 0xb65   : > { %v7152_v0 = vpop.f32.mrb[5].mxu1 }
 0xb66   : > { %v6065_v18 = vadd.f32 %v6013_v61, %v13213_v15  ;;  %v7263_v47 = vpop.f32.mrb[4].mxu0  ;;  %v7153_v52 = vadd.f32 %v7152_v0, %v7151_v17  ;;  %v7154_v57 = vpop.f32.mrb[6].mxu1  ;;  %v12142_v58 = vadd.f32 %v12048_v20, %v6064_v27  ;;  %v6051_v27 = vadd.f32 %v12034_v60, %v13218_v44 }
 0xb67   : > { %v7264_v2 = vpop.f32.mrb[5].mxu0  ;;  %v7155_v3 = vpop.f32.mrb[7].mxu1 }
 0xb68   : > { %v7265_v21 = vadd.f32 %v7264_v2, %v7263_v47  ;;  %v7266_v7 = vpop.f32.mrb[6].mxu0  ;;  %6161 = vadd.xlane.f32.xlu0 %v12142_v58  ;;  %v7156_v14 = vadd.f32 %v7155_v3, %v7154_v57  ;;  %v12148_v63 = vadd.f32 %v12048_v20, %v6065_v18  ;;  %v12174_v18 = vadd.f32 %v12048_v20, %v6050_v30  ;;  %v13219_v47 = vld [vmem:[#allocation22_spill] sm:$0xff] }
 0xb69   : > { %v7267_v23 = vpop.f32.mrb[7].mxu0  ;;  %v12179_v60 = vadd.f32 %v12048_v20, %v6051_v27 }
 0xb6a   : > { %v6018_v1 = vadd.f32 %v7265_v21, %v7153_v52  ;;  %v7268_v31 = vadd.f32 %v7267_v23, %v7266_v7  ;;  %6163 = vadd.xlane.f32.xlu1 %v12148_v63  ;;  %v13221_v21 = vld [vmem:[#allocation23_spill] sm:$0xff] }
 0xb6c   : > { %v6066_v34 = vadd.f32 %v6018_v1, %v13215_v62  ;;  %v6021_v24 = vadd.f32 %v7268_v31, %v7156_v14  ;;  %6129 = vadd.xlane.f32.xlu0 %v12152_v19  ;;  %v7157_v35 = vpop.f32.mrb[8].mxu1 }
 0xb6d   : > { %v7158_v8 = vpop.f32.mrb[9].mxu1 }
 0xb6e   : > { %v6067_v49 = vadd.f32 %v6021_v24, %v13217_v36  ;;  %v7269_v48 = vpop.f32.mrb[8].mxu0  ;;  %6131 = vadd.xlane.f32.xlu1 %v12157_v45  ;;  %v7159_v9 = vadd.f32 %v7158_v8, %v7157_v35  ;;  %v7160_v46 = vpop.f32.mrb[10].mxu1  ;;  %v12164_v39 = vadd.f32 %v12048_v20, %v6066_v34  ;;  %v13222_v24 = vld [vmem:[#allocation4_spill] sm:$0xff] }
 0xb6f   : > { %v7270_v5 = vpop.f32.mrb[9].mxu0  ;;  %v7161_v11 = vpop.f32.mrb[11].mxu1  ;;  %v6053_v35 = vadd.f32 %v12038_v4, %v13222_v24 }
 0xb70   : > { %v7271_v61 = vadd.f32 %v7270_v5, %v7269_v48  ;;  %v7272_v17 = vpop.f32.mrb[10].mxu0  ;;  %6165 = vadd.xlane.f32.xlu0 %v12164_v39  ;;  %v7162_v29 = vadd.f32 %v7161_v11, %v7160_v46  ;;  %v12170_v0 = vadd.f32 %v12048_v20, %v6067_v49  ;;  %v13223_v46 = vld [vmem:[#allocation25_spill] sm:$0xff] }
 0xb71   : > { %v7273_v6 = vpop.f32.mrb[11].mxu0  ;;  %v12201_v4 = vadd.f32 %v12048_v20, %v6053_v35 }
 0xb72   : > { %v6026_v43 = vadd.f32 %v7271_v61, %v7159_v9  ;;  %v7274_v15 = vadd.f32 %v7273_v6, %v7272_v17  ;;  %6167 = vadd.xlane.f32.xlu1 %v12170_v0  ;;  %v12196_v9 = vadd.f32 %v12048_v20, %v6052_v42  ;;  %v13224_v61 = vld [vmem:[#allocation3_spill] sm:$0xff] }
 0xb73   : > { %v6054_v17 = vadd.f32 %v12040_v25, %v13224_v61 }
 0xb74   : > { %v6068_v52 = vadd.f32 %v6026_v43, %v13219_v47  ;;  %v6029_v57 = vadd.f32 %v7274_v15, %v7162_v29  ;;  %6133 = vadd.xlane.f32.xlu0 %v12174_v18  ;;  %v7163_v2 = vpop.f32.mrb[12].mxu1  ;;  %v13225_v29 = vld [vmem:[#allocation24_spill] sm:$0xff] }
 0xb75   : > { %v7164_v3 = vpop.f32.mrb[13].mxu1  ;;  %v12221_v42 = vadd.f32 %v12048_v20, %v6054_v17 }
 0xb76   : > { %v6069_v7 = vadd.f32 %v6029_v57, %v13221_v21  ;;  %v7275_v14 = vpop.f32.mrb[12].mxu0  ;;  %6135 = vadd.xlane.f32.xlu1 %v12179_v60  ;;  %v7165_v23 = vadd.f32 %v7164_v3, %v7163_v2  ;;  %v12186_v1 = vadd.f32 %v12048_v20, %v6068_v52  ;;  %v7166_v31 = vpop.f32.mrb[14].mxu1  ;;  %v13226_v52 = vld [vmem:[#allocation6_spill] sm:$0xff] }
 0xb77   : > { %v7276_v62 = vpop.f32.mrb[13].mxu0  ;;  %v7167_v34 = vpop.f32.mrb[15].mxu1  ;;  %v6055_v57 = vadd.f32 %v12042_v12, %v13226_v52 }
 0xb78   : > { %v7277_v8 = vadd.f32 %v7276_v62, %v7275_v14  ;;  %v7278_v54 = vpop.f32.mrb[14].mxu0  ;;  %6169 = vadd.xlane.f32.xlu0 %v12186_v1  ;;  %v7168_v28 = vadd.f32 %v7167_v34, %v7166_v31  ;;  %v12192_v30 = vadd.f32 %v12048_v20, %v6069_v7 }
 0xb79   : > { %v7279_v36 = vpop.f32.mrb[15].mxu0  ;;  %v12228_v14 = vadd.f32 %v12048_v20, %v6055_v57 }
 0xb7a   : > { %v6034_v49 = vadd.f32 %v7277_v8, %v7165_v23  ;;  %v7280_v48 = vadd.f32 %v7279_v36, %v7278_v54  ;;  %6171 = vadd.xlane.f32.xlu1 %v12192_v30 }
 0xb7b   : > { %v6146_v44 = vpop.xlane.xlu0 %6145 }
 0xb7c   : > { %v6070_v5 = vadd.f32 %v6034_v49, %v13223_v46  ;;  %v6037_v11 = vadd.f32 %v7280_v48, %v7168_v28  ;;  %6137 = vadd.xlane.f32.xlu0 %v12196_v9  ;;  %v6193_v27 = vmul.f32 0.0078125, %v6146_v44 }
 0xb7d   : > { %v6148_v15 = vpop.xlane.xlu1 %6147 }
 0xb7e   : > { %v6071_v6 = vadd.f32 %v6037_v11, %v13225_v29  ;;  %6139 = vadd.xlane.f32.xlu1 %v12201_v4  ;;  %v12208_v43 = vadd.f32 %v12048_v20, %v6070_v5  ;;  %v6194_v47 = vmul.f32 0.0078125, %v6148_v15  ;;  %v12217_v3 = vsub.f32 %v12054_v55, %v6193_v27 }
 0xb7f   : > { %v6114_v25 = vpop.xlane.xlu0 %6113 }
 0xb80   : > { %6173 = vadd.xlane.f32.xlu0 %v12208_v43  ;;  %v12214_v2 = vadd.f32 %v12048_v20, %v6071_v6  ;;  %v6177_v51 = vmul.f32 0.0078125, %v6114_v25  ;;  %v12224_v21 = vsub.f32 %v12060_v16, %v6194_v47  ;;  %v6257_v23 = vmul.f32 %v12217_v3, %v12217_v3 }
 0xb81   : > { %v6116_v7 = vpop.xlane.xlu1 %6115 }
 0xb82   : > { %6175 = vadd.xlane.f32.xlu1 %v12214_v2  ;;  %v6178_v12 = vmul.f32 0.0078125, %v6116_v7  ;;  %v12231_v55 = vsub.f32 %v12064_v53, %v6177_v51  ;;  %v6258_v34 = vmul.f32 %v12224_v21, %v12224_v21 }
 0xb83   : > { %v6150_v31 = vpop.xlane.xlu0 %6149 }
 0xb84   : > { %6141 = vadd.xlane.f32.xlu0 %v12221_v42  ;;  %v6195_v62 = vmul.f32 0.0078125, %v6150_v31  ;;  %v12237_v16 = vsub.f32 %v12069_v33, %v6178_v12  ;;  %v6241_v53 = vmul.f32 %v12231_v55, %v12231_v55 }
 0xb85   : > { %v6152_v24 = vpop.xlane.xlu1 %6151 }
 0xb86   : > { %6143 = vadd.xlane.f32.xlu1 %v12228_v14  ;;  %v6196_v35 = vmul.f32 0.0078125, %v6152_v24  ;;  %v12242_v20 = vsub.f32 %v12076_v59, %v6195_v62  ;;  %v6242_v33 = vmul.f32 %v12237_v16, %v12237_v16 }
 0xb87   : > { %v6118_v8 = vpop.xlane.xlu0 %6117 }
 0xb88   : > { %6305 = vadd.xlane.f32.xlu0 %v6257_v23  ;;  %v6179_v54 = vmul.f32 0.0078125, %v6118_v8  ;;  %v12247_v28 = vsub.f32 %v12082_v26, %v6196_v35  ;;  %v6259_v59 = vmul.f32 %v12242_v20, %v12242_v20 }
 0xb89   : > { %v6120_v36 = vpop.xlane.xlu1 %6119 }
 0xb8a   : > { %6307 = vadd.xlane.f32.xlu1 %v6258_v34  ;;  %v6180_v49 = vmul.f32 0.0078125, %v6120_v36  ;;  %v12252_v48 = vsub.f32 %v12086_v22, %v6179_v54  ;;  %v6260_v26 = vmul.f32 %v12247_v28, %v12247_v28 }
 0xb8c   : > { %6273 = vadd.xlane.f32.xlu0 %v6241_v53  ;;  %v12257_v46 = vsub.f32 %v12090_v37, %v6180_v49  ;;  %v6243_v5 = vmul.f32 %v12252_v48, %v12252_v48 }
 0xb8e   : > { %6275 = vadd.xlane.f32.xlu1 %v6242_v33  ;;  %v6244_v11 = vmul.f32 %v12257_v46, %v12257_v46 }
 0xb90   : > { %6309 = vadd.xlane.f32.xlu0 %v6259_v59 }
 0xb92   : > { %6311 = vadd.xlane.f32.xlu1 %v6260_v26 }
 0xb94   : > { %6277 = vadd.xlane.f32.xlu0 %v6243_v5 }
 0xb96   : > { %6279 = vadd.xlane.f32.xlu1 %v6244_v11 }
 0xbd5   : > { %v6154_v22 = vpop.xlane.xlu0 %6153 }
 0xbd6   : > { %v6197_v44 = vmul.f32 0.0078125, %v6154_v22 }
 0xbd7   : > { %v6156_v27 = vpop.xlane.xlu1 %6155 }
 0xbd8   : > { %v12266_v61 = vsub.f32 %v12098_v40, %v6197_v44  ;;  %v6198_v37 = vmul.f32 0.0078125, %v6156_v27 }
 0xbd9   : > { %v6122_v17 = vpop.xlane.xlu0 %6121 }
 0xbda   : > { %v12269_v29 = vsub.f32 %v12104_v41, %v6198_v37  ;;  %v6181_v6 = vmul.f32 0.0078125, %v6122_v17  ;;  %v6261_v15 = vmul.f32 %v12266_v61, %v12266_v61 }
 0xbdb   : > { %v6124_v47 = vpop.xlane.xlu1 %6123 }
 0xbdc   : > { %v12274_v52 = vsub.f32 %v12108_v13, %v6181_v6  ;;  %v6182_v57 = vmul.f32 0.0078125, %v6124_v47  ;;  %6313 = vadd.xlane.f32.xlu0 %v6261_v15  ;;  %v6262_v25 = vmul.f32 %v12269_v29, %v12269_v29 }
 0xbde   : > { %v12279_v40 = vsub.f32 %v12112_v56, %v6182_v57  ;;  %6315 = vadd.xlane.f32.xlu1 %v6262_v25  ;;  %v6245_v41 = vmul.f32 %v12274_v52, %v12274_v52 }
 0xbe0   : > { %6281 = vadd.xlane.f32.xlu0 %v6245_v41  ;;  %v6246_v51 = vmul.f32 %v12279_v40, %v12279_v40 }
 0xbe2   : > { %6283 = vadd.xlane.f32.xlu1 %v6246_v51 }
 0xbeb   : > { %v6158_v7 = vpop.xlane.xlu0 %6157 }
 0xbec   : > { %v6199_v13 = vmul.f32 0.0078125, %v6158_v7 }
 0xbed   : > { %v6160_v12 = vpop.xlane.xlu1 %6159 }
 0xbee   : > { %v12286_v23 = vsub.f32 %v12120_v32, %v6199_v13  ;;  %v6200_v31 = vmul.f32 0.0078125, %v6160_v12 }
 0xbef   : > { %v6126_v62 = vpop.xlane.xlu0 %6125 }
 0xbf0   : > { %v12289_v56 = vsub.f32 %v12126_v38, %v6200_v31  ;;  %v6183_v34 = vmul.f32 0.0078125, %v6126_v62  ;;  %v6263_v24 = vmul.f32 %v12286_v23, %v12286_v23 }
 0xbf1   : > { %v6128_v35 = vpop.xlane.xlu1 %6127 }
 0xbf2   : > { %v12294_v53 = vsub.f32 %v12130_v10, %v6183_v34  ;;  %v6184_v8 = vmul.f32 0.0078125, %v6128_v35  ;;  %6317 = vadd.xlane.f32.xlu0 %v6263_v24  ;;  %v6264_v54 = vmul.f32 %v12289_v56, %v12289_v56 }
 0xbf4   : > { %v12299_v33 = vsub.f32 %v12135_v50, %v6184_v8  ;;  %6319 = vadd.xlane.f32.xlu1 %v6264_v54  ;;  %v6247_v38 = vmul.f32 %v12294_v53, %v12294_v53 }
 0xbf5   : > { %v6162_v32 = vpop.xlane.xlu0 %6161 }
 0xbf6   : > { %v6201_v36 = vmul.f32 0.0078125, %v6162_v32  ;;  %6285 = vadd.xlane.f32.xlu0 %v6247_v38  ;;  %v6248_v26 = vmul.f32 %v12299_v33, %v12299_v33 }
 0xbf7   : > { %v6164_v49 = vpop.xlane.xlu1 %6163 }
 0xbf8   : > { %v12304_v59 = vsub.f32 %v12142_v58, %v6201_v36  ;;  %v6202_v10 = vmul.f32 0.0078125, %v6164_v49  ;;  %6287 = vadd.xlane.f32.xlu1 %v6248_v26 }
 0xbf9   : > { %v6130_v5 = vpop.xlane.xlu0 %6129 }
 0xbfa   : > { %v12309_v11 = vsub.f32 %v12148_v63, %v6202_v10  ;;  %v6185_v50 = vmul.f32 0.0078125, %v6130_v5  ;;  %v6265_v22 = vmul.f32 %v12304_v59, %v12304_v59 }
 0xbfb   : > { %v6132_v44 = vpop.xlane.xlu1 %6131 }
 0xbfc   : > { %v12314_v27 = vsub.f32 %v12152_v19, %v6185_v50  ;;  %v6186_v58 = vmul.f32 0.0078125, %v6132_v44  ;;  %6321 = vadd.xlane.f32.xlu0 %v6265_v22  ;;  %v6266_v37 = vmul.f32 %v12309_v11, %v12309_v11 }
 0xbfd   : > { %v6166_v17 = vpop.xlane.xlu0 %6165 }
 0xbfe   : > { %v12319_v6 = vsub.f32 %v12157_v45, %v6186_v58  ;;  %v6203_v63 = vmul.f32 0.0078125, %v6166_v17  ;;  %6323 = vadd.xlane.f32.xlu1 %v6266_v37  ;;  %v6249_v15 = vmul.f32 %v12314_v27, %v12314_v27 }
 0xbff   : > { %v6168_v47 = vpop.xlane.xlu1 %6167 }
 0xc00   : > { %v12324_v57 = vsub.f32 %v12164_v39, %v6203_v63  ;;  %v6204_v19 = vmul.f32 0.0078125, %v6168_v47  ;;  %6289 = vadd.xlane.f32.xlu0 %v6249_v15  ;;  %v6250_v25 = vmul.f32 %v12319_v6, %v12319_v6 }
 0xc01   : > { %v6134_v41 = vpop.xlane.xlu0 %6133 }
 0xc02   : > { %v12329_v51 = vsub.f32 %v12170_v0, %v6204_v19  ;;  %v6187_v45 = vmul.f32 0.0078125, %v6134_v41  ;;  %6291 = vadd.xlane.f32.xlu1 %v6250_v25  ;;  %v6267_v7 = vmul.f32 %v12324_v57, %v12324_v57 }
 0xc03   : > { %v6136_v13 = vpop.xlane.xlu1 %6135 }
 0xc04   : > { %v12334_v12 = vsub.f32 %v12174_v18, %v6187_v45  ;;  %v6188_v39 = vmul.f32 0.0078125, %v6136_v13  ;;  %6325 = vadd.xlane.f32.xlu0 %v6267_v7  ;;  %v6268_v31 = vmul.f32 %v12329_v51, %v12329_v51 }
 0xc05   : > { %v6170_v62 = vpop.xlane.xlu0 %6169 }
 0xc06   : > { %v12339_v34 = vsub.f32 %v12179_v60, %v6188_v39  ;;  %v6205_v0 = vmul.f32 0.0078125, %v6170_v62  ;;  %6327 = vadd.xlane.f32.xlu1 %v6268_v31  ;;  %v6251_v24 = vmul.f32 %v12334_v12, %v12334_v12 }
 0xc07   : > { %v6172_v35 = vpop.xlane.xlu1 %6171 }
 0xc08   : > { %v12344_v8 = vsub.f32 %v12186_v1, %v6205_v0  ;;  %v6206_v18 = vmul.f32 0.0078125, %v6172_v35  ;;  %6293 = vadd.xlane.f32.xlu0 %v6251_v24  ;;  %v6252_v54 = vmul.f32 %v12339_v34, %v12339_v34 }
 0xc09   : > { %v6138_v32 = vpop.xlane.xlu0 %6137 }
 0xc0a   : > { %v12349_v36 = vsub.f32 %v12192_v30, %v6206_v18  ;;  %v6189_v60 = vmul.f32 0.0078125, %v6138_v32  ;;  %6295 = vadd.xlane.f32.xlu1 %v6252_v54  ;;  %v6269_v38 = vmul.f32 %v12344_v8, %v12344_v8 }
 0xc0b   : > { %v6140_v49 = vpop.xlane.xlu1 %6139 }
 0xc0c   : > { %v12354_v10 = vsub.f32 %v12196_v9, %v6189_v60  ;;  %v6190_v1 = vmul.f32 0.0078125, %v6140_v49  ;;  %6329 = vadd.xlane.f32.xlu0 %v6269_v38  ;;  %v6270_v26 = vmul.f32 %v12349_v36, %v12349_v36 }
 0xc0d   : > { %v6174_v5 = vpop.xlane.xlu0 %6173 }
 0xc0e   : > { %v12359_v50 = vsub.f32 %v12201_v4, %v6190_v1  ;;  %v6207_v30 = vmul.f32 0.0078125, %v6174_v5  ;;  %6331 = vadd.xlane.f32.xlu1 %v6270_v26  ;;  %v6253_v22 = vmul.f32 %v12354_v10, %v12354_v10 }
 0xc0f   : > { %v6176_v44 = vpop.xlane.xlu1 %6175 }
 0xc10   : > { %v12364_v58 = vsub.f32 %v12208_v43, %v6207_v30  ;;  %v6208_v9 = vmul.f32 0.0078125, %v6176_v44  ;;  %6297 = vadd.xlane.f32.xlu0 %v6253_v22  ;;  %v6254_v37 = vmul.f32 %v12359_v50, %v12359_v50 }
 0xc11   : > { %v6142_v17 = vpop.xlane.xlu0 %6141 }
 0xc12   : > { %v12369_v63 = vsub.f32 %v12214_v2, %v6208_v9  ;;  %v6191_v4 = vmul.f32 0.0078125, %v6142_v17  ;;  %6299 = vadd.xlane.f32.xlu1 %v6254_v37  ;;  %v6271_v15 = vmul.f32 %v12364_v58, %v12364_v58  ;;  %v12388_v17 = vld [vmem:[%s12523_s15] ss:$0 sm:$0xff] }
 0xc13   : > { %v6144_v47 = vpop.xlane.xlu1 %6143 }
 0xc14   : > { %v12374_v19 = vsub.f32 %v12221_v42, %v6191_v4  ;;  %v6192_v43 = vmul.f32 0.0078125, %v6144_v47  ;;  %6333 = vadd.xlane.f32.xlu0 %v6271_v15  ;;  %v6272_v25 = vmul.f32 %v12369_v63, %v12369_v63 }
 0xc15   : > { %v6306_v41 = vpop.xlane.xlu0 %6305 }
 0xc16   : > { %v12379_v45 = vsub.f32 %v12228_v14, %v6192_v43  ;;  %6335 = vadd.xlane.f32.xlu1 %v6272_v25  ;;  %v6255_v2 = vmul.f32 %v12374_v19, %v12374_v19  ;;  %v6353_v7 = vmul.f32 0.0078125, %v6306_v41 }
 0xc17   : > { %v6308_v13 = vpop.xlane.xlu1 %6307 }
 0xc18   : > { %6301 = vadd.xlane.f32.xlu0 %v6255_v2  ;;  %v6256_v42 = vmul.f32 %v12379_v45, %v12379_v45  ;;  %v6385_v39 = vadd.f32 1e-05, %v6353_v7  ;;  %v6354_v31 = vmul.f32 0.0078125, %v6308_v13  ;;  %v12396_v2 = vld [vmem:[%s12524_s16] ss:$0 sm:$0xff] }
 0xc19   : > { %v6274_v62 = vpop.xlane.xlu0 %6273 }
 0xc1a   : > { %6303 = vadd.xlane.f32.xlu1 %v6256_v42  ;;  %8190 = vrsqrt.f32 %v6385_v39  ;;  %v6386_v0 = vadd.f32 1e-05, %v6354_v31  ;;  %v6337_v24 = vmul.f32 0.0078125, %v6274_v62 }
 0xc1b   : > { %v6276_v35 = vpop.xlane.xlu1 %6275 }
 0xc1c   : > { %8192 = vrsqrt.f32 %v6386_v0  ;;  %v6369_v14 = vadd.f32 1e-05, %v6337_v24  ;;  %v6338_v18 = vmul.f32 0.0078125, %v6276_v35 }
 0xc1d   : > { %v6310_v54 = vpop.xlane.xlu0 %6309 }
 0xc1e   : > { %8194 = vrsqrt.f32 %v6369_v14  ;;  %v6370_v32 = vadd.f32 1e-05, %v6338_v18  ;;  %v6355_v60 = vmul.f32 0.0078125, %v6310_v54 }
 0xc1f   : > { %v6312_v38 = vpop.xlane.xlu1 %6311 }
 0xc20   : > { %8196 = vrsqrt.f32 %v6370_v32  ;;  %v6387_v49 = vadd.f32 1e-05, %v6355_v60  ;;  %v6356_v1 = vmul.f32 0.0078125, %v6312_v38 }
 0xc21   : > { %v6278_v26 = vpop.xlane.xlu0 %6277 }
 0xc22   : > { %8198 = vrsqrt.f32 %v6387_v49  ;;  %v6388_v5 = vadd.f32 1e-05, %v6356_v1  ;;  %v6339_v30 = vmul.f32 0.0078125, %v6278_v26 }
 0xc23   : > { %v6280_v22 = vpop.xlane.xlu1 %6279 }
 0xc24   : > { %v8191_v44 = vpop.eup %8190  ;;  %8200 = vrsqrt.f32 %v6388_v5  ;;  %v6371_v9 = vadd.f32 1e-05, %v6339_v30  ;;  %v6340_v37 = vmul.f32 0.0078125, %v6280_v22 }
 0xc25   : > { %v6449_v4 = vmul.f32 %v8191_v44, %v12217_v3 }
 0xc26   : > { %v8193_v15 = vpop.eup %8192  ;;  %8202 = vrsqrt.f32 %v6371_v9  ;;  %v6372_v47 = vadd.f32 1e-05, %v6340_v37  ;;  %v6558_v37 = vld [vmem:[#allocation2] sm:$0x1] }
 0xc27   : > { %v6450_v43 = vmul.f32 %v8193_v15, %v12224_v21  ;;  %v6487_v25 = vmul.f32 %v12388_v17, %v6449_v4 }
 0xc28   : > { %v8195_v41 = vpop.eup %8194  ;;  %8204 = vrsqrt.f32 %v6372_v47 }
 0xc29   : > { %v6433_v7 = vmul.f32 %v8195_v41, %v12231_v55  ;;  %v6488_v13 = vmul.f32 %v12388_v17, %v6450_v43  ;;  %v6525_v39 = vadd.f32 %v12396_v2, %v6487_v25 }
 0xc2a   : > { %v8197_v42 = vpop.eup %8196 }
 0xc2b   : > { %v6434_v3 = vmul.f32 %v8197_v42, %v12237_v16  ;;  %v6526_v21 = vadd.f32 %v12396_v2, %v6488_v13  ;;  %v6471_v31 = vmul.f32 %v12388_v17, %v6433_v7 }
 0xc2c   : > { %v8199_v62 = vpop.eup %8198 }
 0xc2d   : > { %v6550_v0 = vpack.c.bf16 %v6526_v21, %v6525_v39  ;;  %v6472_v24 = vmul.f32 %v12388_v17, %v6434_v3  ;;  %v6451_v35 = vmul.f32 %v8199_v62, %v12242_v20  ;;  %v6509_v55 = vadd.f32 %v12396_v2, %v6471_v31 }
 0xc2e   : > { %v8201_v14 = vpop.eup %8200  ;;  %6561 = vperm.xlu0 %7469, %v6558_v37  }
 0xc2f   : > { %7281 = vmatprep.subr.bf16.mxu1 %v6550_v0  ;;  %v6510_v18 = vadd.f32 %v12396_v2, %v6472_v24  ;;  %v6452_v16 = vmul.f32 %v8201_v14, %v12247_v28  ;;  %v6489_v54 = vmul.f32 %v12388_v17, %v6451_v35 }
 0xc30   : > { %v8203_v32 = vpop.eup %8202 }
 0xc31   : > { %v6435_v60 = vmul.f32 %v8203_v32, %v12252_v48  ;;  %v6542_v38 = vpack.c.bf16 %v6510_v18, %v6509_v55  ;;  %v6490_v49 = vmul.f32 %v12388_v17, %v6452_v16  ;;  %v6527_v20 = vadd.f32 %v12396_v2, %v6489_v54 }
 0xc32   : > { %v8205_v1 = vpop.eup %8204 }
 0xc33   : > { %v6436_v26 = vmul.f32 %v8205_v1, %v12257_v46  ;;  %7282 = vmatpush3.bf16.xpose.msra.mxu1 %v6542_v38  ;;  %v6528_v5 = vadd.f32 %v12396_v2, %v6490_v49  ;;  %v6473_v30 = vmul.f32 %v12388_v17, %v6435_v60  ;;  %v12422_v46 = vld [vmem:[%s12525_s17] sm:$0x1] }
 0xc34   : > { %7297 = vmatprep.mubr.bf16.mxu1 %v12422_v46 }
 0xc35   : > { %v6551_v22 = vpack.c.bf16 %v6528_v5, %v6527_v20  ;;  %v6474_v28 = vmul.f32 %v12388_v17, %v6436_v26  ;;  %v6511_v44 = vadd.f32 %v12396_v2, %v6473_v30 }
 0xc37   : > { %7283 = vmatprep.subr.bf16.mxu1 %v6551_v22  ;;  %v6512_v48 = vadd.f32 %v12396_v2, %v6474_v28 }
 0xc39   : > { %v6543_v9 = vpack.c.bf16 %v6512_v48, %v6511_v44 }
 0xc3b   : > { %7284 = vmatpush3.bf16.xpose.msra.mxu1 %v6543_v9 }
 0xc69   : > { %v6314_v4 = vpop.xlane.xlu0 %6313 }
 0xc6a   : > { %v6357_v15 = vmul.f32 0.0078125, %v6314_v4 }
 0xc6b   : > { %v6316_v47 = vpop.xlane.xlu1 %6315 }
 0xc6c   : > { %v6389_v43 = vadd.f32 1e-05, %v6357_v15  ;;  %v6358_v25 = vmul.f32 0.0078125, %v6316_v47 }
 0xc6d   : > { %v6282_v41 = vpop.xlane.xlu0 %6281 }
 0xc6e   : > { %8206 = vrsqrt.f32 %v6389_v43  ;;  %v6390_v7 = vadd.f32 1e-05, %v6358_v25  ;;  %v6341_v13 = vmul.f32 0.0078125, %v6282_v41 }
 0xc6f   : > { %v6284_v42 = vpop.xlane.xlu1 %6283 }
 0xc70   : > { %8208 = vrsqrt.f32 %v6390_v7  ;;  %v6373_v3 = vadd.f32 1e-05, %v6341_v13  ;;  %v6342_v39 = vmul.f32 0.0078125, %v6284_v42 }
 0xc72   : > { %8210 = vrsqrt.f32 %v6373_v3  ;;  %v6374_v21 = vadd.f32 1e-05, %v6342_v39 }
 0xc74   : > { %8212 = vrsqrt.f32 %v6374_v21 }
 0xc78   : > { %v8207_v31 = vpop.eup %8206 }
 0xc79   : > { %v6453_v62 = vmul.f32 %v8207_v31, %v12266_v61 }
 0xc7a   : > { %v8209_v0 = vpop.eup %8208 }
 0xc7b   : > { %v6454_v24 = vmul.f32 %v8209_v0, %v12269_v29  ;;  %v6491_v35 = vmul.f32 %v12388_v17, %v6453_v62 }
 0xc7c   : > { %v8211_v14 = vpop.eup %8210 }
 0xc7d   : > { %v6437_v55 = vmul.f32 %v8211_v14, %v12274_v52  ;;  %v6492_v18 = vmul.f32 %v12388_v17, %v6454_v24  ;;  %v6529_v60 = vadd.f32 %v12396_v2, %v6491_v35 }
 0xc7e   : > { %v8213_v16 = vpop.eup %8212 }
 0xc7f   : > { %v6438_v54 = vmul.f32 %v8213_v16, %v12279_v40  ;;  %v6318_v32 = vpop.xlane.xlu0 %6317  ;;  %v6530_v38 = vadd.f32 %v12396_v2, %v6492_v18  ;;  %v6475_v61 = vmul.f32 %v12388_v17, %v6437_v55 }
 0xc80   : > { %v6359_v49 = vmul.f32 0.0078125, %v6318_v32 }
 0xc81   : > { %v6320_v1 = vpop.xlane.xlu1 %6319  ;;  %v6552_v29 = vpack.c.bf16 %v6530_v38, %v6529_v60  ;;  %v6476_v26 = vmul.f32 %v12388_v17, %v6438_v54  ;;  %v6513_v30 = vadd.f32 %v12396_v2, %v6475_v61 }
 0xc82   : > { %v6391_v20 = vadd.f32 1e-05, %v6359_v49  ;;  %v6360_v5 = vmul.f32 0.0078125, %v6320_v1 }
 0xc83   : > { %v6286_v52 = vpop.xlane.xlu0 %6285  ;;  %7285 = vmatprep.subr.bf16.mxu1 %v6552_v29  ;;  %v6514_v40 = vadd.f32 %v12396_v2, %v6476_v26 }
 0xc84   : > { %8214 = vrsqrt.f32 %v6391_v20  ;;  %v6392_v22 = vadd.f32 1e-05, %v6360_v5  ;;  %v6343_v28 = vmul.f32 0.0078125, %v6286_v52 }
 0xc85   : > { %v6288_v44 = vpop.xlane.xlu1 %6287  ;;  %v6544_v48 = vpack.c.bf16 %v6514_v40, %v6513_v30 }
 0xc86   : > { %8216 = vrsqrt.f32 %v6392_v22  ;;  %v6375_v9 = vadd.f32 1e-05, %v6343_v28  ;;  %v6344_v37 = vmul.f32 0.0078125, %v6288_v44 }
 0xc87   : > { %7286 = vmatpush3.bf16.xpose.msra.mxu1 %v6544_v48 }
 0xc88   : > { %8218 = vrsqrt.f32 %v6375_v9  ;;  %v6376_v15 = vadd.f32 1e-05, %v6344_v37 }
 0xc89   : > { %v6322_v4 = vpop.xlane.xlu0 %6321 }
 0xc8a   : > { %v6361_v47 = vmul.f32 0.0078125, %v6322_v4  ;;  %8220 = vrsqrt.f32 %v6376_v15 }
 0xc8b   : > { %v6324_v43 = vpop.xlane.xlu1 %6323 }
 0xc8c   : > { %v6393_v25 = vadd.f32 1e-05, %v6361_v47  ;;  %v6362_v41 = vmul.f32 0.0078125, %v6324_v43 }
 0xc8d   : > { %v6290_v7 = vpop.xlane.xlu0 %6289 }
 0xc8e   : > { %8222 = vrsqrt.f32 %v6393_v25  ;;  %v6394_v13 = vadd.f32 1e-05, %v6362_v41  ;;  %v6345_v42 = vmul.f32 0.0078125, %v6290_v7  ;;  %v8215_v39 = vpop.eup %8214 }
 0xc8f   : > { %v6292_v3 = vpop.xlane.xlu1 %6291  ;;  %v6455_v0 = vmul.f32 %v8215_v39, %v12286_v23 }
 0xc90   : > { %8224 = vrsqrt.f32 %v6394_v13  ;;  %v6377_v21 = vadd.f32 1e-05, %v6345_v42  ;;  %v6346_v31 = vmul.f32 0.0078125, %v6292_v3  ;;  %v8217_v24 = vpop.eup %8216 }
 0xc91   : > { %v6326_v62 = vpop.xlane.xlu0 %6325  ;;  %v6456_v18 = vmul.f32 %v8217_v24, %v12289_v56  ;;  %v6493_v16 = vmul.f32 %v12388_v17, %v6455_v0 }
 0xc92   : > { %8226 = vrsqrt.f32 %v6377_v21  ;;  %v6378_v35 = vadd.f32 1e-05, %v6346_v31  ;;  %v6363_v14 = vmul.f32 0.0078125, %v6326_v62  ;;  %v8219_v54 = vpop.eup %8218 }
 0xc93   : > { %v6328_v55 = vpop.xlane.xlu1 %6327  ;;  %v6439_v38 = vmul.f32 %v8219_v54, %v12294_v53  ;;  %v6494_v49 = vmul.f32 %v12388_v17, %v6456_v18  ;;  %v6531_v56 = vadd.f32 %v12396_v2, %v6493_v16 }
 0xc94   : > { %8228 = vrsqrt.f32 %v6378_v35  ;;  %v6395_v32 = vadd.f32 1e-05, %v6363_v14  ;;  %v6364_v60 = vmul.f32 0.0078125, %v6328_v55  ;;  %v8221_v1 = vpop.eup %8220 }
 0xc95   : > { %v6294_v61 = vpop.xlane.xlu0 %6293  ;;  %v6440_v26 = vmul.f32 %v8221_v1, %v12299_v33  ;;  %v6532_v5 = vadd.f32 %v12396_v2, %v6494_v49  ;;  %v6477_v52 = vmul.f32 %v12388_v17, %v6439_v38 }
 0xc96   : > { %8230 = vrsqrt.f32 %v6395_v32  ;;  %v6396_v23 = vadd.f32 1e-05, %v6364_v60  ;;  %v6347_v29 = vmul.f32 0.0078125, %v6294_v61 }
 0xc97   : > { %v6296_v20 = vpop.xlane.xlu1 %6295  ;;  %v6553_v28 = vpack.c.bf16 %v6532_v5, %v6531_v56  ;;  %v6478_v44 = vmul.f32 %v12388_v17, %v6440_v26  ;;  %v6515_v15 = vadd.f32 %v12396_v2, %v6477_v52 }
 0xc98   : > { %v8223_v30 = vpop.eup %8222  ;;  %8232 = vrsqrt.f32 %v6396_v23  ;;  %v6379_v40 = vadd.f32 1e-05, %v6347_v29  ;;  %v6348_v53 = vmul.f32 0.0078125, %v6296_v20 }
 0xc99   : > { %v6330_v22 = vpop.xlane.xlu0 %6329  ;;  %v6457_v48 = vmul.f32 %v8223_v30, %v12304_v59  ;;  %7287 = vmatprep.subr.bf16.mxu1 %v6553_v28  ;;  %v6516_v47 = vadd.f32 %v12396_v2, %v6478_v44 }
 0xc9a   : > { %v8225_v9 = vpop.eup %8224  ;;  %8234 = vrsqrt.f32 %v6379_v40  ;;  %v6380_v33 = vadd.f32 1e-05, %v6348_v53  ;;  %v6365_v37 = vmul.f32 0.0078125, %v6330_v22 }
 0xc9b   : > { %v6332_v4 = vpop.xlane.xlu1 %6331  ;;  %v6458_v43 = vmul.f32 %v8225_v9, %v12309_v11  ;;  %v6495_v25 = vmul.f32 %v12388_v17, %v6457_v48  ;;  %v6545_v3 = vpack.c.bf16 %v6516_v47, %v6515_v15 }
 0xc9c   : > { %v8227_v41 = vpop.eup %8226  ;;  %8236 = vrsqrt.f32 %v6380_v33  ;;  %v6397_v7 = vadd.f32 1e-05, %v6365_v37  ;;  %v6366_v13 = vmul.f32 0.0078125, %v6332_v4 }
 0xc9d   : > { %v6441_v59 = vmul.f32 %v8227_v41, %v12314_v27  ;;  %v6298_v42 = vpop.xlane.xlu0 %6297  ;;  %v6496_v39 = vmul.f32 %v12388_v17, %v6458_v43  ;;  %7288 = vmatpush3.bf16.xpose.msra.mxu1 %v6545_v3  ;;  %v6533_v11 = vadd.f32 %v12396_v2, %v6495_v25 }
 0xc9e   : > { %v8229_v21 = vpop.eup %8228  ;;  %8238 = vrsqrt.f32 %v6397_v7  ;;  %v6398_v31 = vadd.f32 1e-05, %v6366_v13  ;;  %v6349_v62 = vmul.f32 0.0078125, %v6298_v42 }
 0xc9f   : > { %v6442_v0 = vmul.f32 %v8229_v21, %v12319_v6  ;;  %v6300_v24 = vpop.xlane.xlu1 %6299  ;;  %v6534_v35 = vadd.f32 %v12396_v2, %v6496_v39  ;;  %v6479_v14 = vmul.f32 %v12388_v17, %v6441_v59 }
 0xca0   : > { %v8231_v55 = vpop.eup %8230  ;;  %8240 = vrsqrt.f32 %v6398_v31  ;;  %v6381_v27 = vadd.f32 1e-05, %v6349_v62  ;;  %v6350_v18 = vmul.f32 0.0078125, %v6300_v24 }
 0xca1   : > { %v6334_v16 = vpop.xlane.xlu0 %6333  ;;  %v6554_v54 = vpack.c.bf16 %v6534_v35, %v6533_v11  ;;  %v6480_v32 = vmul.f32 %v12388_v17, %v6442_v0  ;;  %v6459_v60 = vmul.f32 %v8231_v55, %v12324_v57  ;;  %v6517_v1 = vadd.f32 %v12396_v2, %v6479_v14 }
 0xca2   : > { %v8233_v38 = vpop.eup %8232  ;;  %8242 = vrsqrt.f32 %v6381_v27  ;;  %v6382_v6 = vadd.f32 1e-05, %v6350_v18  ;;  %v6367_v61 = vmul.f32 0.0078125, %v6334_v16 }
 0xca3   : > { %v6336_v49 = vpop.xlane.xlu1 %6335  ;;  %7289 = vmatprep.subr.bf16.mxu1 %v6554_v54  ;;  %v6518_v23 = vadd.f32 %v12396_v2, %v6480_v32  ;;  %v6460_v29 = vmul.f32 %v8233_v38, %v12329_v51  ;;  %v6497_v26 = vmul.f32 %v12388_v17, %v6459_v60 }
 0xca4   : > { %v8235_v20 = vpop.eup %8234  ;;  %8244 = vrsqrt.f32 %v6382_v6  ;;  %v6399_v56 = vadd.f32 1e-05, %v6367_v61  ;;  %v6368_v5 = vmul.f32 0.0078125, %v6336_v49 }
 0xca5   : > { %v6443_v57 = vmul.f32 %v8235_v20, %v12334_v12  ;;  %v6302_v52 = vpop.xlane.xlu0 %6301  ;;  %v6546_v30 = vpack.c.bf16 %v6518_v23, %v6517_v1  ;;  %v6498_v40 = vmul.f32 %v12388_v17, %v6460_v29  ;;  %v6535_v51 = vadd.f32 %v12396_v2, %v6497_v26 }
 0xca6   : > { %v8237_v53 = vpop.eup %8236  ;;  %8246 = vrsqrt.f32 %v6399_v56  ;;  %v6400_v22 = vadd.f32 1e-05, %v6368_v5  ;;  %v6351_v28 = vmul.f32 0.0078125, %v6302_v52  ;;  %v13227_v56 = vld [vmem:[#allocation36_spill] sm:$0xff] }
 0xca7   : > { %v6444_v44 = vmul.f32 %v8237_v53, %v12339_v34  ;;  %v6304_v48 = vpop.xlane.xlu1 %6303  ;;  %7290 = vmatpush3.bf16.xpose.msra.mxu1 %v6546_v30  ;;  %v6536_v9 = vadd.f32 %v12396_v2, %v6498_v40  ;;  %v6481_v33 = vmul.f32 %v12388_v17, %v6443_v57 }
 0xca8   : > { %v8239_v37 = vpop.eup %8238  ;;  %8248 = vrsqrt.f32 %v6400_v22  ;;  %v6383_v12 = vadd.f32 1e-05, %v6351_v28  ;;  %v6352_v4 = vmul.f32 0.0078125, %v6304_v48 }
 0xca9   : > { %v6555_v15 = vpack.c.bf16 %v6536_v9, %v6535_v51  ;;  %v6482_v47 = vmul.f32 %v12388_v17, %v6444_v44  ;;  %v6461_v43 = vmul.f32 %v8239_v37, %v12344_v8  ;;  %v6519_v41 = vadd.f32 %v12396_v2, %v6481_v33 }
 0xcaa   : > { %v8241_v25 = vpop.eup %8240  ;;  %8250 = vrsqrt.f32 %v6383_v12  ;;  %v6384_v34 = vadd.f32 1e-05, %v6352_v4 }
 0xcab   : > { %7291 = vmatprep.subr.bf16.mxu1 %v6555_v15  ;;  %v6520_v7 = vadd.f32 %v12396_v2, %v6482_v47  ;;  %v6462_v13 = vmul.f32 %v8241_v25, %v12349_v36  ;;  %v6499_v59 = vmul.f32 %v12388_v17, %v6461_v43 }
 0xcac   : > { %v8243_v42 = vpop.eup %8242  ;;  %8252 = vrsqrt.f32 %v6384_v34 }
 0xcad   : > { %v6445_v3 = vmul.f32 %v8243_v42, %v12354_v10  ;;  %v6547_v39 = vpack.c.bf16 %v6520_v7, %v6519_v41  ;;  %v6500_v21 = vmul.f32 %v12388_v17, %v6462_v13  ;;  %v6537_v62 = vadd.f32 %v12396_v2, %v6499_v59  ;;  %v6562_v20 = vpop.permute.xlu0 %6561 }
 0xcae   : > { %v8245_v8 = vpop.eup %8244  ;;  %v6567_v5 = vrot.slane %v6562_v20, %v13227_v56 }
 0xcaf   : > { %v6446_v31 = vmul.f32 %v8245_v8, %v12359_v50  ;;  %7292 = vmatpush3.bf16.xpose.msra.mxu1 %v6547_v39  ;;  %v6538_v0 = vadd.f32 %v12396_v2, %v6500_v21  ;;  %v6483_v24 = vmul.f32 %v12388_v17, %v6445_v3 }
 0xcb0   : > { %v8247_v36 = vpop.eup %8246 }
 0xcb1   : > { %v6556_v11 = vpack.c.bf16 %v6538_v0, %v6537_v62  ;;  %v6484_v35 = vmul.f32 %v12388_v17, %v6446_v31  ;;  %v6463_v14 = vmul.f32 %v8247_v36, %v12364_v58  ;;  %v6521_v55 = vadd.f32 %v12396_v2, %v6483_v24 }
 0xcb2   : > { %v8249_v10 = vpop.eup %8248 }
 0xcb3   : > { %7293 = vmatprep.subr.bf16.mxu1 %v6556_v11  ;;  %v6522_v27 = vadd.f32 %v12396_v2, %v6484_v35  ;;  %v6464_v50 = vmul.f32 %v8249_v10, %v12369_v63  ;;  %v6501_v18 = vmul.f32 %v12388_v17, %v6463_v14 }
 0xcb4   : > { %v8251_v16 = vpop.eup %8250 }
 0xcb5   : > { %v6447_v54 = vmul.f32 %v8251_v16, %v12374_v19  ;;  %v6548_v32 = vpack.c.bf16 %v6522_v27, %v6521_v55  ;;  %v6502_v60 = vmul.f32 %v12388_v17, %v6464_v50  ;;  %v6539_v58 = vadd.f32 %v12396_v2, %v6501_v18 }
 0xcb6   : > { %v8253_v38 = vpop.eup %8252 }
 0xcb7   : > { %v6448_v6 = vmul.f32 %v8253_v38, %v12379_v45  ;;  %7294 = vmatpush3.bf16.xpose.msra.mxu1 %v6548_v32  ;;  %v6540_v61 = vadd.f32 %v12396_v2, %v6502_v60  ;;  %v6485_v49 = vmul.f32 %v12388_v17, %v6447_v54  ;;  %v8263_v45 = vmov 1966171168  }
 0xcb8   : > { %v6613_v26 = vunpack.c.l.s4 %v8263_v45 }
 0xcb9   : > { %v6557_v1 = vpack.c.bf16 %v6540_v61, %v6539_v58  ;;  %v6486_v63 = vmul.f32 %v12388_v17, %v6448_v6  ;;  %v6523_v23 = vadd.f32 %v12396_v2, %v6485_v49  ;;  %v13228_v17 = vld [vmem:[#allocation35_spill] sm:$0xff] }
 0xcba   : > { %v6614_v57 = vunpack.c.0.s8 %v6613_v26 }
 0xcbb   : > { %7295 = vmatprep.subr.bf16.mxu1 %v6557_v1  ;;  %v6524_v19 = vadd.f32 %v12396_v2, %v6486_v63 }
 0xcbc   : > { %v6617_v53 = vsub.s32 %v6614_v57, %v13228_v17 }
 0xcbd   : > { %v6549_v29 = vpack.c.bf16 %v6524_v19, %v6523_v23 }
 0xcbf   : > { %7296 = vmatpush3.bf16.xpose.msra.mxu1 %v6549_v29 }
 0xcc6   : > { %7298 = vmatmul.mubr.bf16.vlgmr.msra.gmra.mrb[16].mxu1 %v12422_v46  ;;  %v13229_v46 = vlaneseq }
 0xcc8   : > { %vm6629_vm0 = vcmp.lt.s32.totalorder %v13229_v46, 256 }
 0xd99   : > { %v6602_v52 = vpop.f32.mrb[16].mxu1 }
 0xd9a   : > { %v6604_v30 = vpop.f32.mrb[17].mxu1  ;;  %v6603_v40 = vadd.f32 %v6602_v52, %v6567_v5 }
 0xd9b   : > { %v6605_v22 = vadd.f32 %v6604_v30, %v6567_v5  ;;  %v6606_v28 = vpop.f32.mrb[18].mxu1 }
 0xd9c   : > { %v6607_v44 = vpop.f32.mrb[19].mxu1 }
 0xd9d   : > { %v6611_v2 = vcombine.low %v6603_v40, %v6605_v22 }
 0xd9f   : > { %v6618_v48 = vrot.slane %v6611_v2, %v6617_v53 }
 0xda1   : > { %v6625_v51 = vrot.slane %v6618_v48, %v6617_v53 }
 0xda3   : > { %6631 = vst.msk [vmem:[%s602_s27] sm:$0x3] %vm6629_vm0, %v6625_v51 }
 0xda4 PF: > { %s31_s20 = sadd.s32 1, %s8260_s20  }
 0xda5   : > { %p28_p4 = scmp.ge.s32.totalorder %s31_s20, 4  }
 0xda7   :  { %30 = sbr.rel (!%p28_p4) target bundleno = 5 (0x5), region = 126 }

</bundles_post_ra>
